<compile_context>
chip_gen: v7x
topology: tpu7x:2x2x1
jax: 0.10.0
libtpu: 0.0.40
codegen_flags: <defaults>
</compile_context>

<pallas_src>
import jax
import jax.numpy as jnp
from jax.experimental import pallas as pl
from jax.experimental.pallas import tpu as pltpu

LANE = 128        # TPU lane width (pad FC out dims to this)
HALO_OFF = 8      # sublane-aligned offset of the conv interior inside the halo scratch


def _round_up(x, m):
    return (x + m - 1) // m * m


# --------------------------------------------------------------------------
# Fused conv stack: all conv(3x3, pad=1) + bias + ReLU layers, all ROIs, one launch.
# --------------------------------------------------------------------------
def _make_conv_stack_kernel(N, H, W, chans):
    num_conv = len(chans) - 1

    def kernel(*refs):
        x_ref = refs[0]
        o_ref = refs[1 + 2 * num_conv]
        act = x_ref[...]                                        # (N, H, W, C0)
        for li in range(num_conv):
            w_ref = refs[1 + 2 * li]                            # (3, 3, Cin, Cout)
            b_ref = refs[2 + 2 * li]                            # (1, Cout)
            pad_ref = refs[2 + 2 * num_conv + li]               # (N, H+2, W_ext, Cin)
            cin, cout = chans[li], chans[li + 1]

            # In-kernel zero padding: zero the halo scratch, drop the activation into its
            # tile-aligned interior (sublane offset HALO_OFF = 8 -> aligned stores only).
            pad_ref[...] = jnp.zeros(pad_ref.shape, pad_ref.dtype)
            pad_ref[:, 1:H + 1, HALO_OFF:HALO_OFF + W, :] = act

            # 3x3 conv as 9 accumulating (N*H*W, Cin) x (Cin, Cout) MXU matmuls.
            acc = jnp.zeros((N * H * W, cout), jnp.float32)
            for dy in range(3):
                for dx in range(3):
                    base = HALO_OFF - 1 + dx
                    patch = pad_ref[:, dy:dy + H, base:base + W, :]
                    acc = acc + jnp.dot(patch.reshape(N * H * W, cin), w_ref[dy, dx],
                                        preferred_element_type=jnp.float32)
            act = jnp.maximum(acc + b_ref[...], 0.0).reshape(N, H, W, cout)
        o_ref[...] = act

    return kernel


def conv_stack(x_nhwc, conv_params):
    """All conv+ReLU layers fused in a single pallas_call; all ROIs in one grid step."""
    N, H, W, c0 = x_nhwc.shape
    chans = [c0] + [int(w.shape[-1]) for (w, _) in conv_params]
    w_ext = HALO_OFF + W + 8                                    # interior + left/right halo

    in_specs = [pl.BlockSpec((N, H, W, c0), lambda i: (0, 0, 0, 0))]
    args = [x_nhwc]
    for (w, b) in conv_params:
        in_specs.append(pl.BlockSpec(w.shape, lambda i: (0, 0, 0, 0)))
        in_specs.append(pl.BlockSpec(b.shape, lambda i: (0, 0)))
        args += [w, b]
    c_out = chans[-1]
    scratch = [pltpu.VMEM((N, H + 2, w_ext, c), jnp.float32) for c in chans[:-1]]

    return pl.pallas_call(
        _make_conv_stack_kernel(N, H, W, chans),
        out_shape=jax.ShapeDtypeStruct((N, H, W, c_out), jnp.float32),
        grid=(1,),
        in_specs=in_specs,
        out_specs=pl.BlockSpec((N, H, W, c_out), lambda i: (0, 0, 0, 0)),
        scratch_shapes=scratch,
        compiler_params=pltpu.CompilerParams(dimension_semantics=("arbitrary",)),
    )(*args)


# --------------------------------------------------------------------------
# Fused FC stack: all Linear + ReLU layers, one launch, one MXU pass per layer,
# 128-lane-padded (lane-dense) weights and output.
# --------------------------------------------------------------------------
def _make_fc_stack_kernel(num_fc):
    def kernel(*refs):
        x_ref = refs[0]
        o_ref = refs[1 + 2 * num_fc]
        h = x_ref[...]
        for li in range(num_fc):
            w_ref = refs[1 + 2 * li]
            b_ref = refs[2 + 2 * li]
            h = jnp.dot(h, w_ref[...], preferred_element_type=jnp.float32)
            h = jnp.maximum(h + b_ref[...], 0.0)
        o_ref[...] = h

    return kernel


def fc_stack(x_flat, fc_params):
    N, d_in = x_flat.shape
    in_specs = [pl.BlockSpec((N, d_in), lambda i: (0, 0))]
    args = [x_flat]
    for (w, b) in fc_params:
        in_specs.append(pl.BlockSpec(w.shape, lambda i: (0, 0)))
        in_specs.append(pl.BlockSpec(b.shape, lambda i: (0, 0)))
        args += [w, b]
    d_out = int(fc_params[-1][0].shape[1])

    return pl.pallas_call(
        _make_fc_stack_kernel(len(fc_params)),
        out_shape=jax.ShapeDtypeStruct((N, d_out), jnp.float32),
        grid=(1,),
        in_specs=in_specs,
        out_specs=pl.BlockSpec((N, d_out), lambda i: (0, 0)),
        compiler_params=pltpu.CompilerParams(dimension_semantics=("arbitrary",)),
    )(*args)


# --------------------------------------------------------------------------
# Head forward (inference path -> pred_logits).
# --------------------------------------------------------------------------
def properties_head_forward(kparams, x_nchw, num_classes):
    x = jnp.transpose(x_nchw, (0, 2, 3, 1))                 # one-time NCHW -> NHWC at boundary
    if kparams["convs"]:
        x = conv_stack(x, kparams["convs"])                 # (N, H, W, conv_dim)
    if kparams["fcs"]:
        x = x.reshape(x.shape[0], -1)                       # free NHWC flatten (fc0 rows pre-permuted)
        logits = fc_stack(x, kparams["fcs"])                # (N, 128) lane-dense
        return logits[:, :num_classes]                      # (N, num_classes)
    return jnp.transpose(x, (0, 3, 1, 2))                   # num_fc == 0: conv features (NCHW)


# --------------------------------------------------------------------------
# Parameters: torch-layout init (reference) + conversion to kernel layout.
# --------------------------------------------------------------------------
def init_torch_params(key, in_channels, H, W, num_conv, conv_dim, num_fc, num_classes):
    """PyTorch-layout params (OIHW convs, (out,in) linears), msra/xavier-style fills."""
    convs, fcs = [], []
    cin = in_channels
    for _ in range(num_conv):
        key, k = jax.random.split(key)
        w = jax.random.normal(k, (conv_dim, cin, 3, 3), jnp.float32) * jnp.sqrt(2.0 / (cin * 9))
        convs.append((w, jnp.zeros((conv_dim,), jnp.float32)))
        cin = conv_dim
    feat_c = conv_dim if num_conv > 0 else in_channels
    din = feat_c * H * W
    for _ in range(num_fc):
        key, k = jax.random.split(key)
        limit = jnp.sqrt(3.0 / din)
        w = jax.random.uniform(k, (num_classes, din), jnp.float32, minval=-limit, maxval=limit)
        fcs.append((w, jnp.zeros((num_classes,), jnp.float32)))
        din = num_classes
    return {"convs": convs, "fcs": fcs}


def prepare_kernel_params(tparams, in_channels, H, W):
    """Convert to kernel layout: conv OIHW->HWIO, bias->(1,Cout); fc0 rows permuted from
    torch (C,H,W) flatten order to NHWC (H,W,C) order; fc dims zero-padded to 128 lanes."""
    convs = []
    for (w, b) in tparams["convs"]:
        convs.append((jnp.transpose(w, (2, 3, 1, 0)), b.reshape(1, -1)))

    feat_c = int(tparams["convs"][-1][0].shape[0]) if tparams["convs"] else in_channels
    fcs = []
    prev_pad = None
    for li, (w, b) in enumerate(tparams["fcs"]):
        d_out, d_in = int(w.shape[0]), int(w.shape[1])
        wt = w.T                                            # (Din, Dout)
        if li == 0:
            # NHWC flat index j = (h*W + w)*C + c  ->  torch flat index c*H*W + h*W + w
            j = jnp.arange(d_in)
            c = j % feat_c
            hw = j // feat_c
            torch_rows = c * (H * W) + (hw // W) * W + (hw % W)
            wt = wt[torch_rows]
            rows = d_in
        else:
            rows = prev_pad
        d_out_pad = _round_up(d_out, LANE)
        w_pad = jnp.zeros((rows, d_out_pad), jnp.float32).at[:d_in, :d_out].set(wt)
        b_pad = jnp.zeros((1, d_out_pad), jnp.float32).at[0, :d_out].set(b)
        fcs.append((w_pad, b_pad))
        prev_pad = d_out_pad
    return {"convs": convs, "fcs": fcs}


# --------------------------------------------------------------------------
# Pure-JAX reference of the PyTorch forward (for numerical validation only).
# --------------------------------------------------------------------------
def reference_forward(tparams, x_nchw):
    x = x_nchw
    for (w, b) in tparams["convs"]:
        x = jax.lax.conv_general_dilated(
            x, w, window_strides=(1, 1), padding=((1, 1), (1, 1)),
            dimension_numbers=("NCHW", "OIHW", "NCHW"))
        x = jnp.maximum(x + b[None, :, None, None], 0.0)
    if tparams["fcs"]:
        x = x.reshape(x.shape[0], -1)                       # torch.flatten(start_dim=1) on NCHW
        for (w, b) in tparams["fcs"]:
            x = jnp.maximum(x @ w.T + b[None, :], 0.0)
    return x


if __name__ == "__main__":
    key = jax.random.PRNGKey(0)
    # ROI-head-like shapes: 8 ROIs, 4 input channels, 8x8 pooled features,
    # 2 convs (conv_dim=8), 2 FCs, 16 property classes.
    N, C, H, W = 8, 4, 8, 8
    num_conv, conv_dim = 2, 8
    num_fc, num_classes = 2, 16

    kx, kp = jax.random.split(key)
    x = jax.random.normal(kx, (N, C, H, W), jnp.float32)
    tparams = init_torch_params(kp, C, H, W, num_conv, conv_dim, num_fc, num_classes)
    kparams = prepare_kernel_params(tparams, C, H, W)

    fwd = jax.jit(properties_head_forward, static_argnums=2)
    pred_logits = jax.block_until_ready(fwd(kparams, x, num_classes))
    assert pred_logits.shape == (N, num_classes)

    # Numerical check against a pure-XLA reference of the torch forward.
    ref_logits = jax.block_until_ready(reference_forward(tparams, x))
    err = float(jnp.max(jnp.abs(pred_logits - ref_logits)))
    tol = 0.1 * max(1.0, float(jnp.max(jnp.abs(ref_logits))))
    assert err < tol, f"kernel/reference mismatch: max_abs_err={err}, tol={tol}"

    # property_rcnn_inference starts from sigmoid(pred_logits):
    pred_prob = jax.block_until_ready(jax.nn.sigmoid(pred_logits))
    # TODO(synk): the remaining property_rcnn_inference logic (per-ROI variable-length
    # top-k over prob > 0.5 written into detectron2 Instances) and property_rcnn_loss are
    # host-side Python / training-time code with data-dependent sizes; they stay outside
    # the Pallas kernels.

    print("KERNEL_OK")
</pallas_src>

<mosaic_0001>
module attributes {stable_mosaic.version = 11 : i64} {
  func.func @kernel(%arg0: i32, %arg1: memref<8x512xf32, #tpu.memory_space<vmem>>, %arg2: memref<512x128xf32, #tpu.memory_space<vmem>>, %arg3: memref<1x128xf32, #tpu.memory_space<vmem>>, %arg4: memref<128x128xf32, #tpu.memory_space<vmem>>, %arg5: memref<1x128xf32, #tpu.memory_space<vmem>>, %arg6: memref<8x128xf32, #tpu.memory_space<vmem>>) attributes {dimension_semantics = [#tpu.dimension_semantics<arbitrary>], iteration_bounds = array<i64: 1>, scalar_prefetch = 0 : i64, scratch_operands = 0 : i64, tpu.core_type = #tpu.core_type<tc>, window_params = [{pipeline_mode = #tpu.pipeline_mode<synchronous>, transform_indices = @transform_0, window_bounds = array<i64: 8, 512>}, {pipeline_mode = #tpu.pipeline_mode<synchronous>, transform_indices = @transform_1, window_bounds = array<i64: 512, 128>}, {pipeline_mode = #tpu.pipeline_mode<synchronous>, transform_indices = @transform_2, window_bounds = array<i64: 1, 128>}, {pipeline_mode = #tpu.pipeline_mode<synchronous>, transform_indices = @transform_3, window_bounds = array<i64: 128, 128>}, {pipeline_mode = #tpu.pipeline_mode<synchronous>, transform_indices = @transform_4, window_bounds = array<i64: 1, 128>}, {pipeline_mode = #tpu.pipeline_mode<synchronous>, transform_indices = @transform_5, window_bounds = array<i64: 8, 128>}]} {
    %c0 = arith.constant 0 : index
    %c0_0 = arith.constant 0 : index
    %0 = vector.load %arg1[%c0, %c0_0] : memref<8x512xf32, #tpu.memory_space<vmem>>, vector<8x512xf32>
    %c0_1 = arith.constant 0 : index
    %c0_2 = arith.constant 0 : index
    %1 = vector.load %arg2[%c0_1, %c0_2] : memref<512x128xf32, #tpu.memory_space<vmem>>, vector<512x128xf32>
    %cst = arith.constant dense<0.000000e+00> : vector<8x128xf32>
    %2 = tpu.matmul %0, %1, %cst {dimension_numbers = #tpu.dot_dimension_numbers<[1], [0], [0], [1], [0, 0, 1, 1], [], []>} : vector<8x512xf32>, vector<512x128xf32>, vector<8x128xf32> -> vector<8x128xf32>
    %c0_3 = arith.constant 0 : index
    %c0_4 = arith.constant 0 : index
    %3 = vector.load %arg3[%c0_3, %c0_4] : memref<1x128xf32, #tpu.memory_space<vmem>>, vector<1x128xf32>
    %4 = vector.broadcast %3 : vector<1x128xf32> to vector<8x128xf32>
    %5 = arith.addf %2, %4 : vector<8x128xf32>
    %cst_5 = arith.constant 0.000000e+00 : f32
    %6 = vector.broadcast %cst_5 : f32 to vector<8x128xf32>
    %7 = arith.maximumf %5, %6 : vector<8x128xf32>
    %c0_6 = arith.constant 0 : index
    %c0_7 = arith.constant 0 : index
    %8 = vector.load %arg4[%c0_6, %c0_7] : memref<128x128xf32, #tpu.memory_space<vmem>>, vector<128x128xf32>
    %cst_8 = arith.constant dense<0.000000e+00> : vector<8x128xf32>
    %9 = tpu.matmul %7, %8, %cst_8 {dimension_numbers = #tpu.dot_dimension_numbers<[1], [0], [0], [1], [0, 0, 1, 1], [], []>} : vector<8x128xf32>, vector<128x128xf32>, vector<8x128xf32> -> vector<8x128xf32>
    %c0_9 = arith.constant 0 : index
    %c0_10 = arith.constant 0 : index
    %10 = vector.load %arg5[%c0_9, %c0_10] : memref<1x128xf32, #tpu.memory_space<vmem>>, vector<1x128xf32>
    %11 = vector.broadcast %10 : vector<1x128xf32> to vector<8x128xf32>
    %12 = arith.addf %9, %11 : vector<8x128xf32>
    %cst_11 = arith.constant 0.000000e+00 : f32
    %13 = vector.broadcast %cst_11 : f32 to vector<8x128xf32>
    %14 = arith.maximumf %12, %13 : vector<8x128xf32>
    %c0_12 = arith.constant 0 : index
    %c0_13 = arith.constant 0 : index
    %15 = vector.load %arg6[%c0_12, %c0_13] : memref<8x128xf32, #tpu.memory_space<vmem>>, vector<8x128xf32>
    tpu.vector_store %arg6[%c0_12, %c0_13], %14 {strides = array<i32>} : memref<8x128xf32, #tpu.memory_space<vmem>>, vector<8x128xf32>,
    return
  }
  func.func @transform_0(%arg0: i32) -> (i32, i32) {
    %c0_i32 = arith.constant 0 : i32
    %c0_i32_0 = arith.constant 0 : i32
    %c0_i32_1 = arith.constant 0 : i32
    return %c0_i32, %c0_i32_0 : i32, i32
  }
  func.func @transform_1(%arg0: i32) -> (i32, i32) {
    %c0_i32 = arith.constant 0 : i32
    %c0_i32_0 = arith.constant 0 : i32
    %c0_i32_1 = arith.constant 0 : i32
    return %c0_i32, %c0_i32_0 : i32, i32
  }
  func.func @transform_2(%arg0: i32) -> (i32, i32) {
    %c0_i32 = arith.constant 0 : i32
    %c0_i32_0 = arith.constant 0 : i32
    %c0_i32_1 = arith.constant 0 : i32
    return %c0_i32, %c0_i32_0 : i32, i32
  }
  func.func @transform_3(%arg0: i32) -> (i32, i32) {
    %c0_i32 = arith.constant 0 : i32
    %c0_i32_0 = arith.constant 0 : i32
    %c0_i32_1 = arith.constant 0 : i32
    return %c0_i32, %c0_i32_0 : i32, i32
  }
  func.func @transform_4(%arg0: i32) -> (i32, i32) {
    %c0_i32 = arith.constant 0 : i32
    %c0_i32_0 = arith.constant 0 : i32
    %c0_i32_1 = arith.constant 0 : i32
    return %c0_i32, %c0_i32_0 : i32, i32
  }
  func.func @transform_5(%arg0: i32) -> (i32, i32) {
    %c0_i32 = arith.constant 0 : i32
    %c0_i32_0 = arith.constant 0 : i32
    %c0_i32_1 = arith.constant 0 : i32
    return %c0_i32, %c0_i32_0 : i32, i32
  }
}

module attributes {stable_mosaic.version = 11 : i64} {
  func.func @kernel(%arg0: i32, %arg1: memref<8x8x8x4xf32, #tpu.memory_space<vmem>>, %arg2: memref<3x3x4x8xf32, #tpu.memory_space<vmem>>, %arg3: memref<1x8xf32, #tpu.memory_space<vmem>>, %arg4: memref<3x3x8x8xf32, #tpu.memory_space<vmem>>, %arg5: memref<1x8xf32, #tpu.memory_space<vmem>>, %arg6: memref<8x8x8x8xf32, #tpu.memory_space<vmem>>, %arg7: memref<8x10x24x4xf32, #tpu.memory_space<vmem>>, %arg8: memref<8x10x24x8xf32, #tpu.memory_space<vmem>>) attributes {dimension_semantics = [#tpu.dimension_semantics<arbitrary>], iteration_bounds = array<i64: 1>, scalar_prefetch = 0 : i64, scratch_operands = 2 : i64, tpu.core_type = #tpu.core_type<tc>, window_params = [{pipeline_mode = #tpu.pipeline_mode<synchronous>, transform_indices = @transform_0, window_bounds = array<i64: 8, 8, 8, 4>}, {pipeline_mode = #tpu.pipeline_mode<synchronous>, transform_indices = @transform_1, window_bounds = array<i64: 3, 3, 4, 8>}, {pipeline_mode = #tpu.pipeline_mode<synchronous>, transform_indices = @transform_2, window_bounds = array<i64: 1, 8>}, {pipeline_mode = #tpu.pipeline_mode<synchronous>, transform_indices = @transform_3, window_bounds = array<i64: 3, 3, 8, 8>}, {pipeline_mode = #tpu.pipeline_mode<synchronous>, transform_indices = @transform_4, window_bounds = array<i64: 1, 8>}, {pipeline_mode = #tpu.pipeline_mode<synchronous>, transform_indices = @transform_5, window_bounds = array<i64: 8, 8, 8, 8>}]} {
    %c0 = arith.constant 0 : index
    %c0_0 = arith.constant 0 : index
    %c0_1 = arith.constant 0 : index
    %c0_2 = arith.constant 0 : index
    %0 = vector.load %arg1[%c0, %c0_0, %c0_1, %c0_2] : memref<8x8x8x4xf32, #tpu.memory_space<vmem>>, vector<8x8x8x4xf32>
    %cst = arith.constant 0.000000e+00 : f32
    %1 = vector.broadcast %cst : f32 to vector<8x10x24x4xf32>
    %c0_3 = arith.constant 0 : index
    %c0_4 = arith.constant 0 : index
    %c0_5 = arith.constant 0 : index
    %c0_6 = arith.constant 0 : index
    %2 = vector.load %arg7[%c0_3, %c0_4, %c0_5, %c0_6] : memref<8x10x24x4xf32, #tpu.memory_space<vmem>>, vector<8x10x24x4xf32>
    tpu.vector_store %arg7[%c0_3, %c0_4, %c0_5, %c0_6], %1 {strides = array<i32>} : memref<8x10x24x4xf32, #tpu.memory_space<vmem>>, vector<8x10x24x4xf32>,
    %c0_7 = arith.constant 0 : index
    %c1 = arith.constant 1 : index
    %c8 = arith.constant 8 : index
    %c0_8 = arith.constant 0 : index
    %3 = vector.load %arg7[%c0_7, %c1, %c8, %c0_8] : memref<8x10x24x4xf32, #tpu.memory_space<vmem>>, vector<8x8x8x4xf32>
    tpu.vector_store %arg7[%c0_7, %c1, %c8, %c0_8], %0 {strides = array<i32>} : memref<8x10x24x4xf32, #tpu.memory_space<vmem>>, vector<8x8x8x4xf32>,
    %cst_9 = arith.constant 0.000000e+00 : f32
    %4 = vector.broadcast %cst_9 : f32 to vector<512x8xf32>
    %c0_10 = arith.constant 0 : index
    %c0_11 = arith.constant 0 : index
    %c7 = arith.constant 7 : index
    %c0_12 = arith.constant 0 : index
    %5 = vector.load %arg7[%c0_10, %c0_11, %c7, %c0_12] : memref<8x10x24x4xf32, #tpu.memory_space<vmem>>, vector<8x8x8x4xf32>
    %6 = vector.shape_cast %5 : vector<8x8x8x4xf32> to vector<512x4xf32>
    %c0_13 = arith.constant 0 : index
    %c0_14 = arith.constant 0 : index
    %c0_15 = arith.constant 0 : index
    %c0_16 = arith.constant 0 : index
    %7 = vector.load %arg2[%c0_13, %c0_14, %c0_15, %c0_16] : memref<3x3x4x8xf32, #tpu.memory_space<vmem>>, vector<1x1x4x8xf32>
    %8 = vector.shape_cast %7 : vector<1x1x4x8xf32> to vector<4x8xf32>
    %cst_17 = arith.constant dense<0.000000e+00> : vector<512x8xf32>
    %9 = tpu.matmul %6, %8, %cst_17 {dimension_numbers = #tpu.dot_dimension_numbers<[1], [0], [0], [1], [0, 0, 1, 1], [], []>} : vector<512x4xf32>, vector<4x8xf32>, vector<512x8xf32> -> vector<512x8xf32>
    %10 = arith.addf %4, %9 : vector<512x8xf32>
    %c0_18 = arith.constant 0 : index
    %c0_19 = arith.constant 0 : index
    %c8_20 = arith.constant 8 : index
    %c0_21 = arith.constant 0 : index
    %11 = vector.load %arg7[%c0_18, %c0_19, %c8_20, %c0_21] : memref<8x10x24x4xf32, #tpu.memory_space<vmem>>, vector<8x8x8x4xf32>
    %12 = vector.shape_cast %11 : vector<8x8x8x4xf32> to vector<512x4xf32>
    %c0_22 = arith.constant 0 : index
    %c1_23 = arith.constant 1 : index
    %c0_24 = arith.constant 0 : index
    %c0_25 = arith.constant 0 : index
    %13 = vector.load %arg2[%c0_22, %c1_23, %c0_24, %c0_25] : memref<3x3x4x8xf32, #tpu.memory_space<vmem>>, vector<1x1x4x8xf32>
    %14 = vector.shape_cast %13 : vector<1x1x4x8xf32> to vector<4x8xf32>
    %cst_26 = arith.constant dense<0.000000e+00> : vector<512x8xf32>
    %15 = tpu.matmul %12, %14, %cst_26 {dimension_numbers = #tpu.dot_dimension_numbers<[1], [0], [0], [1], [0, 0, 1, 1], [], []>} : vector<512x4xf32>, vector<4x8xf32>, vector<512x8xf32> -> vector<512x8xf32>
    %16 = arith.addf %10, %15 : vector<512x8xf32>
    %c0_27 = arith.constant 0 : index
    %c0_28 = arith.constant 0 : index
    %c9 = arith.constant 9 : index
    %c0_29 = arith.constant 0 : index
    %17 = vector.load %arg7[%c0_27, %c0_28, %c9, %c0_29] : memref<8x10x24x4xf32, #tpu.memory_space<vmem>>, vector<8x8x8x4xf32>
    %18 = vector.shape_cast %17 : vector<8x8x8x4xf32> to vector<512x4xf32>
    %c0_30 = arith.constant 0 : index
    %c2 = arith.constant 2 : index
    %c0_31 = arith.constant 0 : index
    %c0_32 = arith.constant 0 : index
    %19 = vector.load %arg2[%c0_30, %c2, %c0_31, %c0_32] : memref<3x3x4x8xf32, #tpu.memory_space<vmem>>, vector<1x1x4x8xf32>
    %20 = vector.shape_cast %19 : vector<1x1x4x8xf32> to vector<4x8xf32>
    %cst_33 = arith.constant dense<0.000000e+00> : vector<512x8xf32>
    %21 = tpu.matmul %18, %20, %cst_33 {dimension_numbers = #tpu.dot_dimension_numbers<[1], [0], [0], [1], [0, 0, 1, 1], [], []>} : vector<512x4xf32>, vector<4x8xf32>, vector<512x8xf32> -> vector<512x8xf32>
    %22 = arith.addf %16, %21 : vector<512x8xf32>
    %c0_34 = arith.constant 0 : index
    %c1_35 = arith.constant 1 : index
    %c7_36 = arith.constant 7 : index
    %c0_37 = arith.constant 0 : index
    %23 = vector.load %arg7[%c0_34, %c1_35, %c7_36, %c0_37] : memref<8x10x24x4xf32, #tpu.memory_space<vmem>>, vector<8x8x8x4xf32>
    %24 = vector.shape_cast %23 : vector<8x8x8x4xf32> to vector<512x4xf32>
    %c1_38 = arith.constant 1 : index
    %c0_39 = arith.constant 0 : index
    %c0_40 = arith.constant 0 : index
    %c0_41 = arith.constant 0 : index
    %25 = vector.load %arg2[%c1_38, %c0_39, %c0_40, %c0_41] : memref<3x3x4x8xf32, #tpu.memory_space<vmem>>, vector<1x1x4x8xf32>
    %26 = vector.shape_cast %25 : vector<1x1x4x8xf32> to vector<4x8xf32>
    %cst_42 = arith.constant dense<0.000000e+00> : vector<512x8xf32>
    %27 = tpu.matmul %24, %26, %cst_42 {dimension_numbers = #tpu.dot_dimension_numbers<[1], [0], [0], [1], [0, 0, 1, 1], [], []>} : vector<512x4xf32>, vector<4x8xf32>, vector<512x8xf32> -> vector<512x8xf32>
    %28 = arith.addf %22, %27 : vector<512x8xf32>
    %c0_43 = arith.constant 0 : index
    %c1_44 = arith.constant 1 : index
    %c8_45 = arith.constant 8 : index
    %c0_46 = arith.constant 0 : index
    %29 = vector.load %arg7[%c0_43, %c1_44, %c8_45, %c0_46] : memref<8x10x24x4xf32, #tpu.memory_space<vmem>>, vector<8x8x8x4xf32>
    %30 = vector.shape_cast %29 : vector<8x8x8x4xf32> to vector<512x4xf32>
    %c1_47 = arith.constant 1 : index
    %c1_48 = arith.constant 1 : index
    %c0_49 = arith.constant 0 : index
    %c0_50 = arith.constant 0 : index
    %31 = vector.load %arg2[%c1_47, %c1_48, %c0_49, %c0_50] : memref<3x3x4x8xf32, #tpu.memory_space<vmem>>, vector<1x1x4x8xf32>
    %32 = vector.shape_cast %31 : vector<1x1x4x8xf32> to vector<4x8xf32>
    %cst_51 = arith.constant dense<0.000000e+00> : vector<512x8xf32>
    %33 = tpu.matmul %30, %32, %cst_51 {dimension_numbers = #tpu.dot_dimension_numbers<[1], [0], [0], [1], [0, 0, 1, 1], [], []>} : vector<512x4xf32>, vector<4x8xf32>, vector<512x8xf32> -> vector<512x8xf32>
    %34 = arith.addf %28, %33 : vector<512x8xf32>
    %c0_52 = arith.constant 0 : index
    %c1_53 = arith.constant 1 : index
    %c9_54 = arith.constant 9 : index
    %c0_55 = arith.constant 0 : index
    %35 = vector.load %arg7[%c0_52, %c1_53, %c9_54, %c0_55] : memref<8x10x24x4xf32, #tpu.memory_space<vmem>>, vector<8x8x8x4xf32>
    %36 = vector.shape_cast %35 : vector<8x8x8x4xf32> to vector<512x4xf32>
    %c1_56 = arith.constant 1 : index
    %c2_57 = arith.constant 2 : index
    %c0_58 = arith.constant 0 : index
    %c0_59 = arith.constant 0 : index
    %37 = vector.load %arg2[%c1_56, %c2_57, %c0_58, %c0_59] : memref<3x3x4x8xf32, #tpu.memory_space<vmem>>, vector<1x1x4x8xf32>
    %38 = vector.shape_cast %37 : vector<1x1x4x8xf32> to vector<4x8xf32>
    %cst_60 = arith.constant dense<0.000000e+00> : vector<512x8xf32>
    %39 = tpu.matmul %36, %38, %cst_60 {dimension_numbers = #tpu.dot_dimension_numbers<[1], [0], [0], [1], [0, 0, 1, 1], [], []>} : vector<512x4xf32>, vector<4x8xf32>, vector<512x8xf32> -> vector<512x8xf32>
    %40 = arith.addf %34, %39 : vector<512x8xf32>
    %c0_61 = arith.constant 0 : index
    %c2_62 = arith.constant 2 : index
    %c7_63 = arith.constant 7 : index
    %c0_64 = arith.constant 0 : index
    %41 = vector.load %arg7[%c0_61, %c2_62, %c7_63, %c0_64] : memref<8x10x24x4xf32, #tpu.memory_space<vmem>>, vector<8x8x8x4xf32>
    %42 = vector.shape_cast %41 : vector<8x8x8x4xf32> to vector<512x4xf32>
    %c2_65 = arith.constant 2 : index
    %c0_66 = arith.constant 0 : index
    %c0_67 = arith.constant 0 : index
    %c0_68 = arith.constant 0 : index
    %43 = vector.load %arg2[%c2_65, %c0_66, %c0_67, %c0_68] : memref<3x3x4x8xf32, #tpu.memory_space<vmem>>, vector<1x1x4x8xf32>
    %44 = vector.shape_cast %43 : vector<1x1x4x8xf32> to vector<4x8xf32>
    %cst_69 = arith.constant dense<0.000000e+00> : vector<512x8xf32>
    %45 = tpu.matmul %42, %44, %cst_69 {dimension_numbers = #tpu.dot_dimension_numbers<[1], [0], [0], [1], [0, 0, 1, 1], [], []>} : vector<512x4xf32>, vector<4x8xf32>, vector<512x8xf32> -> vector<512x8xf32>
    %46 = arith.addf %40, %45 : vector<512x8xf32>
    %c0_70 = arith.constant 0 : index
    %c2_71 = arith.constant 2 : index
    %c8_72 = arith.constant 8 : index
    %c0_73 = arith.constant 0 : index
    %47 = vector.load %arg7[%c0_70, %c2_71, %c8_72, %c0_73] : memref<8x10x24x4xf32, #tpu.memory_space<vmem>>, vector<8x8x8x4xf32>
    %48 = vector.shape_cast %47 : vector<8x8x8x4xf32> to vector<512x4xf32>
    %c2_74 = arith.constant 2 : index
    %c1_75 = arith.constant 1 : index
    %c0_76 = arith.constant 0 : index
    %c0_77 = arith.constant 0 : index
    %49 = vector.load %arg2[%c2_74, %c1_75, %c0_76, %c0_77] : memref<3x3x4x8xf32, #tpu.memory_space<vmem>>, vector<1x1x4x8xf32>
    %50 = vector.shape_cast %49 : vector<1x1x4x8xf32> to vector<4x8xf32>
    %cst_78 = arith.constant dense<0.000000e+00> : vector<512x8xf32>
    %51 = tpu.matmul %48, %50, %cst_78 {dimension_numbers = #tpu.dot_dimension_numbers<[1], [0], [0], [1], [0, 0, 1, 1], [], []>} : vector<512x4xf32>, vector<4x8xf32>, vector<512x8xf32> -> vector<512x8xf32>
    %52 = arith.addf %46, %51 : vector<512x8xf32>
    %c0_79 = arith.constant 0 : index
    %c2_80 = arith.constant 2 : index
    %c9_81 = arith.constant 9 : index
    %c0_82 = arith.constant 0 : index
    %53 = vector.load %arg7[%c0_79, %c2_80, %c9_81, %c0_82] : memref<8x10x24x4xf32, #tpu.memory_space<vmem>>, vector<8x8x8x4xf32>
    %54 = vector.shape_cast %53 : vector<8x8x8x4xf32> to vector<512x4xf32>
    %c2_83 = arith.constant 2 : index
    %c2_84 = arith.constant 2 : index
    %c0_85 = arith.constant 0 : index
    %c0_86 = arith.constant 0 : index
    %55 = vector.load %arg2[%c2_83, %c2_84, %c0_85, %c0_86] : memref<3x3x4x8xf32, #tpu.memory_space<vmem>>, vector<1x1x4x8xf32>
    %56 = vector.shape_cast %55 : vector<1x1x4x8xf32> to vector<4x8xf32>
    %cst_87 = arith.constant dense<0.000000e+00> : vector<512x8xf32>
    %57 = tpu.matmul %54, %56, %cst_87 {dimension_numbers = #tpu.dot_dimension_numbers<[1], [0], [0], [1], [0, 0, 1, 1], [], []>} : vector<512x4xf32>, vector<4x8xf32>, vector<512x8xf32> -> vector<512x8xf32>
    %58 = arith.addf %52, %57 : vector<512x8xf32>
    %c0_88 = arith.constant 0 : index
    %c0_89 = arith.constant 0 : index
    %59 = vector.load %arg3[%c0_88, %c0_89] : memref<1x8xf32, #tpu.memory_space<vmem>>, vector<1x8xf32>
    %60 = vector.broadcast %59 : vector<1x8xf32> to vector<512x8xf32>
    %61 = arith.addf %58, %60 : vector<512x8xf32>
    %cst_90 = arith.constant 0.000000e+00 : f32
    %62 = vector.broadcast %cst_90 : f32 to vector<512x8xf32>
    %63 = arith.maximumf %61, %62 : vector<512x8xf32>
    %64 = vector.shape_cast %63 : vector<512x8xf32> to vector<8x8x8x8xf32>
    %cst_91 = arith.constant 0.000000e+00 : f32
    %65 = vector.broadcast %cst_91 : f32 to vector<8x10x24x8xf32>
    %c0_92 = arith.constant 0 : index
    %c0_93 = arith.constant 0 : index
    %c0_94 = arith.constant 0 : index
    %c0_95 = arith.constant 0 : index
    %66 = vector.load %arg8[%c0_92, %c0_93, %c0_94, %c0_95] : memref<8x10x24x8xf32, #tpu.memory_space<vmem>>, vector<8x10x24x8xf32>
    tpu.vector_store %arg8[%c0_92, %c0_93, %c0_94, %c0_95], %65 {strides = array<i32>} : memref<8x10x24x8xf32, #tpu.memory_space<vmem>>, vector<8x10x24x8xf32>,
    %c0_96 = arith.constant 0 : index
    %c1_97 = arith.constant 1 : index
    %c8_98 = arith.constant 8 : index
    %c0_99 = arith.constant 0 : index
    %67 = vector.load %arg8[%c0_96, %c1_97, %c8_98, %c0_99] : memref<8x10x24x8xf32, #tpu.memory_space<vmem>>, vector<8x8x8x8xf32>
    tpu.vector_store %arg8[%c0_96, %c1_97, %c8_98, %c0_99], %64 {strides = array<i32>} : memref<8x10x24x8xf32, #tpu.memory_space<vmem>>, vector<8x8x8x8xf32>,
    %cst_100 = arith.constant 0.000000e+00 : f32
    %68 = vector.broadcast %cst_100 : f32 to vector<512x8xf32>
    %c0_101 = arith.constant 0 : index
    %c0_102 = arith.constant 0 : index
    %c7_103 = arith.constant 7 : index
    %c0_104 = arith.constant 0 : index
    %69 = vector.load %arg8[%c0_101, %c0_102, %c7_103, %c0_104] : memref<8x10x24x8xf32, #tpu.memory_space<vmem>>, vector<8x8x8x8xf32>
    %70 = vector.shape_cast %69 : vector<8x8x8x8xf32> to vector<512x8xf32>
    %c0_105 = arith.constant 0 : index
    %c0_106 = arith.constant 0 : index
    %c0_107 = arith.constant 0 : index
    %c0_108 = arith.constant 0 : index
    %71 = vector.load %arg4[%c0_105, %c0_106, %c0_107, %c0_108] : memref<3x3x8x8xf32, #tpu.memory_space<vmem>>, vector<1x1x8x8xf32>
    %72 = vector.shape_cast %71 : vector<1x1x8x8xf32> to vector<8x8xf32>
    %cst_109 = arith.constant dense<0.000000e+00> : vector<512x8xf32>
    %73 = tpu.matmul %70, %72, %cst_109 {dimension_numbers = #tpu.dot_dimension_numbers<[1], [0], [0], [1], [0, 0, 1, 1], [], []>} : vector<512x8xf32>, vector<8x8xf32>, vector<512x8xf32> -> vector<512x8xf32>
    %74 = arith.addf %68, %73 : vector<512x8xf32>
    %c0_110 = arith.constant 0 : index
    %c0_111 = arith.constant 0 : index
    %c8_112 = arith.constant 8 : index
    %c0_113 = arith.constant 0 : index
    %75 = vector.load %arg8[%c0_110, %c0_111, %c8_112, %c0_113] : memref<8x10x24x8xf32, #tpu.memory_space<vmem>>, vector<8x8x8x8xf32>
    %76 = vector.shape_cast %75 : vector<8x8x8x8xf32> to vector<512x8xf32>
    %c0_114 = arith.constant 0 : index
    %c1_115 = arith.constant 1 : index
    %c0_116 = arith.constant 0 : index
    %c0_117 = arith.constant 0 : index
    %77 = vector.load %arg4[%c0_114, %c1_115, %c0_116, %c0_117] : memref<3x3x8x8xf32, #tpu.memory_space<vmem>>, vector<1x1x8x8xf32>
    %78 = vector.shape_cast %77 : vector<1x1x8x8xf32> to vector<8x8xf32>
    %cst_118 = arith.constant dense<0.000000e+00> : vector<512x8xf32>
    %79 = tpu.matmul %76, %78, %cst_118 {dimension_numbers = #tpu.dot_dimension_numbers<[1], [0], [0], [1], [0, 0, 1, 1], [], []>} : vector<512x8xf32>, vector<8x8xf32>, vector<512x8xf32> -> vector<512x8xf32>
    %80 = arith.addf %74, %79 : vector<512x8xf32>
    %c0_119 = arith.constant 0 : index
    %c0_120 = arith.constant 0 : index
    %c9_121 = arith.constant 9 : index
    %c0_122 = arith.constant 0 : index
    %81 = vector.load %arg8[%c0_119, %c0_120, %c9_121, %c0_122] : memref<8x10x24x8xf32, #tpu.memory_space<vmem>>, vector<8x8x8x8xf32>
    %82 = vector.shape_cast %81 : vector<8x8x8x8xf32> to vector<512x8xf32>
    %c0_123 = arith.constant 0 : index
    %c2_124 = arith.constant 2 : index
    %c0_125 = arith.constant 0 : index
    %c0_126 = arith.constant 0 : index
    %83 = vector.load %arg4[%c0_123, %c2_124, %c0_125, %c0_126] : memref<3x3x8x8xf32, #tpu.memory_space<vmem>>, vector<1x1x8x8xf32>
    %84 = vector.shape_cast %83 : vector<1x1x8x8xf32> to vector<8x8xf32>
    %cst_127 = arith.constant dense<0.000000e+00> : vector<512x8xf32>
    %85 = tpu.matmul %82, %84, %cst_127 {dimension_numbers = #tpu.dot_dimension_numbers<[1], [0], [0], [1], [0, 0, 1, 1], [], []>} : vector<512x8xf32>, vector<8x8xf32>, vector<512x8xf32> -> vector<512x8xf32>
    %86 = arith.addf %80, %85 : vector<512x8xf32>
    %c0_128 = arith.constant 0 : index
    %c1_129 = arith.constant 1 : index
    %c7_130 = arith.constant 7 : index
    %c0_131 = arith.constant 0 : index
    %87 = vector.load %arg8[%c0_128, %c1_129, %c7_130, %c0_131] : memref<8x10x24x8xf32, #tpu.memory_space<vmem>>, vector<8x8x8x8xf32>
    %88 = vector.shape_cast %87 : vector<8x8x8x8xf32> to vector<512x8xf32>
    %c1_132 = arith.constant 1 : index
    %c0_133 = arith.constant 0 : index
    %c0_134 = arith.constant 0 : index
    %c0_135 = arith.constant 0 : index
    %89 = vector.load %arg4[%c1_132, %c0_133, %c0_134, %c0_135] : memref<3x3x8x8xf32, #tpu.memory_space<vmem>>, vector<1x1x8x8xf32>
    %90 = vector.shape_cast %89 : vector<1x1x8x8xf32> to vector<8x8xf32>
    %cst_136 = arith.constant dense<0.000000e+00> : vector<512x8xf32>
    %91 = tpu.matmul %88, %90, %cst_136 {dimension_numbers = #tpu.dot_dimension_numbers<[1], [0], [0], [1], [0, 0, 1, 1], [], []>} : vector<512x8xf32>, vector<8x8xf32>, vector<512x8xf32> -> vector<512x8xf32>
    %92 = arith.addf %86, %91 : vector<512x8xf32>
    %c0_137 = arith.constant 0 : index
    %c1_138 = arith.constant 1 : index
    %c8_139 = arith.constant 8 : index
    %c0_140 = arith.constant 0 : index
    %93 = vector.load %arg8[%c0_137, %c1_138, %c8_139, %c0_140] : memref<8x10x24x8xf32, #tpu.memory_space<vmem>>, vector<8x8x8x8xf32>
    %94 = vector.shape_cast %93 : vector<8x8x8x8xf32> to vector<512x8xf32>
    %c1_141 = arith.constant 1 : index
    %c1_142 = arith.constant 1 : index
    %c0_143 = arith.constant 0 : index
    %c0_144 = arith.constant 0 : index
    %95 = vector.load %arg4[%c1_141, %c1_142, %c0_143, %c0_144] : memref<3x3x8x8xf32, #tpu.memory_space<vmem>>, vector<1x1x8x8xf32>
    %96 = vector.shape_cast %95 : vector<1x1x8x8xf32> to vector<8x8xf32>
    %cst_145 = arith.constant dense<0.000000e+00> : vector<512x8xf32>
    %97 = tpu.matmul %94, %96, %cst_145 {dimension_numbers = #tpu.dot_dimension_numbers<[1], [0], [0], [1], [0, 0, 1, 1], [], []>} : vector<512x8xf32>, vector<8x8xf32>, vector<512x8xf32> -> vector<512x8xf32>
    %98 = arith.addf %92, %97 : vector<512x8xf32>
    %c0_146 = arith.constant 0 : index
    %c1_147 = arith.constant 1 : index
    %c9_148 = arith.constant 9 : index
    %c0_149 = arith.constant 0 : index
    %99 = vector.load %arg8[%c0_146, %c1_147, %c9_148, %c0_149] : memref<8x10x24x8xf32, #tpu.memory_space<vmem>>, vector<8x8x8x8xf32>
    %100 = vector.shape_cast %99 : vector<8x8x8x8xf32> to vector<512x8xf32>
    %c1_150 = arith.constant 1 : index
    %c2_151 = arith.constant 2 : index
    %c0_152 = arith.constant 0 : index
    %c0_153 = arith.constant 0 : index
    %101 = vector.load %arg4[%c1_150, %c2_151, %c0_152, %c0_153] : memref<3x3x8x8xf32, #tpu.memory_space<vmem>>, vector<1x1x8x8xf32>
    %102 = vector.shape_cast %101 : vector<1x1x8x8xf32> to vector<8x8xf32>
    %cst_154 = arith.constant dense<0.000000e+00> : vector<512x8xf32>
    %103 = tpu.matmul %100, %102, %cst_154 {dimension_numbers = #tpu.dot_dimension_numbers<[1], [0], [0], [1], [0, 0, 1, 1], [], []>} : vector<512x8xf32>, vector<8x8xf32>, vector<512x8xf32> -> vector<512x8xf32>
    %104 = arith.addf %98, %103 : vector<512x8xf32>
    %c0_155 = arith.constant 0 : index
    %c2_156 = arith.constant 2 : index
    %c7_157 = arith.constant 7 : index
    %c0_158 = arith.constant 0 : index
    %105 = vector.load %arg8[%c0_155, %c2_156, %c7_157, %c0_158] : memref<8x10x24x8xf32, #tpu.memory_space<vmem>>, vector<8x8x8x8xf32>
    %106 = vector.shape_cast %105 : vector<8x8x8x8xf32> to vector<512x8xf32>
    %c2_159 = arith.constant 2 : index
    %c0_160 = arith.constant 0 : index
    %c0_161 = arith.constant 0 : index
    %c0_162 = arith.constant 0 : index
    %107 = vector.load %arg4[%c2_159, %c0_160, %c0_161, %c0_162] : memref<3x3x8x8xf32, #tpu.memory_space<vmem>>, vector<1x1x8x8xf32>
    %108 = vector.shape_cast %107 : vector<1x1x8x8xf32> to vector<8x8xf32>
    %cst_163 = arith.constant dense<0.000000e+00> : vector<512x8xf32>
    %109 = tpu.matmul %106, %108, %cst_163 {dimension_numbers = #tpu.dot_dimension_numbers<[1], [0], [0], [1], [0, 0, 1, 1], [], []>} : vector<512x8xf32>, vector<8x8xf32>, vector<512x8xf32> -> vector<512x8xf32>
    %110 = arith.addf %104, %109 : vector<512x8xf32>
    %c0_164 = arith.constant 0 : index
    %c2_165 = arith.constant 2 : index
    %c8_166 = arith.constant 8 : index
    %c0_167 = arith.constant 0 : index
    %111 = vector.load %arg8[%c0_164, %c2_165, %c8_166, %c0_167] : memref<8x10x24x8xf32, #tpu.memory_space<vmem>>, vector<8x8x8x8xf32>
    %112 = vector.shape_cast %111 : vector<8x8x8x8xf32> to vector<512x8xf32>
    %c2_168 = arith.constant 2 : index
    %c1_169 = arith.constant 1 : index
    %c0_170 = arith.constant 0 : index
    %c0_171 = arith.constant 0 : index
    %113 = vector.load %arg4[%c2_168, %c1_169, %c0_170, %c0_171] : memref<3x3x8x8xf32, #tpu.memory_space<vmem>>, vector<1x1x8x8xf32>
    %114 = vector.shape_cast %113 : vector<1x1x8x8xf32> to vector<8x8xf32>
    %cst_172 = arith.constant dense<0.000000e+00> : vector<512x8xf32>
    %115 = tpu.matmul %112, %114, %cst_172 {dimension_numbers = #tpu.dot_dimension_numbers<[1], [0], [0], [1], [0, 0, 1, 1], [], []>} : vector<512x8xf32>, vector<8x8xf32>, vector<512x8xf32> -> vector<512x8xf32>
    %116 = arith.addf %110, %115 : vector<512x8xf32>
    %c0_173 = arith.constant 0 : index
    %c2_174 = arith.constant 2 : index
    %c9_175 = arith.constant 9 : index
    %c0_176 = arith.constant 0 : index
    %117 = vector.load %arg8[%c0_173, %c2_174, %c9_175, %c0_176] : memref<8x10x24x8xf32, #tpu.memory_space<vmem>>, vector<8x8x8x8xf32>
    %118 = vector.shape_cast %117 : vector<8x8x8x8xf32> to vector<512x8xf32>
    %c2_177 = arith.constant 2 : index
    %c2_178 = arith.constant 2 : index
    %c0_179 = arith.constant 0 : index
    %c0_180 = arith.constant 0 : index
    %119 = vector.load %arg4[%c2_177, %c2_178, %c0_179, %c0_180] : memref<3x3x8x8xf32, #tpu.memory_space<vmem>>, vector<1x1x8x8xf32>
    %120 = vector.shape_cast %119 : vector<1x1x8x8xf32> to vector<8x8xf32>
    %cst_181 = arith.constant dense<0.000000e+00> : vector<512x8xf32>
    %121 = tpu.matmul %118, %120, %cst_181 {dimension_numbers = #tpu.dot_dimension_numbers<[1], [0], [0], [1], [0, 0, 1, 1], [], []>} : vector<512x8xf32>, vector<8x8xf32>, vector<512x8xf32> -> vector<512x8xf32>
    %122 = arith.addf %116, %121 : vector<512x8xf32>
    %c0_182 = arith.constant 0 : index
    %c0_183 = arith.constant 0 : index
    %123 = vector.load %arg5[%c0_182, %c0_183] : memref<1x8xf32, #tpu.memory_space<vmem>>, vector<1x8xf32>
    %124 = vector.broadcast %123 : vector<1x8xf32> to vector<512x8xf32>
    %125 = arith.addf %122, %124 : vector<512x8xf32>
    %cst_184 = arith.constant 0.000000e+00 : f32
    %126 = vector.broadcast %cst_184 : f32 to vector<512x8xf32>
    %127 = arith.maximumf %125, %126 : vector<512x8xf32>
    %128 = vector.shape_cast %127 : vector<512x8xf32> to vector<8x8x8x8xf32>
    %c0_185 = arith.constant 0 : index
    %c0_186 = arith.constant 0 : index
    %c0_187 = arith.constant 0 : index
    %c0_188 = arith.constant 0 : index
    %129 = vector.load %arg6[%c0_185, %c0_186, %c0_187, %c0_188] : memref<8x8x8x8xf32, #tpu.memory_space<vmem>>, vector<8x8x8x8xf32>
    tpu.vector_store %arg6[%c0_185, %c0_186, %c0_187, %c0_188], %128 {strides = array<i32>} : memref<8x8x8x8xf32, #tpu.memory_space<vmem>>, vector<8x8x8x8xf32>,
    return
  }
  func.func @transform_0(%arg0: i32) -> (i32, i32, i32, i32) {
    %c0_i32 = arith.constant 0 : i32
    %c0_i32_0 = arith.constant 0 : i32
    %c0_i32_1 = arith.constant 0 : i32
    %c0_i32_2 = arith.constant 0 : i32
    %c0_i32_3 = arith.constant 0 : i32
    return %c0_i32, %c0_i32_0, %c0_i32_1, %c0_i32_2 : i32, i32, i32, i32
  }
  func.func @transform_1(%arg0: i32) -> (i32, i32, i32, i32) {
    %c0_i32 = arith.constant 0 : i32
    %c0_i32_0 = arith.constant 0 : i32
    %c0_i32_1 = arith.constant 0 : i32
    %c0_i32_2 = arith.constant 0 : i32
    %c0_i32_3 = arith.constant 0 : i32
    return %c0_i32, %c0_i32_0, %c0_i32_1, %c0_i32_2 : i32, i32, i32, i32
  }
  func.func @transform_2(%arg0: i32) -> (i32, i32) {
    %c0_i32 = arith.constant 0 : i32
    %c0_i32_0 = arith.constant 0 : i32
    %c0_i32_1 = arith.constant 0 : i32
    return %c0_i32, %c0_i32_0 : i32, i32
  }
  func.func @transform_3(%arg0: i32) -> (i32, i32, i32, i32) {
    %c0_i32 = arith.constant 0 : i32
    %c0_i32_0 = arith.constant 0 : i32
    %c0_i32_1 = arith.constant 0 : i32
    %c0_i32_2 = arith.constant 0 : i32
    %c0_i32_3 = arith.constant 0 : i32
    return %c0_i32, %c0_i32_0, %c0_i32_1, %c0_i32_2 : i32, i32, i32, i32
  }
  func.func @transform_4(%arg0: i32) -> (i32, i32) {
    %c0_i32 = arith.constant 0 : i32
    %c0_i32_0 = arith.constant 0 : i32
    %c0_i32_1 = arith.constant 0 : i32
    return %c0_i32, %c0_i32_0 : i32, i32
  }
  func.func @transform_5(%arg0: i32) -> (i32, i32, i32, i32) {
    %c0_i32 = arith.constant 0 : i32
    %c0_i32_0 = arith.constant 0 : i32
    %c0_i32_1 = arith.constant 0 : i32
    %c0_i32_2 = arith.constant 0 : i32
    %c0_i32_3 = arith.constant 0 : i32
    return %c0_i32, %c0_i32_0, %c0_i32_1, %c0_i32_2 : i32, i32, i32, i32
  }
}

</mosaic_0001>

<bundles_post_ra>
// kernel: properties_head_forward.3
= control target key start
LH: loop header
LB: loop body
LE: loop exit
PB: predicated region body
PF: predicated region fallthrough
CT: control target
= control target key end

     0   :  { %s890_s0 = inlined_call_operand.vmem [shape: f32[8,512], index: 0, kind: input, shape index: {}]   ;;  %s891_s1 = inlined_call_operand.vmem [shape: f32[512,128], index: 1, kind: input, shape index: {}]   ;;  %s892_s2 = inlined_call_operand.vmem [shape: f32[1,128], index: 2, kind: input, shape index: {}]   ;;  %s893_s3 = inlined_call_operand.vmem [shape: f32[128,128], index: 3, kind: input, shape index: {}]   ;;  %s894_s4 = inlined_call_operand.vmem [shape: f32[1,128], index: 4, kind: input, shape index: {}]   ;;  %s895_s5 = inlined_call_operand.hbm [shape: f32[8,128], index: 5, kind: output, shape index: {}]  }
   0x1   :  { %v41_v0 = vld [vmem:[%s891_s1 + $0x80] sm:$0xff]  ;;  %v42_v1 = vld [vmem:[%s891_s1 + $0x88] sm:$0xff]  ;;  %v43_v11 = vld [vmem:[%s891_s1 + $0x90] sm:$0xff] }
   0x2   :  { %v25_v2 = vld [vmem:[%s891_s1] sm:$0xff]  ;;  %v470_v3 = vpack.c.bf16 %v42_v1, %v41_v0  ;;  %v26_v4 = vld [vmem:[%s891_s1 + $0x8] sm:$0xff]  ;;  %v44_v13 = vld [vmem:[%s891_s1 + $0x98] sm:$0xff] }
   0x3   :  { %v73_v5 = vld [vmem:[%s891_s1 + $0x180] sm:$0xff]  ;;  %v74_v6 = vld [vmem:[%s891_s1 + $0x188] sm:$0xff]  ;;  %v472_v7 = vpack.c.bf16 %v26_v4, %v25_v2  ;;  %v27_v14 = vld [vmem:[%s891_s1 + $0x10] sm:$0xff]  ;;  %v474_v16 = vpack.c.bf16 %v44_v13, %v43_v11 }
   0x4   :  { %v502_v8 = vpack.c.bf16 %v74_v6, %v73_v5  ;;  %v57_v9 = vld [vmem:[%s891_s1 + $0x100] sm:$0xff]  ;;  %v58_v10 = vld [vmem:[%s891_s1 + $0x108] sm:$0xff]  ;;  %471 = vmatprep.subr.bf16.mxu0 %v470_v3  ;;  %v28_v15 = vld [vmem:[%s891_s1 + $0x18] sm:$0xff] }
   0x5   :  { %v504_v12 = vpack.c.bf16 %v58_v10, %v57_v9  ;;  %473 = vmatpush3.bf16.msra.mxu0 %v472_v7  ;;  %v476_v17 = vpack.c.bf16 %v28_v15, %v27_v14  ;;  %v75_v18 = vld [vmem:[%s891_s1 + $0x190] sm:$0xff]  ;;  %v76_v19 = vld [vmem:[%s891_s1 + $0x198] sm:$0xff]  ;;  %v45_v23 = vld [vmem:[%s891_s1 + $0xa0] sm:$0xff] }
   0x6   :  { %503 = vmatprep.subr.bf16.mxu1 %v502_v8  ;;  %v59_v20 = vld [vmem:[%s891_s1 + $0x110] sm:$0xff]  ;;  %v506_v21 = vpack.c.bf16 %v76_v19, %v75_v18  ;;  %v60_v22 = vld [vmem:[%s891_s1 + $0x118] sm:$0xff]  ;;  %v46_v24 = vld [vmem:[%s891_s1 + $0xa8] sm:$0xff]  ;;  %475 = vmatprep.subr.bf16.mxu0 %v474_v16 }
   0x7   :  { %505 = vmatpush3.bf16.msra.mxu1 %v504_v12  ;;  %v508_v25 = vpack.c.bf16 %v60_v22, %v59_v20  ;;  %v478_v26 = vpack.c.bf16 %v46_v24, %v45_v23  ;;  %v29_v27 = vld [vmem:[%s891_s1 + $0x20] sm:$0xff]  ;;  %v30_v28 = vld [vmem:[%s891_s1 + $0x28] sm:$0xff]  ;;  %v47_v35 = vld [vmem:[%s891_s1 + $0xb0] sm:$0xff] }
   0x8   :  { %v77_v29 = vld [vmem:[%s891_s1 + $0x1a0] sm:$0xff]  ;;  %507 = vmatprep.subr.bf16.mxu1 %v506_v21  ;;  %v78_v30 = vld [vmem:[%s891_s1 + $0x1a8] sm:$0xff]  ;;  %v480_v33 = vpack.c.bf16 %v30_v28, %v29_v27  ;;  %v48_v36 = vld [vmem:[%s891_s1 + $0xb8] sm:$0xff] }
   0x9   :  { %v61_v31 = vld [vmem:[%s891_s1 + $0x120] sm:$0xff]  ;;  %v62_v32 = vld [vmem:[%s891_s1 + $0x128] sm:$0xff]  ;;  %477 = vmatpush3.bf16.msra.mxu0 %v476_v17  ;;  %v510_v34 = vpack.c.bf16 %v78_v30, %v77_v29  ;;  %v31_v37 = vld [vmem:[%s891_s1 + $0x30] sm:$0xff]  ;;  %v482_v39 = vpack.c.bf16 %v48_v36, %v47_v35 }
   0xa   :  { %479 = vmatprep.subr.bf16.mxu0 %v478_v26  ;;  %v512_v38 = vpack.c.bf16 %v62_v32, %v61_v31  ;;  %v32_v40 = vld [vmem:[%s891_s1 + $0x38] sm:$0xff]  ;;  %v79_v41 = vld [vmem:[%s891_s1 + $0x1b0] sm:$0xff]  ;;  %v49_v46 = vld [vmem:[%s891_s1 + $0xc0] sm:$0xff] }
   0xb   :  { %509 = vmatpush3.bf16.msra.mxu1 %v508_v25  ;;  %v80_v42 = vld [vmem:[%s891_s1 + $0x1b8] sm:$0xff]  ;;  %v63_v44 = vld [vmem:[%s891_s1 + $0x130] sm:$0xff]  ;;  %v50_v47 = vld [vmem:[%s891_s1 + $0xc8] sm:$0xff]  ;;  %v484_v48 = vpack.c.bf16 %v32_v40, %v31_v37 }
   0xc   :  { %511 = vmatprep.subr.bf16.mxu1 %v510_v34  ;;  %v514_v43 = vpack.c.bf16 %v80_v42, %v79_v41  ;;  %v64_v45 = vld [vmem:[%s891_s1 + $0x138] sm:$0xff]  ;;  %v81_v49 = vld [vmem:[%s891_s1 + $0x1c0] sm:$0xff]  ;;  %v82_v50 = vld [vmem:[%s891_s1 + $0x1c8] sm:$0xff]  ;;  %v486_v52 = vpack.c.bf16 %v50_v47, %v49_v46 }
   0xd   :  { %481 = vmatpush3.bf16.msra.mxu0 %v480_v33  ;;  %v516_v51 = vpack.c.bf16 %v64_v45, %v63_v44  ;;  %v33_v53 = vld [vmem:[%s891_s1 + $0x40] sm:$0xff]  ;;  %v34_v54 = vld [vmem:[%s891_s1 + $0x48] sm:$0xff]  ;;  %v518_v56 = vpack.c.bf16 %v82_v50, %v81_v49  ;;  %v51_v58 = vld [vmem:[%s891_s1 + $0xd0] sm:$0xff] }
   0xe   :  { %483 = vmatprep.subr.bf16.mxu0 %v482_v39  ;;  %v65_v55 = vld [vmem:[%s891_s1 + $0x140] sm:$0xff]  ;;  %v66_v57 = vld [vmem:[%s891_s1 + $0x148] sm:$0xff]  ;;  %v52_v59 = vld [vmem:[%s891_s1 + $0xd8] sm:$0xff]  ;;  %v488_v62 = vpack.c.bf16 %v34_v54, %v33_v53 }
   0xf   :  { %513 = vmatpush3.bf16.msra.mxu1 %v512_v38  ;;  %v83_v60 = vld [vmem:[%s891_s1 + $0x1d0] sm:$0xff]  ;;  %v84_v61 = vld [vmem:[%s891_s1 + $0x1d8] sm:$0xff]  ;;  %v520_v63 = vpack.c.bf16 %v66_v57, %v65_v55  ;;  %v490_v0 = vpack.c.bf16 %v52_v59, %v51_v58  ;;  %v53_v6 = vld [vmem:[%s891_s1 + $0xe0] sm:$0xff] }
  0x10   :  { %515 = vmatprep.subr.bf16.mxu1 %v514_v43  ;;  %v35_v1 = vld [vmem:[%s891_s1 + $0x50] sm:$0xff]  ;;  %v36_v2 = vld [vmem:[%s891_s1 + $0x58] sm:$0xff]  ;;  %v522_v4 = vpack.c.bf16 %v84_v61, %v83_v60  ;;  %v54_v7 = vld [vmem:[%s891_s1 + $0xe8] sm:$0xff] }
  0x11   :  { %485 = vmatpush3.bf16.msra.mxu0 %v484_v48  ;;  %v67_v3 = vld [vmem:[%s891_s1 + $0x150] sm:$0xff]  ;;  %v68_v5 = vld [vmem:[%s891_s1 + $0x158] sm:$0xff]  ;;  %v85_v8 = vld [vmem:[%s891_s1 + $0x1e0] sm:$0xff]  ;;  %v492_v10 = vpack.c.bf16 %v36_v2, %v35_v1  ;;  %v494_v14 = vpack.c.bf16 %v54_v7, %v53_v6 }
  0x12   :  { %487 = vmatprep.subr.bf16.mxu0 %v486_v52  ;;  %v86_v9 = vld [vmem:[%s891_s1 + $0x1e8] sm:$0xff]  ;;  %v37_v11 = vld [vmem:[%s891_s1 + $0x60] sm:$0xff]  ;;  %v524_v13 = vpack.c.bf16 %v68_v5, %v67_v3  ;;  %v55_v19 = vld [vmem:[%s891_s1 + $0xf0] sm:$0xff] }
  0x13   :  { %517 = vmatpush3.bf16.msra.mxu1 %v516_v51  ;;  %v38_v12 = vld [vmem:[%s891_s1 + $0x68] sm:$0xff]  ;;  %v69_v15 = vld [vmem:[%s891_s1 + $0x160] sm:$0xff]  ;;  %v526_v18 = vpack.c.bf16 %v86_v9, %v85_v8  ;;  %v56_v20 = vld [vmem:[%s891_s1 + $0xf8] sm:$0xff] }
  0x14   :  { %519 = vmatprep.subr.bf16.mxu1 %v518_v56  ;;  %v70_v16 = vld [vmem:[%s891_s1 + $0x168] sm:$0xff]  ;;  %v24_v21 = vld [vmem:[%s890_s0 + $0x18] sm:$0xff]  ;;  %v87_v22 = vld [vmem:[%s891_s1 + $0x1f0] sm:$0xff]  ;;  %v496_v24 = vpack.c.bf16 %v38_v12, %v37_v11  ;;  %v498_v26 = vpack.c.bf16 %v56_v20, %v55_v19 }
  0x15   :  { %489 = vmatpush3.bf16.msra.mxu0 %v488_v62  ;;  %v22_v17 = vld [vmem:[%s890_s0 + $0x8] sm:$0xff]  ;;  %v88_v23 = vld [vmem:[%s891_s1 + $0x1f8] sm:$0xff]  ;;  %230 = vmatprep.mubr.f32.mxu1 %v24_v21  ;;  %v528_v25 = vpack.c.bf16 %v70_v16, %v69_v15  ;;  %v39_v27 = vld [vmem:[%s891_s1 + $0x70] sm:$0xff] }
  0x16   :  { %491 = vmatprep.subr.bf16.mxu0 %v490_v0  ;;  %160 = vmatprep.mubr.f32.mxu0 %v22_v17  ;;  %v40_v28 = vld [vmem:[%s891_s1 + $0x78] sm:$0xff]  ;;  %v530_v29 = vpack.c.bf16 %v88_v23, %v87_v22  ;;  %v71_v30 = vld [vmem:[%s891_s1 + $0x170] sm:$0xff] }
  0x17   :  { %521 = vmatpush3.bf16.msra.mxu1 %v520_v63  ;;  %v72_v31 = vld [vmem:[%s891_s1 + $0x178] sm:$0xff] }
  0x18   :  { %523 = vmatprep.subr.bf16.mxu1 %v522_v4 }
  0x19   :  { %493 = vmatpush3.bf16.msra.mxu0 %v492_v10 }
  0x1a   :  { %495 = vmatprep.subr.bf16.mxu0 %v494_v14 }
  0x1b   :  { %525 = vmatpush3.bf16.msra.mxu1 %v524_v13 }
  0x1c   :  { %527 = vmatprep.subr.bf16.mxu1 %v526_v18 }
  0x1d   :  { %10 = vsyncpa [#allocation3], 0  ;;  %497 = vmatpush3.bf16.msra.mxu0 %v496_v24  ;;  %v500_v32 = vpack.c.bf16 %v40_v28, %v39_v27  ;;  %v532_v33 = vpack.c.bf16 %v72_v31, %v71_v30  ;;  %v237_v34 = vld [vmem:[%s893_s3] sm:$0xff]  ;;  %v238_v35 = vld [vmem:[%s893_s3 + $0x8] sm:$0xff]  ;;  %v586_v39 = vmov 0.0|0.0   ;;  %vm587_vm0 = vmmov 0  }
  0x1e   :  { %499 = vmatprep.subr.bf16.mxu0 %v498_v26  ;;  %v21_v36 = vld [vmem:[%s890_s0] sm:$0xff]  ;;  %v535_v37 = vpack.c.bf16 %v238_v35, %v237_v34  ;;  %v23_v38 = vld [vmem:[%s890_s0 + $0x10] sm:$0xff]  ;;  %v240_v41 = vld [vmem:[%s893_s3 + $0x18] sm:$0xff]  ;;  %v588_v61 = vmov 0.0   ;;  %s589_s11 = smov [#allocation2]  }
  0x1f   :  { %529 = vmatpush3.bf16.msra.mxu1 %v528_v25  ;;  %v239_v40 = vld [vmem:[%s893_s3 + $0x10] sm:$0xff]  ;;  %v241_v43 = vld [vmem:[%s893_s3 + $0x20] sm:$0xff]  ;;  %v242_v44 = vld [vmem:[%s893_s3 + $0x28] sm:$0xff]  ;;  %s338_s12 = sshll.u32 %s589_s11, 4  ;;  %s339_s12 = int_to_ptr.vmem [resolvable:$true] %s338_s12 }
  0x20   :  { %531 = vmatprep.subr.bf16.mxu1 %v530_v29  ;;  %v538_v42 = vpack.c.bf16 %v240_v41, %v239_v40  ;;  %v541_v45 = vpack.c.bf16 %v242_v44, %v241_v43  ;;  %v243_v46 = vld [vmem:[%s893_s3 + $0x30] sm:$0xff]  ;;  %v244_v47 = vld [vmem:[%s893_s3 + $0x38] sm:$0xff]  ;;  %v245_v49 = vld [vmem:[%s893_s3 + $0x40] sm:$0xff]  ;;  %p567_p1 = scmp.lt.s32.totalorder %s339_s12, %s339_s12 }
  0x21   :  { %501 = vmatpush3.bf16.msra.mxu0 %v500_v32  ;;  %v544_v48 = vpack.c.bf16 %v244_v47, %v243_v46  ;;  %v246_v50 = vld [vmem:[%s893_s3 + $0x48] sm:$0xff]  ;;  %v247_v52 = vld [vmem:[%s893_s3 + $0x50] sm:$0xff]  ;;  %v248_v53 = vld [vmem:[%s893_s3 + $0x58] sm:$0xff] }
  0x22   :  { %534 = vmatprep.subr.bf16.mxu0 %v586_v39  ;;  %v547_v51 = vpack.c.bf16 %v246_v50, %v245_v49  ;;  %v550_v54 = vpack.c.bf16 %v248_v53, %v247_v52  ;;  %v249_v55 = vld [vmem:[%s893_s3 + $0x60] sm:$0xff]  ;;  %v250_v56 = vld [vmem:[%s893_s3 + $0x68] sm:$0xff]  ;;  %v251_v58 = vld [vmem:[%s893_s3 + $0x70] sm:$0xff] }
  0x23   :  { %533 = vmatpush3.bf16.msra.mxu1 %v532_v33  ;;  %v553_v57 = vpack.c.bf16 %v250_v56, %v249_v55  ;;  %v252_v59 = vld [vmem:[%s893_s3 + $0x78] sm:$0xff]  ;;  %v346_v63 = vld [vmem:[%s892_s2] ss:$0 sm:$0xff]  ;;  %s562_s2 = scalar_lea.vmem %s339_s12, 128 }
  0x24   :  { %161 = vmatmul.mubr.f32.vlgmr.msra.gmra.mrb[0].mxu0 %v21_v36  ;;  %v556_v60 = vpack.c.bf16 %v252_v59, %v251_v58  ;;  %v347_v8 = vld [vmem:[%s894_s4] ss:$0 sm:$0xff]  ;;  %p563_p0 = scmp.ne.s32.totalorder %s339_s12, %s562_s2  ;;  %p568_p2 = scmp.lt.s32.totalorder %s562_s2, %s562_s2 }
  0x25   :  { %536 = vmatpush3.bf16.msra.mxu0 %v535_v37  ;;  %467 = vmatprep.mubr.msk.f32.mxu0 %vm587_vm0, %v588_v61 }
  0x26   :  { %231 = vmatmul.mubr.f32.vlgmr.msra.gmra.mrb[0].mxu1 %v23_v38  ;;  %537 = vmatprep.subr.bf16.mxu0 %v586_v39  ;;  %p569_p3 = por %p568_p2, %p567_p1 }
  0x28   :  { %p570_p4 = pnand %p569_p3, %p563_p0 }
  0x29   :  { %539 = vmatpush3.bf16.msra.mxu0 %v538_v42 }
  0x2a   :  { %540 = vmatprep.subr.bf16.mxu0 %v586_v39 }
  0x2d   :  { %542 = vmatpush3.bf16.msra.mxu0 %v541_v45 }
  0x2e   :  { %543 = vmatprep.subr.bf16.mxu0 %v586_v39 }
  0x31   :  { %545 = vmatpush3.bf16.msra.mxu0 %v544_v48 }
  0x32   :  { %546 = vmatprep.subr.bf16.mxu0 %v586_v39 }
  0x35   :  { %548 = vmatpush3.bf16.msra.mxu0 %v547_v51 }
  0x36   :  { %549 = vmatprep.subr.bf16.mxu0 %v586_v39 }
  0x39   :  { %551 = vmatpush3.bf16.msra.mxu0 %v550_v54 }
  0x3a   :  { %552 = vmatprep.subr.bf16.mxu0 %v586_v39 }
  0x3d   :  { %554 = vmatpush3.bf16.msra.mxu0 %v553_v57 }
  0x3e   :  { %555 = vmatprep.subr.bf16.mxu0 %v586_v39 }
  0x41   :  { %557 = vmatpush3.bf16.msra.mxu0 %v556_v60 }
  0xf7   :  { %v380_v62 = vpop.f32.mrb[0].mxu0 }
  0xf8   :  { %v381_v0 = vpop.f32.mrb[1].mxu0 }
  0xf9   :  { %v415_v1 = vpop.f32.mrb[0].mxu1  ;;  %v382_v2 = vadd.f32 %v381_v0, %v380_v62 }
  0xfa   :  { %v416_v3 = vpop.f32.mrb[1].mxu1 }
  0xfb   :  { %v417_v4 = vadd.f32 %v416_v3, %v415_v1  ;;  %v163_v5 = vadd.f32 %v382_v2, %v346_v63 }
  0xfd   :  { %v233_v6 = vadd.f32 %v417_v4, %v163_v5 }
  0xff   :  { %v236_v7 = vmax.f32 %v233_v6, 0.0 }
 0x101   :  { %468 = vmatmul.mubr.f32.vlgmr.msra.gmra.mrb[2].mxu0 %v236_v7 }
 0x1d4   :  { %v326_v9 = vpop.f32.mrb[2].mxu0 }
 0x1d5   :  { %v327_v10 = vadd.f32 %v347_v8, %v326_v9  ;;  %v469_v11 = vpop.f32.mrb[3].mxu0 }
 0x1d7   :  { %v330_v12 = vmax.f32 %v327_v10, 0.0 }
 0x1d9   :  { %331 = vst [vmem:[#allocation2] sm:$0xff] %v330_v12 }
 0x1da   :  { %573 = shalt.err (!%p570_p4)
}
 0x1db   :  { %s574_s14 = scalar_lea.hbm %s895_s5, 128 }
 0x1dc   :  { %p575_p5 = scmp.ne.s32.totalorder %s895_s5, %s574_s14  ;;  %p578_p6 = scmp.lt.u32.totalorder %s574_s14, %s895_s5 }
 0x1de   :  { %p580_p7 = pnand %p578_p6, %p575_p5 }
 0x1e0   :  { %583 = shalt.err (!%p580_p7)
}
 0x1e1   :  { %341 = dma.vmem_to_hbm [thread:$0]  %s339_s12, 128, %s895_s5, [#allocation3]  }
 0x1e2   :  { %584 = dma.done.wait [#allocation3], 128  }
 0x1e3   :  { %585 = vsyncadd [#allocation3], 4294967168 }
 0x1e4   :  { %345 = vsyncpa [#allocation3], 1 }

// kernel: properties_head_forward.2
= control target key start
LH: loop header
LB: loop body
LE: loop exit
PB: predicated region body
PF: predicated region fallthrough
CT: control target
= control target key end

     0   :  { %vm713_vm0 = vcmask 1043456   ;;  %vm84_vm1 = vcmask 31744   ;;  %v23131_v1 = vmov 0.0   ;;  %vm6788_vm2 = vcmask 64512   ;;  %s23125_s1 = inlined_call_operand.vmem [shape: f32[3,3,4,8], index: 1, kind: input, shape index: {}]   ;;  %s23126_s0 = inlined_call_operand.vmem [shape: f32[8,8,8,4], index: 0, kind: input, shape index: {}]   ;;  %s23127_s3 = inlined_call_operand.vmem [shape: f32[3,3,8,8], index: 3, kind: input, shape index: {}]   ;;  %s23128_s2 = inlined_call_operand.vmem [shape: f32[1,8], index: 2, kind: input, shape index: {}]   ;;  %s23129_s4 = inlined_call_operand.vmem [shape: f32[1,8], index: 4, kind: input, shape index: {}]   ;;  %s23130_s5 = inlined_call_operand.vmem [shape: f32[8,8,8,8], index: 5, kind: output, shape index: {}]  }
   0x1   :  { %v18707_v0 = vld [vmem:[%s23125_s1 + $0x4] sm:$0xf]  ;;  %86 = vst.msk [vmem:[#allocation2 + $0x8] sm:$0xff] %vm84_vm1, %v23131_v1  ;;  %85 = vst.msk [vmem:[#allocation2] sm:$0xff] %vm84_vm1, %v23131_v1  ;;  %v454_v2 = vld [vmem:[%s23125_s1] sm:$0xf] }
   0x2   :  { %87 = vst.msk [vmem:[#allocation2 + $0x10] sm:$0xff] %vm84_vm1, %v23131_v1  ;;  %88 = vst.msk [vmem:[#allocation2 + $0x18] sm:$0xff] %vm84_vm1, %v23131_v1  ;;  %v20_v3 = vld [vmem:[%s23126_s0] sm:$0xff]  ;;  %15881 = vmatprep.subr.msk.mxu0 %vm713_vm0, %v18707_v0  ;;  %v21_v4 = vld [vmem:[%s23126_s0 + $0x8] sm:$0xff] }
   0x3   :  { %89 = vst.msk [vmem:[#allocation2 + $0x20] sm:$0xff] %vm84_vm1, %v23131_v1  ;;  %90 = vst.msk [vmem:[#allocation2 + $0x28] sm:$0xff] %vm84_vm1, %v23131_v1  ;;  %v22_v5 = vld [vmem:[%s23126_s0 + $0x10] sm:$0xff]  ;;  %v23_v6 = vld [vmem:[%s23126_s0 + $0x18] sm:$0xff]  ;;  %15882 = vmatpush3.msk.msra.mxu0 %vm713_vm0, %v18707_v0 }
   0x4   :  { %91 = vst.msk [vmem:[#allocation2 + $0x30] sm:$0xff] %vm84_vm1, %v23131_v1  ;;  %92 = vst.msk [vmem:[#allocation2 + $0x38] sm:$0xff] %vm84_vm1, %v23131_v1  ;;  %v24_v7 = vld [vmem:[%s23126_s0 + $0x20] sm:$0xff]  ;;  %v25_v8 = vld [vmem:[%s23126_s0 + $0x28] sm:$0xff]  ;;  %15979 = vmatprep.subr.msk.mxu0 %vm713_vm0, %v454_v2 }
   0x5   :  { %93 = vst.msk [vmem:[#allocation2 + $0x40] sm:$0xff] %vm84_vm1, %v23131_v1  ;;  %94 = vst.msk [vmem:[#allocation2 + $0x48] sm:$0xff] %vm84_vm1, %v23131_v1  ;;  %v26_v9 = vld [vmem:[%s23126_s0 + $0x30] sm:$0xff]  ;;  %v28_v10 = vld [vmem:[%s23126_s0 + $0x40] sm:$0xff] }
   0x6   :  { %95 = vst.msk [vmem:[#allocation2 + $0x50] sm:$0xff] %vm84_vm1, %v23131_v1  ;;  %96 = vst.msk [vmem:[#allocation2 + $0x58] sm:$0xff] %vm84_vm1, %v23131_v1  ;;  %v29_v11 = vld [vmem:[%s23126_s0 + $0x48] sm:$0xff]  ;;  %v30_v12 = vld [vmem:[%s23126_s0 + $0x50] sm:$0xff] }
   0x7   :  { %97 = vst.msk [vmem:[#allocation2 + $0x60] sm:$0xff] %vm84_vm1, %v23131_v1  ;;  %98 = vst.msk [vmem:[#allocation2 + $0x68] sm:$0xff] %vm84_vm1, %v23131_v1  ;;  %v31_v13 = vld [vmem:[%s23126_s0 + $0x58] sm:$0xff]  ;;  %v32_v14 = vld [vmem:[%s23126_s0 + $0x60] sm:$0xff] }
   0x8   :  { %99 = vst.msk [vmem:[#allocation2 + $0x70] sm:$0xff] %vm84_vm1, %v23131_v1  ;;  %100 = vst.msk [vmem:[#allocation2 + $0x78] sm:$0xff] %vm84_vm1, %v23131_v1  ;;  %v33_v15 = vld [vmem:[%s23126_s0 + $0x68] sm:$0xff]  ;;  %v34_v16 = vld [vmem:[%s23126_s0 + $0x70] sm:$0xff] }
   0x9   :  { %101 = vst.msk [vmem:[#allocation2 + $0x80] sm:$0xff] %vm84_vm1, %v23131_v1  ;;  %102 = vst.msk [vmem:[#allocation2 + $0x88] sm:$0xff] %vm84_vm1, %v23131_v1  ;;  %v36_v17 = vld [vmem:[%s23126_s0 + $0x80] sm:$0xff]  ;;  %v37_v18 = vld [vmem:[%s23126_s0 + $0x88] sm:$0xff] }
   0xa   :  { %103 = vst.msk [vmem:[#allocation2 + $0x90] sm:$0xff] %vm84_vm1, %v23131_v1  ;;  %104 = vst.msk [vmem:[#allocation2 + $0x98] sm:$0xff] %vm84_vm1, %v23131_v1  ;;  %v38_v19 = vld [vmem:[%s23126_s0 + $0x90] sm:$0xff]  ;;  %v39_v20 = vld [vmem:[%s23126_s0 + $0x98] sm:$0xff] }
   0xb   :  { %105 = vst.msk [vmem:[#allocation2 + $0xa0] sm:$0xff] %vm84_vm1, %v23131_v1  ;;  %106 = vst.msk [vmem:[#allocation2 + $0xa8] sm:$0xff] %vm84_vm1, %v23131_v1  ;;  %v40_v21 = vld [vmem:[%s23126_s0 + $0xa0] sm:$0xff]  ;;  %v455_v22 = vld [vmem:[#allocation2 + $0x8] sm:$0xff] }
   0xc   :  { %107 = vst.msk [vmem:[#allocation2 + $0xb0] sm:$0xff] %vm84_vm1, %v23131_v1  ;;  %108 = vst.msk [vmem:[#allocation2 + $0xb8] sm:$0xff] %vm84_vm1, %v23131_v1  ;;  %15883 = vmatprep.mubr.msk.f32.mxu0 %vm84_vm1, %v455_v22  ;;  %v41_v24 = vld [vmem:[%s23126_s0 + $0xa8] sm:$0xff]  ;;  %v42_v25 = vld [vmem:[%s23126_s0 + $0xb0] sm:$0xff] }
   0xd   :  { %109 = vst.msk [vmem:[#allocation2 + $0xc0] sm:$0xff] %vm84_vm1, %v23131_v1  ;;  %110 = vst.msk [vmem:[#allocation2 + $0xc8] sm:$0xff] %vm84_vm1, %v23131_v1  ;;  %v44_v31 = vld [vmem:[%s23126_s0 + $0xc0] sm:$0xff]  ;;  %v45_v32 = vld [vmem:[%s23126_s0 + $0xc8] sm:$0xff] }
   0xe   :  { %111 = vst.msk [vmem:[#allocation2 + $0xd0] sm:$0xff] %vm84_vm1, %v23131_v1  ;;  %112 = vst.msk [vmem:[#allocation2 + $0xd8] sm:$0xff] %vm84_vm1, %v23131_v1  ;;  %v46_v33 = vld [vmem:[%s23126_s0 + $0xd0] sm:$0xff]  ;;  %v47_v35 = vld [vmem:[%s23126_s0 + $0xd8] sm:$0xff] }
   0xf   :  { %113 = vst.msk [vmem:[#allocation2 + $0xe0] sm:$0xff] %vm84_vm1, %v23131_v1  ;;  %114 = vst.msk [vmem:[#allocation2 + $0xe8] sm:$0xff] %vm84_vm1, %v23131_v1  ;;  %v48_v36 = vld [vmem:[%s23126_s0 + $0xe0] sm:$0xff]  ;;  %v49_v37 = vld [vmem:[%s23126_s0 + $0xe8] sm:$0xff] }
  0x10   :  { %115 = vst.msk [vmem:[#allocation2 + $0xf0] sm:$0xff] %vm84_vm1, %v23131_v1  ;;  %116 = vst.msk [vmem:[#allocation2 + $0xf8] sm:$0xff] %vm84_vm1, %v23131_v1  ;;  %v50_v39 = vld [vmem:[%s23126_s0 + $0xf0] sm:$0xff]  ;;  %v52_v40 = vld [vmem:[%s23126_s0 + $0x100] sm:$0xff] }
  0x11   :  { %117 = vst.msk [vmem:[#allocation2 + $0x100] sm:$0xff] %vm84_vm1, %v23131_v1  ;;  %118 = vst.msk [vmem:[#allocation2 + $0x108] sm:$0xff] %vm84_vm1, %v23131_v1  ;;  %v53_v41 = vld [vmem:[%s23126_s0 + $0x108] sm:$0xff]  ;;  %v54_v42 = vld [vmem:[%s23126_s0 + $0x110] sm:$0xff] }
  0x12   :  { %119 = vst.msk [vmem:[#allocation2 + $0x110] sm:$0xff] %vm84_vm1, %v23131_v1  ;;  %120 = vst.msk [vmem:[#allocation2 + $0x118] sm:$0xff] %vm84_vm1, %v23131_v1  ;;  %v55_v43 = vld [vmem:[%s23126_s0 + $0x118] sm:$0xff]  ;;  %v56_v44 = vld [vmem:[%s23126_s0 + $0x120] sm:$0xff] }
  0x13   :  { %121 = vst.msk [vmem:[#allocation2 + $0x120] sm:$0xff] %vm84_vm1, %v23131_v1  ;;  %122 = vst.msk [vmem:[#allocation2 + $0x128] sm:$0xff] %vm84_vm1, %v23131_v1  ;;  %v57_v45 = vld [vmem:[%s23126_s0 + $0x128] sm:$0xff]  ;;  %v58_v46 = vld [vmem:[%s23126_s0 + $0x130] sm:$0xff] }
  0x14   :  { %123 = vst.msk [vmem:[#allocation2 + $0x130] sm:$0xff] %vm84_vm1, %v23131_v1  ;;  %124 = vst.msk [vmem:[#allocation2 + $0x138] sm:$0xff] %vm84_vm1, %v23131_v1  ;;  %v60_v48 = vld [vmem:[%s23126_s0 + $0x140] sm:$0xff]  ;;  %v61_v49 = vld [vmem:[%s23126_s0 + $0x148] sm:$0xff] }
  0x15   :  { %125 = vst.msk [vmem:[#allocation2 + $0x140] sm:$0xff] %vm84_vm1, %v23131_v1  ;;  %126 = vst.msk [vmem:[#allocation2 + $0x148] sm:$0xff] %vm84_vm1, %v23131_v1  ;;  %v62_v50 = vld [vmem:[%s23126_s0 + $0x150] sm:$0xff]  ;;  %v63_v51 = vld [vmem:[%s23126_s0 + $0x158] sm:$0xff] }
  0x16   :  { %127 = vst.msk [vmem:[#allocation2 + $0x150] sm:$0xff] %vm84_vm1, %v23131_v1  ;;  %128 = vst.msk [vmem:[#allocation2 + $0x158] sm:$0xff] %vm84_vm1, %v23131_v1  ;;  %v64_v52 = vld [vmem:[%s23126_s0 + $0x160] sm:$0xff]  ;;  %v65_v54 = vld [vmem:[%s23126_s0 + $0x168] sm:$0xff] }
  0x17   :  { %129 = vst.msk [vmem:[#allocation2 + $0x160] sm:$0xff] %vm84_vm1, %v23131_v1  ;;  %130 = vst.msk [vmem:[#allocation2 + $0x168] sm:$0xff] %vm84_vm1, %v23131_v1  ;;  %v463_v34 = vld [vmem:[#allocation2 + $0xf8] sm:$0xff]  ;;  %v66_v55 = vld [vmem:[%s23126_s0 + $0x170] sm:$0xff] }
  0x18   :  { %131 = vst.msk [vmem:[#allocation2 + $0x170] sm:$0xff] %vm84_vm1, %v23131_v1  ;;  %132 = vst.msk [vmem:[#allocation2 + $0x178] sm:$0xff] %vm84_vm1, %v23131_v1  ;;  %v68_v57 = vld [vmem:[%s23126_s0 + $0x180] sm:$0xff]  ;;  %v69_v59 = vld [vmem:[%s23126_s0 + $0x188] sm:$0xff] }
  0x19   :  { %133 = vst.msk [vmem:[#allocation2 + $0x180] sm:$0xff] %vm84_vm1, %v23131_v1  ;;  %134 = vst.msk [vmem:[#allocation2 + $0x188] sm:$0xff] %vm84_vm1, %v23131_v1  ;;  %v70_v62 = vld [vmem:[%s23126_s0 + $0x190] sm:$0xff]  ;;  %v71_v63 = vld [vmem:[%s23126_s0 + $0x198] sm:$0xff] }
  0x1a   :  { %135 = vst.msk [vmem:[#allocation2 + $0x190] sm:$0xff] %vm84_vm1, %v23131_v1  ;;  %136 = vst.msk [vmem:[#allocation2 + $0x198] sm:$0xff] %vm84_vm1, %v23131_v1  ;;  %v72_v0 = vld [vmem:[%s23126_s0 + $0x1a0] sm:$0xff] }
  0x1b   :  { %137 = vst.msk [vmem:[#allocation2 + $0x1a0] sm:$0xff] %vm84_vm1, %v23131_v1  ;;  %138 = vst.msk [vmem:[#allocation2 + $0x1a8] sm:$0xff] %vm84_vm1, %v23131_v1 }
  0x1c   :  { %139 = vst.msk [vmem:[#allocation2 + $0x1b0] sm:$0xff] %vm84_vm1, %v23131_v1  ;;  %140 = vst.msk [vmem:[#allocation2 + $0x1b8] sm:$0xff] %vm84_vm1, %v23131_v1 }
  0x1d   :  { %141 = vst.msk [vmem:[#allocation2 + $0x1c0] sm:$0xff] %vm84_vm1, %v23131_v1  ;;  %142 = vst.msk [vmem:[#allocation2 + $0x1c8] sm:$0xff] %vm84_vm1, %v23131_v1 }
  0x1e   :  { %143 = vst.msk [vmem:[#allocation2 + $0x1d0] sm:$0xff] %vm84_vm1, %v23131_v1  ;;  %144 = vst.msk [vmem:[#allocation2 + $0x1d8] sm:$0xff] %vm84_vm1, %v23131_v1 }
  0x1f   :  { %145 = vst.msk [vmem:[#allocation2 + $0x1e0] sm:$0xff] %vm84_vm1, %v23131_v1  ;;  %146 = vst.msk [vmem:[#allocation2 + $0x1e8] sm:$0xff] %vm84_vm1, %v23131_v1 }
  0x20   :  { %147 = vst.msk [vmem:[#allocation2 + $0x1f0] sm:$0xff] %vm84_vm1, %v23131_v1  ;;  %148 = vst.msk [vmem:[#allocation2 + $0x1f8] sm:$0xff] %vm84_vm1, %v23131_v1 }
  0x21   :  { %149 = vst.msk [vmem:[#allocation2 + $0x200] sm:$0xff] %vm84_vm1, %v23131_v1  ;;  %150 = vst.msk [vmem:[#allocation2 + $0x208] sm:$0xff] %vm84_vm1, %v23131_v1 }
  0x22   :  { %151 = vst.msk [vmem:[#allocation2 + $0x210] sm:$0xff] %vm84_vm1, %v23131_v1  ;;  %152 = vst.msk [vmem:[#allocation2 + $0x218] sm:$0xff] %vm84_vm1, %v23131_v1 }
  0x23   :  { %153 = vst.msk [vmem:[#allocation2 + $0x220] sm:$0xff] %vm84_vm1, %v23131_v1  ;;  %154 = vst.msk [vmem:[#allocation2 + $0x228] sm:$0xff] %vm84_vm1, %v23131_v1 }
  0x24   :  { %155 = vst.msk [vmem:[#allocation2 + $0x230] sm:$0xff] %vm84_vm1, %v23131_v1  ;;  %156 = vst.msk [vmem:[#allocation2 + $0x238] sm:$0xff] %vm84_vm1, %v23131_v1 }
  0x25   :  { %157 = vst.msk [vmem:[#allocation2 + $0x240] sm:$0xff] %vm84_vm1, %v23131_v1  ;;  %158 = vst.msk [vmem:[#allocation2 + $0x248] sm:$0xff] %vm84_vm1, %v23131_v1 }
  0x26   :  { %159 = vst.msk [vmem:[#allocation2 + $0x250] sm:$0xff] %vm84_vm1, %v23131_v1  ;;  %160 = vst.msk [vmem:[#allocation2 + $0x258] sm:$0xff] %vm84_vm1, %v23131_v1 }
  0x27   :  { %161 = vst.msk [vmem:[#allocation2 + $0x260] sm:$0xff] %vm84_vm1, %v23131_v1  ;;  %162 = vst.msk [vmem:[#allocation2 + $0x268] sm:$0xff] %vm84_vm1, %v23131_v1 }
  0x28   :  { %163 = vst.msk [vmem:[#allocation2 + $0x270] sm:$0xff] %vm84_vm1, %v23131_v1  ;;  %164 = vst.msk [vmem:[#allocation2 + $0x278] sm:$0xff] %vm84_vm1, %v23131_v1 }
  0x29   :  { %165 = vst.msk [vmem:[#allocation2 + $0x280] sm:$0xff] %vm84_vm1, %v23131_v1  ;;  %166 = vst.msk [vmem:[#allocation2 + $0x288] sm:$0xff] %vm84_vm1, %v23131_v1 }
  0x2a   :  { %167 = vst.msk [vmem:[#allocation2 + $0x290] sm:$0xff] %vm84_vm1, %v23131_v1  ;;  %168 = vst.msk [vmem:[#allocation2 + $0x298] sm:$0xff] %vm84_vm1, %v23131_v1 }
  0x2b   :  { %169 = vst.msk [vmem:[#allocation2 + $0x2a0] sm:$0xff] %vm84_vm1, %v23131_v1  ;;  %170 = vst.msk [vmem:[#allocation2 + $0x2a8] sm:$0xff] %vm84_vm1, %v23131_v1 }
  0x2c   :  { %171 = vst.msk [vmem:[#allocation2 + $0x2b0] sm:$0xff] %vm84_vm1, %v23131_v1  ;;  %172 = vst.msk [vmem:[#allocation2 + $0x2b8] sm:$0xff] %vm84_vm1, %v23131_v1 }
  0x2d   :  { %173 = vst.msk [vmem:[#allocation2 + $0x2c0] sm:$0xff] %vm84_vm1, %v23131_v1  ;;  %174 = vst.msk [vmem:[#allocation2 + $0x2c8] sm:$0xff] %vm84_vm1, %v23131_v1 }
  0x2e   :  { %175 = vst.msk [vmem:[#allocation2 + $0x2d0] sm:$0xff] %vm84_vm1, %v23131_v1  ;;  %176 = vst.msk [vmem:[#allocation2 + $0x2d8] sm:$0xff] %vm84_vm1, %v23131_v1 }
  0x2f   :  { %177 = vst.msk [vmem:[#allocation2 + $0x2e0] sm:$0xff] %vm84_vm1, %v23131_v1  ;;  %178 = vst.msk [vmem:[#allocation2 + $0x2e8] sm:$0xff] %vm84_vm1, %v23131_v1 }
  0x30   :  { %179 = vst.msk [vmem:[#allocation2 + $0x2f0] sm:$0xff] %vm84_vm1, %v23131_v1  ;;  %180 = vst.msk [vmem:[#allocation2 + $0x2f8] sm:$0xff] %vm84_vm1, %v23131_v1 }
  0x31   :  { %181 = vst.msk [vmem:[#allocation2 + $0x300] sm:$0xff] %vm84_vm1, %v23131_v1  ;;  %182 = vst.msk [vmem:[#allocation2 + $0x308] sm:$0xff] %vm84_vm1, %v23131_v1 }
  0x32   :  { %183 = vst.msk [vmem:[#allocation2 + $0x310] sm:$0xff] %vm84_vm1, %v23131_v1  ;;  %184 = vst.msk [vmem:[#allocation2 + $0x318] sm:$0xff] %vm84_vm1, %v23131_v1 }
  0x33   :  { %185 = vst.msk [vmem:[#allocation2 + $0x320] sm:$0xff] %vm84_vm1, %v23131_v1  ;;  %186 = vst.msk [vmem:[#allocation2 + $0x328] sm:$0xff] %vm84_vm1, %v23131_v1 }
  0x34   :  { %187 = vst.msk [vmem:[#allocation2 + $0x330] sm:$0xff] %vm84_vm1, %v23131_v1  ;;  %188 = vst.msk [vmem:[#allocation2 + $0x338] sm:$0xff] %vm84_vm1, %v23131_v1 }
  0x35   :  { %189 = vst.msk [vmem:[#allocation2 + $0x340] sm:$0xff] %vm84_vm1, %v23131_v1  ;;  %190 = vst.msk [vmem:[#allocation2 + $0x348] sm:$0xff] %vm84_vm1, %v23131_v1 }
  0x36   :  { %191 = vst.msk [vmem:[#allocation2 + $0x350] sm:$0xff] %vm84_vm1, %v23131_v1  ;;  %192 = vst.msk [vmem:[#allocation2 + $0x358] sm:$0xff] %vm84_vm1, %v23131_v1 }
  0x37   :  { %193 = vst.msk [vmem:[#allocation2 + $0x360] sm:$0xff] %vm84_vm1, %v23131_v1  ;;  %194 = vst.msk [vmem:[#allocation2 + $0x368] sm:$0xff] %vm84_vm1, %v23131_v1 }
  0x38   :  { %195 = vst.msk [vmem:[#allocation2 + $0x370] sm:$0xff] %vm84_vm1, %v23131_v1  ;;  %196 = vst.msk [vmem:[#allocation2 + $0x378] sm:$0xff] %vm84_vm1, %v23131_v1 }
  0x39   :  { %197 = vst.msk [vmem:[#allocation2 + $0x380] sm:$0xff] %vm84_vm1, %v23131_v1  ;;  %198 = vst.msk [vmem:[#allocation2 + $0x388] sm:$0xff] %vm84_vm1, %v23131_v1 }
  0x3a   :  { %199 = vst.msk [vmem:[#allocation2 + $0x390] sm:$0xff] %vm84_vm1, %v23131_v1  ;;  %200 = vst.msk [vmem:[#allocation2 + $0x398] sm:$0xff] %vm84_vm1, %v23131_v1 }
  0x3b   :  { %201 = vst.msk [vmem:[#allocation2 + $0x3a0] sm:$0xff] %vm84_vm1, %v23131_v1  ;;  %202 = vst.msk [vmem:[#allocation2 + $0x3a8] sm:$0xff] %vm84_vm1, %v23131_v1 }
  0x3c   :  { %203 = vst.msk [vmem:[#allocation2 + $0x3b0] sm:$0xff] %vm84_vm1, %v23131_v1  ;;  %204 = vst.msk [vmem:[#allocation2 + $0x3b8] sm:$0xff] %vm84_vm1, %v23131_v1 }
  0x3d   :  { %205 = vst.msk [vmem:[#allocation2 + $0x3c0] sm:$0xff] %vm84_vm1, %v23131_v1  ;;  %206 = vst.msk [vmem:[#allocation2 + $0x3c8] sm:$0xff] %vm84_vm1, %v23131_v1 }
  0x3e   :  { %207 = vst.msk [vmem:[#allocation2 + $0x3d0] sm:$0xff] %vm84_vm1, %v23131_v1  ;;  %208 = vst.msk [vmem:[#allocation2 + $0x3d8] sm:$0xff] %vm84_vm1, %v23131_v1 }
  0x3f   :  { %209 = vst.msk [vmem:[#allocation2 + $0x3e0] sm:$0xff] %vm84_vm1, %v23131_v1  ;;  %210 = vst.msk [vmem:[#allocation2 + $0x3e8] sm:$0xff] %vm84_vm1, %v23131_v1 }
  0x40   :  { %211 = vst.msk [vmem:[#allocation2 + $0x3f0] sm:$0xff] %vm84_vm1, %v23131_v1  ;;  %212 = vst.msk [vmem:[#allocation2 + $0x3f8] sm:$0xff] %vm84_vm1, %v23131_v1 }
  0x41   :  { %213 = vst.msk [vmem:[#allocation2 + $0x400] sm:$0xff] %vm84_vm1, %v23131_v1  ;;  %214 = vst.msk [vmem:[#allocation2 + $0x408] sm:$0xff] %vm84_vm1, %v23131_v1 }
  0x42   :  { %215 = vst.msk [vmem:[#allocation2 + $0x410] sm:$0xff] %vm84_vm1, %v23131_v1  ;;  %216 = vst.msk [vmem:[#allocation2 + $0x418] sm:$0xff] %vm84_vm1, %v23131_v1 }
  0x43   :  { %217 = vst.msk [vmem:[#allocation2 + $0x420] sm:$0xff] %vm84_vm1, %v23131_v1  ;;  %218 = vst.msk [vmem:[#allocation2 + $0x428] sm:$0xff] %vm84_vm1, %v23131_v1 }
  0x44   :  { %219 = vst.msk [vmem:[#allocation2 + $0x430] sm:$0xff] %vm84_vm1, %v23131_v1  ;;  %220 = vst.msk [vmem:[#allocation2 + $0x438] sm:$0xff] %vm84_vm1, %v23131_v1 }
  0x45   :  { %221 = vst.msk [vmem:[#allocation2 + $0x440] sm:$0xff] %vm84_vm1, %v23131_v1  ;;  %222 = vst.msk [vmem:[#allocation2 + $0x448] sm:$0xff] %vm84_vm1, %v23131_v1 }
  0x46   :  { %223 = vst.msk [vmem:[#allocation2 + $0x450] sm:$0xff] %vm84_vm1, %v23131_v1  ;;  %224 = vst.msk [vmem:[#allocation2 + $0x458] sm:$0xff] %vm84_vm1, %v23131_v1 }
  0x47   :  { %225 = vst.msk [vmem:[#allocation2 + $0x460] sm:$0xff] %vm84_vm1, %v23131_v1  ;;  %226 = vst.msk [vmem:[#allocation2 + $0x468] sm:$0xff] %vm84_vm1, %v23131_v1 }
  0x48   :  { %227 = vst.msk [vmem:[#allocation2 + $0x470] sm:$0xff] %vm84_vm1, %v23131_v1  ;;  %228 = vst.msk [vmem:[#allocation2 + $0x478] sm:$0xff] %vm84_vm1, %v23131_v1 }
  0x49   :  { %229 = vst.msk [vmem:[#allocation2 + $0x480] sm:$0xff] %vm84_vm1, %v23131_v1  ;;  %230 = vst.msk [vmem:[#allocation2 + $0x488] sm:$0xff] %vm84_vm1, %v23131_v1 }
  0x4a   :  { %231 = vst.msk [vmem:[#allocation2 + $0x490] sm:$0xff] %vm84_vm1, %v23131_v1  ;;  %232 = vst.msk [vmem:[#allocation2 + $0x498] sm:$0xff] %vm84_vm1, %v23131_v1 }
  0x4b   :  { %233 = vst.msk [vmem:[#allocation2 + $0x4a0] sm:$0xff] %vm84_vm1, %v23131_v1  ;;  %234 = vst.msk [vmem:[#allocation2 + $0x4a8] sm:$0xff] %vm84_vm1, %v23131_v1 }
  0x4c   :  { %235 = vst.msk [vmem:[#allocation2 + $0x4b0] sm:$0xff] %vm84_vm1, %v23131_v1  ;;  %236 = vst.msk [vmem:[#allocation2 + $0x4b8] sm:$0xff] %vm84_vm1, %v23131_v1 }
  0x4d   :  { %237 = vst.msk [vmem:[#allocation2 + $0x4c0] sm:$0xff] %vm84_vm1, %v23131_v1  ;;  %238 = vst.msk [vmem:[#allocation2 + $0x4c8] sm:$0xff] %vm84_vm1, %v23131_v1 }
  0x4e   :  { %239 = vst.msk [vmem:[#allocation2 + $0x4d0] sm:$0xff] %vm84_vm1, %v23131_v1  ;;  %240 = vst.msk [vmem:[#allocation2 + $0x4d8] sm:$0xff] %vm84_vm1, %v23131_v1 }
  0x4f   :  { %241 = vst.msk [vmem:[#allocation2 + $0x4e0] sm:$0xff] %vm84_vm1, %v23131_v1  ;;  %242 = vst.msk [vmem:[#allocation2 + $0x4e8] sm:$0xff] %vm84_vm1, %v23131_v1 }
  0x50   :  { %243 = vst.msk [vmem:[#allocation2 + $0x4f0] sm:$0xff] %vm84_vm1, %v23131_v1  ;;  %244 = vst.msk [vmem:[#allocation2 + $0x4f8] sm:$0xff] %vm84_vm1, %v23131_v1 }
  0x51   :  { %245 = vst.msk [vmem:[#allocation2 + $0x500] sm:$0xff] %vm84_vm1, %v23131_v1  ;;  %246 = vst.msk [vmem:[#allocation2 + $0x508] sm:$0xff] %vm84_vm1, %v23131_v1 }
  0x52   :  { %247 = vst.msk [vmem:[#allocation2 + $0x510] sm:$0xff] %vm84_vm1, %v23131_v1  ;;  %248 = vst.msk [vmem:[#allocation2 + $0x518] sm:$0xff] %vm84_vm1, %v23131_v1 }
  0x53   :  { %249 = vst.msk [vmem:[#allocation2 + $0x520] sm:$0xff] %vm84_vm1, %v23131_v1  ;;  %250 = vst.msk [vmem:[#allocation2 + $0x528] sm:$0xff] %vm84_vm1, %v23131_v1 }
  0x54   :  { %251 = vst.msk [vmem:[#allocation2 + $0x530] sm:$0xff] %vm84_vm1, %v23131_v1  ;;  %252 = vst.msk [vmem:[#allocation2 + $0x538] sm:$0xff] %vm84_vm1, %v23131_v1 }
  0x55   :  { %253 = vst.msk [vmem:[#allocation2 + $0x540] sm:$0xff] %vm84_vm1, %v23131_v1  ;;  %254 = vst.msk [vmem:[#allocation2 + $0x548] sm:$0xff] %vm84_vm1, %v23131_v1 }
  0x56   :  { %255 = vst.msk [vmem:[#allocation2 + $0x550] sm:$0xff] %vm84_vm1, %v23131_v1  ;;  %256 = vst.msk [vmem:[#allocation2 + $0x558] sm:$0xff] %vm84_vm1, %v23131_v1 }
  0x57   :  { %257 = vst.msk [vmem:[#allocation2 + $0x560] sm:$0xff] %vm84_vm1, %v23131_v1  ;;  %258 = vst.msk [vmem:[#allocation2 + $0x568] sm:$0xff] %vm84_vm1, %v23131_v1 }
  0x58   :  { %259 = vst.msk [vmem:[#allocation2 + $0x570] sm:$0xff] %vm84_vm1, %v23131_v1  ;;  %260 = vst.msk [vmem:[#allocation2 + $0x578] sm:$0xff] %vm84_vm1, %v23131_v1 }
  0x59   :  { %261 = vst.msk [vmem:[#allocation2 + $0x580] sm:$0xff] %vm84_vm1, %v23131_v1  ;;  %262 = vst.msk [vmem:[#allocation2 + $0x588] sm:$0xff] %vm84_vm1, %v23131_v1 }
  0x5a   :  { %263 = vst.msk [vmem:[#allocation2 + $0x590] sm:$0xff] %vm84_vm1, %v23131_v1  ;;  %264 = vst.msk [vmem:[#allocation2 + $0x598] sm:$0xff] %vm84_vm1, %v23131_v1 }
  0x5b   :  { %265 = vst.msk [vmem:[#allocation2 + $0x5a0] sm:$0xff] %vm84_vm1, %v23131_v1  ;;  %266 = vst.msk [vmem:[#allocation2 + $0x5a8] sm:$0xff] %vm84_vm1, %v23131_v1 }
  0x5c   :  { %267 = vst.msk [vmem:[#allocation2 + $0x5b0] sm:$0xff] %vm84_vm1, %v23131_v1  ;;  %268 = vst.msk [vmem:[#allocation2 + $0x5b8] sm:$0xff] %vm84_vm1, %v23131_v1 }
  0x5d   :  { %269 = vst.msk [vmem:[#allocation2 + $0x5c0] sm:$0xff] %vm84_vm1, %v23131_v1  ;;  %270 = vst.msk [vmem:[#allocation2 + $0x5c8] sm:$0xff] %vm84_vm1, %v23131_v1 }
  0x5e   :  { %271 = vst.msk [vmem:[#allocation2 + $0x5d0] sm:$0xff] %vm84_vm1, %v23131_v1  ;;  %272 = vst.msk [vmem:[#allocation2 + $0x5d8] sm:$0xff] %vm84_vm1, %v23131_v1 }
  0x5f   :  { %273 = vst.msk [vmem:[#allocation2 + $0x5e0] sm:$0xff] %vm84_vm1, %v23131_v1  ;;  %274 = vst.msk [vmem:[#allocation2 + $0x5e8] sm:$0xff] %vm84_vm1, %v23131_v1 }
  0x60   :  { %275 = vst.msk [vmem:[#allocation2 + $0x5f0] sm:$0xff] %vm84_vm1, %v23131_v1  ;;  %276 = vst.msk [vmem:[#allocation2 + $0x5f8] sm:$0xff] %vm84_vm1, %v23131_v1 }
  0x61   :  { %277 = vst.msk [vmem:[#allocation2 + $0x600] sm:$0xff] %vm84_vm1, %v23131_v1  ;;  %278 = vst.msk [vmem:[#allocation2 + $0x608] sm:$0xff] %vm84_vm1, %v23131_v1 }
  0x62   :  { %279 = vst.msk [vmem:[#allocation2 + $0x610] sm:$0xff] %vm84_vm1, %v23131_v1  ;;  %280 = vst.msk [vmem:[#allocation2 + $0x618] sm:$0xff] %vm84_vm1, %v23131_v1 }
  0x63   :  { %281 = vst.msk [vmem:[#allocation2 + $0x620] sm:$0xff] %vm84_vm1, %v23131_v1  ;;  %282 = vst.msk [vmem:[#allocation2 + $0x628] sm:$0xff] %vm84_vm1, %v23131_v1 }
  0x64   :  { %283 = vst.msk [vmem:[#allocation2 + $0x630] sm:$0xff] %vm84_vm1, %v23131_v1  ;;  %284 = vst.msk [vmem:[#allocation2 + $0x638] sm:$0xff] %vm84_vm1, %v23131_v1 }
  0x65   :  { %285 = vst.msk [vmem:[#allocation2 + $0x640] sm:$0xff] %vm84_vm1, %v23131_v1  ;;  %286 = vst.msk [vmem:[#allocation2 + $0x648] sm:$0xff] %vm84_vm1, %v23131_v1 }
  0x66   :  { %287 = vst.msk [vmem:[#allocation2 + $0x650] sm:$0xff] %vm84_vm1, %v23131_v1  ;;  %288 = vst.msk [vmem:[#allocation2 + $0x658] sm:$0xff] %vm84_vm1, %v23131_v1 }
  0x67   :  { %289 = vst.msk [vmem:[#allocation2 + $0x660] sm:$0xff] %vm84_vm1, %v23131_v1  ;;  %290 = vst.msk [vmem:[#allocation2 + $0x668] sm:$0xff] %vm84_vm1, %v23131_v1 }
  0x68   :  { %291 = vst.msk [vmem:[#allocation2 + $0x670] sm:$0xff] %vm84_vm1, %v23131_v1  ;;  %292 = vst.msk [vmem:[#allocation2 + $0x678] sm:$0xff] %vm84_vm1, %v23131_v1 }
  0x69   :  { %293 = vst.msk [vmem:[#allocation2 + $0x680] sm:$0xff] %vm84_vm1, %v23131_v1  ;;  %294 = vst.msk [vmem:[#allocation2 + $0x688] sm:$0xff] %vm84_vm1, %v23131_v1 }
  0x6a   :  { %295 = vst.msk [vmem:[#allocation2 + $0x690] sm:$0xff] %vm84_vm1, %v23131_v1  ;;  %296 = vst.msk [vmem:[#allocation2 + $0x698] sm:$0xff] %vm84_vm1, %v23131_v1 }
  0x6b   :  { %297 = vst.msk [vmem:[#allocation2 + $0x6a0] sm:$0xff] %vm84_vm1, %v23131_v1  ;;  %298 = vst.msk [vmem:[#allocation2 + $0x6a8] sm:$0xff] %vm84_vm1, %v23131_v1 }
  0x6c   :  { %299 = vst.msk [vmem:[#allocation2 + $0x6b0] sm:$0xff] %vm84_vm1, %v23131_v1  ;;  %300 = vst.msk [vmem:[#allocation2 + $0x6b8] sm:$0xff] %vm84_vm1, %v23131_v1 }
  0x6d   :  { %301 = vst.msk [vmem:[#allocation2 + $0x6c0] sm:$0xff] %vm84_vm1, %v23131_v1  ;;  %302 = vst.msk [vmem:[#allocation2 + $0x6c8] sm:$0xff] %vm84_vm1, %v23131_v1 }
  0x6e   :  { %303 = vst.msk [vmem:[#allocation2 + $0x6d0] sm:$0xff] %vm84_vm1, %v23131_v1  ;;  %304 = vst.msk [vmem:[#allocation2 + $0x6d8] sm:$0xff] %vm84_vm1, %v23131_v1 }
  0x6f   :  { %305 = vst.msk [vmem:[#allocation2 + $0x6e0] sm:$0xff] %vm84_vm1, %v23131_v1  ;;  %306 = vst.msk [vmem:[#allocation2 + $0x6e8] sm:$0xff] %vm84_vm1, %v23131_v1 }
  0x70   :  { %307 = vst.msk [vmem:[#allocation2 + $0x6f0] sm:$0xff] %vm84_vm1, %v23131_v1  ;;  %308 = vst.msk [vmem:[#allocation2 + $0x6f8] sm:$0xff] %vm84_vm1, %v23131_v1 }
  0x71   :  { %309 = vst.msk [vmem:[#allocation2 + $0x700] sm:$0xff] %vm84_vm1, %v23131_v1  ;;  %310 = vst.msk [vmem:[#allocation2 + $0x708] sm:$0xff] %vm84_vm1, %v23131_v1 }
  0x72   :  { %311 = vst.msk [vmem:[#allocation2 + $0x710] sm:$0xff] %vm84_vm1, %v23131_v1  ;;  %312 = vst.msk [vmem:[#allocation2 + $0x718] sm:$0xff] %vm84_vm1, %v23131_v1 }
  0x73   :  { %313 = vst.msk [vmem:[#allocation2 + $0x720] sm:$0xff] %vm84_vm1, %v23131_v1  ;;  %314 = vst.msk [vmem:[#allocation2 + $0x728] sm:$0xff] %vm84_vm1, %v23131_v1 }
  0x74   :  { %315 = vst.msk [vmem:[#allocation2 + $0x730] sm:$0xff] %vm84_vm1, %v23131_v1  ;;  %316 = vst.msk [vmem:[#allocation2 + $0x738] sm:$0xff] %vm84_vm1, %v23131_v1 }
  0x75   :  { %317 = vst.msk [vmem:[#allocation2 + $0x740] sm:$0xff] %vm84_vm1, %v23131_v1  ;;  %318 = vst.msk [vmem:[#allocation2 + $0x748] sm:$0xff] %vm84_vm1, %v23131_v1 }
  0x76   :  { %319 = vst.msk [vmem:[#allocation2 + $0x750] sm:$0xff] %vm84_vm1, %v23131_v1  ;;  %320 = vst.msk [vmem:[#allocation2 + $0x758] sm:$0xff] %vm84_vm1, %v23131_v1 }
  0x77   :  { %321 = vst.msk [vmem:[#allocation2 + $0x760] sm:$0xff] %vm84_vm1, %v23131_v1  ;;  %322 = vst.msk [vmem:[#allocation2 + $0x768] sm:$0xff] %vm84_vm1, %v23131_v1 }
  0x78   :  { %323 = vst.msk [vmem:[#allocation2 + $0x770] sm:$0xff] %vm84_vm1, %v23131_v1  ;;  %324 = vst.msk [vmem:[#allocation2 + $0x778] sm:$0xff] %vm84_vm1, %v23131_v1 }
  0x79   :  { %326 = vst.msk [vmem:[#allocation2 + $0x20] sm:$0xff] %vm84_vm1, %v20_v3  ;;  %327 = vst.msk [vmem:[#allocation2 + $0x38] sm:$0xff] %vm84_vm1, %v21_v4  ;;  %v471_v3 = vld [vmem:[#allocation2 + $0x1e8] sm:$0xff]  ;;  %v74_v4 = vld [vmem:[%s23126_s0 + $0x1b0] sm:$0xff] }
  0x7a   :  { %328 = vst.msk [vmem:[#allocation2 + $0x50] sm:$0xff] %vm84_vm1, %v22_v5  ;;  %329 = vst.msk [vmem:[#allocation2 + $0x68] sm:$0xff] %vm84_vm1, %v23_v6  ;;  %v76_v5 = vld [vmem:[%s23126_s0 + $0x1c0] sm:$0xff] }
  0x7b   :  { %330 = vst.msk [vmem:[#allocation2 + $0x80] sm:$0xff] %vm84_vm1, %v24_v7  ;;  %331 = vst.msk [vmem:[#allocation2 + $0x98] sm:$0xff] %vm84_vm1, %v25_v8  ;;  %v77_v7 = vld [vmem:[%s23126_s0 + $0x1c8] sm:$0xff]  ;;  %v78_v8 = vld [vmem:[%s23126_s0 + $0x1d0] sm:$0xff] }
  0x7c   :  { %332 = vst.msk [vmem:[#allocation2 + $0xb0] sm:$0xff] %vm84_vm1, %v26_v9  ;;  %334 = vst.msk [vmem:[#allocation2 + $0x110] sm:$0xff] %vm84_vm1, %v28_v10  ;;  %v79_v9 = vld [vmem:[%s23126_s0 + $0x1d8] sm:$0xff]  ;;  %v80_v10 = vld [vmem:[%s23126_s0 + $0x1e0] sm:$0xff] }
  0x7d   :  { %335 = vst.msk [vmem:[#allocation2 + $0x128] sm:$0xff] %vm84_vm1, %v29_v11  ;;  %336 = vst.msk [vmem:[#allocation2 + $0x140] sm:$0xff] %vm84_vm1, %v30_v12  ;;  %v81_v11 = vld [vmem:[%s23126_s0 + $0x1e8] sm:$0xff]  ;;  %v82_v12 = vld [vmem:[%s23126_s0 + $0x1f0] sm:$0xff] }
  0x7e   :  { %337 = vst.msk [vmem:[#allocation2 + $0x158] sm:$0xff] %vm84_vm1, %v31_v13  ;;  %338 = vst.msk [vmem:[#allocation2 + $0x170] sm:$0xff] %vm84_vm1, %v32_v14  ;;  %v19439_v13 = vld [vmem:[%s23125_s1 + $0x8] sm:$0xf] }
  0x7f   :  { %339 = vst.msk [vmem:[#allocation2 + $0x188] sm:$0xff] %vm84_vm1, %v33_v15  ;;  %340 = vst.msk [vmem:[#allocation2 + $0x1a0] sm:$0xff] %vm84_vm1, %v34_v16 }
  0x80   :  { %342 = vst.msk [vmem:[#allocation2 + $0x200] sm:$0xff] %vm84_vm1, %v36_v17  ;;  %343 = vst.msk [vmem:[#allocation2 + $0x218] sm:$0xff] %vm84_vm1, %v37_v18  ;;  %v456_v23 = vld [vmem:[#allocation2 + $0x20] sm:$0xff]  ;;  %v457_v26 = vld [vmem:[#allocation2 + $0x38] sm:$0xff] }
  0x81   :  { %344 = vst.msk [vmem:[#allocation2 + $0x230] sm:$0xff] %vm84_vm1, %v38_v19  ;;  %345 = vst.msk [vmem:[#allocation2 + $0x248] sm:$0xff] %vm84_vm1, %v39_v20  ;;  %15884 = vmatmul.mubr.msk.f32.vlgmr.msra.gmra.mrb[0].mxu0 %vm84_vm1, %v456_v23  ;;  %v458_v27 = vld [vmem:[#allocation2 + $0x50] sm:$0xff]  ;;  %v459_v28 = vld [vmem:[#allocation2 + $0x68] sm:$0xff] }
  0x82   :  { %346 = vst.msk [vmem:[#allocation2 + $0x260] sm:$0xff] %vm84_vm1, %v40_v21  ;;  %347 = vst.msk [vmem:[#allocation2 + $0x278] sm:$0xff] %vm84_vm1, %v41_v24  ;;  %15980 = vmatpush3.msk.msra.mxu0 %vm713_vm0, %v454_v2  ;;  %15886 = vmatprep.mubr.msk.f32.mxu0 %vm84_vm1, %v457_v26  ;;  %v460_v29 = vld [vmem:[#allocation2 + $0x80] sm:$0xff]  ;;  %v461_v30 = vld [vmem:[#allocation2 + $0x98] sm:$0xff] }
  0x83   :  { %348 = vst.msk [vmem:[#allocation2 + $0x290] sm:$0xff] %vm84_vm1, %v42_v25  ;;  %350 = vst.msk [vmem:[#allocation2 + $0x2f0] sm:$0xff] %vm84_vm1, %v44_v31  ;;  %v462_v38 = vld [vmem:[#allocation2 + $0xb0] sm:$0xff]  ;;  %v73_v2 = vld [vmem:[%s23126_s0 + $0x1a8] sm:$0xff]  ;;  %16077 = vmatprep.subr.msk.mxu0 %vm713_vm0, %v19439_v13 }
  0x84   :  { %351 = vst.msk [vmem:[#allocation2 + $0x308] sm:$0xff] %vm84_vm1, %v45_v32  ;;  %352 = vst.msk [vmem:[#allocation2 + $0x320] sm:$0xff] %vm84_vm1, %v46_v33  ;;  %v464_v47 = vld [vmem:[#allocation2 + $0x110] sm:$0xff]  ;;  %v465_v53 = vld [vmem:[#allocation2 + $0x128] sm:$0xff] }
  0x85   :  { %15887 = vmatmul.mubr.msk.f32.gmra.mrb[2].mxu0 %vm84_vm1, %v458_v27  ;;  %353 = vst.msk [vmem:[#allocation2 + $0x338] sm:$0xff] %vm84_vm1, %v47_v35  ;;  %354 = vst.msk [vmem:[#allocation2 + $0x350] sm:$0xff] %vm84_vm1, %v48_v36  ;;  %v466_v56 = vld [vmem:[#allocation2 + $0x140] sm:$0xff]  ;;  %v467_v58 = vld [vmem:[#allocation2 + $0x158] sm:$0xff] }
  0x86   :  { %15889 = vmatprep.mubr.msk.f32.mxu0 %vm84_vm1, %v459_v28  ;;  %355 = vst.msk [vmem:[#allocation2 + $0x368] sm:$0xff] %vm84_vm1, %v49_v37  ;;  %356 = vst.msk [vmem:[#allocation2 + $0x380] sm:$0xff] %vm84_vm1, %v50_v39  ;;  %v468_v60 = vld [vmem:[#allocation2 + $0x170] sm:$0xff]  ;;  %v469_v61 = vld [vmem:[#allocation2 + $0x188] sm:$0xff] }
  0x87   :  { %358 = vst.msk [vmem:[#allocation2 + $0x3e0] sm:$0xff] %vm84_vm1, %v52_v40  ;;  %359 = vst.msk [vmem:[#allocation2 + $0x3f8] sm:$0xff] %vm84_vm1, %v53_v41  ;;  %v470_v6 = vld [vmem:[#allocation2 + $0x1a0] sm:$0xff]  ;;  %v473_v15 = vld [vmem:[#allocation2 + $0x218] sm:$0xff] }
  0x88   :  { %360 = vst.msk [vmem:[#allocation2 + $0x410] sm:$0xff] %vm84_vm1, %v54_v42  ;;  %361 = vst.msk [vmem:[#allocation2 + $0x428] sm:$0xff] %vm84_vm1, %v55_v43  ;;  %v472_v14 = vld [vmem:[#allocation2 + $0x200] sm:$0xff]  ;;  %v474_v16 = vld [vmem:[#allocation2 + $0x230] sm:$0xff] }
  0x89   :  { %15890 = vmatmul.mubr.msk.f32.gmra.mrb[4].mxu0 %vm84_vm1, %v460_v29  ;;  %362 = vst.msk [vmem:[#allocation2 + $0x440] sm:$0xff] %vm84_vm1, %v56_v44  ;;  %363 = vst.msk [vmem:[#allocation2 + $0x458] sm:$0xff] %vm84_vm1, %v57_v45  ;;  %v475_v17 = vld [vmem:[#allocation2 + $0x248] sm:$0xff]  ;;  %v476_v18 = vld [vmem:[#allocation2 + $0x260] sm:$0xff] }
  0x8a   :  { %15892 = vmatprep.mubr.msk.f32.mxu0 %vm84_vm1, %v461_v30  ;;  %364 = vst.msk [vmem:[#allocation2 + $0x470] sm:$0xff] %vm84_vm1, %v58_v46  ;;  %366 = vst.msk [vmem:[#allocation2 + $0x4d0] sm:$0xff] %vm84_vm1, %v60_v48  ;;  %v477_v19 = vld [vmem:[#allocation2 + $0x278] sm:$0xff]  ;;  %v478_v20 = vld [vmem:[#allocation2 + $0x290] sm:$0xff] }
  0x8b   :  { %367 = vst.msk [vmem:[#allocation2 + $0x4e8] sm:$0xff] %vm84_vm1, %v61_v49  ;;  %368 = vst.msk [vmem:[#allocation2 + $0x500] sm:$0xff] %vm84_vm1, %v62_v50  ;;  %v479_v21 = vld [vmem:[#allocation2 + $0x2d8] sm:$0xff]  ;;  %v480_v22 = vld [vmem:[#allocation2 + $0x2f0] sm:$0xff] }
  0x8c   :  { %369 = vst.msk [vmem:[#allocation2 + $0x518] sm:$0xff] %vm84_vm1, %v63_v51  ;;  %370 = vst.msk [vmem:[#allocation2 + $0x530] sm:$0xff] %vm84_vm1, %v64_v52  ;;  %v481_v23 = vld [vmem:[#allocation2 + $0x308] sm:$0xff]  ;;  %v482_v24 = vld [vmem:[#allocation2 + $0x320] sm:$0xff] }
  0x8d   :  { %15893 = vmatmul.mubr.msk.f32.gmra.mrb[6].mxu0 %vm84_vm1, %v462_v38  ;;  %371 = vst.msk [vmem:[#allocation2 + $0x548] sm:$0xff] %vm84_vm1, %v65_v54  ;;  %372 = vst.msk [vmem:[#allocation2 + $0x560] sm:$0xff] %vm84_vm1, %v66_v55  ;;  %v483_v25 = vld [vmem:[#allocation2 + $0x338] sm:$0xff]  ;;  %v484_v26 = vld [vmem:[#allocation2 + $0x350] sm:$0xff] }
  0x8e   :  { %15895 = vmatprep.mubr.msk.f32.mxu0 %vm84_vm1, %v463_v34  ;;  %374 = vst.msk [vmem:[#allocation2 + $0x5c0] sm:$0xff] %vm84_vm1, %v68_v57  ;;  %375 = vst.msk [vmem:[#allocation2 + $0x5d8] sm:$0xff] %vm84_vm1, %v69_v59  ;;  %v485_v27 = vld [vmem:[#allocation2 + $0x368] sm:$0xff]  ;;  %v486_v28 = vld [vmem:[#allocation2 + $0x380] sm:$0xff] }
  0x8f   :  { %376 = vst.msk [vmem:[#allocation2 + $0x5f0] sm:$0xff] %vm84_vm1, %v70_v62  ;;  %377 = vst.msk [vmem:[#allocation2 + $0x608] sm:$0xff] %vm84_vm1, %v71_v63  ;;  %v487_v29 = vld [vmem:[#allocation2 + $0x3c8] sm:$0xff]  ;;  %v488_v30 = vld [vmem:[#allocation2 + $0x3e0] sm:$0xff] }
  0x90   :  { %378 = vst.msk [vmem:[#allocation2 + $0x620] sm:$0xff] %vm84_vm1, %v72_v0  ;;  %379 = vst.msk [vmem:[#allocation2 + $0x638] sm:$0xff] %vm84_vm1, %v73_v2  ;;  %v489_v31 = vld [vmem:[#allocation2 + $0x3f8] sm:$0xff]  ;;  %v490_v32 = vld [vmem:[#allocation2 + $0x410] sm:$0xff] }
  0x91   :  { %15896 = vmatmul.mubr.msk.f32.gmra.mrb[8].mxu0 %vm84_vm1, %v464_v47  ;;  %380 = vst.msk [vmem:[#allocation2 + $0x650] sm:$0xff] %vm84_vm1, %v74_v4  ;;  %382 = vst.msk [vmem:[#allocation2 + $0x6b0] sm:$0xff] %vm84_vm1, %v76_v5  ;;  %v491_v33 = vld [vmem:[#allocation2 + $0x428] sm:$0xff]  ;;  %v492_v34 = vld [vmem:[#allocation2 + $0x440] sm:$0xff] }
  0x92   :  { %15898 = vmatprep.mubr.msk.f32.mxu0 %vm84_vm1, %v465_v53  ;;  %383 = vst.msk [vmem:[#allocation2 + $0x6c8] sm:$0xff] %vm84_vm1, %v77_v7  ;;  %384 = vst.msk [vmem:[#allocation2 + $0x6e0] sm:$0xff] %vm84_vm1, %v78_v8  ;;  %v493_v35 = vld [vmem:[#allocation2 + $0x458] sm:$0xff]  ;;  %v494_v36 = vld [vmem:[#allocation2 + $0x470] sm:$0xff] }
  0x93   :  { %385 = vst.msk [vmem:[#allocation2 + $0x6f8] sm:$0xff] %vm84_vm1, %v79_v9  ;;  %386 = vst.msk [vmem:[#allocation2 + $0x710] sm:$0xff] %vm84_vm1, %v80_v10  ;;  %v495_v37 = vld [vmem:[#allocation2 + $0x4b8] sm:$0xff]  ;;  %v496_v38 = vld [vmem:[#allocation2 + $0x4d0] sm:$0xff] }
  0x94   :  { %387 = vst.msk [vmem:[#allocation2 + $0x728] sm:$0xff] %vm84_vm1, %v81_v11  ;;  %388 = vst.msk [vmem:[#allocation2 + $0x740] sm:$0xff] %vm84_vm1, %v82_v12  ;;  %v497_v39 = vld [vmem:[#allocation2 + $0x4e8] sm:$0xff]  ;;  %v498_v40 = vld [vmem:[#allocation2 + $0x500] sm:$0xff] }
  0x95   :  { %15899 = vmatmul.mubr.msk.f32.gmra.mrb[10].mxu0 %vm84_vm1, %v466_v56  ;;  %v499_v41 = vld [vmem:[#allocation2 + $0x518] sm:$0xff]  ;;  %v500_v42 = vld [vmem:[#allocation2 + $0x530] sm:$0xff]  ;;  %v501_v43 = vld [vmem:[#allocation2 + $0x548] sm:$0xff] }
  0x96   :  { %15901 = vmatprep.mubr.msk.f32.mxu0 %vm84_vm1, %v467_v58  ;;  %v502_v44 = vld [vmem:[#allocation2 + $0x560] sm:$0xff]  ;;  %v503_v45 = vld [vmem:[#allocation2 + $0x5a8] sm:$0xff]  ;;  %v505_v47 = vld [vmem:[#allocation2 + $0x5d8] sm:$0xff] }
  0x97   :  { %v504_v46 = vld [vmem:[#allocation2 + $0x5c0] sm:$0xff]  ;;  %v506_v48 = vld [vmem:[#allocation2 + $0x5f0] sm:$0xff]  ;;  %v507_v49 = vld [vmem:[#allocation2 + $0x608] sm:$0xff] }
  0x98   :  { %v508_v50 = vld [vmem:[#allocation2 + $0x620] sm:$0xff]  ;;  %v509_v51 = vld [vmem:[#allocation2 + $0x638] sm:$0xff]  ;;  %v510_v52 = vld [vmem:[#allocation2 + $0x650] sm:$0xff] }
  0x99   :  { %15902 = vmatmul.mubr.msk.f32.gmra.mrb[12].mxu0 %vm84_vm1, %v468_v60  ;;  %v511_v53 = vld [vmem:[#allocation2 + $0x698] sm:$0xff]  ;;  %v512_v54 = vld [vmem:[#allocation2 + $0x6b0] sm:$0xff]  ;;  %v513_v55 = vld [vmem:[#allocation2 + $0x6c8] sm:$0xff] }
  0x9a   :  { %15904 = vmatprep.mubr.msk.f32.mxu0 %vm84_vm1, %v469_v61  ;;  %v514_v56 = vld [vmem:[#allocation2 + $0x6e0] sm:$0xff]  ;;  %v515_v57 = vld [vmem:[#allocation2 + $0x6f8] sm:$0xff]  ;;  %v516_v58 = vld [vmem:[#allocation2 + $0x710] sm:$0xff] }
  0x9b   :  { %v517_v59 = vld [vmem:[#allocation2 + $0x728] sm:$0xff]  ;;  %v518_v60 = vld [vmem:[#allocation2 + $0x740] sm:$0xff]  ;;  %v19496_v63 = vld [vmem:[#allocation2 + $0x37] sm:$0xff] }
  0x9c   :  { %v390_v61 = vld [vmem:[#allocation2 + $0x7] sm:$0xff]  ;;  %v19494_v62 = vld [vmem:[#allocation2 + $0x1f] sm:$0xff]  ;;  %v19509_v2 = vld [vmem:[#allocation2 + $0x4f] sm:$0xff] }
  0x9d   :  { %15905 = vmatmul.mubr.msk.f32.gmra.mrb[14].mxu0 %vm84_vm1, %v470_v6  ;;  %v19501_v0 = vld [vmem:[%s23125_s1 + $0xc] sm:$0xf]  ;;  %v19519_v4 = vld [vmem:[#allocation2 + $0x7f] sm:$0xff]  ;;  %v19521_v5 = vld [vmem:[#allocation2 + $0x97] sm:$0xff] }
  0x9e   :  { %15907 = vmatprep.mubr.msk.f32.mxu0 %vm84_vm1, %v471_v3  ;;  %v19511_v3 = vld [vmem:[#allocation2 + $0x67] sm:$0xff]  ;;  %v19527_v6 = vld [vmem:[#allocation2 + $0xaf] sm:$0xff]  ;;  %v398_v7 = vld [vmem:[#allocation2 + $0xf7] sm:$0xff] }
  0x9f   :  { %v19532_v8 = vld [vmem:[#allocation2 + $0x10f] sm:$0xff]  ;;  %v19534_v9 = vld [vmem:[#allocation2 + $0x127] sm:$0xff]  ;;  %v19540_v10 = vld [vmem:[#allocation2 + $0x13f] sm:$0xff] }
  0xa0   :  { %v19542_v11 = vld [vmem:[#allocation2 + $0x157] sm:$0xff]  ;;  %v19548_v12 = vld [vmem:[#allocation2 + $0x16f] sm:$0xff] }
  0xa1   :  { %15908 = vmatmul.mubr.msk.f32.gmra.mrb[16].mxu0 %vm84_vm1, %v472_v14  ;;  %v19556_v14 = vld [vmem:[#allocation2 + $0x19f] sm:$0xff] }
  0xa2   :  { %15910 = vmatprep.mubr.msk.f32.mxu0 %vm84_vm1, %v473_v15  ;;  %v406_v15 = vld [vmem:[#allocation2 + $0x1e7] sm:$0xff]  ;;  %v19766_v1 = vld [vmem:[#allocation2 + $0x99] sm:$0xff] }
  0xa3   :  { %23277 = vst [vmem:[#allocation9_spill] sm:$0xff] %v19766_v1 }
  0xa5   :  { %15911 = vmatmul.mubr.msk.f32.gmra.mrb[18].mxu0 %vm84_vm1, %v474_v16  ;;  %v19561_v16 = vld [vmem:[#allocation2 + $0x1ff] sm:$0xff] }
  0xa6   :  { %15913 = vmatprep.mubr.msk.f32.mxu0 %vm84_vm1, %v475_v17  ;;  %v19563_v17 = vld [vmem:[#allocation2 + $0x217] sm:$0xff] }
  0xa9   :  { %15914 = vmatmul.mubr.msk.f32.gmra.mrb[20].mxu0 %vm84_vm1, %v476_v18  ;;  %v19569_v18 = vld [vmem:[#allocation2 + $0x22f] sm:$0xff] }
  0xaa   :  { %15916 = vmatprep.mubr.msk.f32.mxu0 %vm84_vm1, %v477_v19  ;;  %v19571_v19 = vld [vmem:[#allocation2 + $0x247] sm:$0xff] }
  0xad   :  { %15917 = vmatmul.mubr.msk.f32.gmra.mrb[22].mxu0 %vm84_vm1, %v478_v20  ;;  %v19577_v20 = vld [vmem:[#allocation2 + $0x25f] sm:$0xff] }
  0xae   :  { %15919 = vmatprep.mubr.msk.f32.mxu0 %vm84_vm1, %v479_v21  ;;  %v19579_v21 = vld [vmem:[#allocation2 + $0x277] sm:$0xff] }
  0xb1   :  { %15920 = vmatmul.mubr.msk.f32.gmra.mrb[24].mxu0 %vm84_vm1, %v480_v22  ;;  %v19585_v22 = vld [vmem:[#allocation2 + $0x28f] sm:$0xff] }
  0xb2   :  { %15922 = vmatprep.mubr.msk.f32.mxu0 %vm84_vm1, %v481_v23  ;;  %v414_v23 = vld [vmem:[#allocation2 + $0x2d7] sm:$0xff] }
  0xb5   :  { %15923 = vmatmul.mubr.msk.f32.gmra.mrb[26].mxu0 %vm84_vm1, %v482_v24  ;;  %v19590_v24 = vld [vmem:[#allocation2 + $0x2ef] sm:$0xff] }
  0xb6   :  { %15925 = vmatprep.mubr.msk.f32.mxu0 %vm84_vm1, %v483_v25  ;;  %v19592_v25 = vld [vmem:[#allocation2 + $0x307] sm:$0xff] }
  0xb9   :  { %15926 = vmatmul.mubr.msk.f32.gmra.mrb[28].mxu0 %vm84_vm1, %v484_v26  ;;  %v19598_v26 = vld [vmem:[#allocation2 + $0x31f] sm:$0xff] }
  0xba   :  { %15928 = vmatprep.mubr.msk.f32.mxu0 %vm84_vm1, %v485_v27  ;;  %v19600_v27 = vld [vmem:[#allocation2 + $0x337] sm:$0xff] }
  0xbd   :  { %15929 = vmatmul.mubr.msk.f32.gmra.mrb[30].mxu0 %vm84_vm1, %v486_v28  ;;  %v19606_v28 = vld [vmem:[#allocation2 + $0x34f] sm:$0xff] }
  0xbe   :  { %15931 = vmatprep.mubr.msk.f32.mxu0 %vm84_vm1, %v487_v29  ;;  %v19608_v29 = vld [vmem:[#allocation2 + $0x367] sm:$0xff] }
  0xc1   :  { %15932 = vmatmul.mubr.msk.f32.gmra.mrb[32].mxu0 %vm84_vm1, %v488_v30  ;;  %v19614_v30 = vld [vmem:[#allocation2 + $0x37f] sm:$0xff] }
  0xc2   :  { %15934 = vmatprep.mubr.msk.f32.mxu0 %vm84_vm1, %v489_v31  ;;  %v422_v31 = vld [vmem:[#allocation2 + $0x3c7] sm:$0xff] }
  0xc5   :  { %15935 = vmatmul.mubr.msk.f32.gmra.mrb[34].mxu0 %vm84_vm1, %v490_v32  ;;  %v19619_v32 = vld [vmem:[#allocation2 + $0x3df] sm:$0xff] }
  0xc6   :  { %15937 = vmatprep.mubr.msk.f32.mxu0 %vm84_vm1, %v491_v33  ;;  %v19621_v33 = vld [vmem:[#allocation2 + $0x3f7] sm:$0xff] }
  0xc9   :  { %15938 = vmatmul.mubr.msk.f32.gmra.mrb[36].mxu0 %vm84_vm1, %v492_v34  ;;  %v19627_v34 = vld [vmem:[#allocation2 + $0x40f] sm:$0xff] }
  0xca   :  { %15940 = vmatprep.mubr.msk.f32.mxu0 %vm84_vm1, %v493_v35  ;;  %v19629_v35 = vld [vmem:[#allocation2 + $0x427] sm:$0xff] }
  0xcd   :  { %15941 = vmatmul.mubr.msk.f32.gmra.mrb[38].mxu0 %vm84_vm1, %v494_v36  ;;  %v19635_v36 = vld [vmem:[#allocation2 + $0x43f] sm:$0xff] }
  0xce   :  { %15943 = vmatprep.mubr.msk.f32.mxu0 %vm84_vm1, %v495_v37  ;;  %v19637_v37 = vld [vmem:[#allocation2 + $0x457] sm:$0xff] }
  0xd1   :  { %15944 = vmatmul.mubr.msk.f32.gmra.mrb[40].mxu0 %vm84_vm1, %v496_v38  ;;  %v19643_v38 = vld [vmem:[#allocation2 + $0x46f] sm:$0xff] }
  0xd2   :  { %15946 = vmatprep.mubr.msk.f32.mxu0 %vm84_vm1, %v497_v39  ;;  %v430_v39 = vld [vmem:[#allocation2 + $0x4b7] sm:$0xff] }
  0xd5   :  { %15947 = vmatmul.mubr.msk.f32.gmra.mrb[42].mxu0 %vm84_vm1, %v498_v40  ;;  %v19648_v40 = vld [vmem:[#allocation2 + $0x4cf] sm:$0xff] }
  0xd6   :  { %15949 = vmatprep.mubr.msk.f32.mxu0 %vm84_vm1, %v499_v41  ;;  %v19650_v41 = vld [vmem:[#allocation2 + $0x4e7] sm:$0xff] }
  0xd9   :  { %15950 = vmatmul.mubr.msk.f32.gmra.mrb[44].mxu0 %vm84_vm1, %v500_v42  ;;  %v19656_v42 = vld [vmem:[#allocation2 + $0x4ff] sm:$0xff] }
  0xda   :  { %15952 = vmatprep.mubr.msk.f32.mxu0 %vm84_vm1, %v501_v43  ;;  %v19658_v43 = vld [vmem:[#allocation2 + $0x517] sm:$0xff] }
  0xdd   :  { %15953 = vmatmul.mubr.msk.f32.gmra.mrb[46].mxu0 %vm84_vm1, %v502_v44  ;;  %v19664_v44 = vld [vmem:[#allocation2 + $0x52f] sm:$0xff] }
  0xde   :  { %15955 = vmatprep.mubr.msk.f32.mxu0 %vm84_vm1, %v503_v45  ;;  %v19666_v45 = vld [vmem:[#allocation2 + $0x547] sm:$0xff] }
  0xe1   :  { %15956 = vmatmul.mubr.msk.f32.gmra.mrb[48].mxu0 %vm84_vm1, %v504_v46  ;;  %v19672_v46 = vld [vmem:[#allocation2 + $0x55f] sm:$0xff] }
  0xe2   :  { %15958 = vmatprep.mubr.msk.f32.mxu0 %vm84_vm1, %v505_v47  ;;  %v438_v47 = vld [vmem:[#allocation2 + $0x5a7] sm:$0xff] }
  0xe5   :  { %15959 = vmatmul.mubr.msk.f32.gmra.mrb[50].mxu0 %vm84_vm1, %v506_v48  ;;  %v19677_v48 = vld [vmem:[#allocation2 + $0x5bf] sm:$0xff] }
  0xe6   :  { %15961 = vmatprep.mubr.msk.f32.mxu0 %vm84_vm1, %v507_v49  ;;  %v19679_v49 = vld [vmem:[#allocation2 + $0x5d7] sm:$0xff] }
  0xe9   :  { %15962 = vmatmul.mubr.msk.f32.gmra.mrb[52].mxu0 %vm84_vm1, %v508_v50  ;;  %v19685_v50 = vld [vmem:[#allocation2 + $0x5ef] sm:$0xff] }
  0xea   :  { %15964 = vmatprep.mubr.msk.f32.mxu0 %vm84_vm1, %v509_v51  ;;  %v19687_v51 = vld [vmem:[#allocation2 + $0x607] sm:$0xff] }
  0xed   :  { %15965 = vmatmul.mubr.msk.f32.gmra.mrb[54].mxu0 %vm84_vm1, %v510_v52  ;;  %v19693_v52 = vld [vmem:[#allocation2 + $0x61f] sm:$0xff] }
  0xee   :  { %15967 = vmatprep.mubr.msk.f32.mxu0 %vm84_vm1, %v511_v53  ;;  %v19695_v53 = vld [vmem:[#allocation2 + $0x637] sm:$0xff] }
  0xf1   :  { %15968 = vmatmul.mubr.msk.f32.gmra.mrb[56].mxu0 %vm84_vm1, %v512_v54  ;;  %v19701_v54 = vld [vmem:[#allocation2 + $0x64f] sm:$0xff] }
  0xf2   :  { %15970 = vmatprep.mubr.msk.f32.mxu0 %vm84_vm1, %v513_v55  ;;  %v446_v55 = vld [vmem:[#allocation2 + $0x697] sm:$0xff] }
  0xf5   :  { %15971 = vmatmul.mubr.msk.f32.gmra.mrb[58].mxu0 %vm84_vm1, %v514_v56  ;;  %v19706_v56 = vld [vmem:[#allocation2 + $0x6af] sm:$0xff] }
  0xf6   :  { %15973 = vmatprep.mubr.msk.f32.mxu0 %vm84_vm1, %v515_v57  ;;  %v19708_v57 = vld [vmem:[#allocation2 + $0x6c7] sm:$0xff] }
  0xf9   :  { %15974 = vmatmul.mubr.msk.f32.gmra.mrb[60].mxu0 %vm84_vm1, %v516_v58  ;;  %v19714_v58 = vld [vmem:[#allocation2 + $0x6df] sm:$0xff] }
  0xfa   :  { %15976 = vmatprep.mubr.msk.f32.mxu0 %vm84_vm1, %v517_v59  ;;  %v19716_v59 = vld [vmem:[#allocation2 + $0x6f7] sm:$0xff] }
  0xfd   :  { %15977 = vmatmul.mubr.msk.f32.gmra.mrb[62].mxu0 %vm84_vm1, %v518_v60  ;;  %v19722_v60 = vld [vmem:[#allocation2 + $0x70f] sm:$0xff] }
  0xfe   :  { %15981 = vmatprep.mubr.msk.f32.mxu0 %vm84_vm1, %v390_v61  ;;  %v19724_v61 = vld [vmem:[#allocation2 + $0x727] sm:$0xff] }
 0x101   :  { %15982 = vmatmul.mubr.msk.f32.vlgmr.msra.gmra.mrb[0].mxu0 %vm84_vm1, %v19494_v62 }
 0x102   :  { %16078 = vmatpush3.msk.msra.mxu0 %vm713_vm0, %v19439_v13  ;;  %15984 = vmatprep.mubr.msk.f32.mxu0 %vm84_vm1, %v19496_v63  ;;  %v19550_v13 = vld [vmem:[#allocation2 + $0x187] sm:$0xff] }
 0x103   :  { %16175 = vmatprep.subr.msk.mxu0 %vm713_vm0, %v19501_v0 }
 0x105   :  { %15985 = vmatmul.mubr.msk.f32.gmra.mrb[2].mxu0 %vm84_vm1, %v19509_v2 }
 0x106   :  { %15987 = vmatprep.mubr.msk.f32.mxu0 %vm84_vm1, %v19511_v3 }
 0x109   :  { %15988 = vmatmul.mubr.msk.f32.gmra.mrb[4].mxu0 %vm84_vm1, %v19519_v4 }
 0x10a   :  { %15990 = vmatprep.mubr.msk.f32.mxu0 %vm84_vm1, %v19521_v5 }
 0x10d   :  { %15991 = vmatmul.mubr.msk.f32.gmra.mrb[6].mxu0 %vm84_vm1, %v19527_v6 }
 0x10e   :  { %15993 = vmatprep.mubr.msk.f32.mxu0 %vm84_vm1, %v398_v7  ;;  %v19730_v7 = vld [vmem:[#allocation2 + $0x73f] sm:$0xff] }
 0x111   :  { %15994 = vmatmul.mubr.msk.f32.gmra.mrb[8].mxu0 %vm84_vm1, %v19532_v8 }
 0x112   :  { %15996 = vmatprep.mubr.msk.f32.mxu0 %vm84_vm1, %v19534_v9 }
 0x115   :  { %15997 = vmatmul.mubr.msk.f32.gmra.mrb[10].mxu0 %vm84_vm1, %v19540_v10 }
 0x116   :  { %15999 = vmatprep.mubr.msk.f32.mxu0 %vm84_vm1, %v19542_v11 }
 0x119   :  { %16000 = vmatmul.mubr.msk.f32.gmra.mrb[12].mxu0 %vm84_vm1, %v19548_v12 }
 0x11a   :  { %16002 = vmatprep.mubr.msk.f32.mxu0 %vm84_vm1, %v19550_v13 }
 0x11d   :  { %16003 = vmatmul.mubr.msk.f32.gmra.mrb[14].mxu0 %vm84_vm1, %v19556_v14 }
 0x11e   :  { %16005 = vmatprep.mubr.msk.f32.mxu0 %vm84_vm1, %v406_v15  ;;  %v1682_v15 = vld [vmem:[#allocation2 + $0x9] sm:$0xff] }
 0x121   :  { %16006 = vmatmul.mubr.msk.f32.gmra.mrb[16].mxu0 %vm84_vm1, %v19561_v16 }
 0x122   :  { %16008 = vmatprep.mubr.msk.f32.mxu0 %vm84_vm1, %v19563_v17 }
 0x125   :  { %16009 = vmatmul.mubr.msk.f32.gmra.mrb[18].mxu0 %vm84_vm1, %v19569_v18 }
 0x126   :  { %16011 = vmatprep.mubr.msk.f32.mxu0 %vm84_vm1, %v19571_v19 }
 0x129   :  { %16012 = vmatmul.mubr.msk.f32.gmra.mrb[20].mxu0 %vm84_vm1, %v19577_v20 }
 0x12a   :  { %16014 = vmatprep.mubr.msk.f32.mxu0 %vm84_vm1, %v19579_v21 }
 0x12d   :  { %16015 = vmatmul.mubr.msk.f32.gmra.mrb[22].mxu0 %vm84_vm1, %v19585_v22 }
 0x12e   :  { %16017 = vmatprep.mubr.msk.f32.mxu0 %vm84_vm1, %v414_v23  ;;  %v19735_v23 = vld [vmem:[#allocation2 + $0x21] sm:$0xff] }
 0x12f   :  { %23272 = vst [vmem:[#allocation4_spill] sm:$0xff] %v19735_v23 }
 0x131   :  { %16018 = vmatmul.mubr.msk.f32.gmra.mrb[24].mxu0 %vm84_vm1, %v19590_v24 }
 0x132   :  { %16020 = vmatprep.mubr.msk.f32.mxu0 %vm84_vm1, %v19592_v25 }
 0x135   :  { %16021 = vmatmul.mubr.msk.f32.gmra.mrb[26].mxu0 %vm84_vm1, %v19598_v26 }
 0x136   :  { %16023 = vmatprep.mubr.msk.f32.mxu0 %vm84_vm1, %v19600_v27 }
 0x139   :  { %16024 = vmatmul.mubr.msk.f32.gmra.mrb[28].mxu0 %vm84_vm1, %v19606_v28 }
 0x13a   :  { %16026 = vmatprep.mubr.msk.f32.mxu0 %vm84_vm1, %v19608_v29 }
 0x13d   :  { %16027 = vmatmul.mubr.msk.f32.gmra.mrb[30].mxu0 %vm84_vm1, %v19614_v30 }
 0x13e   :  { %16029 = vmatprep.mubr.msk.f32.mxu0 %vm84_vm1, %v422_v31  ;;  %v19737_v31 = vld [vmem:[#allocation2 + $0x39] sm:$0xff] }
 0x13f   :  { %23273 = vst [vmem:[#allocation5_spill] sm:$0xff] %v19737_v31 }
 0x141   :  { %16030 = vmatmul.mubr.msk.f32.gmra.mrb[32].mxu0 %vm84_vm1, %v19619_v32 }
 0x142   :  { %16032 = vmatprep.mubr.msk.f32.mxu0 %vm84_vm1, %v19621_v33 }
 0x145   :  { %16033 = vmatmul.mubr.msk.f32.gmra.mrb[34].mxu0 %vm84_vm1, %v19627_v34 }
 0x146   :  { %16035 = vmatprep.mubr.msk.f32.mxu0 %vm84_vm1, %v19629_v35 }
 0x149   :  { %16036 = vmatmul.mubr.msk.f32.gmra.mrb[36].mxu0 %vm84_vm1, %v19635_v36 }
 0x14a   :  { %16038 = vmatprep.mubr.msk.f32.mxu0 %vm84_vm1, %v19637_v37 }
 0x14d   :  { %16039 = vmatmul.mubr.msk.f32.gmra.mrb[38].mxu0 %vm84_vm1, %v19643_v38 }
 0x14e   :  { %16041 = vmatprep.mubr.msk.f32.mxu0 %vm84_vm1, %v430_v39  ;;  %v19742_v39 = vld [vmem:[%s23125_s1 + $0x10] sm:$0xf] }
 0x151   :  { %16042 = vmatmul.mubr.msk.f32.gmra.mrb[40].mxu0 %vm84_vm1, %v19648_v40 }
 0x152   :  { %16044 = vmatprep.mubr.msk.f32.mxu0 %vm84_vm1, %v19650_v41 }
 0x155   :  { %16045 = vmatmul.mubr.msk.f32.gmra.mrb[42].mxu0 %vm84_vm1, %v19656_v42 }
 0x156   :  { %16047 = vmatprep.mubr.msk.f32.mxu0 %vm84_vm1, %v19658_v43 }
 0x159   :  { %16048 = vmatmul.mubr.msk.f32.gmra.mrb[44].mxu0 %vm84_vm1, %v19664_v44 }
 0x15a   :  { %16050 = vmatprep.mubr.msk.f32.mxu0 %vm84_vm1, %v19666_v45 }
 0x15d   :  { %16051 = vmatmul.mubr.msk.f32.gmra.mrb[46].mxu0 %vm84_vm1, %v19672_v46 }
 0x15e   :  { %16053 = vmatprep.mubr.msk.f32.mxu0 %vm84_vm1, %v438_v47  ;;  %v19750_v47 = vld [vmem:[#allocation2 + $0x51] sm:$0xff] }
 0x15f   :  { %23274 = vst [vmem:[#allocation6_spill] sm:$0xff] %v19750_v47 }
 0x161   :  { %16054 = vmatmul.mubr.msk.f32.gmra.mrb[48].mxu0 %vm84_vm1, %v19677_v48 }
 0x162   :  { %16056 = vmatprep.mubr.msk.f32.mxu0 %vm84_vm1, %v19679_v49 }
 0x165   :  { %16057 = vmatmul.mubr.msk.f32.gmra.mrb[50].mxu0 %vm84_vm1, %v19685_v50 }
 0x166   :  { %16059 = vmatprep.mubr.msk.f32.mxu0 %vm84_vm1, %v19687_v51 }
 0x169   :  { %16060 = vmatmul.mubr.msk.f32.gmra.mrb[52].mxu0 %vm84_vm1, %v19693_v52 }
 0x16a   :  { %16062 = vmatprep.mubr.msk.f32.mxu0 %vm84_vm1, %v19695_v53 }
 0x16d   :  { %16063 = vmatmul.mubr.msk.f32.gmra.mrb[54].mxu0 %vm84_vm1, %v19701_v54 }
 0x16e   :  { %16065 = vmatprep.mubr.msk.f32.mxu0 %vm84_vm1, %v446_v55  ;;  %v19752_v55 = vld [vmem:[#allocation2 + $0x69] sm:$0xff] }
 0x16f   :  { %23275 = vst [vmem:[#allocation7_spill] sm:$0xff] %v19752_v55 }
 0x171   :  { %16066 = vmatmul.mubr.msk.f32.gmra.mrb[56].mxu0 %vm84_vm1, %v19706_v56 }
 0x172   :  { %16068 = vmatprep.mubr.msk.f32.mxu0 %vm84_vm1, %v19708_v57 }
 0x175   :  { %16069 = vmatmul.mubr.msk.f32.gmra.mrb[58].mxu0 %vm84_vm1, %v19714_v58 }
 0x176   :  { %16071 = vmatprep.mubr.msk.f32.mxu0 %vm84_vm1, %v19716_v59 }
 0x179   :  { %16072 = vmatmul.mubr.msk.f32.gmra.mrb[60].mxu0 %vm84_vm1, %v19722_v60 }
 0x17a   :  { %16074 = vmatprep.mubr.msk.f32.mxu0 %vm84_vm1, %v19724_v61 }
 0x17d   :  { %16075 = vmatmul.mubr.msk.f32.gmra.mrb[62].mxu0 %vm84_vm1, %v19730_v7 }
 0x17e   :  { %16079 = vmatprep.mubr.msk.f32.mxu0 %vm84_vm1, %v1682_v15  ;;  %v27_v15 = vld [vmem:[%s23126_s0 + $0x38] sm:$0xff] }
 0x17f   :  { %333 = vst.msk [vmem:[#allocation2 + $0xc8] sm:$0xff] %vm84_vm1, %v27_v15  ;;  %v19777_v15 = vld [vmem:[#allocation2 + $0x111] sm:$0xff] }
 0x180   :  { %23279 = vst [vmem:[#allocation11_spill] sm:$0xff] %v19777_v15 }
 0x181   :  { %16080 = vmatmul.mubr.msk.f32.vlgmr.msra.gmra.mrb[0].mxu0 %vm84_vm1, %v19735_v23  ;;  %v1690_v23 = vld [vmem:[#allocation2 + $0xf9] sm:$0xff] }
 0x182   :  { %16176 = vmatpush3.msk.msra.mxu0 %vm713_vm0, %v19501_v0  ;;  %16082 = vmatprep.mubr.msk.f32.mxu0 %vm84_vm1, %v19737_v31  ;;  %v19764_v0 = vld [vmem:[#allocation2 + $0x81] sm:$0xff]  ;;  %v19772_v31 = vld [vmem:[#allocation2 + $0xb1] sm:$0xff] }
 0x183   :  { %16273 = vmatprep.subr.msk.mxu0 %vm713_vm0, %v19742_v39  ;;  %23276 = vst [vmem:[#allocation8_spill] sm:$0xff] %v19764_v0  ;;  %23278 = vst [vmem:[#allocation10_spill] sm:$0xff] %v19772_v31 }
 0x185   :  { %16083 = vmatmul.mubr.msk.f32.gmra.mrb[2].mxu0 %vm84_vm1, %v19750_v47  ;;  %v1698_v47 = vld [vmem:[#allocation2 + $0x1e9] sm:$0xff] }
 0x186   :  { %16085 = vmatprep.mubr.msk.f32.mxu0 %vm84_vm1, %v19752_v55  ;;  %v19779_v55 = vld [vmem:[#allocation2 + $0x129] sm:$0xff] }
 0x187   :  { %23280 = vst [vmem:[#allocation12_spill] sm:$0xff] %v19779_v55 }
 0x189   :  { %16086 = vmatmul.mubr.msk.f32.gmra.mrb[4].mxu0 %vm84_vm1, %v19764_v0  ;;  %v19785_v0 = vld [vmem:[#allocation2 + $0x141] sm:$0xff] }
 0x18a   :  { %16088 = vmatprep.mubr.msk.f32.mxu0 %vm84_vm1, %v19766_v1  ;;  %23281 = vst [vmem:[#allocation13_spill] sm:$0xff] %v19785_v0  ;;  %v19787_v1 = vld [vmem:[#allocation2 + $0x159] sm:$0xff] }
 0x18b   :  { %23282 = vst [vmem:[#allocation14_spill] sm:$0xff] %v19787_v1 }
 0x18d   :  { %16089 = vmatmul.mubr.msk.f32.gmra.mrb[6].mxu0 %vm84_vm1, %v19772_v31  ;;  %v35_v31 = vld [vmem:[%s23126_s0 + $0x78] sm:$0xff] }
 0x18e   :  { %16091 = vmatprep.mubr.msk.f32.mxu0 %vm84_vm1, %v1690_v23  ;;  %341 = vst.msk [vmem:[#allocation2 + $0x1b8] sm:$0xff] %vm84_vm1, %v35_v31  ;;  %v19797_v23 = vld [vmem:[#allocation2 + $0x171] sm:$0xff]  ;;  %v19810_v31 = vld [vmem:[#allocation2 + $0x201] sm:$0xff] }
 0x18f   :  { %23283 = vst [vmem:[#allocation15_spill] sm:$0xff] %v19797_v23  ;;  %23286 = vst [vmem:[#allocation18_spill] sm:$0xff] %v19810_v31 }
 0x191   :  { %16092 = vmatmul.mubr.msk.f32.gmra.mrb[8].mxu0 %vm84_vm1, %v19777_v15  ;;  %v19799_v15 = vld [vmem:[#allocation2 + $0x189] sm:$0xff] }
 0x192   :  { %16094 = vmatprep.mubr.msk.f32.mxu0 %vm84_vm1, %v19779_v55  ;;  %23284 = vst [vmem:[#allocation16_spill] sm:$0xff] %v19799_v15  ;;  %v19805_v55 = vld [vmem:[#allocation2 + $0x1a1] sm:$0xff] }
 0x193   :  { %23285 = vst [vmem:[#allocation17_spill] sm:$0xff] %v19805_v55 }
 0x195   :  { %16095 = vmatmul.mubr.msk.f32.gmra.mrb[10].mxu0 %vm84_vm1, %v19785_v0  ;;  %v1706_v0 = vld [vmem:[#allocation2 + $0x2d9] sm:$0xff] }
 0x196   :  { %16097 = vmatprep.mubr.msk.f32.mxu0 %vm84_vm1, %v19787_v1  ;;  %v19812_v1 = vld [vmem:[#allocation2 + $0x219] sm:$0xff] }
 0x197   :  { %23287 = vst [vmem:[#allocation19_spill] sm:$0xff] %v19812_v1 }
 0x199   :  { %16098 = vmatmul.mubr.msk.f32.gmra.mrb[12].mxu0 %vm84_vm1, %v19797_v23  ;;  %v19818_v23 = vld [vmem:[#allocation2 + $0x231] sm:$0xff] }
 0x19a   :  { %16100 = vmatprep.mubr.msk.f32.mxu0 %vm84_vm1, %v19799_v15  ;;  %23288 = vst [vmem:[#allocation20_spill] sm:$0xff] %v19818_v23  ;;  %v19820_v15 = vld [vmem:[#allocation2 + $0x249] sm:$0xff] }
 0x19b   :  { %23289 = vst [vmem:[#allocation21_spill] sm:$0xff] %v19820_v15 }
 0x19d   :  { %16101 = vmatmul.mubr.msk.f32.gmra.mrb[14].mxu0 %vm84_vm1, %v19805_v55  ;;  %v43_v55 = vld [vmem:[%s23126_s0 + $0xb8] sm:$0xff] }
 0x19e   :  { %16103 = vmatprep.mubr.msk.f32.mxu0 %vm84_vm1, %v1698_v47  ;;  %349 = vst.msk [vmem:[#allocation2 + $0x2a8] sm:$0xff] %vm84_vm1, %v43_v55  ;;  %v19830_v47 = vld [vmem:[#allocation2 + $0x261] sm:$0xff]  ;;  %v19843_v55 = vld [vmem:[#allocation2 + $0x2f1] sm:$0xff] }
 0x19f   :  { %23290 = vst [vmem:[#allocation22_spill] sm:$0xff] %v19830_v47  ;;  %23293 = vst [vmem:[#allocation25_spill] sm:$0xff] %v19843_v55 }
 0x1a1   :  { %16104 = vmatmul.mubr.msk.f32.gmra.mrb[16].mxu0 %vm84_vm1, %v19810_v31  ;;  %v19832_v31 = vld [vmem:[#allocation2 + $0x279] sm:$0xff] }
 0x1a2   :  { %16106 = vmatprep.mubr.msk.f32.mxu0 %vm84_vm1, %v19812_v1  ;;  %23291 = vst [vmem:[#allocation23_spill] sm:$0xff] %v19832_v31  ;;  %v19838_v1 = vld [vmem:[#allocation2 + $0x291] sm:$0xff] }
 0x1a3   :  { %23292 = vst [vmem:[#allocation24_spill] sm:$0xff] %v19838_v1 }
 0x1a5   :  { %16107 = vmatmul.mubr.msk.f32.gmra.mrb[18].mxu0 %vm84_vm1, %v19818_v23  ;;  %v1714_v23 = vld [vmem:[#allocation2 + $0x3c9] sm:$0xff] }
 0x1a6   :  { %16109 = vmatprep.mubr.msk.f32.mxu0 %vm84_vm1, %v19820_v15  ;;  %v19845_v15 = vld [vmem:[#allocation2 + $0x309] sm:$0xff] }
 0x1a7   :  { %23294 = vst [vmem:[#allocation26_spill] sm:$0xff] %v19845_v15 }
 0x1a9   :  { %16110 = vmatmul.mubr.msk.f32.gmra.mrb[20].mxu0 %vm84_vm1, %v19830_v47  ;;  %v19851_v47 = vld [vmem:[#allocation2 + $0x321] sm:$0xff] }
 0x1aa   :  { %16112 = vmatprep.mubr.msk.f32.mxu0 %vm84_vm1, %v19832_v31  ;;  %23295 = vst [vmem:[#allocation27_spill] sm:$0xff] %v19851_v47  ;;  %v19853_v31 = vld [vmem:[#allocation2 + $0x339] sm:$0xff] }
 0x1ab   :  { %23296 = vst [vmem:[#allocation28_spill] sm:$0xff] %v19853_v31 }
 0x1ad   :  { %16113 = vmatmul.mubr.msk.f32.gmra.mrb[22].mxu0 %vm84_vm1, %v19838_v1  ;;  %v51_v1 = vld [vmem:[%s23126_s0 + $0xf8] sm:$0xff] }
 0x1ae   :  { %16115 = vmatprep.mubr.msk.f32.mxu0 %vm84_vm1, %v1706_v0  ;;  %357 = vst.msk [vmem:[#allocation2 + $0x398] sm:$0xff] %vm84_vm1, %v51_v1  ;;  %v19863_v0 = vld [vmem:[#allocation2 + $0x351] sm:$0xff]  ;;  %v19876_v1 = vld [vmem:[#allocation2 + $0x3e1] sm:$0xff] }
 0x1af   :  { %23297 = vst [vmem:[#allocation29_spill] sm:$0xff] %v19863_v0  ;;  %23300 = vst [vmem:[#allocation32_spill] sm:$0xff] %v19876_v1 }
 0x1b1   :  { %16116 = vmatmul.mubr.msk.f32.gmra.mrb[24].mxu0 %vm84_vm1, %v19843_v55  ;;  %v19865_v55 = vld [vmem:[#allocation2 + $0x369] sm:$0xff] }
 0x1b2   :  { %16118 = vmatprep.mubr.msk.f32.mxu0 %vm84_vm1, %v19845_v15  ;;  %23298 = vst [vmem:[#allocation30_spill] sm:$0xff] %v19865_v55  ;;  %v19871_v15 = vld [vmem:[#allocation2 + $0x381] sm:$0xff] }
 0x1b3   :  { %23299 = vst [vmem:[#allocation31_spill] sm:$0xff] %v19871_v15 }
 0x1b5   :  { %16119 = vmatmul.mubr.msk.f32.gmra.mrb[26].mxu0 %vm84_vm1, %v19851_v47  ;;  %v1722_v47 = vld [vmem:[#allocation2 + $0x4b9] sm:$0xff] }
 0x1b6   :  { %16121 = vmatprep.mubr.msk.f32.mxu0 %vm84_vm1, %v19853_v31  ;;  %v19878_v31 = vld [vmem:[#allocation2 + $0x3f9] sm:$0xff] }
 0x1b7   :  { %23301 = vst [vmem:[#allocation33_spill] sm:$0xff] %v19878_v31 }
 0x1b9   :  { %16122 = vmatmul.mubr.msk.f32.gmra.mrb[28].mxu0 %vm84_vm1, %v19863_v0  ;;  %v19884_v0 = vld [vmem:[#allocation2 + $0x411] sm:$0xff] }
 0x1ba   :  { %16124 = vmatprep.mubr.msk.f32.mxu0 %vm84_vm1, %v19865_v55  ;;  %23302 = vst [vmem:[#allocation34_spill] sm:$0xff] %v19884_v0  ;;  %v19886_v55 = vld [vmem:[#allocation2 + $0x429] sm:$0xff] }
 0x1bb   :  { %23303 = vst [vmem:[#allocation35_spill] sm:$0xff] %v19886_v55 }
 0x1bd   :  { %16125 = vmatmul.mubr.msk.f32.gmra.mrb[30].mxu0 %vm84_vm1, %v19871_v15  ;;  %v59_v15 = vld [vmem:[%s23126_s0 + $0x138] sm:$0xff] }
 0x1be   :  { %16127 = vmatprep.mubr.msk.f32.mxu0 %vm84_vm1, %v1714_v23  ;;  %365 = vst.msk [vmem:[#allocation2 + $0x488] sm:$0xff] %vm84_vm1, %v59_v15  ;;  %v19896_v23 = vld [vmem:[#allocation2 + $0x441] sm:$0xff]  ;;  %v19909_v15 = vld [vmem:[#allocation2 + $0x4d1] sm:$0xff] }
 0x1bf   :  { %23304 = vst [vmem:[#allocation36_spill] sm:$0xff] %v19896_v23  ;;  %23307 = vst [vmem:[#allocation39_spill] sm:$0xff] %v19909_v15 }
 0x1c1   :  { %16128 = vmatmul.mubr.msk.f32.gmra.mrb[32].mxu0 %vm84_vm1, %v19876_v1  ;;  %v19898_v1 = vld [vmem:[#allocation2 + $0x459] sm:$0xff] }
 0x1c2   :  { %16130 = vmatprep.mubr.msk.f32.mxu0 %vm84_vm1, %v19878_v31  ;;  %23305 = vst [vmem:[#allocation37_spill] sm:$0xff] %v19898_v1  ;;  %v19904_v31 = vld [vmem:[#allocation2 + $0x471] sm:$0xff] }
 0x1c3   :  { %23306 = vst [vmem:[#allocation38_spill] sm:$0xff] %v19904_v31 }
 0x1c5   :  { %16131 = vmatmul.mubr.msk.f32.gmra.mrb[34].mxu0 %vm84_vm1, %v19884_v0  ;;  %v1730_v0 = vld [vmem:[#allocation2 + $0x5a9] sm:$0xff] }
 0x1c6   :  { %16133 = vmatprep.mubr.msk.f32.mxu0 %vm84_vm1, %v19886_v55  ;;  %v19911_v55 = vld [vmem:[#allocation2 + $0x4e9] sm:$0xff] }
 0x1c7   :  { %23308 = vst [vmem:[#allocation40_spill] sm:$0xff] %v19911_v55 }
 0x1c9   :  { %16134 = vmatmul.mubr.msk.f32.gmra.mrb[36].mxu0 %vm84_vm1, %v19896_v23  ;;  %v19917_v23 = vld [vmem:[#allocation2 + $0x501] sm:$0xff] }
 0x1ca   :  { %16136 = vmatprep.mubr.msk.f32.mxu0 %vm84_vm1, %v19898_v1  ;;  %23309 = vst [vmem:[#allocation41_spill] sm:$0xff] %v19917_v23  ;;  %v19919_v1 = vld [vmem:[#allocation2 + $0x519] sm:$0xff] }
 0x1cb   :  { %23310 = vst [vmem:[#allocation42_spill] sm:$0xff] %v19919_v1 }
 0x1cd   :  { %16137 = vmatmul.mubr.msk.f32.gmra.mrb[38].mxu0 %vm84_vm1, %v19904_v31  ;;  %v67_v31 = vld [vmem:[%s23126_s0 + $0x178] sm:$0xff] }
 0x1ce   :  { %16139 = vmatprep.mubr.msk.f32.mxu0 %vm84_vm1, %v1722_v47  ;;  %373 = vst.msk [vmem:[#allocation2 + $0x578] sm:$0xff] %vm84_vm1, %v67_v31  ;;  %v19929_v47 = vld [vmem:[#allocation2 + $0x531] sm:$0xff]  ;;  %v19942_v31 = vld [vmem:[#allocation2 + $0x5c1] sm:$0xff] }
 0x1cf   :  { %23311 = vst [vmem:[#allocation43_spill] sm:$0xff] %v19929_v47  ;;  %23314 = vst [vmem:[#allocation46_spill] sm:$0xff] %v19942_v31 }
 0x1d1   :  { %16140 = vmatmul.mubr.msk.f32.gmra.mrb[40].mxu0 %vm84_vm1, %v19909_v15  ;;  %v19931_v15 = vld [vmem:[#allocation2 + $0x549] sm:$0xff] }
 0x1d2   :  { %16142 = vmatprep.mubr.msk.f32.mxu0 %vm84_vm1, %v19911_v55  ;;  %23312 = vst [vmem:[#allocation44_spill] sm:$0xff] %v19931_v15  ;;  %v19937_v55 = vld [vmem:[#allocation2 + $0x561] sm:$0xff] }
 0x1d3   :  { %23313 = vst [vmem:[#allocation45_spill] sm:$0xff] %v19937_v55 }
 0x1d5   :  { %16143 = vmatmul.mubr.msk.f32.gmra.mrb[42].mxu0 %vm84_vm1, %v19917_v23  ;;  %v1738_v23 = vld [vmem:[#allocation2 + $0x699] sm:$0xff] }
 0x1d6   :  { %16145 = vmatprep.mubr.msk.f32.mxu0 %vm84_vm1, %v19919_v1  ;;  %v19944_v1 = vld [vmem:[#allocation2 + $0x5d9] sm:$0xff] }
 0x1d7   :  { %23315 = vst [vmem:[#allocation47_spill] sm:$0xff] %v19944_v1 }
 0x1d9   :  { %16146 = vmatmul.mubr.msk.f32.gmra.mrb[44].mxu0 %vm84_vm1, %v19929_v47  ;;  %v19950_v47 = vld [vmem:[#allocation2 + $0x5f1] sm:$0xff] }
 0x1da   :  { %16148 = vmatprep.mubr.msk.f32.mxu0 %vm84_vm1, %v19931_v15  ;;  %v19952_v15 = vld [vmem:[#allocation2 + $0x609] sm:$0xff] }
 0x1db   :  { %23316 = vst [vmem:[#allocation48_spill] sm:$0xff] %v19952_v15 }
 0x1dd   :  { %16149 = vmatmul.mubr.msk.f32.gmra.mrb[46].mxu0 %vm84_vm1, %v19937_v55  ;;  %v75_v55 = vld [vmem:[%s23126_s0 + $0x1b8] sm:$0xff] }
 0x1de   :  { %16151 = vmatprep.mubr.msk.f32.mxu0 %vm84_vm1, %v1730_v0  ;;  %381 = vst.msk [vmem:[#allocation2 + $0x668] sm:$0xff] %vm84_vm1, %v75_v55  ;;  %v19962_v0 = vld [vmem:[#allocation2 + $0x621] sm:$0xff]  ;;  %v19975_v55 = vld [vmem:[#allocation2 + $0x6b1] sm:$0xff] }
 0x1df   :  { %23317 = vst [vmem:[#allocation49_spill] sm:$0xff] %v19962_v0  ;;  %23320 = vst [vmem:[#allocation52_spill] sm:$0xff] %v19975_v55 }
 0x1e1   :  { %16152 = vmatmul.mubr.msk.f32.gmra.mrb[48].mxu0 %vm84_vm1, %v19942_v31  ;;  %v19964_v31 = vld [vmem:[#allocation2 + $0x639] sm:$0xff] }
 0x1e2   :  { %16154 = vmatprep.mubr.msk.f32.mxu0 %vm84_vm1, %v19944_v1  ;;  %23318 = vst [vmem:[#allocation50_spill] sm:$0xff] %v19964_v31  ;;  %v19970_v1 = vld [vmem:[#allocation2 + $0x651] sm:$0xff] }
 0x1e3   :  { %23319 = vst [vmem:[#allocation51_spill] sm:$0xff] %v19970_v1 }
 0x1e5   :  { %16155 = vmatmul.mubr.msk.f32.gmra.mrb[50].mxu0 %vm84_vm1, %v19950_v47 }
 0x1e6   :  { %16157 = vmatprep.mubr.msk.f32.mxu0 %vm84_vm1, %v19952_v15  ;;  %v19977_v15 = vld [vmem:[#allocation2 + $0x6c9] sm:$0xff] }
 0x1e7   :  { %23321 = vst [vmem:[#allocation53_spill] sm:$0xff] %v19977_v15 }
 0x1e9   :  { %16158 = vmatmul.mubr.msk.f32.gmra.mrb[52].mxu0 %vm84_vm1, %v19962_v0  ;;  %v19983_v0 = vld [vmem:[#allocation2 + $0x6e1] sm:$0xff] }
 0x1ea   :  { %16160 = vmatprep.mubr.msk.f32.mxu0 %vm84_vm1, %v19964_v31  ;;  %v19985_v31 = vld [vmem:[#allocation2 + $0x6f9] sm:$0xff] }
 0x1ed   :  { %16161 = vmatmul.mubr.msk.f32.gmra.mrb[54].mxu0 %vm84_vm1, %v19970_v1  ;;  %v83_v1 = vld [vmem:[%s23126_s0 + $0x1f8] sm:$0xff] }
 0x1ee   :  { %16163 = vmatprep.mubr.msk.f32.mxu0 %vm84_vm1, %v1738_v23  ;;  %389 = vst.msk [vmem:[#allocation2 + $0x758] sm:$0xff] %vm84_vm1, %v83_v1  ;;  %v19995_v23 = vld [vmem:[#allocation2 + $0x711] sm:$0xff] }
 0x1ef   :  { %v20012_v1 = vld [vmem:[%s23125_s1 + $0x14] sm:$0xf] }
 0x1f1   :  { %16164 = vmatmul.mubr.msk.f32.gmra.mrb[56].mxu0 %vm84_vm1, %v19975_v55  ;;  %v19997_v55 = vld [vmem:[#allocation2 + $0x729] sm:$0xff] }
 0x1f2   :  { %16166 = vmatprep.mubr.msk.f32.mxu0 %vm84_vm1, %v19977_v15  ;;  %v20003_v15 = vld [vmem:[#allocation2 + $0x741] sm:$0xff] }
 0x1f5   :  { %16167 = vmatmul.mubr.msk.f32.gmra.mrb[58].mxu0 %vm84_vm1, %v19983_v0 }
 0x1f6   :  { %16169 = vmatprep.mubr.msk.f32.mxu0 %vm84_vm1, %v19985_v31 }
 0x1f9   :  { %16170 = vmatmul.mubr.msk.f32.gmra.mrb[60].mxu0 %vm84_vm1, %v19995_v23 }
 0x1fa   :  { %16172 = vmatprep.mubr.msk.f32.mxu0 %vm84_vm1, %v19997_v55 }
 0x1fd   :  { %16173 = vmatmul.mubr.msk.f32.gmra.mrb[62].mxu0 %vm84_vm1, %v20003_v15 }
 0x1fe   :  { %16177 = vmatprep.mubr.msk.f32.mxu0 %vm84_vm1, %v19494_v62  ;;  %v20030_v62 = vld [vmem:[#allocation2 + $0xc7] sm:$0xff] }
 0x201   :  { %16178 = vmatmul.mubr.msk.f32.vlgmr.msra.gmra.mrb[0].mxu0 %vm84_vm1, %v19496_v63  ;;  %v20048_v63 = vld [vmem:[#allocation2 + $0x1b7] sm:$0xff] }
 0x202   :  { %16274 = vmatpush3.msk.msra.mxu0 %vm713_vm0, %v19742_v39  ;;  %16180 = vmatprep.mubr.msk.f32.mxu0 %vm84_vm1, %v19509_v2  ;;  %v20066_v2 = vld [vmem:[#allocation2 + $0x2a7] sm:$0xff]  ;;  %v20339_v39 = vld [vmem:[#allocation2 + $0x578] sm:$0xff] }
 0x203   :  { %16371 = vmatprep.subr.msk.mxu0 %vm713_vm0, %v20012_v1  ;;  %23322 = vst [vmem:[#allocation54_spill] sm:$0xff] %v20339_v39 }
 0x205   :  { %16181 = vmatmul.mubr.msk.f32.gmra.mrb[2].mxu0 %vm84_vm1, %v19511_v3  ;;  %v20084_v3 = vld [vmem:[#allocation2 + $0x397] sm:$0xff] }
 0x206   :  { %16183 = vmatprep.mubr.msk.f32.mxu0 %vm84_vm1, %v19519_v4  ;;  %v20102_v4 = vld [vmem:[#allocation2 + $0x487] sm:$0xff] }
 0x209   :  { %16184 = vmatmul.mubr.msk.f32.gmra.mrb[4].mxu0 %vm84_vm1, %v19521_v5  ;;  %v20120_v5 = vld [vmem:[#allocation2 + $0x577] sm:$0xff] }
 0x20a   :  { %16186 = vmatprep.mubr.msk.f32.mxu0 %vm84_vm1, %v19527_v6  ;;  %v20138_v6 = vld [vmem:[#allocation2 + $0x667] sm:$0xff] }
 0x20d   :  { %16187 = vmatmul.mubr.msk.f32.gmra.mrb[6].mxu0 %vm84_vm1, %v20030_v62 }
 0x20e   :  { %16189 = vmatprep.mubr.msk.f32.mxu0 %vm84_vm1, %v19532_v8  ;;  %v20156_v8 = vld [vmem:[#allocation2 + $0x757] sm:$0xff] }
 0x211   :  { %16190 = vmatmul.mubr.msk.f32.gmra.mrb[8].mxu0 %vm84_vm1, %v19534_v9  ;;  %v3102_v9 = vld [vmem:[#allocation2 + $0x20] sm:$0xff] }
 0x212   :  { %16192 = vmatprep.mubr.msk.f32.mxu0 %vm84_vm1, %v19540_v10  ;;  %v20161_v10 = vld [vmem:[#allocation2 + $0x38] sm:$0xff] }
 0x215   :  { %16193 = vmatmul.mubr.msk.f32.gmra.mrb[10].mxu0 %vm84_vm1, %v19542_v11  ;;  %v20163_v11 = vld [vmem:[#allocation2 + $0x50] sm:$0xff] }
 0x216   :  { %16195 = vmatprep.mubr.msk.f32.mxu0 %vm84_vm1, %v19548_v12  ;;  %v20168_v12 = vld [vmem:[%s23125_s1 + $0x18] sm:$0xf] }
 0x219   :  { %16196 = vmatmul.mubr.msk.f32.gmra.mrb[12].mxu0 %vm84_vm1, %v19550_v13  ;;  %v20176_v13 = vld [vmem:[#allocation2 + $0x68] sm:$0xff] }
 0x21a   :  { %16198 = vmatprep.mubr.msk.f32.mxu0 %vm84_vm1, %v19556_v14  ;;  %v20178_v14 = vld [vmem:[#allocation2 + $0x80] sm:$0xff] }
 0x21d   :  { %16199 = vmatmul.mubr.msk.f32.gmra.mrb[14].mxu0 %vm84_vm1, %v20048_v63 }
 0x21e   :  { %16201 = vmatprep.mubr.msk.f32.mxu0 %vm84_vm1, %v19561_v16  ;;  %v20186_v16 = vld [vmem:[#allocation2 + $0x98] sm:$0xff] }
 0x221   :  { %16202 = vmatmul.mubr.msk.f32.gmra.mrb[16].mxu0 %vm84_vm1, %v19563_v17  ;;  %v20188_v17 = vld [vmem:[#allocation2 + $0xb0] sm:$0xff] }
 0x222   :  { %16204 = vmatprep.mubr.msk.f32.mxu0 %vm84_vm1, %v19569_v18  ;;  %v20194_v18 = vld [vmem:[#allocation2 + $0xc8] sm:$0xff] }
 0x225   :  { %16205 = vmatmul.mubr.msk.f32.gmra.mrb[18].mxu0 %vm84_vm1, %v19571_v19  ;;  %v3110_v19 = vld [vmem:[#allocation2 + $0x110] sm:$0xff] }
 0x226   :  { %16207 = vmatprep.mubr.msk.f32.mxu0 %vm84_vm1, %v19577_v20  ;;  %v20199_v20 = vld [vmem:[#allocation2 + $0x128] sm:$0xff] }
 0x229   :  { %16208 = vmatmul.mubr.msk.f32.gmra.mrb[20].mxu0 %vm84_vm1, %v19579_v21  ;;  %v20201_v21 = vld [vmem:[#allocation2 + $0x140] sm:$0xff] }
 0x22a   :  { %16210 = vmatprep.mubr.msk.f32.mxu0 %vm84_vm1, %v19585_v22  ;;  %v20207_v22 = vld [vmem:[#allocation2 + $0x158] sm:$0xff] }
 0x22d   :  { %16211 = vmatmul.mubr.msk.f32.gmra.mrb[22].mxu0 %vm84_vm1, %v20066_v2 }
 0x22e   :  { %16213 = vmatprep.mubr.msk.f32.mxu0 %vm84_vm1, %v19590_v24  ;;  %v20209_v24 = vld [vmem:[#allocation2 + $0x170] sm:$0xff] }
 0x231   :  { %16214 = vmatmul.mubr.msk.f32.gmra.mrb[24].mxu0 %vm84_vm1, %v19592_v25  ;;  %v20215_v25 = vld [vmem:[#allocation2 + $0x188] sm:$0xff] }
 0x232   :  { %16216 = vmatprep.mubr.msk.f32.mxu0 %vm84_vm1, %v19598_v26  ;;  %v20217_v26 = vld [vmem:[#allocation2 + $0x1a0] sm:$0xff] }
 0x235   :  { %16217 = vmatmul.mubr.msk.f32.gmra.mrb[26].mxu0 %vm84_vm1, %v19600_v27  ;;  %v20223_v27 = vld [vmem:[#allocation2 + $0x1b8] sm:$0xff] }
 0x236   :  { %16219 = vmatprep.mubr.msk.f32.mxu0 %vm84_vm1, %v19606_v28  ;;  %v3118_v28 = vld [vmem:[#allocation2 + $0x200] sm:$0xff] }
 0x239   :  { %16220 = vmatmul.mubr.msk.f32.gmra.mrb[28].mxu0 %vm84_vm1, %v19608_v29  ;;  %v20228_v29 = vld [vmem:[#allocation2 + $0x218] sm:$0xff] }
 0x23a   :  { %16222 = vmatprep.mubr.msk.f32.mxu0 %vm84_vm1, %v19614_v30  ;;  %v20230_v30 = vld [vmem:[#allocation2 + $0x230] sm:$0xff] }
 0x23d   :  { %16223 = vmatmul.mubr.msk.f32.gmra.mrb[30].mxu0 %vm84_vm1, %v20084_v3 }
 0x23e   :  { %16225 = vmatprep.mubr.msk.f32.mxu0 %vm84_vm1, %v19619_v32  ;;  %v20236_v32 = vld [vmem:[#allocation2 + $0x248] sm:$0xff] }
 0x241   :  { %16226 = vmatmul.mubr.msk.f32.gmra.mrb[32].mxu0 %vm84_vm1, %v19621_v33  ;;  %v20238_v33 = vld [vmem:[#allocation2 + $0x260] sm:$0xff] }
 0x242   :  { %16228 = vmatprep.mubr.msk.f32.mxu0 %vm84_vm1, %v19627_v34  ;;  %v20244_v34 = vld [vmem:[#allocation2 + $0x278] sm:$0xff] }
 0x245   :  { %16229 = vmatmul.mubr.msk.f32.gmra.mrb[34].mxu0 %vm84_vm1, %v19629_v35  ;;  %v20246_v35 = vld [vmem:[#allocation2 + $0x290] sm:$0xff] }
 0x246   :  { %16231 = vmatprep.mubr.msk.f32.mxu0 %vm84_vm1, %v19635_v36  ;;  %v20252_v36 = vld [vmem:[#allocation2 + $0x2a8] sm:$0xff] }
 0x249   :  { %16232 = vmatmul.mubr.msk.f32.gmra.mrb[36].mxu0 %vm84_vm1, %v19637_v37  ;;  %v3126_v37 = vld [vmem:[#allocation2 + $0x2f0] sm:$0xff] }
 0x24a   :  { %16234 = vmatprep.mubr.msk.f32.mxu0 %vm84_vm1, %v19643_v38  ;;  %v20257_v38 = vld [vmem:[#allocation2 + $0x308] sm:$0xff] }
 0x24d   :  { %16235 = vmatmul.mubr.msk.f32.gmra.mrb[38].mxu0 %vm84_vm1, %v20102_v4 }
 0x24e   :  { %16237 = vmatprep.mubr.msk.f32.mxu0 %vm84_vm1, %v19648_v40  ;;  %v20259_v40 = vld [vmem:[#allocation2 + $0x320] sm:$0xff] }
 0x251   :  { %16238 = vmatmul.mubr.msk.f32.gmra.mrb[40].mxu0 %vm84_vm1, %v19650_v41  ;;  %v20265_v41 = vld [vmem:[#allocation2 + $0x338] sm:$0xff] }
 0x252   :  { %16240 = vmatprep.mubr.msk.f32.mxu0 %vm84_vm1, %v19656_v42  ;;  %v20267_v42 = vld [vmem:[#allocation2 + $0x350] sm:$0xff] }
 0x255   :  { %16241 = vmatmul.mubr.msk.f32.gmra.mrb[42].mxu0 %vm84_vm1, %v19658_v43  ;;  %v20273_v43 = vld [vmem:[#allocation2 + $0x368] sm:$0xff] }
 0x256   :  { %16243 = vmatprep.mubr.msk.f32.mxu0 %vm84_vm1, %v19664_v44  ;;  %v20275_v44 = vld [vmem:[#allocation2 + $0x380] sm:$0xff] }
 0x259   :  { %16244 = vmatmul.mubr.msk.f32.gmra.mrb[44].mxu0 %vm84_vm1, %v19666_v45  ;;  %v20281_v45 = vld [vmem:[#allocation2 + $0x398] sm:$0xff] }
 0x25a   :  { %16246 = vmatprep.mubr.msk.f32.mxu0 %vm84_vm1, %v19672_v46  ;;  %v3134_v46 = vld [vmem:[#allocation2 + $0x3e0] sm:$0xff] }
 0x25d   :  { %16247 = vmatmul.mubr.msk.f32.gmra.mrb[46].mxu0 %vm84_vm1, %v20120_v5 }
 0x25e   :  { %16249 = vmatprep.mubr.msk.f32.mxu0 %vm84_vm1, %v19677_v48  ;;  %v20286_v48 = vld [vmem:[#allocation2 + $0x3f8] sm:$0xff] }
 0x261   :  { %16250 = vmatmul.mubr.msk.f32.gmra.mrb[48].mxu0 %vm84_vm1, %v19679_v49  ;;  %v20288_v49 = vld [vmem:[#allocation2 + $0x410] sm:$0xff] }
 0x262   :  { %16252 = vmatprep.mubr.msk.f32.mxu0 %vm84_vm1, %v19685_v50  ;;  %v20294_v50 = vld [vmem:[#allocation2 + $0x428] sm:$0xff] }
 0x265   :  { %16253 = vmatmul.mubr.msk.f32.gmra.mrb[50].mxu0 %vm84_vm1, %v19687_v51  ;;  %v20296_v51 = vld [vmem:[#allocation2 + $0x440] sm:$0xff] }
 0x266   :  { %16255 = vmatprep.mubr.msk.f32.mxu0 %vm84_vm1, %v19693_v52  ;;  %v20302_v52 = vld [vmem:[#allocation2 + $0x458] sm:$0xff] }
 0x269   :  { %16256 = vmatmul.mubr.msk.f32.gmra.mrb[52].mxu0 %vm84_vm1, %v19695_v53  ;;  %v20304_v53 = vld [vmem:[#allocation2 + $0x470] sm:$0xff] }
 0x26a   :  { %16258 = vmatprep.mubr.msk.f32.mxu0 %vm84_vm1, %v19701_v54  ;;  %v20310_v54 = vld [vmem:[#allocation2 + $0x488] sm:$0xff] }
 0x26d   :  { %16259 = vmatmul.mubr.msk.f32.gmra.mrb[54].mxu0 %vm84_vm1, %v20138_v6 }
 0x26e   :  { %16261 = vmatprep.mubr.msk.f32.mxu0 %vm84_vm1, %v19706_v56  ;;  %v3142_v56 = vld [vmem:[#allocation2 + $0x4d0] sm:$0xff] }
 0x271   :  { %16262 = vmatmul.mubr.msk.f32.gmra.mrb[56].mxu0 %vm84_vm1, %v19708_v57  ;;  %v20315_v57 = vld [vmem:[#allocation2 + $0x4e8] sm:$0xff] }
 0x272   :  { %16264 = vmatprep.mubr.msk.f32.mxu0 %vm84_vm1, %v19714_v58  ;;  %v20317_v58 = vld [vmem:[#allocation2 + $0x500] sm:$0xff] }
 0x275   :  { %16265 = vmatmul.mubr.msk.f32.gmra.mrb[58].mxu0 %vm84_vm1, %v19716_v59  ;;  %v20323_v59 = vld [vmem:[#allocation2 + $0x518] sm:$0xff] }
 0x276   :  { %16267 = vmatprep.mubr.msk.f32.mxu0 %vm84_vm1, %v19722_v60  ;;  %v20325_v60 = vld [vmem:[#allocation2 + $0x530] sm:$0xff] }
 0x279   :  { %16268 = vmatmul.mubr.msk.f32.gmra.mrb[60].mxu0 %vm84_vm1, %v19724_v61  ;;  %v20331_v61 = vld [vmem:[#allocation2 + $0x548] sm:$0xff] }
 0x27a   :  { %16270 = vmatprep.mubr.msk.f32.mxu0 %vm84_vm1, %v19730_v7  ;;  %v20333_v7 = vld [vmem:[#allocation2 + $0x560] sm:$0xff] }
 0x27d   :  { %16271 = vmatmul.mubr.msk.f32.gmra.mrb[62].mxu0 %vm84_vm1, %v20156_v8 }
 0x27e   :  { %16275 = vmatprep.mubr.msk.f32.mxu0 %vm84_vm1, %v3102_v9  ;;  %v20344_v9 = vld [vmem:[#allocation2 + $0x5d8] sm:$0xff] }
 0x27f   :  { %23323 = vst [vmem:[#allocation55_spill] sm:$0xff] %v20344_v9 }
 0x281   :  { %16276 = vmatmul.mubr.msk.f32.vlgmr.msra.gmra.mrb[0].mxu0 %vm84_vm1, %v20161_v10 }
 0x282   :  { %16372 = vmatpush3.msk.msra.mxu0 %vm713_vm0, %v20012_v1  ;;  %16278 = vmatprep.mubr.msk.f32.mxu0 %vm84_vm1, %v20163_v11  ;;  %v3150_v1 = vld [vmem:[#allocation2 + $0x5c0] sm:$0xff] }
 0x283   :  { %16469 = vmatprep.subr.msk.mxu0 %vm713_vm0, %v20168_v12 }
 0x285   :  { %16279 = vmatmul.mubr.msk.f32.gmra.mrb[2].mxu0 %vm84_vm1, %v20176_v13 }
 0x286   :  { %16281 = vmatprep.mubr.msk.f32.mxu0 %vm84_vm1, %v20178_v14 }
 0x289   :  { %16282 = vmatmul.mubr.msk.f32.gmra.mrb[4].mxu0 %vm84_vm1, %v20186_v16 }
 0x28a   :  { %16284 = vmatprep.mubr.msk.f32.mxu0 %vm84_vm1, %v20188_v17 }
 0x28d   :  { %16285 = vmatmul.mubr.msk.f32.gmra.mrb[6].mxu0 %vm84_vm1, %v20194_v18 }
 0x28e   :  { %16287 = vmatprep.mubr.msk.f32.mxu0 %vm84_vm1, %v3110_v19  ;;  %v20346_v19 = vld [vmem:[#allocation2 + $0x5f0] sm:$0xff] }
 0x28f   :  { %23324 = vst [vmem:[#allocation56_spill] sm:$0xff] %v20346_v19 }
 0x291   :  { %16288 = vmatmul.mubr.msk.f32.gmra.mrb[8].mxu0 %vm84_vm1, %v20199_v20 }
 0x292   :  { %16290 = vmatprep.mubr.msk.f32.mxu0 %vm84_vm1, %v20201_v21 }
 0x295   :  { %16291 = vmatmul.mubr.msk.f32.gmra.mrb[10].mxu0 %vm84_vm1, %v20207_v22 }
 0x296   :  { %16293 = vmatprep.mubr.msk.f32.mxu0 %vm84_vm1, %v20209_v24 }
 0x299   :  { %16294 = vmatmul.mubr.msk.f32.gmra.mrb[12].mxu0 %vm84_vm1, %v20215_v25 }
 0x29a   :  { %16296 = vmatprep.mubr.msk.f32.mxu0 %vm84_vm1, %v20217_v26 }
 0x29d   :  { %16297 = vmatmul.mubr.msk.f32.gmra.mrb[14].mxu0 %vm84_vm1, %v20223_v27 }
 0x29e   :  { %16299 = vmatprep.mubr.msk.f32.mxu0 %vm84_vm1, %v3118_v28  ;;  %v20352_v28 = vld [vmem:[#allocation2 + $0x608] sm:$0xff] }
 0x29f   :  { %23325 = vst [vmem:[#allocation57_spill] sm:$0xff] %v20352_v28 }
 0x2a1   :  { %16300 = vmatmul.mubr.msk.f32.gmra.mrb[16].mxu0 %vm84_vm1, %v20228_v29 }
 0x2a2   :  { %16302 = vmatprep.mubr.msk.f32.mxu0 %vm84_vm1, %v20230_v30 }
 0x2a5   :  { %16303 = vmatmul.mubr.msk.f32.gmra.mrb[18].mxu0 %vm84_vm1, %v20236_v32 }
 0x2a6   :  { %16305 = vmatprep.mubr.msk.f32.mxu0 %vm84_vm1, %v20238_v33 }
 0x2a9   :  { %16306 = vmatmul.mubr.msk.f32.gmra.mrb[20].mxu0 %vm84_vm1, %v20244_v34 }
 0x2aa   :  { %16308 = vmatprep.mubr.msk.f32.mxu0 %vm84_vm1, %v20246_v35 }
 0x2ad   :  { %16309 = vmatmul.mubr.msk.f32.gmra.mrb[22].mxu0 %vm84_vm1, %v20252_v36 }
 0x2ae   :  { %16311 = vmatprep.mubr.msk.f32.mxu0 %vm84_vm1, %v3126_v37  ;;  %v20354_v37 = vld [vmem:[#allocation2 + $0x620] sm:$0xff] }
 0x2af   :  { %23326 = vst [vmem:[#allocation58_spill] sm:$0xff] %v20354_v37 }
 0x2b1   :  { %16312 = vmatmul.mubr.msk.f32.gmra.mrb[24].mxu0 %vm84_vm1, %v20257_v38 }
 0x2b2   :  { %16314 = vmatprep.mubr.msk.f32.mxu0 %vm84_vm1, %v20259_v40 }
 0x2b5   :  { %16315 = vmatmul.mubr.msk.f32.gmra.mrb[26].mxu0 %vm84_vm1, %v20265_v41 }
 0x2b6   :  { %16317 = vmatprep.mubr.msk.f32.mxu0 %vm84_vm1, %v20267_v42 }
 0x2b9   :  { %16318 = vmatmul.mubr.msk.f32.gmra.mrb[28].mxu0 %vm84_vm1, %v20273_v43 }
 0x2ba   :  { %16320 = vmatprep.mubr.msk.f32.mxu0 %vm84_vm1, %v20275_v44 }
 0x2bd   :  { %16321 = vmatmul.mubr.msk.f32.gmra.mrb[30].mxu0 %vm84_vm1, %v20281_v45 }
 0x2be   :  { %16323 = vmatprep.mubr.msk.f32.mxu0 %vm84_vm1, %v3134_v46  ;;  %v20360_v46 = vld [vmem:[#allocation2 + $0x638] sm:$0xff] }
 0x2bf   :  { %23327 = vst [vmem:[#allocation59_spill] sm:$0xff] %v20360_v46 }
 0x2c1   :  { %16324 = vmatmul.mubr.msk.f32.gmra.mrb[32].mxu0 %vm84_vm1, %v20286_v48 }
 0x2c2   :  { %16326 = vmatprep.mubr.msk.f32.mxu0 %vm84_vm1, %v20288_v49 }
 0x2c5   :  { %16327 = vmatmul.mubr.msk.f32.gmra.mrb[34].mxu0 %vm84_vm1, %v20294_v50 }
 0x2c6   :  { %16329 = vmatprep.mubr.msk.f32.mxu0 %vm84_vm1, %v20296_v51 }
 0x2c9   :  { %16330 = vmatmul.mubr.msk.f32.gmra.mrb[36].mxu0 %vm84_vm1, %v20302_v52 }
 0x2ca   :  { %16332 = vmatprep.mubr.msk.f32.mxu0 %vm84_vm1, %v20304_v53 }
 0x2cd   :  { %16333 = vmatmul.mubr.msk.f32.gmra.mrb[38].mxu0 %vm84_vm1, %v20310_v54 }
 0x2ce   :  { %16335 = vmatprep.mubr.msk.f32.mxu0 %vm84_vm1, %v3142_v56  ;;  %v20362_v56 = vld [vmem:[#allocation2 + $0x650] sm:$0xff] }
 0x2cf   :  { %23328 = vst [vmem:[#allocation60_spill] sm:$0xff] %v20362_v56 }
 0x2d1   :  { %16336 = vmatmul.mubr.msk.f32.gmra.mrb[40].mxu0 %vm84_vm1, %v20315_v57 }
 0x2d2   :  { %16338 = vmatprep.mubr.msk.f32.mxu0 %vm84_vm1, %v20317_v58 }
 0x2d5   :  { %16339 = vmatmul.mubr.msk.f32.gmra.mrb[42].mxu0 %vm84_vm1, %v20323_v59 }
 0x2d6   :  { %16341 = vmatprep.mubr.msk.f32.mxu0 %vm84_vm1, %v20325_v60 }
 0x2d9   :  { %16342 = vmatmul.mubr.msk.f32.gmra.mrb[44].mxu0 %vm84_vm1, %v20331_v61 }
 0x2da   :  { %16344 = vmatprep.mubr.msk.f32.mxu0 %vm84_vm1, %v20333_v7 }
 0x2dd   :  { %16345 = vmatmul.mubr.msk.f32.gmra.mrb[46].mxu0 %vm84_vm1, %v20339_v39  ;;  %v23351_v39 = vld [vmem:[#allocation17_spill] sm:$0xff] }
 0x2de   :  { %16347 = vmatprep.mubr.msk.f32.mxu0 %vm84_vm1, %v3150_v1  ;;  %v20368_v1 = vld [vmem:[#allocation2 + $0x668] sm:$0xff] }
 0x2df   :  { %23329 = vst [vmem:[#allocation61_spill] sm:$0xff] %v20368_v1 }
 0x2e1   :  { %16348 = vmatmul.mubr.msk.f32.gmra.mrb[48].mxu0 %vm84_vm1, %v20344_v9  ;;  %v23343_v9 = vld [vmem:[#allocation10_spill] sm:$0xff] }
 0x2e2   :  { %16350 = vmatprep.mubr.msk.f32.mxu0 %vm84_vm1, %v20346_v19  ;;  %v3158_v19 = vld [vmem:[#allocation2 + $0x6b0] sm:$0xff] }
 0x2e5   :  { %16351 = vmatmul.mubr.msk.f32.gmra.mrb[50].mxu0 %vm84_vm1, %v20352_v28  ;;  %v20373_v28 = vld [vmem:[#allocation2 + $0x6c8] sm:$0xff] }
 0x2e6   :  { %16353 = vmatprep.mubr.msk.f32.mxu0 %vm84_vm1, %v20354_v37  ;;  %23330 = vst [vmem:[#allocation62_spill] sm:$0xff] %v20373_v28  ;;  %v20375_v37 = vld [vmem:[#allocation2 + $0x6e0] sm:$0xff] }
 0x2e7   :  { %23331 = vst [vmem:[#allocation63_spill] sm:$0xff] %v20375_v37 }
 0x2e9   :  { %16354 = vmatmul.mubr.msk.f32.gmra.mrb[52].mxu0 %vm84_vm1, %v20360_v46  ;;  %v20381_v46 = vld [vmem:[#allocation2 + $0x6f8] sm:$0xff] }
 0x2ea   :  { %16356 = vmatprep.mubr.msk.f32.mxu0 %vm84_vm1, %v20362_v56  ;;  %23332 = vst [vmem:[#allocation64_spill] sm:$0xff] %v20381_v46  ;;  %v20383_v56 = vld [vmem:[#allocation2 + $0x710] sm:$0xff] }
 0x2eb   :  { %23333 = vst [vmem:[#allocation65_spill] sm:$0xff] %v20383_v56 }
 0x2ed   :  { %16357 = vmatmul.mubr.msk.f32.gmra.mrb[54].mxu0 %vm84_vm1, %v20368_v1  ;;  %v20391_v1 = vld [vmem:[#allocation2 + $0x740] sm:$0xff] }
 0x2ee   :  { %16359 = vmatprep.mubr.msk.f32.mxu0 %vm84_vm1, %v3158_v19  ;;  %v20389_v19 = vld [vmem:[#allocation2 + $0x728] sm:$0xff]  ;;  %23335 = vst [vmem:[#allocation67_spill] sm:$0xff] %v20391_v1 }
 0x2ef   :  { %23334 = vst [vmem:[#allocation66_spill] sm:$0xff] %v20389_v19 }
 0x2f1   :  { %16360 = vmatmul.mubr.msk.f32.gmra.mrb[56].mxu0 %vm84_vm1, %v20373_v28  ;;  %v23337_v28 = vld [vmem:[#allocation4_spill] sm:$0xff] }
 0x2f2   :  { %16362 = vmatprep.mubr.msk.f32.mxu0 %vm84_vm1, %v20375_v37  ;;  %v20397_v37 = vld [vmem:[#allocation2 + $0x758] sm:$0xff] }
 0x2f3   :  { %23336 = vst [vmem:[#allocation68_spill] sm:$0xff] %v20397_v37 }
 0x2f5   :  { %16363 = vmatmul.mubr.msk.f32.gmra.mrb[58].mxu0 %vm84_vm1, %v20381_v46  ;;  %v23338_v46 = vld [vmem:[#allocation5_spill] sm:$0xff] }
 0x2f6   :  { %16365 = vmatprep.mubr.msk.f32.mxu0 %vm84_vm1, %v20383_v56  ;;  %v20406_v56 = vld [vmem:[%s23125_s1 + $0x1c] sm:$0xf] }
 0x2f9   :  { %16366 = vmatmul.mubr.msk.f32.gmra.mrb[60].mxu0 %vm84_vm1, %v20389_v19  ;;  %v23342_v19 = vld [vmem:[#allocation9_spill] sm:$0xff] }
 0x2fa   :  { %16368 = vmatprep.mubr.msk.f32.mxu0 %vm84_vm1, %v20391_v1  ;;  %v23339_v1 = vld [vmem:[#allocation6_spill] sm:$0xff] }
 0x2fd   :  { %16369 = vmatmul.mubr.msk.f32.gmra.mrb[62].mxu0 %vm84_vm1, %v20397_v37  ;;  %v23340_v37 = vld [vmem:[#allocation7_spill] sm:$0xff] }
 0x2fe   :  { %16373 = vmatprep.mubr.msk.f32.mxu0 %vm84_vm1, %v23337_v28  ;;  %v23341_v28 = vld [vmem:[#allocation8_spill] sm:$0xff] }
 0x301   :  { %16374 = vmatmul.mubr.msk.f32.vlgmr.msra.gmra.mrb[0].mxu0 %vm84_vm1, %v23338_v46  ;;  %v20424_v46 = vld [vmem:[#allocation2 + $0xc9] sm:$0xff] }
 0x302   :  { %16470 = vmatpush3.msk.msra.mxu0 %vm713_vm0, %v20168_v12  ;;  %16376 = vmatprep.mubr.msk.f32.mxu0 %vm84_vm1, %v23339_v1  ;;  %23344 = vst [vmem:[#allocation4_spill] sm:$0xff] %v20424_v46  ;;  %v23345_v12 = vld [vmem:[#allocation11_spill] sm:$0xff]  ;;  %v23346_v1 = vld [vmem:[#allocation12_spill] sm:$0xff] }
 0x303   :  { %16567 = vmatprep.subr.msk.mxu0 %vm713_vm0, %v20406_v56 }
 0x305   :  { %16377 = vmatmul.mubr.msk.f32.gmra.mrb[2].mxu0 %vm84_vm1, %v23340_v37  ;;  %v23347_v37 = vld [vmem:[#allocation13_spill] sm:$0xff] }
 0x306   :  { %16379 = vmatprep.mubr.msk.f32.mxu0 %vm84_vm1, %v23341_v28  ;;  %v23348_v28 = vld [vmem:[#allocation14_spill] sm:$0xff] }
 0x309   :  { %16380 = vmatmul.mubr.msk.f32.gmra.mrb[4].mxu0 %vm84_vm1, %v23342_v19  ;;  %v23349_v19 = vld [vmem:[#allocation15_spill] sm:$0xff] }
 0x30a   :  { %16382 = vmatprep.mubr.msk.f32.mxu0 %vm84_vm1, %v23343_v9  ;;  %v23350_v9 = vld [vmem:[#allocation16_spill] sm:$0xff] }
 0x30d   :  { %16383 = vmatmul.mubr.msk.f32.gmra.mrb[6].mxu0 %vm84_vm1, %v20424_v46  ;;  %v20442_v46 = vld [vmem:[#allocation2 + $0x1b9] sm:$0xff] }
 0x30e   :  { %16385 = vmatprep.mubr.msk.f32.mxu0 %vm84_vm1, %v23345_v12  ;;  %23352 = vst [vmem:[#allocation5_spill] sm:$0xff] %v20442_v46  ;;  %v23353_v12 = vld [vmem:[#allocation18_spill] sm:$0xff] }
 0x311   :  { %16386 = vmatmul.mubr.msk.f32.gmra.mrb[8].mxu0 %vm84_vm1, %v23346_v1  ;;  %v23354_v1 = vld [vmem:[#allocation19_spill] sm:$0xff] }
 0x312   :  { %16388 = vmatprep.mubr.msk.f32.mxu0 %vm84_vm1, %v23347_v37  ;;  %v23355_v37 = vld [vmem:[#allocation20_spill] sm:$0xff] }
 0x315   :  { %16389 = vmatmul.mubr.msk.f32.gmra.mrb[10].mxu0 %vm84_vm1, %v23348_v28  ;;  %v23356_v28 = vld [vmem:[#allocation21_spill] sm:$0xff] }
 0x316   :  { %16391 = vmatprep.mubr.msk.f32.mxu0 %vm84_vm1, %v23349_v19  ;;  %v23357_v19 = vld [vmem:[#allocation22_spill] sm:$0xff] }
 0x319   :  { %16392 = vmatmul.mubr.msk.f32.gmra.mrb[12].mxu0 %vm84_vm1, %v23350_v9  ;;  %v23359_v9 = vld [vmem:[#allocation24_spill] sm:$0xff] }
 0x31a   :  { %16394 = vmatprep.mubr.msk.f32.mxu0 %vm84_vm1, %v23351_v39  ;;  %v23358_v39 = vld [vmem:[#allocation23_spill] sm:$0xff] }
 0x31d   :  { %16395 = vmatmul.mubr.msk.f32.gmra.mrb[14].mxu0 %vm84_vm1, %v20442_v46  ;;  %v20460_v46 = vld [vmem:[#allocation2 + $0x2a9] sm:$0xff] }
 0x31e   :  { %16397 = vmatprep.mubr.msk.f32.mxu0 %vm84_vm1, %v23353_v12  ;;  %23360 = vst [vmem:[#allocation6_spill] sm:$0xff] %v20460_v46  ;;  %v23361_v12 = vld [vmem:[#allocation25_spill] sm:$0xff] }
 0x321   :  { %16398 = vmatmul.mubr.msk.f32.gmra.mrb[16].mxu0 %vm84_vm1, %v23354_v1  ;;  %v23362_v1 = vld [vmem:[#allocation26_spill] sm:$0xff] }
 0x322   :  { %16400 = vmatprep.mubr.msk.f32.mxu0 %vm84_vm1, %v23355_v37  ;;  %v23363_v37 = vld [vmem:[#allocation27_spill] sm:$0xff] }
 0x325   :  { %16401 = vmatmul.mubr.msk.f32.gmra.mrb[18].mxu0 %vm84_vm1, %v23356_v28  ;;  %v23364_v28 = vld [vmem:[#allocation28_spill] sm:$0xff] }
 0x326   :  { %16403 = vmatprep.mubr.msk.f32.mxu0 %vm84_vm1, %v23357_v19  ;;  %v23365_v19 = vld [vmem:[#allocation29_spill] sm:$0xff] }
 0x329   :  { %16404 = vmatmul.mubr.msk.f32.gmra.mrb[20].mxu0 %vm84_vm1, %v23358_v39  ;;  %v23366_v39 = vld [vmem:[#allocation30_spill] sm:$0xff] }
 0x32a   :  { %16406 = vmatprep.mubr.msk.f32.mxu0 %vm84_vm1, %v23359_v9  ;;  %v23367_v9 = vld [vmem:[#allocation31_spill] sm:$0xff] }
 0x32d   :  { %16407 = vmatmul.mubr.msk.f32.gmra.mrb[22].mxu0 %vm84_vm1, %v20460_v46  ;;  %v20478_v46 = vld [vmem:[#allocation2 + $0x399] sm:$0xff] }
 0x32e   :  { %16409 = vmatprep.mubr.msk.f32.mxu0 %vm84_vm1, %v23361_v12  ;;  %23368 = vst [vmem:[#allocation7_spill] sm:$0xff] %v20478_v46  ;;  %v23369_v12 = vld [vmem:[#allocation32_spill] sm:$0xff] }
 0x331   :  { %16410 = vmatmul.mubr.msk.f32.gmra.mrb[24].mxu0 %vm84_vm1, %v23362_v1  ;;  %v23370_v1 = vld [vmem:[#allocation33_spill] sm:$0xff] }
 0x332   :  { %16412 = vmatprep.mubr.msk.f32.mxu0 %vm84_vm1, %v23363_v37  ;;  %v23371_v37 = vld [vmem:[#allocation34_spill] sm:$0xff] }
 0x335   :  { %16413 = vmatmul.mubr.msk.f32.gmra.mrb[26].mxu0 %vm84_vm1, %v23364_v28  ;;  %v23372_v28 = vld [vmem:[#allocation35_spill] sm:$0xff] }
 0x336   :  { %16415 = vmatprep.mubr.msk.f32.mxu0 %vm84_vm1, %v23365_v19  ;;  %v23373_v19 = vld [vmem:[#allocation36_spill] sm:$0xff] }
 0x339   :  { %16416 = vmatmul.mubr.msk.f32.gmra.mrb[28].mxu0 %vm84_vm1, %v23366_v39  ;;  %v23374_v39 = vld [vmem:[#allocation37_spill] sm:$0xff] }
 0x33a   :  { %16418 = vmatprep.mubr.msk.f32.mxu0 %vm84_vm1, %v23367_v9  ;;  %v23375_v9 = vld [vmem:[#allocation38_spill] sm:$0xff] }
 0x33d   :  { %16419 = vmatmul.mubr.msk.f32.gmra.mrb[30].mxu0 %vm84_vm1, %v20478_v46  ;;  %v20496_v46 = vld [vmem:[#allocation2 + $0x489] sm:$0xff] }
 0x33e   :  { %16421 = vmatprep.mubr.msk.f32.mxu0 %vm84_vm1, %v23369_v12  ;;  %23376 = vst [vmem:[#allocation8_spill] sm:$0xff] %v20496_v46  ;;  %v23377_v12 = vld [vmem:[#allocation39_spill] sm:$0xff] }
 0x341   :  { %16422 = vmatmul.mubr.msk.f32.gmra.mrb[32].mxu0 %vm84_vm1, %v23370_v1  ;;  %v23378_v1 = vld [vmem:[#allocation40_spill] sm:$0xff] }
 0x342   :  { %16424 = vmatprep.mubr.msk.f32.mxu0 %vm84_vm1, %v23371_v37  ;;  %v23379_v37 = vld [vmem:[#allocation41_spill] sm:$0xff] }
 0x345   :  { %16425 = vmatmul.mubr.msk.f32.gmra.mrb[34].mxu0 %vm84_vm1, %v23372_v28  ;;  %v23380_v28 = vld [vmem:[#allocation42_spill] sm:$0xff] }
 0x346   :  { %16427 = vmatprep.mubr.msk.f32.mxu0 %vm84_vm1, %v23373_v19  ;;  %v23381_v19 = vld [vmem:[#allocation43_spill] sm:$0xff] }
 0x349   :  { %16428 = vmatmul.mubr.msk.f32.gmra.mrb[36].mxu0 %vm84_vm1, %v23374_v39  ;;  %v23382_v39 = vld [vmem:[#allocation44_spill] sm:$0xff] }
 0x34a   :  { %16430 = vmatprep.mubr.msk.f32.mxu0 %vm84_vm1, %v23375_v9  ;;  %v23383_v9 = vld [vmem:[#allocation45_spill] sm:$0xff] }
 0x34d   :  { %16431 = vmatmul.mubr.msk.f32.gmra.mrb[38].mxu0 %vm84_vm1, %v20496_v46  ;;  %v3859_v46 = vld [vmem:[#allocation2 + $0x579] sm:$0xff] }
 0x34e   :  { %16433 = vmatprep.mubr.msk.f32.mxu0 %vm84_vm1, %v23377_v12  ;;  %v23384_v12 = vld [vmem:[#allocation46_spill] sm:$0xff] }
 0x351   :  { %16434 = vmatmul.mubr.msk.f32.gmra.mrb[40].mxu0 %vm84_vm1, %v23378_v1  ;;  %v23385_v1 = vld [vmem:[#allocation47_spill] sm:$0xff] }
 0x352   :  { %16436 = vmatprep.mubr.msk.f32.mxu0 %vm84_vm1, %v23379_v37  ;;  %v23386_v37 = vld [vmem:[#allocation48_spill] sm:$0xff] }
 0x355   :  { %16437 = vmatmul.mubr.msk.f32.gmra.mrb[42].mxu0 %vm84_vm1, %v23380_v28  ;;  %v23387_v28 = vld [vmem:[#allocation49_spill] sm:$0xff] }
 0x356   :  { %16439 = vmatprep.mubr.msk.f32.mxu0 %vm84_vm1, %v23381_v19  ;;  %v23388_v19 = vld [vmem:[#allocation50_spill] sm:$0xff] }
 0x359   :  { %16440 = vmatmul.mubr.msk.f32.gmra.mrb[44].mxu0 %vm84_vm1, %v23382_v39  ;;  %v23389_v39 = vld [vmem:[#allocation51_spill] sm:$0xff] }
 0x35a   :  { %16442 = vmatprep.mubr.msk.f32.mxu0 %vm84_vm1, %v23383_v9  ;;  %v23390_v9 = vld [vmem:[#allocation52_spill] sm:$0xff] }
 0x35d   :  { %16443 = vmatmul.mubr.msk.f32.gmra.mrb[46].mxu0 %vm84_vm1, %v3859_v46  ;;  %v3867_v46 = vld [vmem:[#allocation2 + $0x669] sm:$0xff] }
 0x35e   :  { %16445 = vmatprep.mubr.msk.f32.mxu0 %vm84_vm1, %v23384_v12  ;;  %v23391_v12 = vld [vmem:[#allocation53_spill] sm:$0xff] }
 0x361   :  { %16446 = vmatmul.mubr.msk.f32.gmra.mrb[48].mxu0 %vm84_vm1, %v23385_v1  ;;  %v4523_v1 = vld [vmem:[#allocation2 + $0x37] sm:$0xff] }
 0x362   :  { %16448 = vmatprep.mubr.msk.f32.mxu0 %vm84_vm1, %v19950_v47  ;;  %v3875_v47 = vld [vmem:[#allocation2 + $0x759] sm:$0xff] }
 0x365   :  { %16449 = vmatmul.mubr.msk.f32.gmra.mrb[50].mxu0 %vm84_vm1, %v23386_v37  ;;  %v4524_v37 = vld [vmem:[#allocation2 + $0x4f] sm:$0xff] }
 0x366   :  { %16451 = vmatprep.mubr.msk.f32.mxu0 %vm84_vm1, %v23387_v28  ;;  %v4530_v28 = vld [vmem:[#allocation2 + $0xdf] sm:$0xff] }
 0x369   :  { %16452 = vmatmul.mubr.msk.f32.gmra.mrb[52].mxu0 %vm84_vm1, %v23388_v19  ;;  %v4531_v19 = vld [vmem:[#allocation2 + $0x127] sm:$0xff] }
 0x36a   :  { %16454 = vmatprep.mubr.msk.f32.mxu0 %vm84_vm1, %v23389_v39  ;;  %v4533_v39 = vld [vmem:[#allocation2 + $0x157] sm:$0xff] }
 0x36d   :  { %16455 = vmatmul.mubr.msk.f32.gmra.mrb[54].mxu0 %vm84_vm1, %v3867_v46  ;;  %v4534_v46 = vld [vmem:[#allocation2 + $0x16f] sm:$0xff] }
 0x36e   :  { %16457 = vmatprep.mubr.msk.f32.mxu0 %vm84_vm1, %v23390_v9  ;;  %v4535_v9 = vld [vmem:[#allocation2 + $0x187] sm:$0xff] }
 0x371   :  { %16458 = vmatmul.mubr.msk.f32.gmra.mrb[56].mxu0 %vm84_vm1, %v23391_v12  ;;  %v4536_v12 = vld [vmem:[#allocation2 + $0x19f] sm:$0xff] }
 0x372   :  { %16460 = vmatprep.mubr.msk.f32.mxu0 %vm84_vm1, %v19983_v0  ;;  %v4525_v0 = vld [vmem:[#allocation2 + $0x67] sm:$0xff] }
 0x375   :  { %16461 = vmatmul.mubr.msk.f32.gmra.mrb[58].mxu0 %vm84_vm1, %v19985_v31  ;;  %v20549_v31 = vld [vmem:[%s23125_s1 + $0x20] sm:$0xf] }
 0x376   :  { %16463 = vmatprep.mubr.msk.f32.mxu0 %vm84_vm1, %v19995_v23  ;;  %v4528_v23 = vld [vmem:[#allocation2 + $0xaf] sm:$0xff] }
 0x379   :  { %16464 = vmatmul.mubr.msk.f32.gmra.mrb[60].mxu0 %vm84_vm1, %v19997_v55  ;;  %v4527_v55 = vld [vmem:[#allocation2 + $0x97] sm:$0xff] }
 0x37a   :  { %16466 = vmatprep.mubr.msk.f32.mxu0 %vm84_vm1, %v20003_v15  ;;  %v4526_v15 = vld [vmem:[#allocation2 + $0x7f] sm:$0xff] }
 0x37d   :  { %16467 = vmatmul.mubr.msk.f32.gmra.mrb[62].mxu0 %vm84_vm1, %v3875_v47  ;;  %v4539_v47 = vld [vmem:[#allocation2 + $0x217] sm:$0xff] }
 0x37e   :  { %16471 = vmatprep.mubr.msk.f32.mxu0 %vm84_vm1, %v4523_v1  ;;  %v4540_v1 = vld [vmem:[#allocation2 + $0x22f] sm:$0xff] }
 0x381   :  { %16472 = vmatmul.mubr.msk.f32.vlgmr.msra.gmra.mrb[0].mxu0 %vm84_vm1, %v4524_v37  ;;  %v4541_v37 = vld [vmem:[#allocation2 + $0x247] sm:$0xff] }
 0x382   :  { %16568 = vmatpush3.msk.msra.mxu0 %vm713_vm0, %v20406_v56  ;;  %16474 = vmatprep.mubr.msk.f32.mxu0 %vm84_vm1, %v4525_v0  ;;  %v4532_v56 = vld [vmem:[#allocation2 + $0x13f] sm:$0xff] }
 0x383   :  { %16665 = vmatprep.subr.msk.mxu0 %vm713_vm0, %v20549_v31  ;;  %v4542_v0 = vld [vmem:[#allocation2 + $0x25f] sm:$0xff] }
 0x385   :  { %16475 = vmatmul.mubr.msk.f32.gmra.mrb[2].mxu0 %vm84_vm1, %v4526_v15  ;;  %v4543_v15 = vld [vmem:[#allocation2 + $0x277] sm:$0xff] }
 0x386   :  { %16477 = vmatprep.mubr.msk.f32.mxu0 %vm84_vm1, %v4527_v55  ;;  %v4544_v55 = vld [vmem:[#allocation2 + $0x28f] sm:$0xff] }
 0x389   :  { %16478 = vmatmul.mubr.msk.f32.gmra.mrb[4].mxu0 %vm84_vm1, %v4528_v23  ;;  %v4547_v23 = vld [vmem:[#allocation2 + $0x307] sm:$0xff] }
 0x38a   :  { %16480 = vmatprep.mubr.msk.f32.mxu0 %vm84_vm1, %v20030_v62  ;;  %v4538_v62 = vld [vmem:[#allocation2 + $0x1cf] sm:$0xff] }
 0x38d   :  { %16481 = vmatmul.mubr.msk.f32.gmra.mrb[6].mxu0 %vm84_vm1, %v4530_v28  ;;  %v4548_v28 = vld [vmem:[#allocation2 + $0x31f] sm:$0xff] }
 0x38e   :  { %16483 = vmatprep.mubr.msk.f32.mxu0 %vm84_vm1, %v4531_v19  ;;  %v4549_v19 = vld [vmem:[#allocation2 + $0x337] sm:$0xff] }
 0x391   :  { %16484 = vmatmul.mubr.msk.f32.gmra.mrb[8].mxu0 %vm84_vm1, %v4532_v56  ;;  %v4550_v56 = vld [vmem:[#allocation2 + $0x34f] sm:$0xff] }
 0x392   :  { %16486 = vmatprep.mubr.msk.f32.mxu0 %vm84_vm1, %v4533_v39  ;;  %v4551_v39 = vld [vmem:[#allocation2 + $0x367] sm:$0xff] }
 0x395   :  { %16487 = vmatmul.mubr.msk.f32.gmra.mrb[10].mxu0 %vm84_vm1, %v4534_v46  ;;  %v4552_v46 = vld [vmem:[#allocation2 + $0x37f] sm:$0xff] }
 0x396   :  { %16489 = vmatprep.mubr.msk.f32.mxu0 %vm84_vm1, %v4535_v9  ;;  %v4555_v9 = vld [vmem:[#allocation2 + $0x3f7] sm:$0xff] }
 0x399   :  { %16490 = vmatmul.mubr.msk.f32.gmra.mrb[12].mxu0 %vm84_vm1, %v4536_v12  ;;  %v4556_v12 = vld [vmem:[#allocation2 + $0x40f] sm:$0xff] }
 0x39a   :  { %16492 = vmatprep.mubr.msk.f32.mxu0 %vm84_vm1, %v20048_v63  ;;  %v4546_v63 = vld [vmem:[#allocation2 + $0x2bf] sm:$0xff] }
 0x39d   :  { %16493 = vmatmul.mubr.msk.f32.gmra.mrb[14].mxu0 %vm84_vm1, %v4538_v62  ;;  %v4557_v62 = vld [vmem:[#allocation2 + $0x427] sm:$0xff] }
 0x39e   :  { %16495 = vmatprep.mubr.msk.f32.mxu0 %vm84_vm1, %v4539_v47  ;;  %v4558_v47 = vld [vmem:[#allocation2 + $0x43f] sm:$0xff] }
 0x3a1   :  { %16496 = vmatmul.mubr.msk.f32.gmra.mrb[16].mxu0 %vm84_vm1, %v4540_v1  ;;  %v4559_v1 = vld [vmem:[#allocation2 + $0x457] sm:$0xff] }
 0x3a2   :  { %16498 = vmatprep.mubr.msk.f32.mxu0 %vm84_vm1, %v4541_v37  ;;  %v4560_v37 = vld [vmem:[#allocation2 + $0x46f] sm:$0xff] }
 0x3a5   :  { %16499 = vmatmul.mubr.msk.f32.gmra.mrb[18].mxu0 %vm84_vm1, %v4542_v0  ;;  %v4563_v0 = vld [vmem:[#allocation2 + $0x4e7] sm:$0xff] }
 0x3a6   :  { %16501 = vmatprep.mubr.msk.f32.mxu0 %vm84_vm1, %v4543_v15  ;;  %v4564_v15 = vld [vmem:[#allocation2 + $0x4ff] sm:$0xff] }
 0x3a9   :  { %16502 = vmatmul.mubr.msk.f32.gmra.mrb[20].mxu0 %vm84_vm1, %v4544_v55  ;;  %v4565_v55 = vld [vmem:[#allocation2 + $0x517] sm:$0xff] }
 0x3aa   :  { %16504 = vmatprep.mubr.msk.f32.mxu0 %vm84_vm1, %v20066_v2  ;;  %v4554_v2 = vld [vmem:[#allocation2 + $0x3af] sm:$0xff] }
 0x3ad   :  { %16505 = vmatmul.mubr.msk.f32.gmra.mrb[22].mxu0 %vm84_vm1, %v4546_v63  ;;  %v4566_v63 = vld [vmem:[#allocation2 + $0x52f] sm:$0xff] }
 0x3ae   :  { %16507 = vmatprep.mubr.msk.f32.mxu0 %vm84_vm1, %v4547_v23  ;;  %v4567_v23 = vld [vmem:[#allocation2 + $0x547] sm:$0xff] }
 0x3b1   :  { %16508 = vmatmul.mubr.msk.f32.gmra.mrb[24].mxu0 %vm84_vm1, %v4548_v28  ;;  %v4568_v28 = vld [vmem:[#allocation2 + $0x55f] sm:$0xff] }
 0x3b2   :  { %16510 = vmatprep.mubr.msk.f32.mxu0 %vm84_vm1, %v4549_v19  ;;  %v4571_v19 = vld [vmem:[#allocation2 + $0x5d7] sm:$0xff] }
 0x3b5   :  { %16511 = vmatmul.mubr.msk.f32.gmra.mrb[26].mxu0 %vm84_vm1, %v4550_v56  ;;  %v4572_v56 = vld [vmem:[#allocation2 + $0x5ef] sm:$0xff] }
 0x3b6   :  { %16513 = vmatprep.mubr.msk.f32.mxu0 %vm84_vm1, %v4551_v39  ;;  %v4573_v39 = vld [vmem:[#allocation2 + $0x607] sm:$0xff] }
 0x3b9   :  { %16514 = vmatmul.mubr.msk.f32.gmra.mrb[28].mxu0 %vm84_vm1, %v4552_v46  ;;  %v4574_v46 = vld [vmem:[#allocation2 + $0x61f] sm:$0xff] }
 0x3ba   :  { %16516 = vmatprep.mubr.msk.f32.mxu0 %vm84_vm1, %v20084_v3  ;;  %v4562_v3 = vld [vmem:[#allocation2 + $0x49f] sm:$0xff] }
 0x3bd   :  { %16517 = vmatmul.mubr.msk.f32.gmra.mrb[30].mxu0 %vm84_vm1, %v4554_v2  ;;  %v4575_v2 = vld [vmem:[#allocation2 + $0x637] sm:$0xff] }
 0x3be   :  { %16519 = vmatprep.mubr.msk.f32.mxu0 %vm84_vm1, %v4555_v9  ;;  %v4576_v9 = vld [vmem:[#allocation2 + $0x64f] sm:$0xff] }
 0x3c1   :  { %16520 = vmatmul.mubr.msk.f32.gmra.mrb[32].mxu0 %vm84_vm1, %v4556_v12  ;;  %v4579_v12 = vld [vmem:[#allocation2 + $0x6c7] sm:$0xff] }
 0x3c2   :  { %16522 = vmatprep.mubr.msk.f32.mxu0 %vm84_vm1, %v4557_v62  ;;  %v4580_v62 = vld [vmem:[#allocation2 + $0x6df] sm:$0xff] }
 0x3c5   :  { %16523 = vmatmul.mubr.msk.f32.gmra.mrb[34].mxu0 %vm84_vm1, %v4558_v47  ;;  %v4581_v47 = vld [vmem:[#allocation2 + $0x6f7] sm:$0xff] }
 0x3c6   :  { %16525 = vmatprep.mubr.msk.f32.mxu0 %vm84_vm1, %v4559_v1  ;;  %v4582_v1 = vld [vmem:[#allocation2 + $0x70f] sm:$0xff] }
 0x3c9   :  { %16526 = vmatmul.mubr.msk.f32.gmra.mrb[36].mxu0 %vm84_vm1, %v4560_v37  ;;  %v4583_v37 = vld [vmem:[#allocation2 + $0x727] sm:$0xff] }
 0x3ca   :  { %16528 = vmatprep.mubr.msk.f32.mxu0 %vm84_vm1, %v20102_v4  ;;  %v4570_v4 = vld [vmem:[#allocation2 + $0x58f] sm:$0xff] }
 0x3cd   :  { %16529 = vmatmul.mubr.msk.f32.gmra.mrb[38].mxu0 %vm84_vm1, %v4562_v3  ;;  %v4584_v3 = vld [vmem:[#allocation2 + $0x73f] sm:$0xff] }
 0x3ce   :  { %16531 = vmatprep.mubr.msk.f32.mxu0 %vm84_vm1, %v4563_v0  ;;  %v5963_v0 = vld [vmem:[#allocation2 + $0x279] sm:$0xff] }
 0x3d1   :  { %16532 = vmatmul.mubr.msk.f32.gmra.mrb[40].mxu0 %vm84_vm1, %v4564_v15  ;;  %v5964_v15 = vld [vmem:[#allocation2 + $0x291] sm:$0xff] }
 0x3d2   :  { %16534 = vmatprep.mubr.msk.f32.mxu0 %vm84_vm1, %v4565_v55  ;;  %v23409_v55 = vld [vmem:[#allocation6_spill] sm:$0xff] }
 0x3d5   :  { %16535 = vmatmul.mubr.msk.f32.gmra.mrb[42].mxu0 %vm84_vm1, %v4566_v63  ;;  %v5966_v63 = vld [vmem:[#allocation2 + $0x2c1] sm:$0xff] }
 0x3d6   :  { %16537 = vmatprep.mubr.msk.f32.mxu0 %vm84_vm1, %v4567_v23  ;;  %v5967_v23 = vld [vmem:[#allocation2 + $0x309] sm:$0xff] }
 0x3d9   :  { %16538 = vmatmul.mubr.msk.f32.gmra.mrb[44].mxu0 %vm84_vm1, %v4568_v28  ;;  %v5968_v28 = vld [vmem:[#allocation2 + $0x321] sm:$0xff] }
 0x3da   :  { %16540 = vmatprep.mubr.msk.f32.mxu0 %vm84_vm1, %v20120_v5  ;;  %v4578_v5 = vld [vmem:[#allocation2 + $0x67f] sm:$0xff] }
 0x3dd   :  { %16541 = vmatmul.mubr.msk.f32.gmra.mrb[46].mxu0 %vm84_vm1, %v4570_v4  ;;  %v5969_v4 = vld [vmem:[#allocation2 + $0x339] sm:$0xff] }
 0x3de   :  { %16543 = vmatprep.mubr.msk.f32.mxu0 %vm84_vm1, %v4571_v19  ;;  %v5970_v19 = vld [vmem:[#allocation2 + $0x351] sm:$0xff] }
 0x3e1   :  { %16544 = vmatmul.mubr.msk.f32.gmra.mrb[48].mxu0 %vm84_vm1, %v4572_v56  ;;  %v5971_v56 = vld [vmem:[#allocation2 + $0x369] sm:$0xff] }
 0x3e2   :  { %16546 = vmatprep.mubr.msk.f32.mxu0 %vm84_vm1, %v4573_v39  ;;  %v5972_v39 = vld [vmem:[#allocation2 + $0x381] sm:$0xff] }
 0x3e5   :  { %16547 = vmatmul.mubr.msk.f32.gmra.mrb[50].mxu0 %vm84_vm1, %v4574_v46  ;;  %v23410_v46 = vld [vmem:[#allocation7_spill] sm:$0xff] }
 0x3e6   :  { %16549 = vmatprep.mubr.msk.f32.mxu0 %vm84_vm1, %v4575_v2  ;;  %v5974_v2 = vld [vmem:[#allocation2 + $0x3b1] sm:$0xff] }
 0x3e9   :  { %16550 = vmatmul.mubr.msk.f32.gmra.mrb[52].mxu0 %vm84_vm1, %v4576_v9  ;;  %v5975_v9 = vld [vmem:[#allocation2 + $0x3f9] sm:$0xff] }
 0x3ea   :  { %16552 = vmatprep.mubr.msk.f32.mxu0 %vm84_vm1, %v20138_v6  ;;  %v4586_v6 = vld [vmem:[#allocation2 + $0x76f] sm:$0xff] }
 0x3ed   :  { %16553 = vmatmul.mubr.msk.f32.gmra.mrb[54].mxu0 %vm84_vm1, %v4578_v5  ;;  %v5976_v5 = vld [vmem:[#allocation2 + $0x411] sm:$0xff] }
 0x3ee   :  { %16555 = vmatprep.mubr.msk.f32.mxu0 %vm84_vm1, %v4579_v12  ;;  %v5977_v12 = vld [vmem:[#allocation2 + $0x429] sm:$0xff] }
 0x3f1   :  { %16556 = vmatmul.mubr.msk.f32.gmra.mrb[56].mxu0 %vm84_vm1, %v4580_v62  ;;  %v5978_v62 = vld [vmem:[#allocation2 + $0x441] sm:$0xff] }
 0x3f2   :  { %16558 = vmatprep.mubr.msk.f32.mxu0 %vm84_vm1, %v4581_v47  ;;  %v5979_v47 = vld [vmem:[#allocation2 + $0x459] sm:$0xff] }
 0x3f5   :  { %16559 = vmatmul.mubr.msk.f32.gmra.mrb[58].mxu0 %vm84_vm1, %v4582_v1  ;;  %v5980_v1 = vld [vmem:[#allocation2 + $0x471] sm:$0xff] }
 0x3f6   :  { %16561 = vmatprep.mubr.msk.f32.mxu0 %vm84_vm1, %v4583_v37  ;;  %v23411_v37 = vld [vmem:[#allocation8_spill] sm:$0xff] }
 0x3f9   :  { %16562 = vmatmul.mubr.msk.f32.gmra.mrb[60].mxu0 %vm84_vm1, %v4584_v3  ;;  %v5982_v3 = vld [vmem:[#allocation2 + $0x4a1] sm:$0xff] }
 0x3fa   :  { %16564 = vmatprep.mubr.msk.f32.mxu0 %vm84_vm1, %v20156_v8  ;;  %v5240_v8 = vld [vmem:[#allocation2 + $0xe0] sm:$0xff] }
 0x3fd   :  { %16565 = vmatmul.mubr.msk.f32.gmra.mrb[62].mxu0 %vm84_vm1, %v4586_v6  ;;  %v5983_v6 = vld [vmem:[#allocation2 + $0x4e9] sm:$0xff] }
 0x3fe   :  { %16569 = vmatprep.mubr.msk.f32.mxu0 %vm84_vm1, %v20161_v10  ;;  %v5248_v10 = vld [vmem:[#allocation2 + $0x1d0] sm:$0xff] }
 0x401   :  { %16570 = vmatmul.mubr.msk.f32.vlgmr.msra.gmra.mrb[0].mxu0 %vm84_vm1, %v20163_v11  ;;  %v5256_v11 = vld [vmem:[#allocation2 + $0x2c0] sm:$0xff] }
 0x402   :  { %16666 = vmatpush3.msk.msra.mxu0 %vm713_vm0, %v20549_v31  ;;  %16572 = vmatprep.mubr.msk.f32.mxu0 %vm84_vm1, %v20176_v13  ;;  %v5264_v13 = vld [vmem:[#allocation2 + $0x3b0] sm:$0xff]  ;;  %v5962_v31 = vld [vmem:[#allocation2 + $0x261] sm:$0xff] }
 0x405   :  { %16573 = vmatmul.mubr.msk.f32.gmra.mrb[2].mxu0 %vm84_vm1, %v20178_v14  ;;  %v5272_v14 = vld [vmem:[#allocation2 + $0x4a0] sm:$0xff] }
 0x406   :  { %16575 = vmatprep.mubr.msk.f32.mxu0 %vm84_vm1, %v20186_v16  ;;  %v23392_v16 = vld [vmem:[#allocation54_spill] sm:$0xff] }
 0x409   :  { %16576 = vmatmul.mubr.msk.f32.gmra.mrb[4].mxu0 %vm84_vm1, %v20188_v17  ;;  %v5280_v17 = vld [vmem:[#allocation2 + $0x590] sm:$0xff] }
 0x40a   :  { %16578 = vmatprep.mubr.msk.f32.mxu0 %vm84_vm1, %v20194_v18  ;;  %v23393_v18 = vld [vmem:[#allocation55_spill] sm:$0xff] }
 0x40d   :  { %16579 = vmatmul.mubr.msk.f32.gmra.mrb[6].mxu0 %vm84_vm1, %v5240_v8  ;;  %v5984_v8 = vld [vmem:[#allocation2 + $0x501] sm:$0xff] }
 0x40e   :  { %16581 = vmatprep.mubr.msk.f32.mxu0 %vm84_vm1, %v20199_v20  ;;  %v23394_v20 = vld [vmem:[#allocation56_spill] sm:$0xff] }
 0x411   :  { %16582 = vmatmul.mubr.msk.f32.gmra.mrb[8].mxu0 %vm84_vm1, %v20201_v21  ;;  %v23395_v21 = vld [vmem:[#allocation57_spill] sm:$0xff] }
 0x412   :  { %16584 = vmatprep.mubr.msk.f32.mxu0 %vm84_vm1, %v20207_v22  ;;  %v23396_v22 = vld [vmem:[#allocation58_spill] sm:$0xff] }
 0x415   :  { %16585 = vmatmul.mubr.msk.f32.gmra.mrb[10].mxu0 %vm84_vm1, %v20209_v24  ;;  %v23397_v24 = vld [vmem:[#allocation59_spill] sm:$0xff] }
 0x416   :  { %16587 = vmatprep.mubr.msk.f32.mxu0 %vm84_vm1, %v20215_v25  ;;  %v23398_v25 = vld [vmem:[#allocation60_spill] sm:$0xff] }
 0x419   :  { %16588 = vmatmul.mubr.msk.f32.gmra.mrb[12].mxu0 %vm84_vm1, %v20217_v26  ;;  %v23399_v26 = vld [vmem:[#allocation61_spill] sm:$0xff] }
 0x41a   :  { %16590 = vmatprep.mubr.msk.f32.mxu0 %vm84_vm1, %v20223_v27  ;;  %v5288_v27 = vld [vmem:[#allocation2 + $0x680] sm:$0xff] }
 0x41d   :  { %16591 = vmatmul.mubr.msk.f32.gmra.mrb[14].mxu0 %vm84_vm1, %v5248_v10  ;;  %v5985_v10 = vld [vmem:[#allocation2 + $0x519] sm:$0xff] }
 0x41e   :  { %16593 = vmatprep.mubr.msk.f32.mxu0 %vm84_vm1, %v20228_v29  ;;  %v23400_v29 = vld [vmem:[#allocation62_spill] sm:$0xff] }
 0x421   :  { %16594 = vmatmul.mubr.msk.f32.gmra.mrb[16].mxu0 %vm84_vm1, %v20230_v30  ;;  %v23401_v30 = vld [vmem:[#allocation63_spill] sm:$0xff] }
 0x422   :  { %16596 = vmatprep.mubr.msk.f32.mxu0 %vm84_vm1, %v20236_v32  ;;  %v23402_v32 = vld [vmem:[#allocation64_spill] sm:$0xff] }
 0x425   :  { %16597 = vmatmul.mubr.msk.f32.gmra.mrb[18].mxu0 %vm84_vm1, %v20238_v33  ;;  %v23403_v33 = vld [vmem:[#allocation65_spill] sm:$0xff] }
 0x426   :  { %16599 = vmatprep.mubr.msk.f32.mxu0 %vm84_vm1, %v20244_v34  ;;  %v23404_v34 = vld [vmem:[#allocation66_spill] sm:$0xff] }
 0x429   :  { %16600 = vmatmul.mubr.msk.f32.gmra.mrb[20].mxu0 %vm84_vm1, %v20246_v35  ;;  %v23405_v35 = vld [vmem:[#allocation67_spill] sm:$0xff] }
 0x42a   :  { %16602 = vmatprep.mubr.msk.f32.mxu0 %vm84_vm1, %v20252_v36  ;;  %v23406_v36 = vld [vmem:[#allocation68_spill] sm:$0xff] }
 0x42d   :  { %16603 = vmatmul.mubr.msk.f32.gmra.mrb[22].mxu0 %vm84_vm1, %v5256_v11  ;;  %v5986_v11 = vld [vmem:[#allocation2 + $0x531] sm:$0xff] }
 0x42e   :  { %16605 = vmatprep.mubr.msk.f32.mxu0 %vm84_vm1, %v20257_v38  ;;  %v5296_v38 = vld [vmem:[#allocation2 + $0x770] sm:$0xff] }
 0x431   :  { %16606 = vmatmul.mubr.msk.f32.gmra.mrb[24].mxu0 %vm84_vm1, %v20259_v40  ;;  %v5943_v40 = vld [vmem:[#allocation2 + $0x39] sm:$0xff] }
 0x432   :  { %16608 = vmatprep.mubr.msk.f32.mxu0 %vm84_vm1, %v20265_v41  ;;  %v5944_v41 = vld [vmem:[#allocation2 + $0x51] sm:$0xff] }
 0x435   :  { %16609 = vmatmul.mubr.msk.f32.gmra.mrb[26].mxu0 %vm84_vm1, %v20267_v42  ;;  %v5945_v42 = vld [vmem:[#allocation2 + $0x69] sm:$0xff] }
 0x436   :  { %16611 = vmatprep.mubr.msk.f32.mxu0 %vm84_vm1, %v20273_v43  ;;  %v5946_v43 = vld [vmem:[#allocation2 + $0x81] sm:$0xff] }
 0x439   :  { %16612 = vmatmul.mubr.msk.f32.gmra.mrb[28].mxu0 %vm84_vm1, %v20275_v44  ;;  %v5947_v44 = vld [vmem:[#allocation2 + $0x99] sm:$0xff] }
 0x43a   :  { %16614 = vmatprep.mubr.msk.f32.mxu0 %vm84_vm1, %v20281_v45  ;;  %v5948_v45 = vld [vmem:[#allocation2 + $0xb1] sm:$0xff] }
 0x43d   :  { %16615 = vmatmul.mubr.msk.f32.gmra.mrb[30].mxu0 %vm84_vm1, %v5264_v13  ;;  %v5987_v13 = vld [vmem:[#allocation2 + $0x549] sm:$0xff] }
 0x43e   :  { %16617 = vmatprep.mubr.msk.f32.mxu0 %vm84_vm1, %v20286_v48  ;;  %v23407_v48 = vld [vmem:[#allocation4_spill] sm:$0xff] }
 0x441   :  { %16618 = vmatmul.mubr.msk.f32.gmra.mrb[32].mxu0 %vm84_vm1, %v20288_v49  ;;  %v5950_v49 = vld [vmem:[#allocation2 + $0xe1] sm:$0xff] }
 0x442   :  { %16620 = vmatprep.mubr.msk.f32.mxu0 %vm84_vm1, %v20294_v50  ;;  %v5951_v50 = vld [vmem:[#allocation2 + $0x129] sm:$0xff] }
 0x445   :  { %16621 = vmatmul.mubr.msk.f32.gmra.mrb[34].mxu0 %vm84_vm1, %v20296_v51  ;;  %v5952_v51 = vld [vmem:[#allocation2 + $0x141] sm:$0xff] }
 0x446   :  { %16623 = vmatprep.mubr.msk.f32.mxu0 %vm84_vm1, %v20302_v52  ;;  %v5953_v52 = vld [vmem:[#allocation2 + $0x159] sm:$0xff] }
 0x449   :  { %16624 = vmatmul.mubr.msk.f32.gmra.mrb[36].mxu0 %vm84_vm1, %v20304_v53  ;;  %v5954_v53 = vld [vmem:[#allocation2 + $0x171] sm:$0xff] }
 0x44a   :  { %16626 = vmatprep.mubr.msk.f32.mxu0 %vm84_vm1, %v20310_v54  ;;  %v5955_v54 = vld [vmem:[#allocation2 + $0x189] sm:$0xff] }
 0x44d   :  { %16627 = vmatmul.mubr.msk.f32.gmra.mrb[38].mxu0 %vm84_vm1, %v5272_v14  ;;  %v20798_v14 = vld [vmem:[#allocation2 + $0x561] sm:$0xff] }
 0x44e   :  { %16629 = vmatprep.mubr.msk.f32.mxu0 %vm84_vm1, %v20315_v57  ;;  %v5956_v57 = vld [vmem:[#allocation2 + $0x1a1] sm:$0xff] }
 0x451   :  { %16630 = vmatmul.mubr.msk.f32.gmra.mrb[40].mxu0 %vm84_vm1, %v20317_v58  ;;  %v23408_v58 = vld [vmem:[#allocation5_spill] sm:$0xff] }
 0x452   :  { %16632 = vmatprep.mubr.msk.f32.mxu0 %vm84_vm1, %v20323_v59  ;;  %v5958_v59 = vld [vmem:[#allocation2 + $0x1d1] sm:$0xff] }
 0x455   :  { %16633 = vmatmul.mubr.msk.f32.gmra.mrb[42].mxu0 %vm84_vm1, %v20325_v60  ;;  %v5959_v60 = vld [vmem:[#allocation2 + $0x219] sm:$0xff] }
 0x456   :  { %16635 = vmatprep.mubr.msk.f32.mxu0 %vm84_vm1, %v20331_v61  ;;  %v5960_v61 = vld [vmem:[#allocation2 + $0x231] sm:$0xff] }
 0x459   :  { %16636 = vmatmul.mubr.msk.f32.gmra.mrb[44].mxu0 %vm84_vm1, %v20333_v7  ;;  %v5961_v7 = vld [vmem:[#allocation2 + $0x249] sm:$0xff] }
 0x45a   :  { %16638 = vmatprep.mubr.msk.f32.mxu0 %vm84_vm1, %v23392_v16  ;;  %v23412_v16 = vmov 0.0  }
 0x45b   :  { %6796 = vst.msk [vmem:[#allocation3 + $0x38] sm:$0xff] %vm6788_vm2, %v23412_v16  ;;  %6789 = vst.msk [vmem:[#allocation3] sm:$0xff] %vm6788_vm2, %v23412_v16 }
 0x45c   :  { %6790 = vst.msk [vmem:[#allocation3 + $0x8] sm:$0xff] %vm6788_vm2, %v23412_v16  ;;  %6791 = vst.msk [vmem:[#allocation3 + $0x10] sm:$0xff] %vm6788_vm2, %v23412_v16 }
 0x45d   :  { %16639 = vmatmul.mubr.msk.f32.gmra.mrb[46].mxu0 %vm84_vm1, %v5280_v17  ;;  %6792 = vst.msk [vmem:[#allocation3 + $0x18] sm:$0xff] %vm6788_vm2, %v23412_v16  ;;  %6793 = vst.msk [vmem:[#allocation3 + $0x20] sm:$0xff] %vm6788_vm2, %v23412_v16  ;;  %v18670_v17 = vld [vmem:[#allocation2 + $0x579] sm:$0xff] }
 0x45e   :  { %16641 = vmatprep.mubr.msk.f32.mxu0 %vm84_vm1, %v23393_v18  ;;  %6794 = vst.msk [vmem:[#allocation3 + $0x28] sm:$0xff] %vm6788_vm2, %v23412_v16  ;;  %6795 = vst.msk [vmem:[#allocation3 + $0x30] sm:$0xff] %vm6788_vm2, %v23412_v16  ;;  %v5990_v18 = vld [vmem:[#allocation2 + $0x591] sm:$0xff] }
 0x45f   :  { %6797 = vst.msk [vmem:[#allocation3 + $0x40] sm:$0xff] %vm6788_vm2, %v23412_v16  ;;  %6798 = vst.msk [vmem:[#allocation3 + $0x48] sm:$0xff] %vm6788_vm2, %v23412_v16 }
 0x460   :  { %6799 = vst.msk [vmem:[#allocation3 + $0x50] sm:$0xff] %vm6788_vm2, %v23412_v16  ;;  %6800 = vst.msk [vmem:[#allocation3 + $0x58] sm:$0xff] %vm6788_vm2, %v23412_v16 }
 0x461   :  { %16642 = vmatmul.mubr.msk.f32.gmra.mrb[48].mxu0 %vm84_vm1, %v23394_v20  ;;  %6801 = vst.msk [vmem:[#allocation3 + $0x60] sm:$0xff] %vm6788_vm2, %v23412_v16  ;;  %6802 = vst.msk [vmem:[#allocation3 + $0x68] sm:$0xff] %vm6788_vm2, %v23412_v16  ;;  %v5991_v20 = vld [vmem:[#allocation2 + $0x5d9] sm:$0xff] }
 0x462   :  { %16644 = vmatprep.mubr.msk.f32.mxu0 %vm84_vm1, %v23395_v21  ;;  %6803 = vst.msk [vmem:[#allocation3 + $0x70] sm:$0xff] %vm6788_vm2, %v23412_v16  ;;  %6804 = vst.msk [vmem:[#allocation3 + $0x78] sm:$0xff] %vm6788_vm2, %v23412_v16  ;;  %v5992_v21 = vld [vmem:[#allocation2 + $0x5f1] sm:$0xff] }
 0x463   :  { %6805 = vst.msk [vmem:[#allocation3 + $0x80] sm:$0xff] %vm6788_vm2, %v23412_v16  ;;  %6806 = vst.msk [vmem:[#allocation3 + $0x88] sm:$0xff] %vm6788_vm2, %v23412_v16 }
 0x464   :  { %6807 = vst.msk [vmem:[#allocation3 + $0x90] sm:$0xff] %vm6788_vm2, %v23412_v16  ;;  %6808 = vst.msk [vmem:[#allocation3 + $0x98] sm:$0xff] %vm6788_vm2, %v23412_v16 }
 0x465   :  { %16645 = vmatmul.mubr.msk.f32.gmra.mrb[50].mxu0 %vm84_vm1, %v23396_v22  ;;  %6809 = vst.msk [vmem:[#allocation3 + $0xa0] sm:$0xff] %vm6788_vm2, %v23412_v16  ;;  %6810 = vst.msk [vmem:[#allocation3 + $0xa8] sm:$0xff] %vm6788_vm2, %v23412_v16  ;;  %v5993_v22 = vld [vmem:[#allocation2 + $0x609] sm:$0xff] }
 0x466   :  { %16647 = vmatprep.mubr.msk.f32.mxu0 %vm84_vm1, %v23397_v24  ;;  %6811 = vst.msk [vmem:[#allocation3 + $0xb0] sm:$0xff] %vm6788_vm2, %v23412_v16  ;;  %6812 = vst.msk [vmem:[#allocation3 + $0xb8] sm:$0xff] %vm6788_vm2, %v23412_v16  ;;  %v14126_v24 = vld [vmem:[%s23127_s3 + $0x8] sm:$0xff] }
 0x467   :  { %6813 = vst.msk [vmem:[#allocation3 + $0xc0] sm:$0xff] %vm6788_vm2, %v23412_v16  ;;  %6814 = vst.msk [vmem:[#allocation3 + $0xc8] sm:$0xff] %vm6788_vm2, %v23412_v16  ;;  %16763 = vmatprep.subr.mxu1 %v14126_v24 }
 0x468   :  { %6815 = vst.msk [vmem:[#allocation3 + $0xd0] sm:$0xff] %vm6788_vm2, %v23412_v16  ;;  %6816 = vst.msk [vmem:[#allocation3 + $0xd8] sm:$0xff] %vm6788_vm2, %v23412_v16  ;;  %16764 = vmatpush3.msra.mxu1 %v14126_v24 }
 0x469   :  { %16648 = vmatmul.mubr.msk.f32.gmra.mrb[52].mxu0 %vm84_vm1, %v23398_v25  ;;  %6817 = vst.msk [vmem:[#allocation3 + $0xe0] sm:$0xff] %vm6788_vm2, %v23412_v16  ;;  %6818 = vst.msk [vmem:[#allocation3 + $0xe8] sm:$0xff] %vm6788_vm2, %v23412_v16  ;;  %v7159_v25 = vld [vmem:[#allocation3 + $0x8] sm:$0xff] }
 0x46a   :  { %16650 = vmatprep.mubr.msk.f32.mxu0 %vm84_vm1, %v23399_v26  ;;  %6819 = vst.msk [vmem:[#allocation3 + $0xf0] sm:$0xff] %vm6788_vm2, %v23412_v16  ;;  %6820 = vst.msk [vmem:[#allocation3 + $0xf8] sm:$0xff] %vm6788_vm2, %v23412_v16  ;;  %v5994_v26 = vld [vmem:[#allocation2 + $0x621] sm:$0xff]  ;;  %16765 = vmatprep.mubr.msk.f32.mxu1 %vm6788_vm2, %v7159_v25 }
 0x46b   :  { %6821 = vst.msk [vmem:[#allocation3 + $0x100] sm:$0xff] %vm6788_vm2, %v23412_v16  ;;  %6822 = vst.msk [vmem:[#allocation3 + $0x108] sm:$0xff] %vm6788_vm2, %v23412_v16 }
 0x46c   :  { %6823 = vst.msk [vmem:[#allocation3 + $0x110] sm:$0xff] %vm6788_vm2, %v23412_v16  ;;  %6824 = vst.msk [vmem:[#allocation3 + $0x118] sm:$0xff] %vm6788_vm2, %v23412_v16 }
 0x46d   :  { %16651 = vmatmul.mubr.msk.f32.gmra.mrb[54].mxu0 %vm84_vm1, %v5288_v27  ;;  %6825 = vst.msk [vmem:[#allocation3 + $0x120] sm:$0xff] %vm6788_vm2, %v23412_v16  ;;  %6826 = vst.msk [vmem:[#allocation3 + $0x128] sm:$0xff] %vm6788_vm2, %v23412_v16  ;;  %v5995_v27 = vld [vmem:[#allocation2 + $0x639] sm:$0xff] }
 0x46e   :  { %16653 = vmatprep.mubr.msk.f32.mxu0 %vm84_vm1, %v23400_v29  ;;  %6827 = vst.msk [vmem:[#allocation3 + $0x130] sm:$0xff] %vm6788_vm2, %v23412_v16  ;;  %6828 = vst.msk [vmem:[#allocation3 + $0x138] sm:$0xff] %vm6788_vm2, %v23412_v16  ;;  %v5996_v29 = vld [vmem:[#allocation2 + $0x651] sm:$0xff] }
 0x46f   :  { %6829 = vst.msk [vmem:[#allocation3 + $0x140] sm:$0xff] %vm6788_vm2, %v23412_v16  ;;  %6830 = vst.msk [vmem:[#allocation3 + $0x148] sm:$0xff] %vm6788_vm2, %v23412_v16 }
 0x470   :  { %6831 = vst.msk [vmem:[#allocation3 + $0x150] sm:$0xff] %vm6788_vm2, %v23412_v16  ;;  %6832 = vst.msk [vmem:[#allocation3 + $0x158] sm:$0xff] %vm6788_vm2, %v23412_v16 }
 0x471   :  { %16654 = vmatmul.mubr.msk.f32.gmra.mrb[56].mxu0 %vm84_vm1, %v23401_v30  ;;  %6833 = vst.msk [vmem:[#allocation3 + $0x160] sm:$0xff] %vm6788_vm2, %v23412_v16  ;;  %6834 = vst.msk [vmem:[#allocation3 + $0x168] sm:$0xff] %vm6788_vm2, %v23412_v16  ;;  %v7158_v30 = vld [vmem:[%s23127_s3] sm:$0xff] }
 0x472   :  { %16656 = vmatprep.mubr.msk.f32.mxu0 %vm84_vm1, %v23402_v32  ;;  %6835 = vst.msk [vmem:[#allocation3 + $0x170] sm:$0xff] %vm6788_vm2, %v23412_v16  ;;  %6836 = vst.msk [vmem:[#allocation3 + $0x178] sm:$0xff] %vm6788_vm2, %v23412_v16  ;;  %16861 = vmatprep.subr.mxu1 %v7158_v30  ;;  %v18671_v32 = vld [vmem:[#allocation2 + $0x669] sm:$0xff] }
 0x473   :  { %6837 = vst.msk [vmem:[#allocation3 + $0x180] sm:$0xff] %vm6788_vm2, %v23412_v16  ;;  %6838 = vst.msk [vmem:[#allocation3 + $0x188] sm:$0xff] %vm6788_vm2, %v23412_v16 }
 0x474   :  { %6839 = vst.msk [vmem:[#allocation3 + $0x190] sm:$0xff] %vm6788_vm2, %v23412_v16  ;;  %6840 = vst.msk [vmem:[#allocation3 + $0x198] sm:$0xff] %vm6788_vm2, %v23412_v16 }
 0x475   :  { %16657 = vmatmul.mubr.msk.f32.gmra.mrb[58].mxu0 %vm84_vm1, %v23403_v33  ;;  %6841 = vst.msk [vmem:[#allocation3 + $0x1a0] sm:$0xff] %vm6788_vm2, %v23412_v16  ;;  %6842 = vst.msk [vmem:[#allocation3 + $0x1a8] sm:$0xff] %vm6788_vm2, %v23412_v16  ;;  %v5998_v33 = vld [vmem:[#allocation2 + $0x681] sm:$0xff] }
 0x476   :  { %16659 = vmatprep.mubr.msk.f32.mxu0 %vm84_vm1, %v23404_v34  ;;  %6843 = vst.msk [vmem:[#allocation3 + $0x1b0] sm:$0xff] %vm6788_vm2, %v23412_v16  ;;  %6844 = vst.msk [vmem:[#allocation3 + $0x1b8] sm:$0xff] %vm6788_vm2, %v23412_v16  ;;  %v5999_v34 = vld [vmem:[#allocation2 + $0x6c9] sm:$0xff] }
 0x477   :  { %6845 = vst.msk [vmem:[#allocation3 + $0x1c0] sm:$0xff] %vm6788_vm2, %v23412_v16  ;;  %6846 = vst.msk [vmem:[#allocation3 + $0x1c8] sm:$0xff] %vm6788_vm2, %v23412_v16 }
 0x478   :  { %6847 = vst.msk [vmem:[#allocation3 + $0x1d0] sm:$0xff] %vm6788_vm2, %v23412_v16  ;;  %6848 = vst.msk [vmem:[#allocation3 + $0x1d8] sm:$0xff] %vm6788_vm2, %v23412_v16 }
 0x479   :  { %16660 = vmatmul.mubr.msk.f32.gmra.mrb[60].mxu0 %vm84_vm1, %v23405_v35  ;;  %6849 = vst.msk [vmem:[#allocation3 + $0x1e0] sm:$0xff] %vm6788_vm2, %v23412_v16  ;;  %6850 = vst.msk [vmem:[#allocation3 + $0x1e8] sm:$0xff] %vm6788_vm2, %v23412_v16  ;;  %v6000_v35 = vld [vmem:[#allocation2 + $0x6e1] sm:$0xff] }
 0x47a   :  { %16662 = vmatprep.mubr.msk.f32.mxu0 %vm84_vm1, %v23406_v36  ;;  %6851 = vst.msk [vmem:[#allocation3 + $0x1f0] sm:$0xff] %vm6788_vm2, %v23412_v16  ;;  %6852 = vst.msk [vmem:[#allocation3 + $0x1f8] sm:$0xff] %vm6788_vm2, %v23412_v16  ;;  %v6001_v36 = vld [vmem:[#allocation2 + $0x6f9] sm:$0xff] }
 0x47b   :  { %6853 = vst.msk [vmem:[#allocation3 + $0x200] sm:$0xff] %vm6788_vm2, %v23412_v16  ;;  %6854 = vst.msk [vmem:[#allocation3 + $0x208] sm:$0xff] %vm6788_vm2, %v23412_v16 }
 0x47c   :  { %6855 = vst.msk [vmem:[#allocation3 + $0x210] sm:$0xff] %vm6788_vm2, %v23412_v16  ;;  %6856 = vst.msk [vmem:[#allocation3 + $0x218] sm:$0xff] %vm6788_vm2, %v23412_v16 }
 0x47d   :  { %16663 = vmatmul.mubr.msk.f32.gmra.mrb[62].mxu0 %vm84_vm1, %v5296_v38  ;;  %6857 = vst.msk [vmem:[#allocation3 + $0x220] sm:$0xff] %vm6788_vm2, %v23412_v16  ;;  %6858 = vst.msk [vmem:[#allocation3 + $0x228] sm:$0xff] %vm6788_vm2, %v23412_v16  ;;  %v6002_v38 = vld [vmem:[#allocation2 + $0x711] sm:$0xff] }
 0x47e   :  { %16667 = vmatprep.mubr.msk.f32.mxu0 %vm84_vm1, %v5943_v40  ;;  %6859 = vst.msk [vmem:[#allocation3 + $0x230] sm:$0xff] %vm6788_vm2, %v23412_v16  ;;  %6860 = vst.msk [vmem:[#allocation3 + $0x238] sm:$0xff] %vm6788_vm2, %v23412_v16  ;;  %v6003_v40 = vld [vmem:[#allocation2 + $0x729] sm:$0xff] }
 0x47f   :  { %6861 = vst.msk [vmem:[#allocation3 + $0x240] sm:$0xff] %vm6788_vm2, %v23412_v16  ;;  %6862 = vst.msk [vmem:[#allocation3 + $0x248] sm:$0xff] %vm6788_vm2, %v23412_v16 }
 0x480   :  { %6863 = vst.msk [vmem:[#allocation3 + $0x250] sm:$0xff] %vm6788_vm2, %v23412_v16  ;;  %6864 = vst.msk [vmem:[#allocation3 + $0x258] sm:$0xff] %vm6788_vm2, %v23412_v16 }
 0x481   :  { %16668 = vmatmul.mubr.msk.f32.vlgmr.msra.gmra.mrb[0].mxu0 %vm84_vm1, %v5944_v41  ;;  %6865 = vst.msk [vmem:[#allocation3 + $0x260] sm:$0xff] %vm6788_vm2, %v23412_v16  ;;  %6866 = vst.msk [vmem:[#allocation3 + $0x268] sm:$0xff] %vm6788_vm2, %v23412_v16  ;;  %v6004_v41 = vld [vmem:[#allocation2 + $0x741] sm:$0xff] }
 0x482   :  { %16670 = vmatprep.mubr.msk.f32.mxu0 %vm84_vm1, %v5945_v42  ;;  %6867 = vst.msk [vmem:[#allocation3 + $0x270] sm:$0xff] %vm6788_vm2, %v23412_v16  ;;  %6868 = vst.msk [vmem:[#allocation3 + $0x278] sm:$0xff] %vm6788_vm2, %v23412_v16  ;;  %v18672_v42 = vld [vmem:[#allocation2 + $0x759] sm:$0xff] }
 0x483   :  { %6869 = vst.msk [vmem:[#allocation3 + $0x280] sm:$0xff] %vm6788_vm2, %v23412_v16  ;;  %6870 = vst.msk [vmem:[#allocation3 + $0x288] sm:$0xff] %vm6788_vm2, %v23412_v16 }
 0x484   :  { %6871 = vst.msk [vmem:[#allocation3 + $0x290] sm:$0xff] %vm6788_vm2, %v23412_v16  ;;  %6872 = vst.msk [vmem:[#allocation3 + $0x298] sm:$0xff] %vm6788_vm2, %v23412_v16 }
 0x485   :  { %16671 = vmatmul.mubr.msk.f32.gmra.mrb[2].mxu0 %vm84_vm1, %v5946_v43  ;;  %6873 = vst.msk [vmem:[#allocation3 + $0x2a0] sm:$0xff] %vm6788_vm2, %v23412_v16  ;;  %6874 = vst.msk [vmem:[#allocation3 + $0x2a8] sm:$0xff] %vm6788_vm2, %v23412_v16  ;;  %v6006_v43 = vld [vmem:[#allocation2 + $0x771] sm:$0xff] }
 0x486   :  { %16673 = vmatprep.mubr.msk.f32.mxu0 %vm84_vm1, %v5947_v44  ;;  %6875 = vst.msk [vmem:[#allocation3 + $0x2b0] sm:$0xff] %vm6788_vm2, %v23412_v16  ;;  %6876 = vst.msk [vmem:[#allocation3 + $0x2b8] sm:$0xff] %vm6788_vm2, %v23412_v16  ;;  %v21310_v44 = vld [vmem:[%s23128_s2] ss:$0 sm:$0xff] }
 0x487   :  { %6877 = vst.msk [vmem:[#allocation3 + $0x2c0] sm:$0xff] %vm6788_vm2, %v23412_v16  ;;  %6878 = vst.msk [vmem:[#allocation3 + $0x2c8] sm:$0xff] %vm6788_vm2, %v23412_v16 }
 0x488   :  { %6879 = vst.msk [vmem:[#allocation3 + $0x2d0] sm:$0xff] %vm6788_vm2, %v23412_v16  ;;  %6880 = vst.msk [vmem:[#allocation3 + $0x2d8] sm:$0xff] %vm6788_vm2, %v23412_v16 }
 0x489   :  { %16674 = vmatmul.mubr.msk.f32.gmra.mrb[4].mxu0 %vm84_vm1, %v5948_v45  ;;  %6881 = vst.msk [vmem:[#allocation3 + $0x2e0] sm:$0xff] %vm6788_vm2, %v23412_v16  ;;  %6882 = vst.msk [vmem:[#allocation3 + $0x2e8] sm:$0xff] %vm6788_vm2, %v23412_v16 }
 0x48a   :  { %16676 = vmatprep.mubr.msk.f32.mxu0 %vm84_vm1, %v23407_v48  ;;  %6883 = vst.msk [vmem:[#allocation3 + $0x2f0] sm:$0xff] %vm6788_vm2, %v23412_v16  ;;  %6884 = vst.msk [vmem:[#allocation3 + $0x2f8] sm:$0xff] %vm6788_vm2, %v23412_v16 }
 0x48b   :  { %6885 = vst.msk [vmem:[#allocation3 + $0x300] sm:$0xff] %vm6788_vm2, %v23412_v16  ;;  %6886 = vst.msk [vmem:[#allocation3 + $0x308] sm:$0xff] %vm6788_vm2, %v23412_v16 }
 0x48c   :  { %6887 = vst.msk [vmem:[#allocation3 + $0x310] sm:$0xff] %vm6788_vm2, %v23412_v16  ;;  %6888 = vst.msk [vmem:[#allocation3 + $0x318] sm:$0xff] %vm6788_vm2, %v23412_v16 }
 0x48d   :  { %16677 = vmatmul.mubr.msk.f32.gmra.mrb[6].mxu0 %vm84_vm1, %v5950_v49  ;;  %6889 = vst.msk [vmem:[#allocation3 + $0x320] sm:$0xff] %vm6788_vm2, %v23412_v16  ;;  %6890 = vst.msk [vmem:[#allocation3 + $0x328] sm:$0xff] %vm6788_vm2, %v23412_v16 }
 0x48e   :  { %16679 = vmatprep.mubr.msk.f32.mxu0 %vm84_vm1, %v5951_v50  ;;  %6891 = vst.msk [vmem:[#allocation3 + $0x330] sm:$0xff] %vm6788_vm2, %v23412_v16  ;;  %6892 = vst.msk [vmem:[#allocation3 + $0x338] sm:$0xff] %vm6788_vm2, %v23412_v16 }
 0x48f   :  { %6893 = vst.msk [vmem:[#allocation3 + $0x340] sm:$0xff] %vm6788_vm2, %v23412_v16  ;;  %6894 = vst.msk [vmem:[#allocation3 + $0x348] sm:$0xff] %vm6788_vm2, %v23412_v16 }
 0x490   :  { %6895 = vst.msk [vmem:[#allocation3 + $0x350] sm:$0xff] %vm6788_vm2, %v23412_v16  ;;  %6896 = vst.msk [vmem:[#allocation3 + $0x358] sm:$0xff] %vm6788_vm2, %v23412_v16 }
 0x491   :  { %16680 = vmatmul.mubr.msk.f32.gmra.mrb[8].mxu0 %vm84_vm1, %v5952_v51  ;;  %6897 = vst.msk [vmem:[#allocation3 + $0x360] sm:$0xff] %vm6788_vm2, %v23412_v16  ;;  %6898 = vst.msk [vmem:[#allocation3 + $0x368] sm:$0xff] %vm6788_vm2, %v23412_v16 }
 0x492   :  { %16682 = vmatprep.mubr.msk.f32.mxu0 %vm84_vm1, %v5953_v52  ;;  %6899 = vst.msk [vmem:[#allocation3 + $0x370] sm:$0xff] %vm6788_vm2, %v23412_v16  ;;  %6900 = vst.msk [vmem:[#allocation3 + $0x378] sm:$0xff] %vm6788_vm2, %v23412_v16 }
 0x493   :  { %6901 = vst.msk [vmem:[#allocation3 + $0x380] sm:$0xff] %vm6788_vm2, %v23412_v16  ;;  %6902 = vst.msk [vmem:[#allocation3 + $0x388] sm:$0xff] %vm6788_vm2, %v23412_v16 }
 0x494   :  { %6903 = vst.msk [vmem:[#allocation3 + $0x390] sm:$0xff] %vm6788_vm2, %v23412_v16  ;;  %6904 = vst.msk [vmem:[#allocation3 + $0x398] sm:$0xff] %vm6788_vm2, %v23412_v16 }
 0x495   :  { %16683 = vmatmul.mubr.msk.f32.gmra.mrb[10].mxu0 %vm84_vm1, %v5954_v53  ;;  %6905 = vst.msk [vmem:[#allocation3 + $0x3a0] sm:$0xff] %vm6788_vm2, %v23412_v16  ;;  %6906 = vst.msk [vmem:[#allocation3 + $0x3a8] sm:$0xff] %vm6788_vm2, %v23412_v16 }
 0x496   :  { %16685 = vmatprep.mubr.msk.f32.mxu0 %vm84_vm1, %v5955_v54  ;;  %6907 = vst.msk [vmem:[#allocation3 + $0x3b0] sm:$0xff] %vm6788_vm2, %v23412_v16  ;;  %6908 = vst.msk [vmem:[#allocation3 + $0x3b8] sm:$0xff] %vm6788_vm2, %v23412_v16 }
 0x497   :  { %6909 = vst.msk [vmem:[#allocation3 + $0x3c0] sm:$0xff] %vm6788_vm2, %v23412_v16  ;;  %6910 = vst.msk [vmem:[#allocation3 + $0x3c8] sm:$0xff] %vm6788_vm2, %v23412_v16 }
 0x498   :  { %6911 = vst.msk [vmem:[#allocation3 + $0x3d0] sm:$0xff] %vm6788_vm2, %v23412_v16  ;;  %6912 = vst.msk [vmem:[#allocation3 + $0x3d8] sm:$0xff] %vm6788_vm2, %v23412_v16 }
 0x499   :  { %16686 = vmatmul.mubr.msk.f32.gmra.mrb[12].mxu0 %vm84_vm1, %v5956_v57  ;;  %6913 = vst.msk [vmem:[#allocation3 + $0x3e0] sm:$0xff] %vm6788_vm2, %v23412_v16  ;;  %6914 = vst.msk [vmem:[#allocation3 + $0x3e8] sm:$0xff] %vm6788_vm2, %v23412_v16 }
 0x49a   :  { %16688 = vmatprep.mubr.msk.f32.mxu0 %vm84_vm1, %v23408_v58  ;;  %6915 = vst.msk [vmem:[#allocation3 + $0x3f0] sm:$0xff] %vm6788_vm2, %v23412_v16  ;;  %6916 = vst.msk [vmem:[#allocation3 + $0x3f8] sm:$0xff] %vm6788_vm2, %v23412_v16 }
 0x49b   :  { %6917 = vst.msk [vmem:[#allocation3 + $0x400] sm:$0xff] %vm6788_vm2, %v23412_v16  ;;  %6918 = vst.msk [vmem:[#allocation3 + $0x408] sm:$0xff] %vm6788_vm2, %v23412_v16 }
 0x49c   :  { %6919 = vst.msk [vmem:[#allocation3 + $0x410] sm:$0xff] %vm6788_vm2, %v23412_v16  ;;  %6920 = vst.msk [vmem:[#allocation3 + $0x418] sm:$0xff] %vm6788_vm2, %v23412_v16 }
 0x49d   :  { %16689 = vmatmul.mubr.msk.f32.gmra.mrb[14].mxu0 %vm84_vm1, %v5958_v59  ;;  %6921 = vst.msk [vmem:[#allocation3 + $0x420] sm:$0xff] %vm6788_vm2, %v23412_v16  ;;  %6922 = vst.msk [vmem:[#allocation3 + $0x428] sm:$0xff] %vm6788_vm2, %v23412_v16 }
 0x49e   :  { %16691 = vmatprep.mubr.msk.f32.mxu0 %vm84_vm1, %v5959_v60  ;;  %6923 = vst.msk [vmem:[#allocation3 + $0x430] sm:$0xff] %vm6788_vm2, %v23412_v16  ;;  %6924 = vst.msk [vmem:[#allocation3 + $0x438] sm:$0xff] %vm6788_vm2, %v23412_v16 }
 0x49f   :  { %6925 = vst.msk [vmem:[#allocation3 + $0x440] sm:$0xff] %vm6788_vm2, %v23412_v16  ;;  %6926 = vst.msk [vmem:[#allocation3 + $0x448] sm:$0xff] %vm6788_vm2, %v23412_v16 }
 0x4a0   :  { %6927 = vst.msk [vmem:[#allocation3 + $0x450] sm:$0xff] %vm6788_vm2, %v23412_v16  ;;  %6928 = vst.msk [vmem:[#allocation3 + $0x458] sm:$0xff] %vm6788_vm2, %v23412_v16 }
 0x4a1   :  { %16692 = vmatmul.mubr.msk.f32.gmra.mrb[16].mxu0 %vm84_vm1, %v5960_v61  ;;  %6929 = vst.msk [vmem:[#allocation3 + $0x460] sm:$0xff] %vm6788_vm2, %v23412_v16  ;;  %6930 = vst.msk [vmem:[#allocation3 + $0x468] sm:$0xff] %vm6788_vm2, %v23412_v16 }
 0x4a2   :  { %16694 = vmatprep.mubr.msk.f32.mxu0 %vm84_vm1, %v5961_v7  ;;  %6931 = vst.msk [vmem:[#allocation3 + $0x470] sm:$0xff] %vm6788_vm2, %v23412_v16  ;;  %6932 = vst.msk [vmem:[#allocation3 + $0x478] sm:$0xff] %vm6788_vm2, %v23412_v16 }
 0x4a3   :  { %6933 = vst.msk [vmem:[#allocation3 + $0x480] sm:$0xff] %vm6788_vm2, %v23412_v16  ;;  %6934 = vst.msk [vmem:[#allocation3 + $0x488] sm:$0xff] %vm6788_vm2, %v23412_v16 }
 0x4a4   :  { %6935 = vst.msk [vmem:[#allocation3 + $0x490] sm:$0xff] %vm6788_vm2, %v23412_v16  ;;  %6936 = vst.msk [vmem:[#allocation3 + $0x498] sm:$0xff] %vm6788_vm2, %v23412_v16 }
 0x4a5   :  { %16695 = vmatmul.mubr.msk.f32.gmra.mrb[18].mxu0 %vm84_vm1, %v5962_v31  ;;  %6937 = vst.msk [vmem:[#allocation3 + $0x4a0] sm:$0xff] %vm6788_vm2, %v23412_v16  ;;  %6938 = vst.msk [vmem:[#allocation3 + $0x4a8] sm:$0xff] %vm6788_vm2, %v23412_v16 }
 0x4a6   :  { %16697 = vmatprep.mubr.msk.f32.mxu0 %vm84_vm1, %v5963_v0  ;;  %6939 = vst.msk [vmem:[#allocation3 + $0x4b0] sm:$0xff] %vm6788_vm2, %v23412_v16  ;;  %6940 = vst.msk [vmem:[#allocation3 + $0x4b8] sm:$0xff] %vm6788_vm2, %v23412_v16 }
 0x4a7   :  { %6941 = vst.msk [vmem:[#allocation3 + $0x4c0] sm:$0xff] %vm6788_vm2, %v23412_v16  ;;  %6942 = vst.msk [vmem:[#allocation3 + $0x4c8] sm:$0xff] %vm6788_vm2, %v23412_v16 }
 0x4a8   :  { %6943 = vst.msk [vmem:[#allocation3 + $0x4d0] sm:$0xff] %vm6788_vm2, %v23412_v16  ;;  %6944 = vst.msk [vmem:[#allocation3 + $0x4d8] sm:$0xff] %vm6788_vm2, %v23412_v16 }
 0x4a9   :  { %16698 = vmatmul.mubr.msk.f32.gmra.mrb[20].mxu0 %vm84_vm1, %v5964_v15  ;;  %6945 = vst.msk [vmem:[#allocation3 + $0x4e0] sm:$0xff] %vm6788_vm2, %v23412_v16  ;;  %6946 = vst.msk [vmem:[#allocation3 + $0x4e8] sm:$0xff] %vm6788_vm2, %v23412_v16 }
 0x4aa   :  { %16700 = vmatprep.mubr.msk.f32.mxu0 %vm84_vm1, %v23409_v55  ;;  %6947 = vst.msk [vmem:[#allocation3 + $0x4f0] sm:$0xff] %vm6788_vm2, %v23412_v16  ;;  %6948 = vst.msk [vmem:[#allocation3 + $0x4f8] sm:$0xff] %vm6788_vm2, %v23412_v16 }
 0x4ab   :  { %6949 = vst.msk [vmem:[#allocation3 + $0x500] sm:$0xff] %vm6788_vm2, %v23412_v16  ;;  %6950 = vst.msk [vmem:[#allocation3 + $0x508] sm:$0xff] %vm6788_vm2, %v23412_v16 }
 0x4ac   :  { %6951 = vst.msk [vmem:[#allocation3 + $0x510] sm:$0xff] %vm6788_vm2, %v23412_v16  ;;  %6952 = vst.msk [vmem:[#allocation3 + $0x518] sm:$0xff] %vm6788_vm2, %v23412_v16 }
 0x4ad   :  { %16701 = vmatmul.mubr.msk.f32.gmra.mrb[22].mxu0 %vm84_vm1, %v5966_v63  ;;  %6953 = vst.msk [vmem:[#allocation3 + $0x520] sm:$0xff] %vm6788_vm2, %v23412_v16  ;;  %6954 = vst.msk [vmem:[#allocation3 + $0x528] sm:$0xff] %vm6788_vm2, %v23412_v16 }
 0x4ae   :  { %16703 = vmatprep.mubr.msk.f32.mxu0 %vm84_vm1, %v5967_v23  ;;  %6955 = vst.msk [vmem:[#allocation3 + $0x530] sm:$0xff] %vm6788_vm2, %v23412_v16  ;;  %6956 = vst.msk [vmem:[#allocation3 + $0x538] sm:$0xff] %vm6788_vm2, %v23412_v16 }
 0x4af   :  { %6957 = vst.msk [vmem:[#allocation3 + $0x540] sm:$0xff] %vm6788_vm2, %v23412_v16  ;;  %6958 = vst.msk [vmem:[#allocation3 + $0x548] sm:$0xff] %vm6788_vm2, %v23412_v16 }
 0x4b0   :  { %6959 = vst.msk [vmem:[#allocation3 + $0x550] sm:$0xff] %vm6788_vm2, %v23412_v16  ;;  %6960 = vst.msk [vmem:[#allocation3 + $0x558] sm:$0xff] %vm6788_vm2, %v23412_v16 }
 0x4b1   :  { %16704 = vmatmul.mubr.msk.f32.gmra.mrb[24].mxu0 %vm84_vm1, %v5968_v28  ;;  %6961 = vst.msk [vmem:[#allocation3 + $0x560] sm:$0xff] %vm6788_vm2, %v23412_v16  ;;  %6962 = vst.msk [vmem:[#allocation3 + $0x568] sm:$0xff] %vm6788_vm2, %v23412_v16 }
 0x4b2   :  { %16706 = vmatprep.mubr.msk.f32.mxu0 %vm84_vm1, %v5969_v4  ;;  %6963 = vst.msk [vmem:[#allocation3 + $0x570] sm:$0xff] %vm6788_vm2, %v23412_v16  ;;  %6964 = vst.msk [vmem:[#allocation3 + $0x578] sm:$0xff] %vm6788_vm2, %v23412_v16 }
 0x4b3   :  { %6965 = vst.msk [vmem:[#allocation3 + $0x580] sm:$0xff] %vm6788_vm2, %v23412_v16  ;;  %6966 = vst.msk [vmem:[#allocation3 + $0x588] sm:$0xff] %vm6788_vm2, %v23412_v16 }
 0x4b4   :  { %6967 = vst.msk [vmem:[#allocation3 + $0x590] sm:$0xff] %vm6788_vm2, %v23412_v16  ;;  %6968 = vst.msk [vmem:[#allocation3 + $0x598] sm:$0xff] %vm6788_vm2, %v23412_v16 }
 0x4b5   :  { %16707 = vmatmul.mubr.msk.f32.gmra.mrb[26].mxu0 %vm84_vm1, %v5970_v19  ;;  %6969 = vst.msk [vmem:[#allocation3 + $0x5a0] sm:$0xff] %vm6788_vm2, %v23412_v16  ;;  %6970 = vst.msk [vmem:[#allocation3 + $0x5a8] sm:$0xff] %vm6788_vm2, %v23412_v16  ;;  %v21327_v19 = vld [vmem:[%s23127_s3 + $0x10] sm:$0xff] }
 0x4b6   :  { %16709 = vmatprep.mubr.msk.f32.mxu0 %vm84_vm1, %v5971_v56  ;;  %6971 = vst.msk [vmem:[#allocation3 + $0x5b0] sm:$0xff] %vm6788_vm2, %v23412_v16  ;;  %6972 = vst.msk [vmem:[#allocation3 + $0x5b8] sm:$0xff] %vm6788_vm2, %v23412_v16 }
 0x4b7   :  { %6973 = vst.msk [vmem:[#allocation3 + $0x5c0] sm:$0xff] %vm6788_vm2, %v23412_v16  ;;  %6974 = vst.msk [vmem:[#allocation3 + $0x5c8] sm:$0xff] %vm6788_vm2, %v23412_v16 }
 0x4b8   :  { %6975 = vst.msk [vmem:[#allocation3 + $0x5d0] sm:$0xff] %vm6788_vm2, %v23412_v16  ;;  %6976 = vst.msk [vmem:[#allocation3 + $0x5d8] sm:$0xff] %vm6788_vm2, %v23412_v16 }
 0x4b9   :  { %16710 = vmatmul.mubr.msk.f32.gmra.mrb[28].mxu0 %vm84_vm1, %v5972_v39  ;;  %6977 = vst.msk [vmem:[#allocation3 + $0x5e0] sm:$0xff] %vm6788_vm2, %v23412_v16  ;;  %6978 = vst.msk [vmem:[#allocation3 + $0x5e8] sm:$0xff] %vm6788_vm2, %v23412_v16 }
 0x4ba   :  { %16712 = vmatprep.mubr.msk.f32.mxu0 %vm84_vm1, %v23410_v46  ;;  %6979 = vst.msk [vmem:[#allocation3 + $0x5f0] sm:$0xff] %vm6788_vm2, %v23412_v16  ;;  %6980 = vst.msk [vmem:[#allocation3 + $0x5f8] sm:$0xff] %vm6788_vm2, %v23412_v16 }
 0x4bb   :  { %6981 = vst.msk [vmem:[#allocation3 + $0x600] sm:$0xff] %vm6788_vm2, %v23412_v16  ;;  %6982 = vst.msk [vmem:[#allocation3 + $0x608] sm:$0xff] %vm6788_vm2, %v23412_v16 }
 0x4bc   :  { %6983 = vst.msk [vmem:[#allocation3 + $0x610] sm:$0xff] %vm6788_vm2, %v23412_v16  ;;  %6984 = vst.msk [vmem:[#allocation3 + $0x618] sm:$0xff] %vm6788_vm2, %v23412_v16 }
 0x4bd   :  { %16713 = vmatmul.mubr.msk.f32.gmra.mrb[30].mxu0 %vm84_vm1, %v5974_v2  ;;  %6985 = vst.msk [vmem:[#allocation3 + $0x620] sm:$0xff] %vm6788_vm2, %v23412_v16  ;;  %6986 = vst.msk [vmem:[#allocation3 + $0x628] sm:$0xff] %vm6788_vm2, %v23412_v16 }
 0x4be   :  { %16715 = vmatprep.mubr.msk.f32.mxu0 %vm84_vm1, %v5975_v9  ;;  %6987 = vst.msk [vmem:[#allocation3 + $0x630] sm:$0xff] %vm6788_vm2, %v23412_v16  ;;  %6988 = vst.msk [vmem:[#allocation3 + $0x638] sm:$0xff] %vm6788_vm2, %v23412_v16 }
 0x4bf   :  { %6989 = vst.msk [vmem:[#allocation3 + $0x640] sm:$0xff] %vm6788_vm2, %v23412_v16  ;;  %6990 = vst.msk [vmem:[#allocation3 + $0x648] sm:$0xff] %vm6788_vm2, %v23412_v16 }
 0x4c0   :  { %6991 = vst.msk [vmem:[#allocation3 + $0x650] sm:$0xff] %vm6788_vm2, %v23412_v16  ;;  %6992 = vst.msk [vmem:[#allocation3 + $0x658] sm:$0xff] %vm6788_vm2, %v23412_v16 }
 0x4c1   :  { %16716 = vmatmul.mubr.msk.f32.gmra.mrb[32].mxu0 %vm84_vm1, %v5976_v5  ;;  %6993 = vst.msk [vmem:[#allocation3 + $0x660] sm:$0xff] %vm6788_vm2, %v23412_v16  ;;  %6994 = vst.msk [vmem:[#allocation3 + $0x668] sm:$0xff] %vm6788_vm2, %v23412_v16 }
 0x4c2   :  { %16718 = vmatprep.mubr.msk.f32.mxu0 %vm84_vm1, %v5977_v12  ;;  %6995 = vst.msk [vmem:[#allocation3 + $0x670] sm:$0xff] %vm6788_vm2, %v23412_v16  ;;  %6996 = vst.msk [vmem:[#allocation3 + $0x678] sm:$0xff] %vm6788_vm2, %v23412_v16 }
 0x4c3   :  { %6997 = vst.msk [vmem:[#allocation3 + $0x680] sm:$0xff] %vm6788_vm2, %v23412_v16  ;;  %6998 = vst.msk [vmem:[#allocation3 + $0x688] sm:$0xff] %vm6788_vm2, %v23412_v16 }
 0x4c4   :  { %6999 = vst.msk [vmem:[#allocation3 + $0x690] sm:$0xff] %vm6788_vm2, %v23412_v16  ;;  %7000 = vst.msk [vmem:[#allocation3 + $0x698] sm:$0xff] %vm6788_vm2, %v23412_v16 }
 0x4c5   :  { %16719 = vmatmul.mubr.msk.f32.gmra.mrb[34].mxu0 %vm84_vm1, %v5978_v62  ;;  %7001 = vst.msk [vmem:[#allocation3 + $0x6a0] sm:$0xff] %vm6788_vm2, %v23412_v16  ;;  %7002 = vst.msk [vmem:[#allocation3 + $0x6a8] sm:$0xff] %vm6788_vm2, %v23412_v16 }
 0x4c6   :  { %16721 = vmatprep.mubr.msk.f32.mxu0 %vm84_vm1, %v5979_v47  ;;  %7003 = vst.msk [vmem:[#allocation3 + $0x6b0] sm:$0xff] %vm6788_vm2, %v23412_v16  ;;  %7004 = vst.msk [vmem:[#allocation3 + $0x6b8] sm:$0xff] %vm6788_vm2, %v23412_v16 }
 0x4c7   :  { %7005 = vst.msk [vmem:[#allocation3 + $0x6c0] sm:$0xff] %vm6788_vm2, %v23412_v16  ;;  %7006 = vst.msk [vmem:[#allocation3 + $0x6c8] sm:$0xff] %vm6788_vm2, %v23412_v16 }
 0x4c8   :  { %7007 = vst.msk [vmem:[#allocation3 + $0x6d0] sm:$0xff] %vm6788_vm2, %v23412_v16  ;;  %7008 = vst.msk [vmem:[#allocation3 + $0x6d8] sm:$0xff] %vm6788_vm2, %v23412_v16 }
 0x4c9   :  { %16722 = vmatmul.mubr.msk.f32.gmra.mrb[36].mxu0 %vm84_vm1, %v5980_v1  ;;  %7009 = vst.msk [vmem:[#allocation3 + $0x6e0] sm:$0xff] %vm6788_vm2, %v23412_v16  ;;  %7010 = vst.msk [vmem:[#allocation3 + $0x6e8] sm:$0xff] %vm6788_vm2, %v23412_v16 }
 0x4ca   :  { %16724 = vmatprep.mubr.msk.f32.mxu0 %vm84_vm1, %v23411_v37  ;;  %7011 = vst.msk [vmem:[#allocation3 + $0x6f0] sm:$0xff] %vm6788_vm2, %v23412_v16  ;;  %7012 = vst.msk [vmem:[#allocation3 + $0x6f8] sm:$0xff] %vm6788_vm2, %v23412_v16 }
 0x4cb   :  { %7013 = vst.msk [vmem:[#allocation3 + $0x700] sm:$0xff] %vm6788_vm2, %v23412_v16  ;;  %7014 = vst.msk [vmem:[#allocation3 + $0x708] sm:$0xff] %vm6788_vm2, %v23412_v16 }
 0x4cc   :  { %7015 = vst.msk [vmem:[#allocation3 + $0x710] sm:$0xff] %vm6788_vm2, %v23412_v16  ;;  %7016 = vst.msk [vmem:[#allocation3 + $0x718] sm:$0xff] %vm6788_vm2, %v23412_v16 }
 0x4cd   :  { %16725 = vmatmul.mubr.msk.f32.gmra.mrb[38].mxu0 %vm84_vm1, %v5982_v3  ;;  %7017 = vst.msk [vmem:[#allocation3 + $0x720] sm:$0xff] %vm6788_vm2, %v23412_v16  ;;  %7018 = vst.msk [vmem:[#allocation3 + $0x728] sm:$0xff] %vm6788_vm2, %v23412_v16 }
 0x4ce   :  { %16727 = vmatprep.mubr.msk.f32.mxu0 %vm84_vm1, %v5983_v6  ;;  %7019 = vst.msk [vmem:[#allocation3 + $0x730] sm:$0xff] %vm6788_vm2, %v23412_v16  ;;  %7020 = vst.msk [vmem:[#allocation3 + $0x738] sm:$0xff] %vm6788_vm2, %v23412_v16 }
 0x4cf   :  { %7021 = vst.msk [vmem:[#allocation3 + $0x740] sm:$0xff] %vm6788_vm2, %v23412_v16  ;;  %7022 = vst.msk [vmem:[#allocation3 + $0x748] sm:$0xff] %vm6788_vm2, %v23412_v16 }
 0x4d0   :  { %7023 = vst.msk [vmem:[#allocation3 + $0x750] sm:$0xff] %vm6788_vm2, %v23412_v16  ;;  %7024 = vst.msk [vmem:[#allocation3 + $0x758] sm:$0xff] %vm6788_vm2, %v23412_v16 }
 0x4d1   :  { %16728 = vmatmul.mubr.msk.f32.gmra.mrb[40].mxu0 %vm84_vm1, %v5984_v8  ;;  %7025 = vst.msk [vmem:[#allocation3 + $0x760] sm:$0xff] %vm6788_vm2, %v23412_v16  ;;  %7026 = vst.msk [vmem:[#allocation3 + $0x768] sm:$0xff] %vm6788_vm2, %v23412_v16 }
 0x4d2   :  { %16730 = vmatprep.mubr.msk.f32.mxu0 %vm84_vm1, %v5985_v10  ;;  %7027 = vst.msk [vmem:[#allocation3 + $0x770] sm:$0xff] %vm6788_vm2, %v23412_v16  ;;  %7028 = vst.msk [vmem:[#allocation3 + $0x778] sm:$0xff] %vm6788_vm2, %v23412_v16 }
 0x4d5   :  { %16731 = vmatmul.mubr.msk.f32.gmra.mrb[42].mxu0 %vm84_vm1, %v5986_v11 }
 0x4d6   :  { %16733 = vmatprep.mubr.msk.f32.mxu0 %vm84_vm1, %v5987_v13 }
 0x4d9   :  { %16734 = vmatmul.mubr.msk.f32.gmra.mrb[44].mxu0 %vm84_vm1, %v20798_v14 }
 0x4da   :  { %16736 = vmatprep.mubr.msk.f32.mxu0 %vm84_vm1, %v18670_v17 }
 0x4dd   :  { %16737 = vmatmul.mubr.msk.f32.gmra.mrb[46].mxu0 %vm84_vm1, %v5990_v18 }
 0x4de   :  { %16739 = vmatprep.mubr.msk.f32.mxu0 %vm84_vm1, %v5991_v20  ;;  %v7167_v20 = vld [vmem:[#allocation3 + $0xf8] sm:$0xff] }
 0x4e1   :  { %16740 = vmatmul.mubr.msk.f32.gmra.mrb[48].mxu0 %vm84_vm1, %v5992_v21 }
 0x4e2   :  { %16742 = vmatprep.mubr.msk.f32.mxu0 %vm84_vm1, %v5993_v22 }
 0x4e5   :  { %16743 = vmatmul.mubr.msk.f32.gmra.mrb[50].mxu0 %vm84_vm1, %v5994_v26 }
 0x4e6   :  { %16745 = vmatprep.mubr.msk.f32.mxu0 %vm84_vm1, %v5995_v27 }
 0x4e9   :  { %16746 = vmatmul.mubr.msk.f32.gmra.mrb[52].mxu0 %vm84_vm1, %v5996_v29 }
 0x4ea   :  { %16748 = vmatprep.mubr.msk.f32.mxu0 %vm84_vm1, %v18671_v32 }
 0x4ed   :  { %16749 = vmatmul.mubr.msk.f32.gmra.mrb[54].mxu0 %vm84_vm1, %v5998_v33 }
 0x4ee   :  { %16751 = vmatprep.mubr.msk.f32.mxu0 %vm84_vm1, %v5999_v34 }
 0x4f1   :  { %16752 = vmatmul.mubr.msk.f32.gmra.mrb[56].mxu0 %vm84_vm1, %v6000_v35 }
 0x4f2   :  { %16754 = vmatprep.mubr.msk.f32.mxu0 %vm84_vm1, %v6001_v36 }
 0x4f5   :  { %16755 = vmatmul.mubr.msk.f32.gmra.mrb[58].mxu0 %vm84_vm1, %v6002_v38 }
 0x4f6   :  { %16757 = vmatprep.mubr.msk.f32.mxu0 %vm84_vm1, %v6003_v40 }
 0x4f9   :  { %16758 = vmatmul.mubr.msk.f32.gmra.mrb[60].mxu0 %vm84_vm1, %v6004_v41 }
 0x4fa   :  { %16760 = vmatprep.mubr.msk.f32.mxu0 %vm84_vm1, %v18672_v42 }
 0x4fd   :  { %16761 = vmatmul.mubr.msk.f32.gmra.mrb[62].mxu0 %vm84_vm1, %v6006_v43 }
 0x554   :  { %v16669_v45 = vpop.f32.mrb[0].mxu0 }
 0x555   :  { %v6661_v48 = vadd.f32 %v16669_v45, %v21310_v44  ;;  %v6270_v49 = vpop.f32.mrb[1].mxu0 }
 0x556   :  { %v6660_v50 = vadd.f32 %v21310_v44, %v6270_v49 }
 0x557   :  { %v6725_v51 = vmax.f32 %v6661_v48, 0.0 }
 0x558   :  { %v6724_v52 = vmax.f32 %v6660_v50, 0.0  ;;  %v16672_v53 = vpop.f32.mrb[2].mxu0 }
 0x559   :  { %7031 = vst.msk [vmem:[#allocation3 + $0x38] sm:$0xff] %vm6788_vm2, %v6725_v51  ;;  %v6663_v54 = vadd.f32 %v16672_v53, %v21310_v44  ;;  %v6280_v57 = vpop.f32.mrb[3].mxu0 }
 0x55a   :  { %7030 = vst.msk [vmem:[#allocation3 + $0x20] sm:$0xff] %vm6788_vm2, %v6724_v52  ;;  %v6662_v58 = vadd.f32 %v21310_v44, %v6280_v57 }
 0x55b   :  { %v6727_v59 = vmax.f32 %v6663_v54, 0.0 }
 0x55c   :  { %v6726_v60 = vmax.f32 %v6662_v58, 0.0  ;;  %v16675_v61 = vpop.f32.mrb[4].mxu0 }
 0x55d   :  { %7033 = vst.msk [vmem:[#allocation3 + $0x68] sm:$0xff] %vm6788_vm2, %v6727_v59  ;;  %v6665_v7 = vadd.f32 %v16675_v61, %v21310_v44  ;;  %v6290_v31 = vpop.f32.mrb[5].mxu0 }
 0x55e   :  { %7032 = vst.msk [vmem:[#allocation3 + $0x50] sm:$0xff] %vm6788_vm2, %v6726_v60  ;;  %v6664_v0 = vadd.f32 %v21310_v44, %v6290_v31 }
 0x55f   :  { %v6729_v15 = vmax.f32 %v6665_v7, 0.0  ;;  %v7175_v7 = vld [vmem:[#allocation3 + $0x1e8] sm:$0xff] }
 0x560   :  { %v6728_v55 = vmax.f32 %v6664_v0, 0.0  ;;  %v16678_v63 = vpop.f32.mrb[6].mxu0  ;;  %v7161_v39 = vld [vmem:[#allocation3 + $0x38] sm:$0xff] }
 0x561   :  { %7035 = vst.msk [vmem:[#allocation3 + $0x98] sm:$0xff] %vm6788_vm2, %v6729_v15  ;;  %v6667_v23 = vadd.f32 %v16678_v63, %v21310_v44  ;;  %v6300_v28 = vpop.f32.mrb[7].mxu0  ;;  %v7160_v4 = vld [vmem:[#allocation3 + $0x20] sm:$0xff] }
 0x562   :  { %7034 = vst.msk [vmem:[#allocation3 + $0x80] sm:$0xff] %vm6788_vm2, %v6728_v55  ;;  %v6666_v56 = vadd.f32 %v21310_v44, %v6300_v28  ;;  %16766 = vmatmul.mubr.msk.f32.vlgmr.msra.gmra.mrb[0].mxu1 %vm6788_vm2, %v7160_v4 }
 0x563   :  { %v6731_v46 = vmax.f32 %v6667_v23, 0.0  ;;  %16862 = vmatpush3.msra.mxu1 %v7158_v30  ;;  %16768 = vmatprep.mubr.msk.f32.mxu1 %vm6788_vm2, %v7161_v39 }
 0x564   :  { %v6730_v2 = vmax.f32 %v6666_v56, 0.0  ;;  %v16681_v9 = vpop.f32.mrb[8].mxu0  ;;  %16959 = vmatprep.subr.mxu1 %v21327_v19  ;;  %v7163_v1 = vld [vmem:[#allocation3 + $0x68] sm:$0xff] }
 0x565   :  { %7037 = vst.msk [vmem:[#allocation3 + $0xc8] sm:$0xff] %vm6788_vm2, %v6731_v46  ;;  %v6669_v5 = vadd.f32 %v16681_v9, %v21310_v44  ;;  %v6310_v12 = vpop.f32.mrb[9].mxu0  ;;  %v7162_v62 = vld [vmem:[#allocation3 + $0x50] sm:$0xff] }
 0x566   :  { %7036 = vst.msk [vmem:[#allocation3 + $0xb0] sm:$0xff] %vm6788_vm2, %v6730_v2  ;;  %v6668_v47 = vadd.f32 %v21310_v44, %v6310_v12  ;;  %16769 = vmatmul.mubr.msk.f32.gmra.mrb[2].mxu1 %vm6788_vm2, %v7162_v62 }
 0x567   :  { %v6733_v37 = vmax.f32 %v6669_v5, 0.0  ;;  %16771 = vmatprep.mubr.msk.f32.mxu1 %vm6788_vm2, %v7163_v1 }
 0x568   :  { %v6732_v3 = vmax.f32 %v6668_v47, 0.0  ;;  %v16684_v6 = vpop.f32.mrb[10].mxu0  ;;  %v7165_v14 = vld [vmem:[#allocation3 + $0x98] sm:$0xff] }
 0x569   :  { %7039 = vst.msk [vmem:[#allocation3 + $0x128] sm:$0xff] %vm6788_vm2, %v6733_v37  ;;  %v6671_v8 = vadd.f32 %v16684_v6, %v21310_v44  ;;  %v6320_v10 = vpop.f32.mrb[11].mxu0  ;;  %v7164_v11 = vld [vmem:[#allocation3 + $0x80] sm:$0xff] }
 0x56a   :  { %7038 = vst.msk [vmem:[#allocation3 + $0x110] sm:$0xff] %vm6788_vm2, %v6732_v3  ;;  %v6670_v13 = vadd.f32 %v21310_v44, %v6320_v10  ;;  %16772 = vmatmul.mubr.msk.f32.gmra.mrb[4].mxu1 %vm6788_vm2, %v7164_v11 }
 0x56b   :  { %v6735_v16 = vmax.f32 %v6671_v8, 0.0  ;;  %16774 = vmatprep.mubr.msk.f32.mxu1 %vm6788_vm2, %v7165_v14 }
 0x56c   :  { %v6734_v17 = vmax.f32 %v6670_v13, 0.0  ;;  %v16687_v18 = vpop.f32.mrb[12].mxu0 }
 0x56d   :  { %7041 = vst.msk [vmem:[#allocation3 + $0x158] sm:$0xff] %vm6788_vm2, %v6735_v16  ;;  %v6673_v21 = vadd.f32 %v16687_v18, %v21310_v44  ;;  %v6330_v22 = vpop.f32.mrb[13].mxu0  ;;  %v7166_v24 = vld [vmem:[#allocation3 + $0xb0] sm:$0xff] }
 0x56e   :  { %7040 = vst.msk [vmem:[#allocation3 + $0x140] sm:$0xff] %vm6788_vm2, %v6734_v17  ;;  %v6672_v25 = vadd.f32 %v21310_v44, %v6330_v22  ;;  %16775 = vmatmul.mubr.msk.f32.gmra.mrb[6].mxu1 %vm6788_vm2, %v7166_v24  ;;  %v7183_v22 = vld [vmem:[#allocation3 + $0x2d8] sm:$0xff] }
 0x56f   :  { %v6737_v26 = vmax.f32 %v6673_v21, 0.0  ;;  %16777 = vmatprep.mubr.msk.f32.mxu1 %vm6788_vm2, %v7167_v20 }
 0x570   :  { %v6736_v27 = vmax.f32 %v6672_v25, 0.0  ;;  %v16690_v29 = vpop.f32.mrb[14].mxu0  ;;  %v7169_v35 = vld [vmem:[#allocation3 + $0x128] sm:$0xff] }
 0x571   :  { %7043 = vst.msk [vmem:[#allocation3 + $0x188] sm:$0xff] %vm6788_vm2, %v6737_v26  ;;  %v6675_v30 = vadd.f32 %v16690_v29, %v21310_v44  ;;  %v6340_v32 = vpop.f32.mrb[15].mxu0  ;;  %v7168_v33 = vld [vmem:[#allocation3 + $0x110] sm:$0xff] }
 0x572   :  { %7042 = vst.msk [vmem:[#allocation3 + $0x170] sm:$0xff] %vm6788_vm2, %v6736_v27  ;;  %v6674_v34 = vadd.f32 %v21310_v44, %v6340_v32  ;;  %16778 = vmatmul.mubr.msk.f32.gmra.mrb[8].mxu1 %vm6788_vm2, %v7168_v33 }
 0x573   :  { %v6739_v36 = vmax.f32 %v6675_v30, 0.0  ;;  %16780 = vmatprep.mubr.msk.f32.mxu1 %vm6788_vm2, %v7169_v35 }
 0x574   :  { %v6738_v38 = vmax.f32 %v6674_v34, 0.0  ;;  %v16693_v40 = vpop.f32.mrb[16].mxu0  ;;  %v7171_v48 = vld [vmem:[#allocation3 + $0x158] sm:$0xff] }
 0x575   :  { %7045 = vst.msk [vmem:[#allocation3 + $0x1b8] sm:$0xff] %vm6788_vm2, %v6739_v36  ;;  %v6677_v41 = vadd.f32 %v16693_v40, %v21310_v44  ;;  %v6350_v42 = vpop.f32.mrb[17].mxu0  ;;  %v7170_v43 = vld [vmem:[#allocation3 + $0x140] sm:$0xff] }
 0x576   :  { %7044 = vst.msk [vmem:[#allocation3 + $0x1a0] sm:$0xff] %vm6788_vm2, %v6738_v38  ;;  %v6676_v45 = vadd.f32 %v21310_v44, %v6350_v42  ;;  %16781 = vmatmul.mubr.msk.f32.gmra.mrb[10].mxu1 %vm6788_vm2, %v7170_v43 }
 0x577   :  { %v6741_v49 = vmax.f32 %v6677_v41, 0.0  ;;  %16783 = vmatprep.mubr.msk.f32.mxu1 %vm6788_vm2, %v7171_v48 }
 0x578   :  { %v6740_v50 = vmax.f32 %v6676_v45, 0.0  ;;  %v16696_v51 = vpop.f32.mrb[18].mxu0  ;;  %v7173_v58 = vld [vmem:[#allocation3 + $0x188] sm:$0xff] }
 0x579   :  { %7047 = vst.msk [vmem:[#allocation3 + $0x218] sm:$0xff] %vm6788_vm2, %v6741_v49  ;;  %v6679_v52 = vadd.f32 %v16696_v51, %v21310_v44  ;;  %v6360_v53 = vpop.f32.mrb[19].mxu0  ;;  %v7172_v54 = vld [vmem:[#allocation3 + $0x170] sm:$0xff] }
 0x57a   :  { %7046 = vst.msk [vmem:[#allocation3 + $0x200] sm:$0xff] %vm6788_vm2, %v6740_v50  ;;  %v6678_v57 = vadd.f32 %v21310_v44, %v6360_v53  ;;  %16784 = vmatmul.mubr.msk.f32.gmra.mrb[12].mxu1 %vm6788_vm2, %v7172_v54 }
 0x57b   :  { %v6743_v59 = vmax.f32 %v6679_v52, 0.0  ;;  %16786 = vmatprep.mubr.msk.f32.mxu1 %vm6788_vm2, %v7173_v58 }
 0x57c   :  { %v6742_v60 = vmax.f32 %v6678_v57, 0.0  ;;  %v16699_v61 = vpop.f32.mrb[20].mxu0 }
 0x57d   :  { %7049 = vst.msk [vmem:[#allocation3 + $0x248] sm:$0xff] %vm6788_vm2, %v6743_v59  ;;  %v6681_v31 = vadd.f32 %v16699_v61, %v21310_v44  ;;  %v6370_v0 = vpop.f32.mrb[21].mxu0  ;;  %v7174_v15 = vld [vmem:[#allocation3 + $0x1a0] sm:$0xff] }
 0x57e   :  { %7048 = vst.msk [vmem:[#allocation3 + $0x230] sm:$0xff] %vm6788_vm2, %v6742_v60  ;;  %v6680_v55 = vadd.f32 %v21310_v44, %v6370_v0  ;;  %16787 = vmatmul.mubr.msk.f32.gmra.mrb[14].mxu1 %vm6788_vm2, %v7174_v15  ;;  %v7191_v0 = vld [vmem:[#allocation3 + $0x3c8] sm:$0xff] }
 0x57f   :  { %v6745_v63 = vmax.f32 %v6681_v31, 0.0  ;;  %16789 = vmatprep.mubr.msk.f32.mxu1 %vm6788_vm2, %v7175_v7 }
 0x580   :  { %v6744_v23 = vmax.f32 %v6680_v55, 0.0  ;;  %v16702_v28 = vpop.f32.mrb[22].mxu0  ;;  %v7177_v2 = vld [vmem:[#allocation3 + $0x218] sm:$0xff] }
 0x581   :  { %7051 = vst.msk [vmem:[#allocation3 + $0x278] sm:$0xff] %vm6788_vm2, %v6745_v63  ;;  %v6683_v4 = vadd.f32 %v16702_v28, %v21310_v44  ;;  %v6380_v56 = vpop.f32.mrb[23].mxu0  ;;  %v7176_v39 = vld [vmem:[#allocation3 + $0x200] sm:$0xff] }
 0x582   :  { %7050 = vst.msk [vmem:[#allocation3 + $0x260] sm:$0xff] %vm6788_vm2, %v6744_v23  ;;  %v6682_v46 = vadd.f32 %v21310_v44, %v6380_v56  ;;  %16790 = vmatmul.mubr.msk.f32.gmra.mrb[16].mxu1 %vm6788_vm2, %v7176_v39 }
 0x583   :  { %v6747_v9 = vmax.f32 %v6683_v4, 0.0  ;;  %16792 = vmatprep.mubr.msk.f32.mxu1 %vm6788_vm2, %v7177_v2 }
 0x584   :  { %v6746_v5 = vmax.f32 %v6682_v46, 0.0  ;;  %v16705_v12 = vpop.f32.mrb[24].mxu0  ;;  %v7179_v3 = vld [vmem:[#allocation3 + $0x248] sm:$0xff] }
 0x585   :  { %7053 = vst.msk [vmem:[#allocation3 + $0x2a8] sm:$0xff] %vm6788_vm2, %v6747_v9  ;;  %v6685_v62 = vadd.f32 %v16705_v12, %v21310_v44  ;;  %v6390_v47 = vpop.f32.mrb[25].mxu0  ;;  %v7178_v1 = vld [vmem:[#allocation3 + $0x230] sm:$0xff] }
 0x586   :  { %7052 = vst.msk [vmem:[#allocation3 + $0x290] sm:$0xff] %vm6788_vm2, %v6746_v5  ;;  %v6684_v37 = vadd.f32 %v21310_v44, %v6390_v47  ;;  %16793 = vmatmul.mubr.msk.f32.gmra.mrb[18].mxu1 %vm6788_vm2, %v7178_v1 }
 0x587   :  { %v6749_v6 = vmax.f32 %v6685_v62, 0.0  ;;  %16795 = vmatprep.mubr.msk.f32.mxu1 %vm6788_vm2, %v7179_v3 }
 0x588   :  { %v6748_v8 = vmax.f32 %v6684_v37, 0.0  ;;  %v16708_v10 = vpop.f32.mrb[26].mxu0  ;;  %v7181_v17 = vld [vmem:[#allocation3 + $0x278] sm:$0xff] }
 0x589   :  { %7055 = vst.msk [vmem:[#allocation3 + $0x308] sm:$0xff] %vm6788_vm2, %v6749_v6  ;;  %v6687_v11 = vadd.f32 %v16708_v10, %v21310_v44  ;;  %v6400_v13 = vpop.f32.mrb[27].mxu0  ;;  %v7180_v14 = vld [vmem:[#allocation3 + $0x260] sm:$0xff] }
 0x58a   :  { %7054 = vst.msk [vmem:[#allocation3 + $0x2f0] sm:$0xff] %vm6788_vm2, %v6748_v8  ;;  %v6686_v16 = vadd.f32 %v21310_v44, %v6400_v13  ;;  %16796 = vmatmul.mubr.msk.f32.gmra.mrb[20].mxu1 %vm6788_vm2, %v7180_v14 }
 0x58b   :  { %v6751_v18 = vmax.f32 %v6687_v11, 0.0  ;;  %16798 = vmatprep.mubr.msk.f32.mxu1 %vm6788_vm2, %v7181_v17 }
 0x58c   :  { %v6750_v20 = vmax.f32 %v6686_v16, 0.0  ;;  %v16711_v21 = vpop.f32.mrb[28].mxu0 }
 0x58d   :  { %7057 = vst.msk [vmem:[#allocation3 + $0x338] sm:$0xff] %vm6788_vm2, %v6751_v18  ;;  %v6689_v24 = vadd.f32 %v16711_v21, %v21310_v44  ;;  %v6410_v25 = vpop.f32.mrb[29].mxu0  ;;  %v7182_v26 = vld [vmem:[#allocation3 + $0x290] sm:$0xff] }
 0x58e   :  { %7056 = vst.msk [vmem:[#allocation3 + $0x320] sm:$0xff] %vm6788_vm2, %v6750_v20  ;;  %v6688_v27 = vadd.f32 %v21310_v44, %v6410_v25  ;;  %16799 = vmatmul.mubr.msk.f32.gmra.mrb[22].mxu1 %vm6788_vm2, %v7182_v26  ;;  %v7199_v25 = vld [vmem:[#allocation3 + $0x4b8] sm:$0xff] }
 0x58f   :  { %v6753_v29 = vmax.f32 %v6689_v24, 0.0  ;;  %16801 = vmatprep.mubr.msk.f32.mxu1 %vm6788_vm2, %v7183_v22 }
 0x590   :  { %v6752_v30 = vmax.f32 %v6688_v27, 0.0  ;;  %v16714_v32 = vpop.f32.mrb[30].mxu0  ;;  %v7185_v38 = vld [vmem:[#allocation3 + $0x308] sm:$0xff] }
 0x591   :  { %7059 = vst.msk [vmem:[#allocation3 + $0x368] sm:$0xff] %vm6788_vm2, %v6753_v29  ;;  %v6691_v33 = vadd.f32 %v16714_v32, %v21310_v44  ;;  %v6420_v34 = vpop.f32.mrb[31].mxu0  ;;  %v7184_v35 = vld [vmem:[#allocation3 + $0x2f0] sm:$0xff] }
 0x592   :  { %7058 = vst.msk [vmem:[#allocation3 + $0x350] sm:$0xff] %vm6788_vm2, %v6752_v30  ;;  %v6690_v36 = vadd.f32 %v21310_v44, %v6420_v34  ;;  %16802 = vmatmul.mubr.msk.f32.gmra.mrb[24].mxu1 %vm6788_vm2, %v7184_v35 }
 0x593   :  { %v6755_v40 = vmax.f32 %v6691_v33, 0.0  ;;  %16804 = vmatprep.mubr.msk.f32.mxu1 %vm6788_vm2, %v7185_v38 }
 0x594   :  { %v6754_v41 = vmax.f32 %v6690_v36, 0.0  ;;  %v16717_v42 = vpop.f32.mrb[32].mxu0  ;;  %v7187_v50 = vld [vmem:[#allocation3 + $0x338] sm:$0xff] }
 0x595   :  { %7061 = vst.msk [vmem:[#allocation3 + $0x398] sm:$0xff] %vm6788_vm2, %v6755_v40  ;;  %v6693_v43 = vadd.f32 %v16717_v42, %v21310_v44  ;;  %v6430_v45 = vpop.f32.mrb[33].mxu0  ;;  %v7186_v48 = vld [vmem:[#allocation3 + $0x320] sm:$0xff] }
 0x596   :  { %7060 = vst.msk [vmem:[#allocation3 + $0x380] sm:$0xff] %vm6788_vm2, %v6754_v41  ;;  %v6692_v49 = vadd.f32 %v21310_v44, %v6430_v45  ;;  %16805 = vmatmul.mubr.msk.f32.gmra.mrb[26].mxu1 %vm6788_vm2, %v7186_v48 }
 0x597   :  { %v6757_v51 = vmax.f32 %v6693_v43, 0.0  ;;  %16807 = vmatprep.mubr.msk.f32.mxu1 %vm6788_vm2, %v7187_v50 }
 0x598   :  { %v6756_v52 = vmax.f32 %v6692_v49, 0.0  ;;  %v16720_v53 = vpop.f32.mrb[34].mxu0  ;;  %v7189_v60 = vld [vmem:[#allocation3 + $0x368] sm:$0xff] }
 0x599   :  { %7063 = vst.msk [vmem:[#allocation3 + $0x3f8] sm:$0xff] %vm6788_vm2, %v6757_v51  ;;  %v6695_v54 = vadd.f32 %v16720_v53, %v21310_v44  ;;  %v6440_v57 = vpop.f32.mrb[35].mxu0  ;;  %v7188_v58 = vld [vmem:[#allocation3 + $0x350] sm:$0xff] }
 0x59a   :  { %7062 = vst.msk [vmem:[#allocation3 + $0x3e0] sm:$0xff] %vm6788_vm2, %v6756_v52  ;;  %v6694_v59 = vadd.f32 %v21310_v44, %v6440_v57  ;;  %16808 = vmatmul.mubr.msk.f32.gmra.mrb[28].mxu1 %vm6788_vm2, %v7188_v58 }
 0x59b   :  { %v6759_v61 = vmax.f32 %v6695_v54, 0.0  ;;  %16810 = vmatprep.mubr.msk.f32.mxu1 %vm6788_vm2, %v7189_v60 }
 0x59c   :  { %v6758_v7 = vmax.f32 %v6694_v59, 0.0  ;;  %v16723_v31 = vpop.f32.mrb[36].mxu0 }
 0x59d   :  { %7065 = vst.msk [vmem:[#allocation3 + $0x428] sm:$0xff] %vm6788_vm2, %v6759_v61  ;;  %v6697_v15 = vadd.f32 %v16723_v31, %v21310_v44  ;;  %v6450_v55 = vpop.f32.mrb[37].mxu0  ;;  %v7190_v63 = vld [vmem:[#allocation3 + $0x380] sm:$0xff] }
 0x59e   :  { %7064 = vst.msk [vmem:[#allocation3 + $0x410] sm:$0xff] %vm6788_vm2, %v6758_v7  ;;  %v6696_v23 = vadd.f32 %v21310_v44, %v6450_v55  ;;  %16811 = vmatmul.mubr.msk.f32.gmra.mrb[30].mxu1 %vm6788_vm2, %v7190_v63  ;;  %v7207_v55 = vld [vmem:[#allocation3 + $0x5a8] sm:$0xff] }
 0x59f   :  { %v6761_v28 = vmax.f32 %v6697_v15, 0.0  ;;  %16813 = vmatprep.mubr.msk.f32.mxu1 %vm6788_vm2, %v7191_v0 }
 0x5a0   :  { %v6760_v4 = vmax.f32 %v6696_v23, 0.0  ;;  %v16726_v56 = vpop.f32.mrb[38].mxu0  ;;  %v7193_v5 = vld [vmem:[#allocation3 + $0x3f8] sm:$0xff] }
 0x5a1   :  { %7067 = vst.msk [vmem:[#allocation3 + $0x458] sm:$0xff] %vm6788_vm2, %v6761_v28  ;;  %v6699_v39 = vadd.f32 %v16726_v56, %v21310_v44  ;;  %v6460_v46 = vpop.f32.mrb[39].mxu0  ;;  %v7192_v2 = vld [vmem:[#allocation3 + $0x3e0] sm:$0xff] }
 0x5a2   :  { %7066 = vst.msk [vmem:[#allocation3 + $0x440] sm:$0xff] %vm6788_vm2, %v6760_v4  ;;  %v6698_v9 = vadd.f32 %v21310_v44, %v6460_v46  ;;  %16814 = vmatmul.mubr.msk.f32.gmra.mrb[32].mxu1 %vm6788_vm2, %v7192_v2 }
 0x5a3   :  { %v6763_v12 = vmax.f32 %v6699_v39, 0.0  ;;  %16816 = vmatprep.mubr.msk.f32.mxu1 %vm6788_vm2, %v7193_v5 }
 0x5a4   :  { %v6762_v62 = vmax.f32 %v6698_v9, 0.0  ;;  %v16729_v47 = vpop.f32.mrb[40].mxu0  ;;  %v7195_v8 = vld [vmem:[#allocation3 + $0x428] sm:$0xff] }
 0x5a5   :  { %7069 = vst.msk [vmem:[#allocation3 + $0x488] sm:$0xff] %vm6788_vm2, %v6763_v12  ;;  %v6701_v1 = vadd.f32 %v16729_v47, %v21310_v44  ;;  %v6470_v37 = vpop.f32.mrb[41].mxu0  ;;  %v7194_v3 = vld [vmem:[#allocation3 + $0x410] sm:$0xff] }
 0x5a6   :  { %7068 = vst.msk [vmem:[#allocation3 + $0x470] sm:$0xff] %vm6788_vm2, %v6762_v62  ;;  %v6700_v6 = vadd.f32 %v21310_v44, %v6470_v37  ;;  %16817 = vmatmul.mubr.msk.f32.gmra.mrb[34].mxu1 %vm6788_vm2, %v7194_v3 }
 0x5a7   :  { %v6765_v10 = vmax.f32 %v6701_v1, 0.0  ;;  %16819 = vmatprep.mubr.msk.f32.mxu1 %vm6788_vm2, %v7195_v8 }
 0x5a8   :  { %v6764_v11 = vmax.f32 %v6700_v6, 0.0  ;;  %v16732_v13 = vpop.f32.mrb[42].mxu0  ;;  %v7197_v20 = vld [vmem:[#allocation3 + $0x458] sm:$0xff] }
 0x5a9   :  { %7071 = vst.msk [vmem:[#allocation3 + $0x4e8] sm:$0xff] %vm6788_vm2, %v6765_v10  ;;  %v6703_v14 = vadd.f32 %v16732_v13, %v21310_v44  ;;  %v6480_v16 = vpop.f32.mrb[43].mxu0  ;;  %v7196_v17 = vld [vmem:[#allocation3 + $0x440] sm:$0xff] }
 0x5aa   :  { %7070 = vst.msk [vmem:[#allocation3 + $0x4d0] sm:$0xff] %vm6788_vm2, %v6764_v11  ;;  %v6702_v18 = vadd.f32 %v21310_v44, %v6480_v16  ;;  %16820 = vmatmul.mubr.msk.f32.gmra.mrb[36].mxu1 %vm6788_vm2, %v7196_v17 }
 0x5ab   :  { %v6767_v21 = vmax.f32 %v6703_v14, 0.0  ;;  %16822 = vmatprep.mubr.msk.f32.mxu1 %vm6788_vm2, %v7197_v20 }
 0x5ac   :  { %v6766_v22 = vmax.f32 %v6702_v18, 0.0  ;;  %v16735_v24 = vpop.f32.mrb[44].mxu0 }
 0x5ad   :  { %7073 = vst.msk [vmem:[#allocation3 + $0x518] sm:$0xff] %vm6788_vm2, %v6767_v21  ;;  %v6705_v26 = vadd.f32 %v16735_v24, %v21310_v44  ;;  %v6490_v27 = vpop.f32.mrb[45].mxu0  ;;  %v7198_v29 = vld [vmem:[#allocation3 + $0x470] sm:$0xff] }
 0x5ae   :  { %7072 = vst.msk [vmem:[#allocation3 + $0x500] sm:$0xff] %vm6788_vm2, %v6766_v22  ;;  %v6704_v30 = vadd.f32 %v21310_v44, %v6490_v27  ;;  %16823 = vmatmul.mubr.msk.f32.gmra.mrb[38].mxu1 %vm6788_vm2, %v7198_v29  ;;  %v7215_v27 = vld [vmem:[#allocation3 + $0x698] sm:$0xff] }
 0x5af   :  { %v6769_v32 = vmax.f32 %v6705_v26, 0.0  ;;  %16825 = vmatprep.mubr.msk.f32.mxu1 %vm6788_vm2, %v7199_v25 }
 0x5b0   :  { %v6768_v33 = vmax.f32 %v6704_v30, 0.0  ;;  %v16738_v34 = vpop.f32.mrb[46].mxu0  ;;  %v7201_v41 = vld [vmem:[#allocation3 + $0x4e8] sm:$0xff] }
 0x5b1   :  { %7075 = vst.msk [vmem:[#allocation3 + $0x548] sm:$0xff] %vm6788_vm2, %v6769_v32  ;;  %v6707_v35 = vadd.f32 %v16738_v34, %v21310_v44  ;;  %v6500_v36 = vpop.f32.mrb[47].mxu0  ;;  %v7200_v38 = vld [vmem:[#allocation3 + $0x4d0] sm:$0xff] }
 0x5b2   :  { %7074 = vst.msk [vmem:[#allocation3 + $0x530] sm:$0xff] %vm6788_vm2, %v6768_v33  ;;  %v6706_v40 = vadd.f32 %v21310_v44, %v6500_v36  ;;  %16826 = vmatmul.mubr.msk.f32.gmra.mrb[40].mxu1 %vm6788_vm2, %v7200_v38 }
 0x5b3   :  { %v6771_v42 = vmax.f32 %v6707_v35, 0.0  ;;  %16828 = vmatprep.mubr.msk.f32.mxu1 %vm6788_vm2, %v7201_v41 }
 0x5b4   :  { %v6770_v43 = vmax.f32 %v6706_v40, 0.0  ;;  %v16741_v45 = vpop.f32.mrb[48].mxu0  ;;  %v7203_v52 = vld [vmem:[#allocation3 + $0x518] sm:$0xff] }
 0x5b5   :  { %7077 = vst.msk [vmem:[#allocation3 + $0x578] sm:$0xff] %vm6788_vm2, %v6771_v42  ;;  %v6709_v48 = vadd.f32 %v16741_v45, %v21310_v44  ;;  %v6510_v49 = vpop.f32.mrb[49].mxu0  ;;  %v7202_v50 = vld [vmem:[#allocation3 + $0x500] sm:$0xff] }
 0x5b6   :  { %7076 = vst.msk [vmem:[#allocation3 + $0x560] sm:$0xff] %vm6788_vm2, %v6770_v43  ;;  %v6708_v51 = vadd.f32 %v21310_v44, %v6510_v49  ;;  %16829 = vmatmul.mubr.msk.f32.gmra.mrb[42].mxu1 %vm6788_vm2, %v7202_v50 }
 0x5b7   :  { %v6773_v53 = vmax.f32 %v6709_v48, 0.0  ;;  %16831 = vmatprep.mubr.msk.f32.mxu1 %vm6788_vm2, %v7203_v52  ;;  %v7094_v52 = vld [vmem:[#allocation3 + $0x7] sm:$0xff] }
 0x5b8   :  { %v6772_v54 = vmax.f32 %v6708_v51, 0.0  ;;  %v16744_v57 = vpop.f32.mrb[50].mxu0  ;;  %v7205_v7 = vld [vmem:[#allocation3 + $0x548] sm:$0xff] }
 0x5b9   :  { %7079 = vst.msk [vmem:[#allocation3 + $0x5d8] sm:$0xff] %vm6788_vm2, %v6773_v53  ;;  %v6711_v58 = vadd.f32 %v16744_v57, %v21310_v44  ;;  %v6520_v59 = vpop.f32.mrb[51].mxu0  ;;  %v7204_v60 = vld [vmem:[#allocation3 + $0x530] sm:$0xff]  ;;  %v21515_v57 = vld [vmem:[%s23127_s3 + $0x18] sm:$0xff] }
 0x5ba   :  { %7078 = vst.msk [vmem:[#allocation3 + $0x5c0] sm:$0xff] %vm6788_vm2, %v6772_v54  ;;  %v6710_v61 = vadd.f32 %v21310_v44, %v6520_v59  ;;  %16832 = vmatmul.mubr.msk.f32.gmra.mrb[44].mxu1 %vm6788_vm2, %v7204_v60  ;;  %v21510_v54 = vld [vmem:[#allocation3 + $0x1f] sm:$0xff]  ;;  %v21525_v59 = vld [vmem:[#allocation3 + $0x4f] sm:$0xff]  ;;  %v21529_v60 = vld [vmem:[#allocation3 + $0x67] sm:$0xff] }
 0x5bb   :  { %v6775_v31 = vmax.f32 %v6711_v58, 0.0  ;;  %16834 = vmatprep.mubr.msk.f32.mxu1 %vm6788_vm2, %v7205_v7  ;;  %v21519_v58 = vld [vmem:[#allocation3 + $0x37] sm:$0xff] }
 0x5bc   :  { %v6774_v0 = vmax.f32 %v6710_v61, 0.0  ;;  %v16747_v15 = vpop.f32.mrb[52].mxu0  ;;  %v21533_v61 = vld [vmem:[#allocation3 + $0x7f] sm:$0xff]  ;;  %v7102_v7 = vld [vmem:[#allocation3 + $0xf7] sm:$0xff] }
 0x5bd   :  { %7081 = vst.msk [vmem:[#allocation3 + $0x608] sm:$0xff] %vm6788_vm2, %v6775_v31  ;;  %v6713_v63 = vadd.f32 %v16747_v15, %v21310_v44  ;;  %v6530_v23 = vpop.f32.mrb[53].mxu0  ;;  %v7206_v28 = vld [vmem:[#allocation3 + $0x560] sm:$0xff]  ;;  %v21541_v31 = vld [vmem:[#allocation3 + $0xaf] sm:$0xff] }
 0x5be   :  { %7080 = vst.msk [vmem:[#allocation3 + $0x5f0] sm:$0xff] %vm6788_vm2, %v6774_v0  ;;  %v6712_v4 = vadd.f32 %v21310_v44, %v6530_v23  ;;  %16835 = vmatmul.mubr.msk.f32.gmra.mrb[46].mxu1 %vm6788_vm2, %v7206_v28  ;;  %v21546_v0 = vld [vmem:[#allocation3 + $0x10f] sm:$0xff]  ;;  %v21550_v15 = vld [vmem:[#allocation3 + $0x127] sm:$0xff] }
 0x5bf   :  { %v6777_v56 = vmax.f32 %v6713_v63, 0.0  ;;  %16837 = vmatprep.mubr.msk.f32.mxu1 %vm6788_vm2, %v7207_v55  ;;  %v21554_v55 = vld [vmem:[#allocation3 + $0x13f] sm:$0xff]  ;;  %v21558_v63 = vld [vmem:[#allocation3 + $0x157] sm:$0xff]  ;;  %v21562_v23 = vld [vmem:[#allocation3 + $0x16f] sm:$0xff] }
 0x5c0   :  { %v6776_v39 = vmax.f32 %v6712_v4, 0.0  ;;  %v16750_v46 = vpop.f32.mrb[54].mxu0  ;;  %v7209_v62 = vld [vmem:[#allocation3 + $0x5d8] sm:$0xff]  ;;  %v21566_v28 = vld [vmem:[#allocation3 + $0x187] sm:$0xff] }
 0x5c1   :  { %7083 = vst.msk [vmem:[#allocation3 + $0x638] sm:$0xff] %vm6788_vm2, %v6777_v56  ;;  %v6715_v2 = vadd.f32 %v16750_v46, %v21310_v44  ;;  %v6540_v9 = vpop.f32.mrb[55].mxu0  ;;  %v7208_v5 = vld [vmem:[#allocation3 + $0x5c0] sm:$0xff]  ;;  %v21579_v46 = vld [vmem:[#allocation3 + $0x217] sm:$0xff] }
 0x5c2   :  { %7082 = vst.msk [vmem:[#allocation3 + $0x620] sm:$0xff] %vm6788_vm2, %v6776_v39  ;;  %v6714_v12 = vadd.f32 %v21310_v44, %v6540_v9  ;;  %16838 = vmatmul.mubr.msk.f32.gmra.mrb[48].mxu1 %vm6788_vm2, %v7208_v5  ;;  %v7110_v4 = vld [vmem:[#allocation3 + $0x1e7] sm:$0xff]  ;;  %v21570_v56 = vld [vmem:[#allocation3 + $0x19f] sm:$0xff] }
 0x5c3   :  { %v6779_v47 = vmax.f32 %v6715_v2, 0.0  ;;  %16840 = vmatprep.mubr.msk.f32.mxu1 %vm6788_vm2, %v7209_v62  ;;  %v21575_v39 = vld [vmem:[#allocation3 + $0x1ff] sm:$0xff]  ;;  %v21583_v2 = vld [vmem:[#allocation3 + $0x22f] sm:$0xff]  ;;  %v21587_v9 = vld [vmem:[#allocation3 + $0x247] sm:$0xff] }
 0x5c4   :  { %v6778_v1 = vmax.f32 %v6714_v12, 0.0  ;;  %v16753_v37 = vpop.f32.mrb[56].mxu0  ;;  %v7211_v11 = vld [vmem:[#allocation3 + $0x608] sm:$0xff]  ;;  %v21591_v5 = vld [vmem:[#allocation3 + $0x25f] sm:$0xff]  ;;  %v21595_v12 = vld [vmem:[#allocation3 + $0x277] sm:$0xff] }
 0x5c5   :  { %7085 = vst.msk [vmem:[#allocation3 + $0x668] sm:$0xff] %vm6788_vm2, %v6779_v47  ;;  %v6717_v3 = vadd.f32 %v16753_v37, %v21310_v44  ;;  %v6550_v6 = vpop.f32.mrb[57].mxu0  ;;  %v7210_v8 = vld [vmem:[#allocation3 + $0x5f0] sm:$0xff]  ;;  %v21608_v37 = vld [vmem:[#allocation3 + $0x307] sm:$0xff] }
 0x5c6   :  { %7084 = vst.msk [vmem:[#allocation3 + $0x650] sm:$0xff] %vm6788_vm2, %v6778_v1  ;;  %v6716_v10 = vadd.f32 %v21310_v44, %v6550_v6  ;;  %16841 = vmatmul.mubr.msk.f32.gmra.mrb[50].mxu1 %vm6788_vm2, %v7210_v8  ;;  %v7118_v62 = vld [vmem:[#allocation3 + $0x2d7] sm:$0xff]  ;;  %v21599_v47 = vld [vmem:[#allocation3 + $0x28f] sm:$0xff] }
 0x5c7   :  { %v6781_v13 = vmax.f32 %v6717_v3, 0.0  ;;  %16843 = vmatprep.mubr.msk.f32.mxu1 %vm6788_vm2, %v7211_v11  ;;  %v21604_v1 = vld [vmem:[#allocation3 + $0x2ef] sm:$0xff]  ;;  %v21612_v3 = vld [vmem:[#allocation3 + $0x31f] sm:$0xff]  ;;  %v21616_v6 = vld [vmem:[#allocation3 + $0x337] sm:$0xff] }
 0x5c8   :  { %v6780_v14 = vmax.f32 %v6716_v10, 0.0  ;;  %v16756_v16 = vpop.f32.mrb[58].mxu0  ;;  %v7213_v22 = vld [vmem:[#allocation3 + $0x638] sm:$0xff]  ;;  %v21620_v8 = vld [vmem:[#allocation3 + $0x34f] sm:$0xff]  ;;  %v21624_v10 = vld [vmem:[#allocation3 + $0x367] sm:$0xff] }
 0x5c9   :  { %7087 = vst.msk [vmem:[#allocation3 + $0x6c8] sm:$0xff] %vm6788_vm2, %v6781_v13  ;;  %v6719_v17 = vadd.f32 %v16756_v16, %v21310_v44  ;;  %v6560_v18 = vpop.f32.mrb[59].mxu0  ;;  %v7212_v20 = vld [vmem:[#allocation3 + $0x620] sm:$0xff]  ;;  %v21637_v16 = vld [vmem:[#allocation3 + $0x3f7] sm:$0xff] }
 0x5ca   :  { %7086 = vst.msk [vmem:[#allocation3 + $0x6b0] sm:$0xff] %vm6788_vm2, %v6780_v14  ;;  %v6718_v21 = vadd.f32 %v21310_v44, %v6560_v18  ;;  %16844 = vmatmul.mubr.msk.f32.gmra.mrb[52].mxu1 %vm6788_vm2, %v7212_v20  ;;  %v7126_v11 = vld [vmem:[#allocation3 + $0x3c7] sm:$0xff]  ;;  %v21628_v13 = vld [vmem:[#allocation3 + $0x37f] sm:$0xff] }
 0x5cb   :  { %v6783_v24 = vmax.f32 %v6719_v17, 0.0  ;;  %16846 = vmatprep.mubr.msk.f32.mxu1 %vm6788_vm2, %v7213_v22  ;;  %v21633_v14 = vld [vmem:[#allocation3 + $0x3df] sm:$0xff]  ;;  %v21641_v17 = vld [vmem:[#allocation3 + $0x40f] sm:$0xff]  ;;  %v21645_v18 = vld [vmem:[#allocation3 + $0x427] sm:$0xff] }
 0x5cc   :  { %v6782_v25 = vmax.f32 %v6718_v21, 0.0  ;;  %v16759_v26 = vpop.f32.mrb[60].mxu0  ;;  %v21649_v20 = vld [vmem:[#allocation3 + $0x43f] sm:$0xff]  ;;  %v21653_v21 = vld [vmem:[#allocation3 + $0x457] sm:$0xff] }
 0x5cd   :  { %7089 = vst.msk [vmem:[#allocation3 + $0x6f8] sm:$0xff] %vm6788_vm2, %v6783_v24  ;;  %v6721_v29 = vadd.f32 %v16759_v26, %v21310_v44  ;;  %v6570_v30 = vpop.f32.mrb[61].mxu0  ;;  %v7214_v32 = vld [vmem:[#allocation3 + $0x650] sm:$0xff]  ;;  %v21666_v26 = vld [vmem:[#allocation3 + $0x4e7] sm:$0xff] }
 0x5ce   :  { %7088 = vst.msk [vmem:[#allocation3 + $0x6e0] sm:$0xff] %vm6788_vm2, %v6782_v25  ;;  %v6720_v33 = vadd.f32 %v21310_v44, %v6570_v30  ;;  %16847 = vmatmul.mubr.msk.f32.gmra.mrb[54].mxu1 %vm6788_vm2, %v7214_v32  ;;  %v7134_v22 = vld [vmem:[#allocation3 + $0x4b7] sm:$0xff]  ;;  %v21657_v24 = vld [vmem:[#allocation3 + $0x46f] sm:$0xff]  ;;  %v21682_v32 = vld [vmem:[#allocation3 + $0x547] sm:$0xff] }
 0x5cf   :  { %v6785_v34 = vmax.f32 %v6721_v29, 0.0  ;;  %16849 = vmatprep.mubr.msk.f32.mxu1 %vm6788_vm2, %v7215_v27  ;;  %v21662_v25 = vld [vmem:[#allocation3 + $0x4cf] sm:$0xff]  ;;  %v21670_v27 = vld [vmem:[#allocation3 + $0x4ff] sm:$0xff]  ;;  %v21674_v29 = vld [vmem:[#allocation3 + $0x517] sm:$0xff] }
 0x5d0   :  { %v6784_v35 = vmax.f32 %v6720_v33, 0.0  ;;  %v16762_v36 = vpop.f32.mrb[62].mxu0  ;;  %v7217_v43 = vld [vmem:[#allocation3 + $0x6c8] sm:$0xff] }
 0x5d1   :  { %7091 = vst.msk [vmem:[#allocation3 + $0x728] sm:$0xff] %vm6788_vm2, %v6785_v34  ;;  %v6723_v38 = vadd.f32 %v16762_v36, %v21310_v44  ;;  %v6580_v40 = vpop.f32.mrb[63].mxu0  ;;  %v7216_v41 = vld [vmem:[#allocation3 + $0x6b0] sm:$0xff]  ;;  %v7142_v33 = vld [vmem:[#allocation3 + $0x5a7] sm:$0xff]  ;;  %v21686_v34 = vld [vmem:[#allocation3 + $0x55f] sm:$0xff] }
 0x5d2   :  { %7090 = vst.msk [vmem:[#allocation3 + $0x710] sm:$0xff] %vm6788_vm2, %v6784_v35  ;;  %v6722_v42 = vadd.f32 %v21310_v44, %v6580_v40  ;;  %16850 = vmatmul.mubr.msk.f32.gmra.mrb[56].mxu1 %vm6788_vm2, %v7216_v41  ;;  %v21678_v30 = vld [vmem:[#allocation3 + $0x52f] sm:$0xff]  ;;  %v21691_v35 = vld [vmem:[#allocation3 + $0x5bf] sm:$0xff]  ;;  %v21695_v36 = vld [vmem:[#allocation3 + $0x5d7] sm:$0xff] }
 0x5d3   :  { %v6787_v45 = vmax.f32 %v6723_v38, 0.0  ;;  %16852 = vmatprep.mubr.msk.f32.mxu1 %vm6788_vm2, %v7217_v43  ;;  %v21699_v38 = vld [vmem:[#allocation3 + $0x5ef] sm:$0xff]  ;;  %v21703_v40 = vld [vmem:[#allocation3 + $0x607] sm:$0xff]  ;;  %v21707_v41 = vld [vmem:[#allocation3 + $0x61f] sm:$0xff] }
 0x5d4   :  { %v6786_v48 = vmax.f32 %v6722_v42, 0.0  ;;  %v7219_v50 = vld [vmem:[#allocation3 + $0x6f8] sm:$0xff] }
 0x5d5   :  { %7093 = vst.msk [vmem:[#allocation3 + $0x758] sm:$0xff] %vm6788_vm2, %v6787_v45  ;;  %v7218_v49 = vld [vmem:[#allocation3 + $0x6e0] sm:$0xff]  ;;  %v21711_v42 = vld [vmem:[#allocation3 + $0x637] sm:$0xff]  ;;  %v21715_v45 = vld [vmem:[#allocation3 + $0x64f] sm:$0xff] }
 0x5d6   :  { %7092 = vst.msk [vmem:[#allocation3 + $0x740] sm:$0xff] %vm6788_vm2, %v6786_v48  ;;  %16853 = vmatmul.mubr.msk.f32.gmra.mrb[58].mxu1 %vm6788_vm2, %v7218_v49  ;;  %v7150_v43 = vld [vmem:[#allocation3 + $0x697] sm:$0xff]  ;;  %v21720_v48 = vld [vmem:[#allocation3 + $0x6af] sm:$0xff]  ;;  %v21724_v49 = vld [vmem:[#allocation3 + $0x6c7] sm:$0xff] }
 0x5d7   :  { %16855 = vmatprep.mubr.msk.f32.mxu1 %vm6788_vm2, %v7219_v50  ;;  %v21728_v50 = vld [vmem:[#allocation3 + $0x6df] sm:$0xff] }
 0x5d8   :  { %v7221_v44 = vld [vmem:[#allocation3 + $0x728] sm:$0xff] }
 0x5d9   :  { %v7220_v51 = vld [vmem:[#allocation3 + $0x710] sm:$0xff] }
 0x5da   :  { %16856 = vmatmul.mubr.msk.f32.gmra.mrb[60].mxu1 %vm6788_vm2, %v7220_v51  ;;  %v21732_v51 = vld [vmem:[#allocation3 + $0x6f7] sm:$0xff] }
 0x5db   :  { %16858 = vmatprep.mubr.msk.f32.mxu1 %vm6788_vm2, %v7221_v44  ;;  %v21736_v44 = vld [vmem:[#allocation3 + $0x70f] sm:$0xff] }
 0x5dd   :  { %v7222_v53 = vld [vmem:[#allocation3 + $0x740] sm:$0xff] }
 0x5de   :  { %16859 = vmatmul.mubr.msk.f32.gmra.mrb[62].mxu1 %vm6788_vm2, %v7222_v53  ;;  %v8379_v53 = vld [vmem:[#allocation3 + $0x9] sm:$0xff] }
 0x5df   :  { %16863 = vmatprep.mubr.msk.f32.mxu1 %vm6788_vm2, %v7094_v52  ;;  %v21740_v52 = vld [vmem:[#allocation3 + $0x727] sm:$0xff] }
 0x5e2   :  { %16864 = vmatmul.mubr.msk.f32.vlgmr.msra.gmra.mrb[0].mxu1 %vm6788_vm2, %v21510_v54 }
 0x5e3   :  { %16960 = vmatpush3.msra.mxu1 %v21327_v19  ;;  %16866 = vmatprep.mubr.msk.f32.mxu1 %vm6788_vm2, %v21519_v58  ;;  %v21537_v19 = vld [vmem:[#allocation3 + $0x97] sm:$0xff] }
 0x5e4   :  { %17057 = vmatprep.subr.mxu1 %v21515_v57 }
 0x5e6   :  { %16867 = vmatmul.mubr.msk.f32.gmra.mrb[2].mxu1 %vm6788_vm2, %v21525_v59 }
 0x5e7   :  { %16869 = vmatprep.mubr.msk.f32.mxu1 %vm6788_vm2, %v21529_v60 }
 0x5ea   :  { %16870 = vmatmul.mubr.msk.f32.gmra.mrb[4].mxu1 %vm6788_vm2, %v21533_v61 }
 0x5eb   :  { %16872 = vmatprep.mubr.msk.f32.mxu1 %vm6788_vm2, %v21537_v19 }
 0x5ee   :  { %16873 = vmatmul.mubr.msk.f32.gmra.mrb[6].mxu1 %vm6788_vm2, %v21541_v31 }
 0x5ef   :  { %16875 = vmatprep.mubr.msk.f32.mxu1 %vm6788_vm2, %v7102_v7  ;;  %v21744_v7 = vld [vmem:[#allocation3 + $0x73f] sm:$0xff] }
 0x5f2   :  { %16876 = vmatmul.mubr.msk.f32.gmra.mrb[8].mxu1 %vm6788_vm2, %v21546_v0 }
 0x5f3   :  { %16878 = vmatprep.mubr.msk.f32.mxu1 %vm6788_vm2, %v21550_v15 }
 0x5f6   :  { %16879 = vmatmul.mubr.msk.f32.gmra.mrb[10].mxu1 %vm6788_vm2, %v21554_v55 }
 0x5f7   :  { %16881 = vmatprep.mubr.msk.f32.mxu1 %vm6788_vm2, %v21558_v63 }
 0x5fa   :  { %16882 = vmatmul.mubr.msk.f32.gmra.mrb[12].mxu1 %vm6788_vm2, %v21562_v23 }
 0x5fb   :  { %16884 = vmatprep.mubr.msk.f32.mxu1 %vm6788_vm2, %v21566_v28 }
 0x5fe   :  { %16885 = vmatmul.mubr.msk.f32.gmra.mrb[14].mxu1 %vm6788_vm2, %v21570_v56 }
 0x5ff   :  { %16887 = vmatprep.mubr.msk.f32.mxu1 %vm6788_vm2, %v7110_v4  ;;  %v21749_v4 = vld [vmem:[#allocation3 + $0x21] sm:$0xff] }
 0x602   :  { %16888 = vmatmul.mubr.msk.f32.gmra.mrb[16].mxu1 %vm6788_vm2, %v21575_v39 }
 0x603   :  { %16890 = vmatprep.mubr.msk.f32.mxu1 %vm6788_vm2, %v21579_v46 }
 0x606   :  { %16891 = vmatmul.mubr.msk.f32.gmra.mrb[18].mxu1 %vm6788_vm2, %v21583_v2 }
 0x607   :  { %16893 = vmatprep.mubr.msk.f32.mxu1 %vm6788_vm2, %v21587_v9 }
 0x60a   :  { %16894 = vmatmul.mubr.msk.f32.gmra.mrb[20].mxu1 %vm6788_vm2, %v21591_v5 }
 0x60b   :  { %16896 = vmatprep.mubr.msk.f32.mxu1 %vm6788_vm2, %v21595_v12 }
 0x60e   :  { %16897 = vmatmul.mubr.msk.f32.gmra.mrb[22].mxu1 %vm6788_vm2, %v21599_v47 }
 0x60f   :  { %16899 = vmatprep.mubr.msk.f32.mxu1 %vm6788_vm2, %v7118_v62  ;;  %v21754_v62 = vld [vmem:[%s23127_s3 + $0x20] sm:$0xff] }
 0x612   :  { %16900 = vmatmul.mubr.msk.f32.gmra.mrb[24].mxu1 %vm6788_vm2, %v21604_v1 }
 0x613   :  { %16902 = vmatprep.mubr.msk.f32.mxu1 %vm6788_vm2, %v21608_v37 }
 0x616   :  { %16903 = vmatmul.mubr.msk.f32.gmra.mrb[26].mxu1 %vm6788_vm2, %v21612_v3 }
 0x617   :  { %16905 = vmatprep.mubr.msk.f32.mxu1 %vm6788_vm2, %v21616_v6 }
 0x61a   :  { %16906 = vmatmul.mubr.msk.f32.gmra.mrb[28].mxu1 %vm6788_vm2, %v21620_v8 }
 0x61b   :  { %16908 = vmatprep.mubr.msk.f32.mxu1 %vm6788_vm2, %v21624_v10 }
 0x61e   :  { %16909 = vmatmul.mubr.msk.f32.gmra.mrb[30].mxu1 %vm6788_vm2, %v21628_v13 }
 0x61f   :  { %16911 = vmatprep.mubr.msk.f32.mxu1 %vm6788_vm2, %v7126_v11  ;;  %v21758_v11 = vld [vmem:[#allocation3 + $0x39] sm:$0xff] }
 0x620   :  { %23413 = vst [vmem:[#allocation9_spill] sm:$0xff] %v21758_v11 }
 0x622   :  { %16912 = vmatmul.mubr.msk.f32.gmra.mrb[32].mxu1 %vm6788_vm2, %v21633_v14 }
 0x623   :  { %16914 = vmatprep.mubr.msk.f32.mxu1 %vm6788_vm2, %v21637_v16 }
 0x626   :  { %16915 = vmatmul.mubr.msk.f32.gmra.mrb[34].mxu1 %vm6788_vm2, %v21641_v17 }
 0x627   :  { %16917 = vmatprep.mubr.msk.f32.mxu1 %vm6788_vm2, %v21645_v18 }
 0x62a   :  { %16918 = vmatmul.mubr.msk.f32.gmra.mrb[36].mxu1 %vm6788_vm2, %v21649_v20 }
 0x62b   :  { %16920 = vmatprep.mubr.msk.f32.mxu1 %vm6788_vm2, %v21653_v21 }
 0x62e   :  { %16921 = vmatmul.mubr.msk.f32.gmra.mrb[38].mxu1 %vm6788_vm2, %v21657_v24 }
 0x62f   :  { %16923 = vmatprep.mubr.msk.f32.mxu1 %vm6788_vm2, %v7134_v22  ;;  %v21764_v22 = vld [vmem:[#allocation3 + $0x51] sm:$0xff] }
 0x630   :  { %23414 = vst [vmem:[#allocation10_spill] sm:$0xff] %v21764_v22 }
 0x632   :  { %16924 = vmatmul.mubr.msk.f32.gmra.mrb[40].mxu1 %vm6788_vm2, %v21662_v25 }
 0x633   :  { %16926 = vmatprep.mubr.msk.f32.mxu1 %vm6788_vm2, %v21666_v26 }
 0x636   :  { %16927 = vmatmul.mubr.msk.f32.gmra.mrb[42].mxu1 %vm6788_vm2, %v21670_v27 }
 0x637   :  { %16929 = vmatprep.mubr.msk.f32.mxu1 %vm6788_vm2, %v21674_v29 }
 0x63a   :  { %16930 = vmatmul.mubr.msk.f32.gmra.mrb[44].mxu1 %vm6788_vm2, %v21678_v30 }
 0x63b   :  { %16932 = vmatprep.mubr.msk.f32.mxu1 %vm6788_vm2, %v21682_v32 }
 0x63e   :  { %16933 = vmatmul.mubr.msk.f32.gmra.mrb[46].mxu1 %vm6788_vm2, %v21686_v34 }
 0x63f   :  { %16935 = vmatprep.mubr.msk.f32.mxu1 %vm6788_vm2, %v7142_v33  ;;  %v21768_v33 = vld [vmem:[#allocation3 + $0x69] sm:$0xff] }
 0x640   :  { %23415 = vst [vmem:[#allocation11_spill] sm:$0xff] %v21768_v33 }
 0x642   :  { %16936 = vmatmul.mubr.msk.f32.gmra.mrb[48].mxu1 %vm6788_vm2, %v21691_v35 }
 0x643   :  { %16938 = vmatprep.mubr.msk.f32.mxu1 %vm6788_vm2, %v21695_v36 }
 0x646   :  { %16939 = vmatmul.mubr.msk.f32.gmra.mrb[50].mxu1 %vm6788_vm2, %v21699_v38 }
 0x647   :  { %16941 = vmatprep.mubr.msk.f32.mxu1 %vm6788_vm2, %v21703_v40 }
 0x64a   :  { %16942 = vmatmul.mubr.msk.f32.gmra.mrb[52].mxu1 %vm6788_vm2, %v21707_v41 }
 0x64b   :  { %16944 = vmatprep.mubr.msk.f32.mxu1 %vm6788_vm2, %v21711_v42 }
 0x64e   :  { %16945 = vmatmul.mubr.msk.f32.gmra.mrb[54].mxu1 %vm6788_vm2, %v21715_v45 }
 0x64f   :  { %16947 = vmatprep.mubr.msk.f32.mxu1 %vm6788_vm2, %v7150_v43  ;;  %v21772_v43 = vld [vmem:[#allocation3 + $0x81] sm:$0xff] }
 0x650   :  { %23416 = vst [vmem:[#allocation12_spill] sm:$0xff] %v21772_v43 }
 0x652   :  { %16948 = vmatmul.mubr.msk.f32.gmra.mrb[56].mxu1 %vm6788_vm2, %v21720_v48 }
 0x653   :  { %16950 = vmatprep.mubr.msk.f32.mxu1 %vm6788_vm2, %v21724_v49 }
 0x656   :  { %16951 = vmatmul.mubr.msk.f32.gmra.mrb[58].mxu1 %vm6788_vm2, %v21728_v50 }
 0x657   :  { %16953 = vmatprep.mubr.msk.f32.mxu1 %vm6788_vm2, %v21732_v51 }
 0x65a   :  { %16954 = vmatmul.mubr.msk.f32.gmra.mrb[60].mxu1 %vm6788_vm2, %v21736_v44 }
 0x65b   :  { %16956 = vmatprep.mubr.msk.f32.mxu1 %vm6788_vm2, %v21740_v52 }
 0x65e   :  { %16957 = vmatmul.mubr.msk.f32.gmra.mrb[62].mxu1 %vm6788_vm2, %v21744_v7 }
 0x65f   :  { %16961 = vmatprep.mubr.msk.f32.mxu1 %vm6788_vm2, %v8379_v53  ;;  %v8387_v53 = vld [vmem:[#allocation3 + $0xf9] sm:$0xff] }
 0x662   :  { %16962 = vmatmul.mubr.msk.f32.vlgmr.msra.gmra.mrb[0].mxu1 %vm6788_vm2, %v21749_v4 }
 0x663   :  { %17058 = vmatpush3.msra.mxu1 %v21515_v57  ;;  %16964 = vmatprep.mubr.msk.f32.mxu1 %vm6788_vm2, %v21758_v11  ;;  %v21776_v57 = vld [vmem:[#allocation3 + $0x99] sm:$0xff]  ;;  %v21780_v11 = vld [vmem:[#allocation3 + $0xb1] sm:$0xff] }
 0x664   :  { %17155 = vmatprep.subr.mxu1 %v21754_v62  ;;  %23417 = vst [vmem:[#allocation13_spill] sm:$0xff] %v21776_v57  ;;  %23418 = vst [vmem:[#allocation14_spill] sm:$0xff] %v21780_v11 }
 0x666   :  { %16965 = vmatmul.mubr.msk.f32.gmra.mrb[2].mxu1 %vm6788_vm2, %v21764_v22  ;;  %v21785_v22 = vld [vmem:[#allocation3 + $0x111] sm:$0xff] }
 0x667   :  { %16967 = vmatprep.mubr.msk.f32.mxu1 %vm6788_vm2, %v21768_v33  ;;  %23419 = vst [vmem:[#allocation15_spill] sm:$0xff] %v21785_v22  ;;  %v21789_v33 = vld [vmem:[#allocation3 + $0x129] sm:$0xff] }
 0x668   :  { %23420 = vst [vmem:[#allocation16_spill] sm:$0xff] %v21789_v33 }
 0x66a   :  { %16968 = vmatmul.mubr.msk.f32.gmra.mrb[4].mxu1 %vm6788_vm2, %v21772_v43  ;;  %v21793_v43 = vld [vmem:[#allocation3 + $0x141] sm:$0xff] }
 0x66b   :  { %16970 = vmatprep.mubr.msk.f32.mxu1 %vm6788_vm2, %v21776_v57  ;;  %23421 = vst [vmem:[#allocation17_spill] sm:$0xff] %v21793_v43  ;;  %v21797_v57 = vld [vmem:[#allocation3 + $0x159] sm:$0xff] }
 0x66c   :  { %23422 = vst [vmem:[#allocation18_spill] sm:$0xff] %v21797_v57 }
 0x66e   :  { %16971 = vmatmul.mubr.msk.f32.gmra.mrb[6].mxu1 %vm6788_vm2, %v21780_v11  ;;  %v21809_v11 = vld [vmem:[#allocation3 + $0x1a1] sm:$0xff] }
 0x66f   :  { %16973 = vmatprep.mubr.msk.f32.mxu1 %vm6788_vm2, %v8387_v53  ;;  %v21801_v53 = vld [vmem:[#allocation3 + $0x171] sm:$0xff]  ;;  %23425 = vst [vmem:[#allocation21_spill] sm:$0xff] %v21809_v11 }
 0x670   :  { %23423 = vst [vmem:[#allocation19_spill] sm:$0xff] %v21801_v53 }
 0x672   :  { %16974 = vmatmul.mubr.msk.f32.gmra.mrb[8].mxu1 %vm6788_vm2, %v21785_v22  ;;  %v21805_v22 = vld [vmem:[#allocation3 + $0x189] sm:$0xff] }
 0x673   :  { %16976 = vmatprep.mubr.msk.f32.mxu1 %vm6788_vm2, %v21789_v33  ;;  %23424 = vst [vmem:[#allocation20_spill] sm:$0xff] %v21805_v22  ;;  %v8395_v33 = vld [vmem:[#allocation3 + $0x1e9] sm:$0xff] }
 0x676   :  { %16977 = vmatmul.mubr.msk.f32.gmra.mrb[10].mxu1 %vm6788_vm2, %v21793_v43  ;;  %v21814_v43 = vld [vmem:[#allocation3 + $0x201] sm:$0xff] }
 0x677   :  { %16979 = vmatprep.mubr.msk.f32.mxu1 %vm6788_vm2, %v21797_v57  ;;  %23426 = vst [vmem:[#allocation22_spill] sm:$0xff] %v21814_v43  ;;  %v21818_v57 = vld [vmem:[#allocation3 + $0x219] sm:$0xff] }
 0x678   :  { %23427 = vst [vmem:[#allocation23_spill] sm:$0xff] %v21818_v57 }
 0x67a   :  { %16980 = vmatmul.mubr.msk.f32.gmra.mrb[12].mxu1 %vm6788_vm2, %v21801_v53  ;;  %v21822_v53 = vld [vmem:[#allocation3 + $0x231] sm:$0xff] }
 0x67b   :  { %16982 = vmatprep.mubr.msk.f32.mxu1 %vm6788_vm2, %v21805_v22  ;;  %23428 = vst [vmem:[#allocation24_spill] sm:$0xff] %v21822_v53  ;;  %v21826_v22 = vld [vmem:[#allocation3 + $0x249] sm:$0xff] }
 0x67c   :  { %23429 = vst [vmem:[#allocation25_spill] sm:$0xff] %v21826_v22 }
 0x67e   :  { %16983 = vmatmul.mubr.msk.f32.gmra.mrb[14].mxu1 %vm6788_vm2, %v21809_v11  ;;  %v21838_v11 = vld [vmem:[#allocation3 + $0x291] sm:$0xff] }
 0x67f   :  { %16985 = vmatprep.mubr.msk.f32.mxu1 %vm6788_vm2, %v8395_v33  ;;  %v21830_v33 = vld [vmem:[#allocation3 + $0x261] sm:$0xff]  ;;  %23432 = vst [vmem:[#allocation28_spill] sm:$0xff] %v21838_v11 }
 0x680   :  { %23430 = vst [vmem:[#allocation26_spill] sm:$0xff] %v21830_v33 }
 0x682   :  { %16986 = vmatmul.mubr.msk.f32.gmra.mrb[16].mxu1 %vm6788_vm2, %v21814_v43  ;;  %v21834_v43 = vld [vmem:[#allocation3 + $0x279] sm:$0xff] }
 0x683   :  { %16988 = vmatprep.mubr.msk.f32.mxu1 %vm6788_vm2, %v21818_v57  ;;  %23431 = vst [vmem:[#allocation27_spill] sm:$0xff] %v21834_v43  ;;  %v8403_v57 = vld [vmem:[#allocation3 + $0x2d9] sm:$0xff] }
 0x686   :  { %16989 = vmatmul.mubr.msk.f32.gmra.mrb[18].mxu1 %vm6788_vm2, %v21822_v53  ;;  %v21843_v53 = vld [vmem:[#allocation3 + $0x2f1] sm:$0xff] }
 0x687   :  { %16991 = vmatprep.mubr.msk.f32.mxu1 %vm6788_vm2, %v21826_v22  ;;  %23433 = vst [vmem:[#allocation29_spill] sm:$0xff] %v21843_v53  ;;  %v21847_v22 = vld [vmem:[#allocation3 + $0x309] sm:$0xff] }
 0x688   :  { %23434 = vst [vmem:[#allocation30_spill] sm:$0xff] %v21847_v22 }
 0x68a   :  { %16992 = vmatmul.mubr.msk.f32.gmra.mrb[20].mxu1 %vm6788_vm2, %v21830_v33  ;;  %v21851_v33 = vld [vmem:[#allocation3 + $0x321] sm:$0xff] }
 0x68b   :  { %16994 = vmatprep.mubr.msk.f32.mxu1 %vm6788_vm2, %v21834_v43  ;;  %23435 = vst [vmem:[#allocation31_spill] sm:$0xff] %v21851_v33  ;;  %v21855_v43 = vld [vmem:[#allocation3 + $0x339] sm:$0xff] }
 0x68c   :  { %23436 = vst [vmem:[#allocation32_spill] sm:$0xff] %v21855_v43 }
 0x68e   :  { %16995 = vmatmul.mubr.msk.f32.gmra.mrb[22].mxu1 %vm6788_vm2, %v21838_v11  ;;  %v21867_v11 = vld [vmem:[#allocation3 + $0x381] sm:$0xff] }
 0x68f   :  { %16997 = vmatprep.mubr.msk.f32.mxu1 %vm6788_vm2, %v8403_v57  ;;  %v21859_v57 = vld [vmem:[#allocation3 + $0x351] sm:$0xff]  ;;  %23439 = vst [vmem:[#allocation35_spill] sm:$0xff] %v21867_v11 }
 0x690   :  { %23437 = vst [vmem:[#allocation33_spill] sm:$0xff] %v21859_v57 }
 0x692   :  { %16998 = vmatmul.mubr.msk.f32.gmra.mrb[24].mxu1 %vm6788_vm2, %v21843_v53  ;;  %v21863_v53 = vld [vmem:[#allocation3 + $0x369] sm:$0xff] }
 0x693   :  { %17000 = vmatprep.mubr.msk.f32.mxu1 %vm6788_vm2, %v21847_v22  ;;  %23438 = vst [vmem:[#allocation34_spill] sm:$0xff] %v21863_v53  ;;  %v8411_v22 = vld [vmem:[#allocation3 + $0x3c9] sm:$0xff] }
 0x696   :  { %17001 = vmatmul.mubr.msk.f32.gmra.mrb[26].mxu1 %vm6788_vm2, %v21851_v33  ;;  %v21872_v33 = vld [vmem:[#allocation3 + $0x3e1] sm:$0xff] }
 0x697   :  { %17003 = vmatprep.mubr.msk.f32.mxu1 %vm6788_vm2, %v21855_v43  ;;  %23440 = vst [vmem:[#allocation36_spill] sm:$0xff] %v21872_v33  ;;  %v21876_v43 = vld [vmem:[#allocation3 + $0x3f9] sm:$0xff] }
 0x698   :  { %23441 = vst [vmem:[#allocation37_spill] sm:$0xff] %v21876_v43 }
 0x69a   :  { %17004 = vmatmul.mubr.msk.f32.gmra.mrb[28].mxu1 %vm6788_vm2, %v21859_v57  ;;  %v21880_v57 = vld [vmem:[#allocation3 + $0x411] sm:$0xff] }
 0x69b   :  { %17006 = vmatprep.mubr.msk.f32.mxu1 %vm6788_vm2, %v21863_v53  ;;  %23442 = vst [vmem:[#allocation38_spill] sm:$0xff] %v21880_v57  ;;  %v21884_v53 = vld [vmem:[#allocation3 + $0x429] sm:$0xff] }
 0x69c   :  { %23443 = vst [vmem:[#allocation39_spill] sm:$0xff] %v21884_v53 }
 0x69e   :  { %17007 = vmatmul.mubr.msk.f32.gmra.mrb[30].mxu1 %vm6788_vm2, %v21867_v11  ;;  %v21896_v11 = vld [vmem:[#allocation3 + $0x471] sm:$0xff] }
 0x69f   :  { %17009 = vmatprep.mubr.msk.f32.mxu1 %vm6788_vm2, %v8411_v22  ;;  %v21888_v22 = vld [vmem:[#allocation3 + $0x441] sm:$0xff]  ;;  %23446 = vst [vmem:[#allocation42_spill] sm:$0xff] %v21896_v11 }
 0x6a0   :  { %23444 = vst [vmem:[#allocation40_spill] sm:$0xff] %v21888_v22 }
 0x6a2   :  { %17010 = vmatmul.mubr.msk.f32.gmra.mrb[32].mxu1 %vm6788_vm2, %v21872_v33  ;;  %v21892_v33 = vld [vmem:[#allocation3 + $0x459] sm:$0xff] }
 0x6a3   :  { %17012 = vmatprep.mubr.msk.f32.mxu1 %vm6788_vm2, %v21876_v43  ;;  %23445 = vst [vmem:[#allocation41_spill] sm:$0xff] %v21892_v33  ;;  %v8419_v43 = vld [vmem:[#allocation3 + $0x4b9] sm:$0xff] }
 0x6a6   :  { %17013 = vmatmul.mubr.msk.f32.gmra.mrb[34].mxu1 %vm6788_vm2, %v21880_v57  ;;  %v21901_v57 = vld [vmem:[#allocation3 + $0x4d1] sm:$0xff] }
 0x6a7   :  { %17015 = vmatprep.mubr.msk.f32.mxu1 %vm6788_vm2, %v21884_v53  ;;  %23447 = vst [vmem:[#allocation43_spill] sm:$0xff] %v21901_v57  ;;  %v21905_v53 = vld [vmem:[#allocation3 + $0x4e9] sm:$0xff] }
 0x6a8   :  { %23448 = vst [vmem:[#allocation44_spill] sm:$0xff] %v21905_v53 }
 0x6aa   :  { %17016 = vmatmul.mubr.msk.f32.gmra.mrb[36].mxu1 %vm6788_vm2, %v21888_v22  ;;  %v21909_v22 = vld [vmem:[#allocation3 + $0x501] sm:$0xff] }
 0x6ab   :  { %17018 = vmatprep.mubr.msk.f32.mxu1 %vm6788_vm2, %v21892_v33  ;;  %23449 = vst [vmem:[#allocation45_spill] sm:$0xff] %v21909_v22  ;;  %v21913_v33 = vld [vmem:[#allocation3 + $0x519] sm:$0xff] }
 0x6ac   :  { %23450 = vst [vmem:[#allocation46_spill] sm:$0xff] %v21913_v33 }
 0x6ae   :  { %17019 = vmatmul.mubr.msk.f32.gmra.mrb[38].mxu1 %vm6788_vm2, %v21896_v11  ;;  %v21925_v11 = vld [vmem:[#allocation3 + $0x561] sm:$0xff] }
 0x6af   :  { %17021 = vmatprep.mubr.msk.f32.mxu1 %vm6788_vm2, %v8419_v43  ;;  %v21917_v43 = vld [vmem:[#allocation3 + $0x531] sm:$0xff]  ;;  %23453 = vst [vmem:[#allocation49_spill] sm:$0xff] %v21925_v11 }
 0x6b0   :  { %23451 = vst [vmem:[#allocation47_spill] sm:$0xff] %v21917_v43 }
 0x6b2   :  { %17022 = vmatmul.mubr.msk.f32.gmra.mrb[40].mxu1 %vm6788_vm2, %v21901_v57  ;;  %v21921_v57 = vld [vmem:[#allocation3 + $0x549] sm:$0xff] }
 0x6b3   :  { %17024 = vmatprep.mubr.msk.f32.mxu1 %vm6788_vm2, %v21905_v53  ;;  %23452 = vst [vmem:[#allocation48_spill] sm:$0xff] %v21921_v57  ;;  %v8427_v53 = vld [vmem:[#allocation3 + $0x5a9] sm:$0xff] }
 0x6b6   :  { %17025 = vmatmul.mubr.msk.f32.gmra.mrb[42].mxu1 %vm6788_vm2, %v21909_v22  ;;  %v21930_v22 = vld [vmem:[#allocation3 + $0x5c1] sm:$0xff] }
 0x6b7   :  { %17027 = vmatprep.mubr.msk.f32.mxu1 %vm6788_vm2, %v21913_v33  ;;  %23454 = vst [vmem:[#allocation50_spill] sm:$0xff] %v21930_v22  ;;  %v21934_v33 = vld [vmem:[#allocation3 + $0x5d9] sm:$0xff] }
 0x6b8   :  { %23455 = vst [vmem:[#allocation51_spill] sm:$0xff] %v21934_v33 }
 0x6ba   :  { %17028 = vmatmul.mubr.msk.f32.gmra.mrb[44].mxu1 %vm6788_vm2, %v21917_v43  ;;  %v21938_v43 = vld [vmem:[#allocation3 + $0x5f1] sm:$0xff] }
 0x6bb   :  { %17030 = vmatprep.mubr.msk.f32.mxu1 %vm6788_vm2, %v21921_v57  ;;  %23456 = vst [vmem:[#allocation52_spill] sm:$0xff] %v21938_v43  ;;  %v21942_v57 = vld [vmem:[#allocation3 + $0x609] sm:$0xff] }
 0x6bc   :  { %23457 = vst [vmem:[#allocation53_spill] sm:$0xff] %v21942_v57 }
 0x6be   :  { %17031 = vmatmul.mubr.msk.f32.gmra.mrb[46].mxu1 %vm6788_vm2, %v21925_v11  ;;  %v21954_v11 = vld [vmem:[#allocation3 + $0x651] sm:$0xff] }
 0x6bf   :  { %17033 = vmatprep.mubr.msk.f32.mxu1 %vm6788_vm2, %v8427_v53  ;;  %v21946_v53 = vld [vmem:[#allocation3 + $0x621] sm:$0xff] }
 0x6c0   :  { %23458 = vst [vmem:[#allocation54_spill] sm:$0xff] %v21946_v53 }
 0x6c2   :  { %17034 = vmatmul.mubr.msk.f32.gmra.mrb[48].mxu1 %vm6788_vm2, %v21930_v22  ;;  %v21950_v22 = vld [vmem:[#allocation3 + $0x639] sm:$0xff] }
 0x6c3   :  { %17036 = vmatprep.mubr.msk.f32.mxu1 %vm6788_vm2, %v21934_v33  ;;  %23459 = vst [vmem:[#allocation55_spill] sm:$0xff] %v21950_v22  ;;  %v8435_v33 = vld [vmem:[#allocation3 + $0x699] sm:$0xff] }
 0x6c6   :  { %17037 = vmatmul.mubr.msk.f32.gmra.mrb[50].mxu1 %vm6788_vm2, %v21938_v43  ;;  %v21959_v43 = vld [vmem:[#allocation3 + $0x6b1] sm:$0xff] }
 0x6c7   :  { %17039 = vmatprep.mubr.msk.f32.mxu1 %vm6788_vm2, %v21942_v57  ;;  %23460 = vst [vmem:[#allocation56_spill] sm:$0xff] %v21959_v43  ;;  %v21963_v57 = vld [vmem:[#allocation3 + $0x6c9] sm:$0xff] }
 0x6c8   :  { %23461 = vst [vmem:[#allocation57_spill] sm:$0xff] %v21963_v57 }
 0x6ca   :  { %17040 = vmatmul.mubr.msk.f32.gmra.mrb[52].mxu1 %vm6788_vm2, %v21946_v53  ;;  %v21967_v53 = vld [vmem:[#allocation3 + $0x6e1] sm:$0xff] }
 0x6cb   :  { %17042 = vmatprep.mubr.msk.f32.mxu1 %vm6788_vm2, %v21950_v22  ;;  %v21971_v22 = vld [vmem:[#allocation3 + $0x6f9] sm:$0xff] }
 0x6cc   :  { %23462 = vst [vmem:[#allocation58_spill] sm:$0xff] %v21971_v22 }
 0x6ce   :  { %17043 = vmatmul.mubr.msk.f32.gmra.mrb[54].mxu1 %vm6788_vm2, %v21954_v11 }
 0x6cf   :  { %17045 = vmatprep.mubr.msk.f32.mxu1 %vm6788_vm2, %v8435_v33  ;;  %v21975_v33 = vld [vmem:[#allocation3 + $0x711] sm:$0xff] }
 0x6d2   :  { %17046 = vmatmul.mubr.msk.f32.gmra.mrb[56].mxu1 %vm6788_vm2, %v21959_v43  ;;  %v21979_v43 = vld [vmem:[#allocation3 + $0x729] sm:$0xff] }
 0x6d3   :  { %17048 = vmatprep.mubr.msk.f32.mxu1 %vm6788_vm2, %v21963_v57  ;;  %v21983_v57 = vld [vmem:[#allocation3 + $0x741] sm:$0xff] }
 0x6d6   :  { %17049 = vmatmul.mubr.msk.f32.gmra.mrb[58].mxu1 %vm6788_vm2, %v21967_v53 }
 0x6d7   :  { %17051 = vmatprep.mubr.msk.f32.mxu1 %vm6788_vm2, %v21971_v22  ;;  %v21992_v22 = vld [vmem:[%s23127_s3 + $0x28] sm:$0xff] }
 0x6da   :  { %17052 = vmatmul.mubr.msk.f32.gmra.mrb[60].mxu1 %vm6788_vm2, %v21975_v33 }
 0x6db   :  { %17054 = vmatprep.mubr.msk.f32.mxu1 %vm6788_vm2, %v21979_v43 }
 0x6de   :  { %17055 = vmatmul.mubr.msk.f32.gmra.mrb[62].mxu1 %vm6788_vm2, %v21983_v57 }
 0x6df   :  { %17059 = vmatprep.mubr.msk.f32.mxu1 %vm6788_vm2, %v21510_v54  ;;  %v22008_v54 = vld [vmem:[#allocation3 + $0xc7] sm:$0xff] }
 0x6e2   :  { %17060 = vmatmul.mubr.msk.f32.vlgmr.msra.gmra.mrb[0].mxu1 %vm6788_vm2, %v21519_v58  ;;  %v22026_v58 = vld [vmem:[#allocation3 + $0x1b7] sm:$0xff] }
 0x6e3   :  { %17156 = vmatpush3.msra.mxu1 %v21754_v62  ;;  %17062 = vmatprep.mubr.msk.f32.mxu1 %vm6788_vm2, %v21525_v59  ;;  %v22044_v59 = vld [vmem:[#allocation3 + $0x2a7] sm:$0xff]  ;;  %v22315_v62 = vld [vmem:[#allocation3 + $0x578] sm:$0xff] }
 0x6e4   :  { %17253 = vmatprep.subr.mxu1 %v21992_v22 }
 0x6e6   :  { %17063 = vmatmul.mubr.msk.f32.gmra.mrb[2].mxu1 %vm6788_vm2, %v21529_v60  ;;  %v22062_v60 = vld [vmem:[#allocation3 + $0x397] sm:$0xff] }
 0x6e7   :  { %17065 = vmatprep.mubr.msk.f32.mxu1 %vm6788_vm2, %v21533_v61  ;;  %v22080_v61 = vld [vmem:[#allocation3 + $0x487] sm:$0xff] }
 0x6ea   :  { %17066 = vmatmul.mubr.msk.f32.gmra.mrb[4].mxu1 %vm6788_vm2, %v21537_v19  ;;  %v22098_v19 = vld [vmem:[#allocation3 + $0x577] sm:$0xff] }
 0x6eb   :  { %17068 = vmatprep.mubr.msk.f32.mxu1 %vm6788_vm2, %v21541_v31  ;;  %v22116_v31 = vld [vmem:[#allocation3 + $0x667] sm:$0xff] }
 0x6ee   :  { %17069 = vmatmul.mubr.msk.f32.gmra.mrb[6].mxu1 %vm6788_vm2, %v22008_v54 }
 0x6ef   :  { %17071 = vmatprep.mubr.msk.f32.mxu1 %vm6788_vm2, %v21546_v0  ;;  %v22134_v0 = vld [vmem:[#allocation3 + $0x757] sm:$0xff] }
 0x6f2   :  { %17072 = vmatmul.mubr.msk.f32.gmra.mrb[8].mxu1 %vm6788_vm2, %v21550_v15  ;;  %v9793_v15 = vld [vmem:[#allocation3 + $0x20] sm:$0xff] }
 0x6f3   :  { %17074 = vmatprep.mubr.msk.f32.mxu1 %vm6788_vm2, %v21554_v55  ;;  %v22139_v55 = vld [vmem:[#allocation3 + $0x38] sm:$0xff] }
 0x6f6   :  { %17075 = vmatmul.mubr.msk.f32.gmra.mrb[10].mxu1 %vm6788_vm2, %v21558_v63  ;;  %v22144_v63 = vld [vmem:[%s23127_s3 + $0x30] sm:$0xff] }
 0x6f7   :  { %17077 = vmatprep.mubr.msk.f32.mxu1 %vm6788_vm2, %v21562_v23  ;;  %v22148_v23 = vld [vmem:[#allocation3 + $0x50] sm:$0xff] }
 0x6fa   :  { %17078 = vmatmul.mubr.msk.f32.gmra.mrb[12].mxu1 %vm6788_vm2, %v21566_v28  ;;  %v22154_v28 = vld [vmem:[#allocation3 + $0x68] sm:$0xff] }
 0x6fb   :  { %17080 = vmatprep.mubr.msk.f32.mxu1 %vm6788_vm2, %v21570_v56  ;;  %v22158_v56 = vld [vmem:[#allocation3 + $0x80] sm:$0xff] }
 0x6fe   :  { %17081 = vmatmul.mubr.msk.f32.gmra.mrb[14].mxu1 %vm6788_vm2, %v22026_v58 }
 0x6ff   :  { %17083 = vmatprep.mubr.msk.f32.mxu1 %vm6788_vm2, %v21575_v39  ;;  %v22162_v39 = vld [vmem:[#allocation3 + $0x98] sm:$0xff] }
 0x702   :  { %17084 = vmatmul.mubr.msk.f32.gmra.mrb[16].mxu1 %vm6788_vm2, %v21579_v46  ;;  %v22166_v46 = vld [vmem:[#allocation3 + $0xb0] sm:$0xff] }
 0x703   :  { %17086 = vmatprep.mubr.msk.f32.mxu1 %vm6788_vm2, %v21583_v2  ;;  %v22170_v2 = vld [vmem:[#allocation3 + $0xc8] sm:$0xff] }
 0x706   :  { %17087 = vmatmul.mubr.msk.f32.gmra.mrb[18].mxu1 %vm6788_vm2, %v21587_v9  ;;  %v9801_v9 = vld [vmem:[#allocation3 + $0x110] sm:$0xff] }
 0x707   :  { %17089 = vmatprep.mubr.msk.f32.mxu1 %vm6788_vm2, %v21591_v5  ;;  %v22175_v5 = vld [vmem:[#allocation3 + $0x128] sm:$0xff] }
 0x70a   :  { %17090 = vmatmul.mubr.msk.f32.gmra.mrb[20].mxu1 %vm6788_vm2, %v21595_v12  ;;  %v22179_v12 = vld [vmem:[#allocation3 + $0x140] sm:$0xff] }
 0x70b   :  { %17092 = vmatprep.mubr.msk.f32.mxu1 %vm6788_vm2, %v21599_v47  ;;  %v22183_v47 = vld [vmem:[#allocation3 + $0x158] sm:$0xff] }
 0x70e   :  { %17093 = vmatmul.mubr.msk.f32.gmra.mrb[22].mxu1 %vm6788_vm2, %v22044_v59 }
 0x70f   :  { %17095 = vmatprep.mubr.msk.f32.mxu1 %vm6788_vm2, %v21604_v1  ;;  %v22187_v1 = vld [vmem:[#allocation3 + $0x170] sm:$0xff] }
 0x712   :  { %17096 = vmatmul.mubr.msk.f32.gmra.mrb[24].mxu1 %vm6788_vm2, %v21608_v37  ;;  %v22191_v37 = vld [vmem:[#allocation3 + $0x188] sm:$0xff] }
 0x713   :  { %17098 = vmatprep.mubr.msk.f32.mxu1 %vm6788_vm2, %v21612_v3  ;;  %v22195_v3 = vld [vmem:[#allocation3 + $0x1a0] sm:$0xff] }
 0x716   :  { %17099 = vmatmul.mubr.msk.f32.gmra.mrb[26].mxu1 %vm6788_vm2, %v21616_v6  ;;  %v22199_v6 = vld [vmem:[#allocation3 + $0x1b8] sm:$0xff] }
 0x717   :  { %17101 = vmatprep.mubr.msk.f32.mxu1 %vm6788_vm2, %v21620_v8  ;;  %v9809_v8 = vld [vmem:[#allocation3 + $0x200] sm:$0xff] }
 0x71a   :  { %17102 = vmatmul.mubr.msk.f32.gmra.mrb[28].mxu1 %vm6788_vm2, %v21624_v10  ;;  %v22204_v10 = vld [vmem:[#allocation3 + $0x218] sm:$0xff] }
 0x71b   :  { %17104 = vmatprep.mubr.msk.f32.mxu1 %vm6788_vm2, %v21628_v13  ;;  %v22208_v13 = vld [vmem:[#allocation3 + $0x230] sm:$0xff] }
 0x71e   :  { %17105 = vmatmul.mubr.msk.f32.gmra.mrb[30].mxu1 %vm6788_vm2, %v22062_v60 }
 0x71f   :  { %17107 = vmatprep.mubr.msk.f32.mxu1 %vm6788_vm2, %v21633_v14  ;;  %v22212_v14 = vld [vmem:[#allocation3 + $0x248] sm:$0xff] }
 0x722   :  { %17108 = vmatmul.mubr.msk.f32.gmra.mrb[32].mxu1 %vm6788_vm2, %v21637_v16  ;;  %v22216_v16 = vld [vmem:[#allocation3 + $0x260] sm:$0xff] }
 0x723   :  { %17110 = vmatprep.mubr.msk.f32.mxu1 %vm6788_vm2, %v21641_v17  ;;  %v22220_v17 = vld [vmem:[#allocation3 + $0x278] sm:$0xff] }
 0x726   :  { %17111 = vmatmul.mubr.msk.f32.gmra.mrb[34].mxu1 %vm6788_vm2, %v21645_v18  ;;  %v22224_v18 = vld [vmem:[#allocation3 + $0x290] sm:$0xff] }
 0x727   :  { %17113 = vmatprep.mubr.msk.f32.mxu1 %vm6788_vm2, %v21649_v20  ;;  %v22228_v20 = vld [vmem:[#allocation3 + $0x2a8] sm:$0xff] }
 0x72a   :  { %17114 = vmatmul.mubr.msk.f32.gmra.mrb[36].mxu1 %vm6788_vm2, %v21653_v21  ;;  %v9817_v21 = vld [vmem:[#allocation3 + $0x2f0] sm:$0xff] }
 0x72b   :  { %17116 = vmatprep.mubr.msk.f32.mxu1 %vm6788_vm2, %v21657_v24  ;;  %v22233_v24 = vld [vmem:[#allocation3 + $0x308] sm:$0xff] }
 0x72e   :  { %17117 = vmatmul.mubr.msk.f32.gmra.mrb[38].mxu1 %vm6788_vm2, %v22080_v61 }
 0x72f   :  { %17119 = vmatprep.mubr.msk.f32.mxu1 %vm6788_vm2, %v21662_v25  ;;  %v22237_v25 = vld [vmem:[#allocation3 + $0x320] sm:$0xff] }
 0x732   :  { %17120 = vmatmul.mubr.msk.f32.gmra.mrb[40].mxu1 %vm6788_vm2, %v21666_v26  ;;  %v22241_v26 = vld [vmem:[#allocation3 + $0x338] sm:$0xff] }
 0x733   :  { %17122 = vmatprep.mubr.msk.f32.mxu1 %vm6788_vm2, %v21670_v27  ;;  %v22245_v27 = vld [vmem:[#allocation3 + $0x350] sm:$0xff] }
 0x736   :  { %17123 = vmatmul.mubr.msk.f32.gmra.mrb[42].mxu1 %vm6788_vm2, %v21674_v29  ;;  %v22249_v29 = vld [vmem:[#allocation3 + $0x368] sm:$0xff] }
 0x737   :  { %17125 = vmatprep.mubr.msk.f32.mxu1 %vm6788_vm2, %v21678_v30  ;;  %v22253_v30 = vld [vmem:[#allocation3 + $0x380] sm:$0xff] }
 0x73a   :  { %17126 = vmatmul.mubr.msk.f32.gmra.mrb[44].mxu1 %vm6788_vm2, %v21682_v32  ;;  %v22257_v32 = vld [vmem:[#allocation3 + $0x398] sm:$0xff] }
 0x73b   :  { %17128 = vmatprep.mubr.msk.f32.mxu1 %vm6788_vm2, %v21686_v34  ;;  %v9825_v34 = vld [vmem:[#allocation3 + $0x3e0] sm:$0xff] }
 0x73e   :  { %17129 = vmatmul.mubr.msk.f32.gmra.mrb[46].mxu1 %vm6788_vm2, %v22098_v19 }
 0x73f   :  { %17131 = vmatprep.mubr.msk.f32.mxu1 %vm6788_vm2, %v21691_v35  ;;  %v22262_v35 = vld [vmem:[#allocation3 + $0x3f8] sm:$0xff] }
 0x742   :  { %17132 = vmatmul.mubr.msk.f32.gmra.mrb[48].mxu1 %vm6788_vm2, %v21695_v36  ;;  %v22266_v36 = vld [vmem:[#allocation3 + $0x410] sm:$0xff] }
 0x743   :  { %17134 = vmatprep.mubr.msk.f32.mxu1 %vm6788_vm2, %v21699_v38  ;;  %v22270_v38 = vld [vmem:[#allocation3 + $0x428] sm:$0xff] }
 0x746   :  { %17135 = vmatmul.mubr.msk.f32.gmra.mrb[50].mxu1 %vm6788_vm2, %v21703_v40  ;;  %v22274_v40 = vld [vmem:[#allocation3 + $0x440] sm:$0xff] }
 0x747   :  { %17137 = vmatprep.mubr.msk.f32.mxu1 %vm6788_vm2, %v21707_v41  ;;  %v22278_v41 = vld [vmem:[#allocation3 + $0x458] sm:$0xff] }
 0x74a   :  { %17138 = vmatmul.mubr.msk.f32.gmra.mrb[52].mxu1 %vm6788_vm2, %v21711_v42  ;;  %v22282_v42 = vld [vmem:[#allocation3 + $0x470] sm:$0xff] }
 0x74b   :  { %17140 = vmatprep.mubr.msk.f32.mxu1 %vm6788_vm2, %v21715_v45  ;;  %v22286_v45 = vld [vmem:[#allocation3 + $0x488] sm:$0xff] }
 0x74e   :  { %17141 = vmatmul.mubr.msk.f32.gmra.mrb[54].mxu1 %vm6788_vm2, %v22116_v31 }
 0x74f   :  { %17143 = vmatprep.mubr.msk.f32.mxu1 %vm6788_vm2, %v21720_v48  ;;  %v9833_v48 = vld [vmem:[#allocation3 + $0x4d0] sm:$0xff] }
 0x752   :  { %17144 = vmatmul.mubr.msk.f32.gmra.mrb[56].mxu1 %vm6788_vm2, %v21724_v49  ;;  %v22291_v49 = vld [vmem:[#allocation3 + $0x4e8] sm:$0xff] }
 0x753   :  { %17146 = vmatprep.mubr.msk.f32.mxu1 %vm6788_vm2, %v21728_v50  ;;  %v22295_v50 = vld [vmem:[#allocation3 + $0x500] sm:$0xff] }
 0x756   :  { %17147 = vmatmul.mubr.msk.f32.gmra.mrb[58].mxu1 %vm6788_vm2, %v21732_v51  ;;  %v22299_v51 = vld [vmem:[#allocation3 + $0x518] sm:$0xff] }
 0x757   :  { %17149 = vmatprep.mubr.msk.f32.mxu1 %vm6788_vm2, %v21736_v44  ;;  %v22303_v44 = vld [vmem:[#allocation3 + $0x530] sm:$0xff] }
 0x75a   :  { %17150 = vmatmul.mubr.msk.f32.gmra.mrb[60].mxu1 %vm6788_vm2, %v21740_v52  ;;  %v22307_v52 = vld [vmem:[#allocation3 + $0x548] sm:$0xff] }
 0x75b   :  { %17152 = vmatprep.mubr.msk.f32.mxu1 %vm6788_vm2, %v21744_v7  ;;  %v22311_v7 = vld [vmem:[#allocation3 + $0x560] sm:$0xff] }
 0x75e   :  { %17153 = vmatmul.mubr.msk.f32.gmra.mrb[62].mxu1 %vm6788_vm2, %v22134_v0 }
 0x75f   :  { %17157 = vmatprep.mubr.msk.f32.mxu1 %vm6788_vm2, %v9793_v15  ;;  %v22320_v15 = vld [vmem:[#allocation3 + $0x5d8] sm:$0xff] }
 0x760   :  { %23463 = vst [vmem:[#allocation59_spill] sm:$0xff] %v22320_v15 }
 0x762   :  { %17158 = vmatmul.mubr.msk.f32.vlgmr.msra.gmra.mrb[0].mxu1 %vm6788_vm2, %v22139_v55 }
 0x763   :  { %17254 = vmatpush3.msra.mxu1 %v21992_v22  ;;  %17160 = vmatprep.mubr.msk.f32.mxu1 %vm6788_vm2, %v22148_v23  ;;  %v9841_v22 = vld [vmem:[#allocation3 + $0x5c0] sm:$0xff] }
 0x764   :  { %17351 = vmatprep.subr.mxu1 %v22144_v63 }
 0x766   :  { %17161 = vmatmul.mubr.msk.f32.gmra.mrb[2].mxu1 %vm6788_vm2, %v22154_v28 }
 0x767   :  { %17163 = vmatprep.mubr.msk.f32.mxu1 %vm6788_vm2, %v22158_v56 }
 0x76a   :  { %17164 = vmatmul.mubr.msk.f32.gmra.mrb[4].mxu1 %vm6788_vm2, %v22162_v39 }
 0x76b   :  { %17166 = vmatprep.mubr.msk.f32.mxu1 %vm6788_vm2, %v22166_v46 }
 0x76e   :  { %17167 = vmatmul.mubr.msk.f32.gmra.mrb[6].mxu1 %vm6788_vm2, %v22170_v2 }
 0x76f   :  { %17169 = vmatprep.mubr.msk.f32.mxu1 %vm6788_vm2, %v9801_v9  ;;  %v22324_v9 = vld [vmem:[#allocation3 + $0x5f0] sm:$0xff] }
 0x770   :  { %23464 = vst [vmem:[#allocation60_spill] sm:$0xff] %v22324_v9 }
 0x772   :  { %17170 = vmatmul.mubr.msk.f32.gmra.mrb[8].mxu1 %vm6788_vm2, %v22175_v5 }
 0x773   :  { %17172 = vmatprep.mubr.msk.f32.mxu1 %vm6788_vm2, %v22179_v12 }
 0x776   :  { %17173 = vmatmul.mubr.msk.f32.gmra.mrb[10].mxu1 %vm6788_vm2, %v22183_v47 }
 0x777   :  { %17175 = vmatprep.mubr.msk.f32.mxu1 %vm6788_vm2, %v22187_v1 }
 0x77a   :  { %17176 = vmatmul.mubr.msk.f32.gmra.mrb[12].mxu1 %vm6788_vm2, %v22191_v37 }
 0x77b   :  { %17178 = vmatprep.mubr.msk.f32.mxu1 %vm6788_vm2, %v22195_v3 }
 0x77e   :  { %17179 = vmatmul.mubr.msk.f32.gmra.mrb[14].mxu1 %vm6788_vm2, %v22199_v6 }
 0x77f   :  { %17181 = vmatprep.mubr.msk.f32.mxu1 %vm6788_vm2, %v9809_v8  ;;  %v22328_v8 = vld [vmem:[#allocation3 + $0x608] sm:$0xff] }
 0x780   :  { %23465 = vst [vmem:[#allocation61_spill] sm:$0xff] %v22328_v8 }
 0x782   :  { %17182 = vmatmul.mubr.msk.f32.gmra.mrb[16].mxu1 %vm6788_vm2, %v22204_v10 }
 0x783   :  { %17184 = vmatprep.mubr.msk.f32.mxu1 %vm6788_vm2, %v22208_v13 }
 0x786   :  { %17185 = vmatmul.mubr.msk.f32.gmra.mrb[18].mxu1 %vm6788_vm2, %v22212_v14 }
 0x787   :  { %17187 = vmatprep.mubr.msk.f32.mxu1 %vm6788_vm2, %v22216_v16 }
 0x78a   :  { %17188 = vmatmul.mubr.msk.f32.gmra.mrb[20].mxu1 %vm6788_vm2, %v22220_v17 }
 0x78b   :  { %17190 = vmatprep.mubr.msk.f32.mxu1 %vm6788_vm2, %v22224_v18 }
 0x78e   :  { %17191 = vmatmul.mubr.msk.f32.gmra.mrb[22].mxu1 %vm6788_vm2, %v22228_v20 }
 0x78f   :  { %17193 = vmatprep.mubr.msk.f32.mxu1 %vm6788_vm2, %v9817_v21  ;;  %v22332_v21 = vld [vmem:[#allocation3 + $0x620] sm:$0xff] }
 0x790   :  { %23466 = vst [vmem:[#allocation62_spill] sm:$0xff] %v22332_v21 }
 0x792   :  { %17194 = vmatmul.mubr.msk.f32.gmra.mrb[24].mxu1 %vm6788_vm2, %v22233_v24 }
 0x793   :  { %17196 = vmatprep.mubr.msk.f32.mxu1 %vm6788_vm2, %v22237_v25 }
 0x796   :  { %17197 = vmatmul.mubr.msk.f32.gmra.mrb[26].mxu1 %vm6788_vm2, %v22241_v26 }
 0x797   :  { %17199 = vmatprep.mubr.msk.f32.mxu1 %vm6788_vm2, %v22245_v27 }
 0x79a   :  { %17200 = vmatmul.mubr.msk.f32.gmra.mrb[28].mxu1 %vm6788_vm2, %v22249_v29 }
 0x79b   :  { %17202 = vmatprep.mubr.msk.f32.mxu1 %vm6788_vm2, %v22253_v30 }
 0x79e   :  { %17203 = vmatmul.mubr.msk.f32.gmra.mrb[30].mxu1 %vm6788_vm2, %v22257_v32 }
 0x79f   :  { %17205 = vmatprep.mubr.msk.f32.mxu1 %vm6788_vm2, %v9825_v34  ;;  %v22336_v34 = vld [vmem:[#allocation3 + $0x638] sm:$0xff] }
 0x7a0   :  { %23467 = vst [vmem:[#allocation63_spill] sm:$0xff] %v22336_v34 }
 0x7a2   :  { %17206 = vmatmul.mubr.msk.f32.gmra.mrb[32].mxu1 %vm6788_vm2, %v22262_v35 }
 0x7a3   :  { %17208 = vmatprep.mubr.msk.f32.mxu1 %vm6788_vm2, %v22266_v36 }
 0x7a6   :  { %17209 = vmatmul.mubr.msk.f32.gmra.mrb[34].mxu1 %vm6788_vm2, %v22270_v38 }
 0x7a7   :  { %17211 = vmatprep.mubr.msk.f32.mxu1 %vm6788_vm2, %v22274_v40 }
 0x7aa   :  { %17212 = vmatmul.mubr.msk.f32.gmra.mrb[36].mxu1 %vm6788_vm2, %v22278_v41 }
 0x7ab   :  { %17214 = vmatprep.mubr.msk.f32.mxu1 %vm6788_vm2, %v22282_v42 }
 0x7ae   :  { %17215 = vmatmul.mubr.msk.f32.gmra.mrb[38].mxu1 %vm6788_vm2, %v22286_v45 }
 0x7af   :  { %17217 = vmatprep.mubr.msk.f32.mxu1 %vm6788_vm2, %v9833_v48  ;;  %v22340_v48 = vld [vmem:[#allocation3 + $0x650] sm:$0xff] }
 0x7b0   :  { %23468 = vst [vmem:[#allocation64_spill] sm:$0xff] %v22340_v48 }
 0x7b2   :  { %17218 = vmatmul.mubr.msk.f32.gmra.mrb[40].mxu1 %vm6788_vm2, %v22291_v49 }
 0x7b3   :  { %17220 = vmatprep.mubr.msk.f32.mxu1 %vm6788_vm2, %v22295_v50 }
 0x7b6   :  { %17221 = vmatmul.mubr.msk.f32.gmra.mrb[42].mxu1 %vm6788_vm2, %v22299_v51 }
 0x7b7   :  { %17223 = vmatprep.mubr.msk.f32.mxu1 %vm6788_vm2, %v22303_v44 }
 0x7ba   :  { %17224 = vmatmul.mubr.msk.f32.gmra.mrb[44].mxu1 %vm6788_vm2, %v22307_v52 }
 0x7bb   :  { %17226 = vmatprep.mubr.msk.f32.mxu1 %vm6788_vm2, %v22311_v7 }
 0x7be   :  { %17227 = vmatmul.mubr.msk.f32.gmra.mrb[46].mxu1 %vm6788_vm2, %v22315_v62 }
 0x7bf   :  { %17229 = vmatprep.mubr.msk.f32.mxu1 %vm6788_vm2, %v9841_v22  ;;  %v22344_v22 = vld [vmem:[#allocation3 + $0x668] sm:$0xff] }
 0x7c0   :  { %23469 = vst [vmem:[#allocation65_spill] sm:$0xff] %v22344_v22 }
 0x7c2   :  { %17230 = vmatmul.mubr.msk.f32.gmra.mrb[48].mxu1 %vm6788_vm2, %v22320_v15  ;;  %v23490_v15 = vld [vmem:[#allocation21_spill] sm:$0xff] }
 0x7c3   :  { %17232 = vmatprep.mubr.msk.f32.mxu1 %vm6788_vm2, %v22324_v9  ;;  %v22349_v9 = vld [vmem:[#allocation3 + $0x6c8] sm:$0xff] }
 0x7c4   :  { %23470 = vst [vmem:[#allocation66_spill] sm:$0xff] %v22349_v9 }
 0x7c6   :  { %17233 = vmatmul.mubr.msk.f32.gmra.mrb[50].mxu1 %vm6788_vm2, %v22328_v8  ;;  %v9849_v8 = vld [vmem:[#allocation3 + $0x6b0] sm:$0xff] }
 0x7c7   :  { %17235 = vmatprep.mubr.msk.f32.mxu1 %vm6788_vm2, %v22332_v21  ;;  %v22353_v21 = vld [vmem:[#allocation3 + $0x6e0] sm:$0xff] }
 0x7c8   :  { %23471 = vst [vmem:[#allocation67_spill] sm:$0xff] %v22353_v21 }
 0x7ca   :  { %17236 = vmatmul.mubr.msk.f32.gmra.mrb[52].mxu1 %vm6788_vm2, %v22336_v34  ;;  %v22357_v34 = vld [vmem:[#allocation3 + $0x6f8] sm:$0xff] }
 0x7cb   :  { %17238 = vmatprep.mubr.msk.f32.mxu1 %vm6788_vm2, %v22340_v48  ;;  %23472 = vst [vmem:[#allocation68_spill] sm:$0xff] %v22357_v34  ;;  %v22361_v48 = vld [vmem:[#allocation3 + $0x710] sm:$0xff] }
 0x7cc   :  { %23473 = vst [vmem:[#allocation4_spill] sm:$0xff] %v22361_v48 }
 0x7ce   :  { %17239 = vmatmul.mubr.msk.f32.gmra.mrb[54].mxu1 %vm6788_vm2, %v22344_v22  ;;  %v23482_v22 = vld [vmem:[#allocation14_spill] sm:$0xff] }
 0x7cf   :  { %17241 = vmatprep.mubr.msk.f32.mxu1 %vm6788_vm2, %v9849_v8  ;;  %v22365_v8 = vld [vmem:[#allocation3 + $0x728] sm:$0xff] }
 0x7d0   :  { %23474 = vst [vmem:[#allocation5_spill] sm:$0xff] %v22365_v8 }
 0x7d2   :  { %17242 = vmatmul.mubr.msk.f32.gmra.mrb[56].mxu1 %vm6788_vm2, %v22349_v9  ;;  %v22369_v9 = vld [vmem:[#allocation3 + $0x740] sm:$0xff] }
 0x7d3   :  { %17244 = vmatprep.mubr.msk.f32.mxu1 %vm6788_vm2, %v22353_v21  ;;  %23475 = vst [vmem:[#allocation6_spill] sm:$0xff] %v22369_v9  ;;  %v22373_v21 = vld [vmem:[#allocation3 + $0x758] sm:$0xff] }
 0x7d4   :  { %23476 = vst [vmem:[#allocation7_spill] sm:$0xff] %v22373_v21 }
 0x7d6   :  { %17245 = vmatmul.mubr.msk.f32.gmra.mrb[58].mxu1 %vm6788_vm2, %v22357_v34  ;;  %v23477_v34 = vld [vmem:[#allocation9_spill] sm:$0xff] }
 0x7d7   :  { %17247 = vmatprep.mubr.msk.f32.mxu1 %vm6788_vm2, %v22361_v48  ;;  %v22382_v48 = vld [vmem:[%s23127_s3 + $0x38] sm:$0xff] }
 0x7da   :  { %17248 = vmatmul.mubr.msk.f32.gmra.mrb[60].mxu1 %vm6788_vm2, %v22365_v8  ;;  %v23478_v8 = vld [vmem:[#allocation10_spill] sm:$0xff] }
 0x7db   :  { %17250 = vmatprep.mubr.msk.f32.mxu1 %vm6788_vm2, %v22369_v9  ;;  %v23479_v9 = vld [vmem:[#allocation11_spill] sm:$0xff] }
 0x7de   :  { %17251 = vmatmul.mubr.msk.f32.gmra.mrb[62].mxu1 %vm6788_vm2, %v22373_v21  ;;  %v23480_v21 = vld [vmem:[#allocation12_spill] sm:$0xff] }
 0x7df   :  { %17255 = vmatprep.mubr.msk.f32.mxu1 %vm6788_vm2, %v21749_v4  ;;  %v23481_v4 = vld [vmem:[#allocation13_spill] sm:$0xff] }
 0x7e2   :  { %17256 = vmatmul.mubr.msk.f32.vlgmr.msra.gmra.mrb[0].mxu1 %vm6788_vm2, %v23477_v34  ;;  %v22398_v34 = vld [vmem:[#allocation3 + $0xc9] sm:$0xff] }
 0x7e3   :  { %17352 = vmatpush3.msra.mxu1 %v22144_v63  ;;  %17258 = vmatprep.mubr.msk.f32.mxu1 %vm6788_vm2, %v23478_v8  ;;  %23483 = vst [vmem:[#allocation8_spill] sm:$0xff] %v22398_v34  ;;  %v23484_v63 = vld [vmem:[#allocation15_spill] sm:$0xff]  ;;  %v23485_v8 = vld [vmem:[#allocation16_spill] sm:$0xff] }
 0x7e4   :  { %17449 = vmatprep.subr.mxu1 %v22382_v48 }
 0x7e6   :  { %17259 = vmatmul.mubr.msk.f32.gmra.mrb[2].mxu1 %vm6788_vm2, %v23479_v9  ;;  %v23486_v9 = vld [vmem:[#allocation17_spill] sm:$0xff] }
 0x7e7   :  { %17261 = vmatprep.mubr.msk.f32.mxu1 %vm6788_vm2, %v23480_v21  ;;  %v23487_v21 = vld [vmem:[#allocation18_spill] sm:$0xff] }
 0x7ea   :  { %17262 = vmatmul.mubr.msk.f32.gmra.mrb[4].mxu1 %vm6788_vm2, %v23481_v4  ;;  %v23488_v4 = vld [vmem:[#allocation19_spill] sm:$0xff] }
 0x7eb   :  { %17264 = vmatprep.mubr.msk.f32.mxu1 %vm6788_vm2, %v23482_v22  ;;  %v23489_v22 = vld [vmem:[#allocation20_spill] sm:$0xff] }
 0x7ee   :  { %17265 = vmatmul.mubr.msk.f32.gmra.mrb[6].mxu1 %vm6788_vm2, %v22398_v34  ;;  %v22416_v34 = vld [vmem:[#allocation3 + $0x1b9] sm:$0xff] }
 0x7ef   :  { %17267 = vmatprep.mubr.msk.f32.mxu1 %vm6788_vm2, %v23484_v63  ;;  %23491 = vst [vmem:[#allocation9_spill] sm:$0xff] %v22416_v34  ;;  %v23492_v63 = vld [vmem:[#allocation22_spill] sm:$0xff] }
 0x7f2   :  { %17268 = vmatmul.mubr.msk.f32.gmra.mrb[8].mxu1 %vm6788_vm2, %v23485_v8  ;;  %v23493_v8 = vld [vmem:[#allocation23_spill] sm:$0xff] }
 0x7f3   :  { %17270 = vmatprep.mubr.msk.f32.mxu1 %vm6788_vm2, %v23486_v9  ;;  %v23494_v9 = vld [vmem:[#allocation24_spill] sm:$0xff] }
 0x7f6   :  { %17271 = vmatmul.mubr.msk.f32.gmra.mrb[10].mxu1 %vm6788_vm2, %v23487_v21  ;;  %v23495_v21 = vld [vmem:[#allocation25_spill] sm:$0xff] }
 0x7f7   :  { %17273 = vmatprep.mubr.msk.f32.mxu1 %vm6788_vm2, %v23488_v4  ;;  %v23496_v4 = vld [vmem:[#allocation26_spill] sm:$0xff] }
 0x7fa   :  { %17274 = vmatmul.mubr.msk.f32.gmra.mrb[12].mxu1 %vm6788_vm2, %v23489_v22  ;;  %v23498_v22 = vld [vmem:[#allocation28_spill] sm:$0xff] }
 0x7fb   :  { %17276 = vmatprep.mubr.msk.f32.mxu1 %vm6788_vm2, %v23490_v15  ;;  %v23497_v15 = vld [vmem:[#allocation27_spill] sm:$0xff] }
 0x7fe   :  { %17277 = vmatmul.mubr.msk.f32.gmra.mrb[14].mxu1 %vm6788_vm2, %v22416_v34  ;;  %v22434_v34 = vld [vmem:[#allocation3 + $0x2a9] sm:$0xff] }
 0x7ff   :  { %17279 = vmatprep.mubr.msk.f32.mxu1 %vm6788_vm2, %v23492_v63  ;;  %23499 = vst [vmem:[#allocation10_spill] sm:$0xff] %v22434_v34  ;;  %v23500_v63 = vld [vmem:[#allocation29_spill] sm:$0xff] }
 0x802   :  { %17280 = vmatmul.mubr.msk.f32.gmra.mrb[16].mxu1 %vm6788_vm2, %v23493_v8  ;;  %v23501_v8 = vld [vmem:[#allocation30_spill] sm:$0xff] }
 0x803   :  { %17282 = vmatprep.mubr.msk.f32.mxu1 %vm6788_vm2, %v23494_v9  ;;  %v23502_v9 = vld [vmem:[#allocation31_spill] sm:$0xff] }
 0x806   :  { %17283 = vmatmul.mubr.msk.f32.gmra.mrb[18].mxu1 %vm6788_vm2, %v23495_v21  ;;  %v23503_v21 = vld [vmem:[#allocation32_spill] sm:$0xff] }
 0x807   :  { %17285 = vmatprep.mubr.msk.f32.mxu1 %vm6788_vm2, %v23496_v4  ;;  %v23504_v4 = vld [vmem:[#allocation33_spill] sm:$0xff] }
 0x80a   :  { %17286 = vmatmul.mubr.msk.f32.gmra.mrb[20].mxu1 %vm6788_vm2, %v23497_v15  ;;  %v23505_v15 = vld [vmem:[#allocation34_spill] sm:$0xff] }
 0x80b   :  { %17288 = vmatprep.mubr.msk.f32.mxu1 %vm6788_vm2, %v23498_v22  ;;  %v23506_v22 = vld [vmem:[#allocation35_spill] sm:$0xff] }
 0x80e   :  { %17289 = vmatmul.mubr.msk.f32.gmra.mrb[22].mxu1 %vm6788_vm2, %v22434_v34  ;;  %v22452_v34 = vld [vmem:[#allocation3 + $0x399] sm:$0xff] }
 0x80f   :  { %17291 = vmatprep.mubr.msk.f32.mxu1 %vm6788_vm2, %v23500_v63  ;;  %23507 = vst [vmem:[#allocation11_spill] sm:$0xff] %v22452_v34  ;;  %v23508_v63 = vld [vmem:[#allocation36_spill] sm:$0xff] }
 0x812   :  { %17292 = vmatmul.mubr.msk.f32.gmra.mrb[24].mxu1 %vm6788_vm2, %v23501_v8  ;;  %v23509_v8 = vld [vmem:[#allocation37_spill] sm:$0xff] }
 0x813   :  { %17294 = vmatprep.mubr.msk.f32.mxu1 %vm6788_vm2, %v23502_v9  ;;  %v23510_v9 = vld [vmem:[#allocation38_spill] sm:$0xff] }
 0x816   :  { %17295 = vmatmul.mubr.msk.f32.gmra.mrb[26].mxu1 %vm6788_vm2, %v23503_v21  ;;  %v23511_v21 = vld [vmem:[#allocation39_spill] sm:$0xff] }
 0x817   :  { %17297 = vmatprep.mubr.msk.f32.mxu1 %vm6788_vm2, %v23504_v4  ;;  %v23512_v4 = vld [vmem:[#allocation40_spill] sm:$0xff] }
 0x81a   :  { %17298 = vmatmul.mubr.msk.f32.gmra.mrb[28].mxu1 %vm6788_vm2, %v23505_v15  ;;  %v23513_v15 = vld [vmem:[#allocation41_spill] sm:$0xff] }
 0x81b   :  { %17300 = vmatprep.mubr.msk.f32.mxu1 %vm6788_vm2, %v23506_v22  ;;  %v23514_v22 = vld [vmem:[#allocation42_spill] sm:$0xff] }
 0x81e   :  { %17301 = vmatmul.mubr.msk.f32.gmra.mrb[30].mxu1 %vm6788_vm2, %v22452_v34  ;;  %v22470_v34 = vld [vmem:[#allocation3 + $0x489] sm:$0xff] }
 0x81f   :  { %17303 = vmatprep.mubr.msk.f32.mxu1 %vm6788_vm2, %v23508_v63  ;;  %23515 = vst [vmem:[#allocation12_spill] sm:$0xff] %v22470_v34  ;;  %v23516_v63 = vld [vmem:[#allocation43_spill] sm:$0xff] }
 0x822   :  { %17304 = vmatmul.mubr.msk.f32.gmra.mrb[32].mxu1 %vm6788_vm2, %v23509_v8  ;;  %v23517_v8 = vld [vmem:[#allocation44_spill] sm:$0xff] }
 0x823   :  { %17306 = vmatprep.mubr.msk.f32.mxu1 %vm6788_vm2, %v23510_v9  ;;  %v23518_v9 = vld [vmem:[#allocation45_spill] sm:$0xff] }
 0x826   :  { %17307 = vmatmul.mubr.msk.f32.gmra.mrb[34].mxu1 %vm6788_vm2, %v23511_v21  ;;  %v23519_v21 = vld [vmem:[#allocation46_spill] sm:$0xff] }
 0x827   :  { %17309 = vmatprep.mubr.msk.f32.mxu1 %vm6788_vm2, %v23512_v4  ;;  %v23520_v4 = vld [vmem:[#allocation47_spill] sm:$0xff] }
 0x82a   :  { %17310 = vmatmul.mubr.msk.f32.gmra.mrb[36].mxu1 %vm6788_vm2, %v23513_v15  ;;  %v23521_v15 = vld [vmem:[#allocation48_spill] sm:$0xff] }
 0x82b   :  { %17312 = vmatprep.mubr.msk.f32.mxu1 %vm6788_vm2, %v23514_v22  ;;  %v23522_v22 = vld [vmem:[#allocation49_spill] sm:$0xff] }
 0x82e   :  { %17313 = vmatmul.mubr.msk.f32.gmra.mrb[38].mxu1 %vm6788_vm2, %v22470_v34  ;;  %v22488_v34 = vld [vmem:[#allocation3 + $0x579] sm:$0xff] }
 0x82f   :  { %17315 = vmatprep.mubr.msk.f32.mxu1 %vm6788_vm2, %v23516_v63  ;;  %v23523_v63 = vld [vmem:[#allocation50_spill] sm:$0xff] }
 0x832   :  { %17316 = vmatmul.mubr.msk.f32.gmra.mrb[40].mxu1 %vm6788_vm2, %v23517_v8  ;;  %v23524_v8 = vld [vmem:[#allocation51_spill] sm:$0xff] }
 0x833   :  { %17318 = vmatprep.mubr.msk.f32.mxu1 %vm6788_vm2, %v23518_v9  ;;  %v23525_v9 = vld [vmem:[#allocation52_spill] sm:$0xff] }
 0x836   :  { %17319 = vmatmul.mubr.msk.f32.gmra.mrb[42].mxu1 %vm6788_vm2, %v23519_v21  ;;  %v23526_v21 = vld [vmem:[#allocation53_spill] sm:$0xff] }
 0x837   :  { %17321 = vmatprep.mubr.msk.f32.mxu1 %vm6788_vm2, %v23520_v4  ;;  %v23527_v4 = vld [vmem:[#allocation54_spill] sm:$0xff] }
 0x83a   :  { %17322 = vmatmul.mubr.msk.f32.gmra.mrb[44].mxu1 %vm6788_vm2, %v23521_v15  ;;  %v23528_v15 = vld [vmem:[#allocation55_spill] sm:$0xff] }
 0x83b   :  { %17324 = vmatprep.mubr.msk.f32.mxu1 %vm6788_vm2, %v23522_v22  ;;  %v22506_v22 = vld [vmem:[#allocation3 + $0x669] sm:$0xff] }
 0x83e   :  { %17325 = vmatmul.mubr.msk.f32.gmra.mrb[46].mxu1 %vm6788_vm2, %v22488_v34 }
 0x83f   :  { %17327 = vmatprep.mubr.msk.f32.mxu1 %vm6788_vm2, %v23523_v63  ;;  %v23529_v63 = vld [vmem:[#allocation56_spill] sm:$0xff] }
 0x842   :  { %17328 = vmatmul.mubr.msk.f32.gmra.mrb[48].mxu1 %vm6788_vm2, %v23524_v8  ;;  %v23530_v8 = vld [vmem:[#allocation57_spill] sm:$0xff] }
 0x843   :  { %17330 = vmatprep.mubr.msk.f32.mxu1 %vm6788_vm2, %v23525_v9  ;;  %v23531_v9 = vld [vmem:[#allocation58_spill] sm:$0xff] }
 0x846   :  { %17331 = vmatmul.mubr.msk.f32.gmra.mrb[50].mxu1 %vm6788_vm2, %v23526_v21  ;;  %v11208_v21 = vld [vmem:[#allocation3 + $0x37] sm:$0xff] }
 0x847   :  { %17333 = vmatprep.mubr.msk.f32.mxu1 %vm6788_vm2, %v23527_v4  ;;  %v22532_v4 = vld [vmem:[%s23127_s3 + $0x40] sm:$0xff] }
 0x84a   :  { %17334 = vmatmul.mubr.msk.f32.gmra.mrb[52].mxu1 %vm6788_vm2, %v23528_v15  ;;  %v11213_v15 = vld [vmem:[#allocation3 + $0xaf] sm:$0xff] }
 0x84b   :  { %17336 = vmatprep.mubr.msk.f32.mxu1 %vm6788_vm2, %v21954_v11  ;;  %v22524_v11 = vld [vmem:[#allocation3 + $0x759] sm:$0xff] }
 0x84e   :  { %17337 = vmatmul.mubr.msk.f32.gmra.mrb[54].mxu1 %vm6788_vm2, %v22506_v22 }
 0x84f   :  { %17339 = vmatprep.mubr.msk.f32.mxu1 %vm6788_vm2, %v23529_v63  ;;  %v11215_v63 = vld [vmem:[#allocation3 + $0xdf] sm:$0xff] }
 0x852   :  { %17340 = vmatmul.mubr.msk.f32.gmra.mrb[56].mxu1 %vm6788_vm2, %v23530_v8  ;;  %v11217_v8 = vld [vmem:[#allocation3 + $0x13f] sm:$0xff] }
 0x853   :  { %17342 = vmatprep.mubr.msk.f32.mxu1 %vm6788_vm2, %v21967_v53  ;;  %v11209_v53 = vld [vmem:[#allocation3 + $0x4f] sm:$0xff] }
 0x856   :  { %17343 = vmatmul.mubr.msk.f32.gmra.mrb[58].mxu1 %vm6788_vm2, %v23531_v9  ;;  %v11218_v9 = vld [vmem:[#allocation3 + $0x157] sm:$0xff] }
 0x857   :  { %17345 = vmatprep.mubr.msk.f32.mxu1 %vm6788_vm2, %v21975_v33  ;;  %v11212_v33 = vld [vmem:[#allocation3 + $0x97] sm:$0xff] }
 0x85a   :  { %17346 = vmatmul.mubr.msk.f32.gmra.mrb[60].mxu1 %vm6788_vm2, %v21979_v43  ;;  %v11210_v43 = vld [vmem:[#allocation3 + $0x67] sm:$0xff] }
 0x85b   :  { %17348 = vmatprep.mubr.msk.f32.mxu1 %vm6788_vm2, %v21983_v57  ;;  %v11211_v57 = vld [vmem:[#allocation3 + $0x7f] sm:$0xff] }
 0x85e   :  { %17349 = vmatmul.mubr.msk.f32.gmra.mrb[62].mxu1 %vm6788_vm2, %v22524_v11 }
 0x85f   :  { %17353 = vmatprep.mubr.msk.f32.mxu1 %vm6788_vm2, %v11208_v21  ;;  %v11219_v21 = vld [vmem:[#allocation3 + $0x16f] sm:$0xff] }
 0x862   :  { %17354 = vmatmul.mubr.msk.f32.vlgmr.msra.gmra.mrb[0].mxu1 %vm6788_vm2, %v11209_v53  ;;  %v11220_v53 = vld [vmem:[#allocation3 + $0x187] sm:$0xff] }
 0x863   :  { %17450 = vmatpush3.msra.mxu1 %v22382_v48  ;;  %17356 = vmatprep.mubr.msk.f32.mxu1 %vm6788_vm2, %v11210_v43  ;;  %v11216_v48 = vld [vmem:[#allocation3 + $0x127] sm:$0xff]  ;;  %v11221_v43 = vld [vmem:[#allocation3 + $0x19f] sm:$0xff] }
 0x864   :  { %17547 = vmatprep.subr.mxu1 %v22532_v4 }
 0x866   :  { %17357 = vmatmul.mubr.msk.f32.gmra.mrb[2].mxu1 %vm6788_vm2, %v11211_v57  ;;  %v11224_v57 = vld [vmem:[#allocation3 + $0x217] sm:$0xff] }
 0x867   :  { %17359 = vmatprep.mubr.msk.f32.mxu1 %vm6788_vm2, %v11212_v33  ;;  %v11225_v33 = vld [vmem:[#allocation3 + $0x22f] sm:$0xff] }
 0x86a   :  { %17360 = vmatmul.mubr.msk.f32.gmra.mrb[4].mxu1 %vm6788_vm2, %v11213_v15  ;;  %v11226_v15 = vld [vmem:[#allocation3 + $0x247] sm:$0xff] }
 0x86b   :  { %17362 = vmatprep.mubr.msk.f32.mxu1 %vm6788_vm2, %v22008_v54  ;;  %v11223_v54 = vld [vmem:[#allocation3 + $0x1cf] sm:$0xff] }
 0x86e   :  { %17363 = vmatmul.mubr.msk.f32.gmra.mrb[6].mxu1 %vm6788_vm2, %v11215_v63  ;;  %v11227_v63 = vld [vmem:[#allocation3 + $0x25f] sm:$0xff] }
 0x86f   :  { %17365 = vmatprep.mubr.msk.f32.mxu1 %vm6788_vm2, %v11216_v48  ;;  %v11228_v48 = vld [vmem:[#allocation3 + $0x277] sm:$0xff] }
 0x872   :  { %17366 = vmatmul.mubr.msk.f32.gmra.mrb[8].mxu1 %vm6788_vm2, %v11217_v8  ;;  %v11229_v8 = vld [vmem:[#allocation3 + $0x28f] sm:$0xff] }
 0x873   :  { %17368 = vmatprep.mubr.msk.f32.mxu1 %vm6788_vm2, %v11218_v9  ;;  %v11232_v9 = vld [vmem:[#allocation3 + $0x307] sm:$0xff] }
 0x876   :  { %17369 = vmatmul.mubr.msk.f32.gmra.mrb[10].mxu1 %vm6788_vm2, %v11219_v21  ;;  %v11233_v21 = vld [vmem:[#allocation3 + $0x31f] sm:$0xff] }
 0x877   :  { %17371 = vmatprep.mubr.msk.f32.mxu1 %vm6788_vm2, %v11220_v53  ;;  %v11234_v53 = vld [vmem:[#allocation3 + $0x337] sm:$0xff] }
 0x87a   :  { %17372 = vmatmul.mubr.msk.f32.gmra.mrb[12].mxu1 %vm6788_vm2, %v11221_v43  ;;  %v11235_v43 = vld [vmem:[#allocation3 + $0x34f] sm:$0xff] }
 0x87b   :  { %17374 = vmatprep.mubr.msk.f32.mxu1 %vm6788_vm2, %v22026_v58  ;;  %v11231_v58 = vld [vmem:[#allocation3 + $0x2bf] sm:$0xff] }
 0x87e   :  { %17375 = vmatmul.mubr.msk.f32.gmra.mrb[14].mxu1 %vm6788_vm2, %v11223_v54  ;;  %v11236_v54 = vld [vmem:[#allocation3 + $0x367] sm:$0xff] }
 0x87f   :  { %17377 = vmatprep.mubr.msk.f32.mxu1 %vm6788_vm2, %v11224_v57  ;;  %v11237_v57 = vld [vmem:[#allocation3 + $0x37f] sm:$0xff] }
 0x882   :  { %17378 = vmatmul.mubr.msk.f32.gmra.mrb[16].mxu1 %vm6788_vm2, %v11225_v33  ;;  %v11240_v33 = vld [vmem:[#allocation3 + $0x3f7] sm:$0xff] }
 0x883   :  { %17380 = vmatprep.mubr.msk.f32.mxu1 %vm6788_vm2, %v11226_v15  ;;  %v11241_v15 = vld [vmem:[#allocation3 + $0x40f] sm:$0xff] }
 0x886   :  { %17381 = vmatmul.mubr.msk.f32.gmra.mrb[18].mxu1 %vm6788_vm2, %v11227_v63  ;;  %v11242_v63 = vld [vmem:[#allocation3 + $0x427] sm:$0xff] }
 0x887   :  { %17383 = vmatprep.mubr.msk.f32.mxu1 %vm6788_vm2, %v11228_v48  ;;  %v11243_v48 = vld [vmem:[#allocation3 + $0x43f] sm:$0xff] }
 0x88a   :  { %17384 = vmatmul.mubr.msk.f32.gmra.mrb[20].mxu1 %vm6788_vm2, %v11229_v8  ;;  %v11244_v8 = vld [vmem:[#allocation3 + $0x457] sm:$0xff] }
 0x88b   :  { %17386 = vmatprep.mubr.msk.f32.mxu1 %vm6788_vm2, %v22044_v59  ;;  %v11239_v59 = vld [vmem:[#allocation3 + $0x3af] sm:$0xff] }
 0x88e   :  { %17387 = vmatmul.mubr.msk.f32.gmra.mrb[22].mxu1 %vm6788_vm2, %v11231_v58  ;;  %v11245_v58 = vld [vmem:[#allocation3 + $0x46f] sm:$0xff] }
 0x88f   :  { %17389 = vmatprep.mubr.msk.f32.mxu1 %vm6788_vm2, %v11232_v9  ;;  %v11248_v9 = vld [vmem:[#allocation3 + $0x4e7] sm:$0xff] }
 0x892   :  { %17390 = vmatmul.mubr.msk.f32.gmra.mrb[24].mxu1 %vm6788_vm2, %v11233_v21  ;;  %v11249_v21 = vld [vmem:[#allocation3 + $0x4ff] sm:$0xff] }
 0x893   :  { %17392 = vmatprep.mubr.msk.f32.mxu1 %vm6788_vm2, %v11234_v53  ;;  %v11250_v53 = vld [vmem:[#allocation3 + $0x517] sm:$0xff] }
 0x896   :  { %17393 = vmatmul.mubr.msk.f32.gmra.mrb[26].mxu1 %vm6788_vm2, %v11235_v43  ;;  %v11251_v43 = vld [vmem:[#allocation3 + $0x52f] sm:$0xff] }
 0x897   :  { %17395 = vmatprep.mubr.msk.f32.mxu1 %vm6788_vm2, %v11236_v54  ;;  %v11252_v54 = vld [vmem:[#allocation3 + $0x547] sm:$0xff] }
 0x89a   :  { %17396 = vmatmul.mubr.msk.f32.gmra.mrb[28].mxu1 %vm6788_vm2, %v11237_v57  ;;  %v11253_v57 = vld [vmem:[#allocation3 + $0x55f] sm:$0xff] }
 0x89b   :  { %17398 = vmatprep.mubr.msk.f32.mxu1 %vm6788_vm2, %v22062_v60  ;;  %v11247_v60 = vld [vmem:[#allocation3 + $0x49f] sm:$0xff] }
 0x89e   :  { %17399 = vmatmul.mubr.msk.f32.gmra.mrb[30].mxu1 %vm6788_vm2, %v11239_v59  ;;  %v11256_v59 = vld [vmem:[#allocation3 + $0x5d7] sm:$0xff] }
 0x89f   :  { %17401 = vmatprep.mubr.msk.f32.mxu1 %vm6788_vm2, %v11240_v33  ;;  %v11257_v33 = vld [vmem:[#allocation3 + $0x5ef] sm:$0xff] }
 0x8a2   :  { %17402 = vmatmul.mubr.msk.f32.gmra.mrb[32].mxu1 %vm6788_vm2, %v11241_v15  ;;  %v11258_v15 = vld [vmem:[#allocation3 + $0x607] sm:$0xff] }
 0x8a3   :  { %17404 = vmatprep.mubr.msk.f32.mxu1 %vm6788_vm2, %v11242_v63  ;;  %v11259_v63 = vld [vmem:[#allocation3 + $0x61f] sm:$0xff] }
 0x8a6   :  { %17405 = vmatmul.mubr.msk.f32.gmra.mrb[34].mxu1 %vm6788_vm2, %v11243_v48  ;;  %v11260_v48 = vld [vmem:[#allocation3 + $0x637] sm:$0xff] }
 0x8a7   :  { %17407 = vmatprep.mubr.msk.f32.mxu1 %vm6788_vm2, %v11244_v8  ;;  %v11261_v8 = vld [vmem:[#allocation3 + $0x64f] sm:$0xff] }
 0x8aa   :  { %17408 = vmatmul.mubr.msk.f32.gmra.mrb[36].mxu1 %vm6788_vm2, %v11245_v58  ;;  %v11264_v58 = vld [vmem:[#allocation3 + $0x6c7] sm:$0xff] }
 0x8ab   :  { %17410 = vmatprep.mubr.msk.f32.mxu1 %vm6788_vm2, %v22080_v61  ;;  %v11255_v61 = vld [vmem:[#allocation3 + $0x58f] sm:$0xff] }
 0x8ae   :  { %17411 = vmatmul.mubr.msk.f32.gmra.mrb[38].mxu1 %vm6788_vm2, %v11247_v60  ;;  %v11265_v60 = vld [vmem:[#allocation3 + $0x6df] sm:$0xff] }
 0x8af   :  { %17413 = vmatprep.mubr.msk.f32.mxu1 %vm6788_vm2, %v11248_v9  ;;  %v11266_v9 = vld [vmem:[#allocation3 + $0x6f7] sm:$0xff] }
 0x8b2   :  { %17414 = vmatmul.mubr.msk.f32.gmra.mrb[40].mxu1 %vm6788_vm2, %v11249_v21  ;;  %v11267_v21 = vld [vmem:[#allocation3 + $0x70f] sm:$0xff] }
 0x8b3   :  { %17416 = vmatprep.mubr.msk.f32.mxu1 %vm6788_vm2, %v11250_v53  ;;  %v11268_v53 = vld [vmem:[#allocation3 + $0x727] sm:$0xff] }
 0x8b6   :  { %17417 = vmatmul.mubr.msk.f32.gmra.mrb[42].mxu1 %vm6788_vm2, %v11251_v43  ;;  %v11269_v43 = vld [vmem:[#allocation3 + $0x73f] sm:$0xff] }
 0x8b7   :  { %17419 = vmatprep.mubr.msk.f32.mxu1 %vm6788_vm2, %v11252_v54  ;;  %v23548_v54 = vld [vmem:[#allocation10_spill] sm:$0xff] }
 0x8ba   :  { %17420 = vmatmul.mubr.msk.f32.gmra.mrb[44].mxu1 %vm6788_vm2, %v11253_v57  ;;  %v12645_v57 = vld [vmem:[#allocation3 + $0x2c1] sm:$0xff] }
 0x8bb   :  { %17422 = vmatprep.mubr.msk.f32.mxu1 %vm6788_vm2, %v22098_v19  ;;  %v11263_v19 = vld [vmem:[#allocation3 + $0x67f] sm:$0xff] }
 0x8be   :  { %17423 = vmatmul.mubr.msk.f32.gmra.mrb[46].mxu1 %vm6788_vm2, %v11255_v61  ;;  %v12646_v61 = vld [vmem:[#allocation3 + $0x309] sm:$0xff] }
 0x8bf   :  { %17425 = vmatprep.mubr.msk.f32.mxu1 %vm6788_vm2, %v11256_v59  ;;  %v12647_v59 = vld [vmem:[#allocation3 + $0x321] sm:$0xff] }
 0x8c2   :  { %17426 = vmatmul.mubr.msk.f32.gmra.mrb[48].mxu1 %vm6788_vm2, %v11257_v33  ;;  %v12648_v33 = vld [vmem:[#allocation3 + $0x339] sm:$0xff] }
 0x8c3   :  { %17428 = vmatprep.mubr.msk.f32.mxu1 %vm6788_vm2, %v11258_v15  ;;  %v12649_v15 = vld [vmem:[#allocation3 + $0x351] sm:$0xff] }
 0x8c6   :  { %17429 = vmatmul.mubr.msk.f32.gmra.mrb[50].mxu1 %vm6788_vm2, %v11259_v63  ;;  %v12650_v63 = vld [vmem:[#allocation3 + $0x369] sm:$0xff] }
 0x8c7   :  { %17431 = vmatprep.mubr.msk.f32.mxu1 %vm6788_vm2, %v11260_v48  ;;  %v12651_v48 = vld [vmem:[#allocation3 + $0x381] sm:$0xff] }
 0x8ca   :  { %17432 = vmatmul.mubr.msk.f32.gmra.mrb[52].mxu1 %vm6788_vm2, %v11261_v8  ;;  %v23549_v8 = vld [vmem:[#allocation11_spill] sm:$0xff] }
 0x8cb   :  { %17434 = vmatprep.mubr.msk.f32.mxu1 %vm6788_vm2, %v22116_v31  ;;  %v11271_v31 = vld [vmem:[#allocation3 + $0x76f] sm:$0xff] }
 0x8ce   :  { %17435 = vmatmul.mubr.msk.f32.gmra.mrb[54].mxu1 %vm6788_vm2, %v11263_v19  ;;  %v12653_v19 = vld [vmem:[#allocation3 + $0x3b1] sm:$0xff] }
 0x8cf   :  { %17437 = vmatprep.mubr.msk.f32.mxu1 %vm6788_vm2, %v11264_v58  ;;  %v12654_v58 = vld [vmem:[#allocation3 + $0x3f9] sm:$0xff] }
 0x8d2   :  { %17438 = vmatmul.mubr.msk.f32.gmra.mrb[56].mxu1 %vm6788_vm2, %v11265_v60  ;;  %v12655_v60 = vld [vmem:[#allocation3 + $0x411] sm:$0xff] }
 0x8d3   :  { %17440 = vmatprep.mubr.msk.f32.mxu1 %vm6788_vm2, %v11266_v9  ;;  %v12656_v9 = vld [vmem:[#allocation3 + $0x429] sm:$0xff] }
 0x8d6   :  { %17441 = vmatmul.mubr.msk.f32.gmra.mrb[58].mxu1 %vm6788_vm2, %v11267_v21  ;;  %v12657_v21 = vld [vmem:[#allocation3 + $0x441] sm:$0xff] }
 0x8d7   :  { %17443 = vmatprep.mubr.msk.f32.mxu1 %vm6788_vm2, %v11268_v53  ;;  %v12658_v53 = vld [vmem:[#allocation3 + $0x459] sm:$0xff] }
 0x8da   :  { %17444 = vmatmul.mubr.msk.f32.gmra.mrb[60].mxu1 %vm6788_vm2, %v11269_v43  ;;  %v12659_v43 = vld [vmem:[#allocation3 + $0x471] sm:$0xff] }
 0x8db   :  { %17446 = vmatprep.mubr.msk.f32.mxu1 %vm6788_vm2, %v22134_v0  ;;  %v11922_v0 = vld [vmem:[#allocation3 + $0xe0] sm:$0xff] }
 0x8de   :  { %17447 = vmatmul.mubr.msk.f32.gmra.mrb[62].mxu1 %vm6788_vm2, %v11271_v31  ;;  %v23550_v31 = vld [vmem:[#allocation12_spill] sm:$0xff] }
 0x8df   :  { %17451 = vmatprep.mubr.msk.f32.mxu1 %vm6788_vm2, %v22139_v55  ;;  %v11930_v55 = vld [vmem:[#allocation3 + $0x1d0] sm:$0xff] }
 0x8e2   :  { %17452 = vmatmul.mubr.msk.f32.vlgmr.msra.gmra.mrb[0].mxu1 %vm6788_vm2, %v22148_v23  ;;  %v11938_v23 = vld [vmem:[#allocation3 + $0x2c0] sm:$0xff] }
 0x8e3   :  { %17548 = vmatpush3.msra.mxu1 %v22532_v4  ;;  %17454 = vmatprep.mubr.msk.f32.mxu1 %vm6788_vm2, %v22154_v28  ;;  %v11946_v28 = vld [vmem:[#allocation3 + $0x3b0] sm:$0xff] }
 0x8e4   :  { %v12643_v4 = vld [vmem:[#allocation3 + $0x291] sm:$0xff] }
 0x8e6   :  { %17455 = vmatmul.mubr.msk.f32.gmra.mrb[2].mxu1 %vm6788_vm2, %v22158_v56  ;;  %v11954_v56 = vld [vmem:[#allocation3 + $0x4a0] sm:$0xff] }
 0x8e7   :  { %17457 = vmatprep.mubr.msk.f32.mxu1 %vm6788_vm2, %v22162_v39  ;;  %v11962_v39 = vld [vmem:[#allocation3 + $0x590] sm:$0xff] }
 0x8ea   :  { %17458 = vmatmul.mubr.msk.f32.gmra.mrb[4].mxu1 %vm6788_vm2, %v22166_v46  ;;  %v23532_v46 = vld [vmem:[#allocation59_spill] sm:$0xff] }
 0x8eb   :  { %17460 = vmatprep.mubr.msk.f32.mxu1 %vm6788_vm2, %v22170_v2  ;;  %v23533_v2 = vld [vmem:[#allocation60_spill] sm:$0xff] }
 0x8ee   :  { %17461 = vmatmul.mubr.msk.f32.gmra.mrb[6].mxu1 %vm6788_vm2, %v11922_v0  ;;  %v12661_v0 = vld [vmem:[#allocation3 + $0x4a1] sm:$0xff] }
 0x8ef   :  { %17463 = vmatprep.mubr.msk.f32.mxu1 %vm6788_vm2, %v22175_v5  ;;  %v23534_v5 = vld [vmem:[#allocation61_spill] sm:$0xff] }
 0x8f2   :  { %17464 = vmatmul.mubr.msk.f32.gmra.mrb[8].mxu1 %vm6788_vm2, %v22179_v12  ;;  %v23535_v12 = vld [vmem:[#allocation62_spill] sm:$0xff] }
 0x8f3   :  { %17466 = vmatprep.mubr.msk.f32.mxu1 %vm6788_vm2, %v22183_v47  ;;  %v23536_v47 = vld [vmem:[#allocation63_spill] sm:$0xff] }
 0x8f6   :  { %17467 = vmatmul.mubr.msk.f32.gmra.mrb[10].mxu1 %vm6788_vm2, %v22187_v1  ;;  %v23537_v1 = vld [vmem:[#allocation64_spill] sm:$0xff] }
 0x8f7   :  { %17469 = vmatprep.mubr.msk.f32.mxu1 %vm6788_vm2, %v22191_v37  ;;  %v23538_v37 = vld [vmem:[#allocation65_spill] sm:$0xff] }
 0x8fa   :  { %17470 = vmatmul.mubr.msk.f32.gmra.mrb[12].mxu1 %vm6788_vm2, %v22195_v3  ;;  %v11970_v3 = vld [vmem:[#allocation3 + $0x680] sm:$0xff] }
 0x8fb   :  { %17472 = vmatprep.mubr.msk.f32.mxu1 %vm6788_vm2, %v22199_v6  ;;  %v23539_v6 = vld [vmem:[#allocation66_spill] sm:$0xff] }
 0x8fe   :  { %17473 = vmatmul.mubr.msk.f32.gmra.mrb[14].mxu1 %vm6788_vm2, %v11930_v55  ;;  %v12662_v55 = vld [vmem:[#allocation3 + $0x4e9] sm:$0xff] }
 0x8ff   :  { %17475 = vmatprep.mubr.msk.f32.mxu1 %vm6788_vm2, %v22204_v10  ;;  %v23540_v10 = vld [vmem:[#allocation67_spill] sm:$0xff] }
 0x902   :  { %17476 = vmatmul.mubr.msk.f32.gmra.mrb[16].mxu1 %vm6788_vm2, %v22208_v13  ;;  %v23541_v13 = vld [vmem:[#allocation68_spill] sm:$0xff] }
 0x903   :  { %17478 = vmatprep.mubr.msk.f32.mxu1 %vm6788_vm2, %v22212_v14  ;;  %v23542_v14 = vld [vmem:[#allocation4_spill] sm:$0xff] }
 0x906   :  { %17479 = vmatmul.mubr.msk.f32.gmra.mrb[18].mxu1 %vm6788_vm2, %v22216_v16  ;;  %v23543_v16 = vld [vmem:[#allocation5_spill] sm:$0xff] }
 0x907   :  { %17481 = vmatprep.mubr.msk.f32.mxu1 %vm6788_vm2, %v22220_v17  ;;  %v23544_v17 = vld [vmem:[#allocation6_spill] sm:$0xff] }
 0x90a   :  { %17482 = vmatmul.mubr.msk.f32.gmra.mrb[20].mxu1 %vm6788_vm2, %v22224_v18  ;;  %v23545_v18 = vld [vmem:[#allocation7_spill] sm:$0xff] }
 0x90b   :  { %17484 = vmatprep.mubr.msk.f32.mxu1 %vm6788_vm2, %v22228_v20  ;;  %v11978_v20 = vld [vmem:[#allocation3 + $0x770] sm:$0xff] }
 0x90e   :  { %17485 = vmatmul.mubr.msk.f32.gmra.mrb[22].mxu1 %vm6788_vm2, %v11938_v23  ;;  %v12663_v23 = vld [vmem:[#allocation3 + $0x501] sm:$0xff] }
 0x90f   :  { %17487 = vmatprep.mubr.msk.f32.mxu1 %vm6788_vm2, %v22233_v24  ;;  %v12622_v24 = vld [vmem:[#allocation3 + $0x39] sm:$0xff] }
 0x912   :  { %17488 = vmatmul.mubr.msk.f32.gmra.mrb[24].mxu1 %vm6788_vm2, %v22237_v25  ;;  %v12623_v25 = vld [vmem:[#allocation3 + $0x51] sm:$0xff] }
 0x913   :  { %17490 = vmatprep.mubr.msk.f32.mxu1 %vm6788_vm2, %v22241_v26  ;;  %v12624_v26 = vld [vmem:[#allocation3 + $0x69] sm:$0xff] }
 0x916   :  { %17491 = vmatmul.mubr.msk.f32.gmra.mrb[26].mxu1 %vm6788_vm2, %v22245_v27  ;;  %v12625_v27 = vld [vmem:[#allocation3 + $0x81] sm:$0xff] }
 0x917   :  { %17493 = vmatprep.mubr.msk.f32.mxu1 %vm6788_vm2, %v22249_v29  ;;  %v12626_v29 = vld [vmem:[#allocation3 + $0x99] sm:$0xff] }
 0x91a   :  { %17494 = vmatmul.mubr.msk.f32.gmra.mrb[28].mxu1 %vm6788_vm2, %v22253_v30  ;;  %v12627_v30 = vld [vmem:[#allocation3 + $0xb1] sm:$0xff] }
 0x91b   :  { %17496 = vmatprep.mubr.msk.f32.mxu1 %vm6788_vm2, %v22257_v32  ;;  %v23546_v32 = vld [vmem:[#allocation8_spill] sm:$0xff] }
 0x91e   :  { %17497 = vmatmul.mubr.msk.f32.gmra.mrb[30].mxu1 %vm6788_vm2, %v11946_v28  ;;  %v12664_v28 = vld [vmem:[#allocation3 + $0x519] sm:$0xff] }
 0x91f   :  { %17499 = vmatprep.mubr.msk.f32.mxu1 %vm6788_vm2, %v22262_v35  ;;  %v12629_v35 = vld [vmem:[#allocation3 + $0xe1] sm:$0xff] }
 0x922   :  { %17500 = vmatmul.mubr.msk.f32.gmra.mrb[32].mxu1 %vm6788_vm2, %v22266_v36  ;;  %v12630_v36 = vld [vmem:[#allocation3 + $0x129] sm:$0xff] }
 0x923   :  { %17502 = vmatprep.mubr.msk.f32.mxu1 %vm6788_vm2, %v22270_v38  ;;  %v12631_v38 = vld [vmem:[#allocation3 + $0x141] sm:$0xff] }
 0x926   :  { %17503 = vmatmul.mubr.msk.f32.gmra.mrb[34].mxu1 %vm6788_vm2, %v22274_v40  ;;  %v12632_v40 = vld [vmem:[#allocation3 + $0x159] sm:$0xff] }
 0x927   :  { %17505 = vmatprep.mubr.msk.f32.mxu1 %vm6788_vm2, %v22278_v41  ;;  %v12633_v41 = vld [vmem:[#allocation3 + $0x171] sm:$0xff] }
 0x92a   :  { %17506 = vmatmul.mubr.msk.f32.gmra.mrb[36].mxu1 %vm6788_vm2, %v22282_v42  ;;  %v12634_v42 = vld [vmem:[#allocation3 + $0x189] sm:$0xff] }
 0x92b   :  { %17508 = vmatprep.mubr.msk.f32.mxu1 %vm6788_vm2, %v22286_v45  ;;  %v12635_v45 = vld [vmem:[#allocation3 + $0x1a1] sm:$0xff] }
 0x92e   :  { %17509 = vmatmul.mubr.msk.f32.gmra.mrb[38].mxu1 %vm6788_vm2, %v11954_v56  ;;  %v12665_v56 = vld [vmem:[#allocation3 + $0x531] sm:$0xff] }
 0x92f   :  { %17511 = vmatprep.mubr.msk.f32.mxu1 %vm6788_vm2, %v22291_v49  ;;  %v23547_v49 = vld [vmem:[#allocation9_spill] sm:$0xff] }
 0x932   :  { %17512 = vmatmul.mubr.msk.f32.gmra.mrb[40].mxu1 %vm6788_vm2, %v22295_v50  ;;  %v12637_v50 = vld [vmem:[#allocation3 + $0x1d1] sm:$0xff] }
 0x933   :  { %17514 = vmatprep.mubr.msk.f32.mxu1 %vm6788_vm2, %v22299_v51  ;;  %v12638_v51 = vld [vmem:[#allocation3 + $0x219] sm:$0xff] }
 0x936   :  { %17515 = vmatmul.mubr.msk.f32.gmra.mrb[42].mxu1 %vm6788_vm2, %v22303_v44  ;;  %v12639_v44 = vld [vmem:[#allocation3 + $0x231] sm:$0xff] }
 0x937   :  { %17517 = vmatprep.mubr.msk.f32.mxu1 %vm6788_vm2, %v22307_v52  ;;  %v12640_v52 = vld [vmem:[#allocation3 + $0x249] sm:$0xff] }
 0x93a   :  { %17518 = vmatmul.mubr.msk.f32.gmra.mrb[44].mxu1 %vm6788_vm2, %v22311_v7  ;;  %v12641_v7 = vld [vmem:[#allocation3 + $0x261] sm:$0xff] }
 0x93b   :  { %17520 = vmatprep.mubr.msk.f32.mxu1 %vm6788_vm2, %v22315_v62  ;;  %v12642_v62 = vld [vmem:[#allocation3 + $0x279] sm:$0xff] }
 0x93e   :  { %17521 = vmatmul.mubr.msk.f32.gmra.mrb[46].mxu1 %vm6788_vm2, %v11962_v39  ;;  %v12666_v39 = vld [vmem:[#allocation3 + $0x549] sm:$0xff] }
 0x93f   :  { %17523 = vmatprep.mubr.msk.f32.mxu1 %vm6788_vm2, %v23532_v46  ;;  %v12667_v46 = vld [vmem:[#allocation3 + $0x561] sm:$0xff] }
 0x942   :  { %17524 = vmatmul.mubr.msk.f32.gmra.mrb[48].mxu1 %vm6788_vm2, %v23533_v2  ;;  %v12669_v2 = vld [vmem:[#allocation3 + $0x591] sm:$0xff] }
 0x943   :  { %17526 = vmatprep.mubr.msk.f32.mxu1 %vm6788_vm2, %v23534_v5  ;;  %v12670_v5 = vld [vmem:[#allocation3 + $0x5d9] sm:$0xff] }
 0x946   :  { %17527 = vmatmul.mubr.msk.f32.gmra.mrb[50].mxu1 %vm6788_vm2, %v23535_v12  ;;  %v12671_v12 = vld [vmem:[#allocation3 + $0x5f1] sm:$0xff] }
 0x947   :  { %17529 = vmatprep.mubr.msk.f32.mxu1 %vm6788_vm2, %v23536_v47  ;;  %v12672_v47 = vld [vmem:[#allocation3 + $0x609] sm:$0xff] }
 0x94a   :  { %17530 = vmatmul.mubr.msk.f32.gmra.mrb[52].mxu1 %vm6788_vm2, %v23537_v1  ;;  %v12673_v1 = vld [vmem:[#allocation3 + $0x621] sm:$0xff] }
 0x94b   :  { %17532 = vmatprep.mubr.msk.f32.mxu1 %vm6788_vm2, %v23538_v37  ;;  %v12674_v37 = vld [vmem:[#allocation3 + $0x639] sm:$0xff] }
 0x94e   :  { %17533 = vmatmul.mubr.msk.f32.gmra.mrb[54].mxu1 %vm6788_vm2, %v11970_v3  ;;  %v12675_v3 = vld [vmem:[#allocation3 + $0x651] sm:$0xff] }
 0x94f   :  { %17535 = vmatprep.mubr.msk.f32.mxu1 %vm6788_vm2, %v23539_v6  ;;  %v12678_v6 = vld [vmem:[#allocation3 + $0x6c9] sm:$0xff] }
 0x952   :  { %17536 = vmatmul.mubr.msk.f32.gmra.mrb[56].mxu1 %vm6788_vm2, %v23540_v10  ;;  %v12679_v10 = vld [vmem:[#allocation3 + $0x6e1] sm:$0xff] }
 0x953   :  { %17538 = vmatprep.mubr.msk.f32.mxu1 %vm6788_vm2, %v23541_v13  ;;  %v12680_v13 = vld [vmem:[#allocation3 + $0x6f9] sm:$0xff] }
 0x956   :  { %17539 = vmatmul.mubr.msk.f32.gmra.mrb[58].mxu1 %vm6788_vm2, %v23542_v14  ;;  %v12681_v14 = vld [vmem:[#allocation3 + $0x711] sm:$0xff] }
 0x957   :  { %17541 = vmatprep.mubr.msk.f32.mxu1 %vm6788_vm2, %v23543_v16  ;;  %v12682_v16 = vld [vmem:[#allocation3 + $0x729] sm:$0xff] }
 0x95a   :  { %17542 = vmatmul.mubr.msk.f32.gmra.mrb[60].mxu1 %vm6788_vm2, %v23544_v17  ;;  %v12683_v17 = vld [vmem:[#allocation3 + $0x741] sm:$0xff] }
 0x95b   :  { %17544 = vmatprep.mubr.msk.f32.mxu1 %vm6788_vm2, %v23545_v18  ;;  %v22803_v18 = vld [vmem:[%s23129_s4] ss:$0 sm:$0xff] }
 0x95e   :  { %17545 = vmatmul.mubr.msk.f32.gmra.mrb[62].mxu1 %vm6788_vm2, %v11978_v20 }
 0x95f   :  { %17549 = vmatprep.mubr.msk.f32.mxu1 %vm6788_vm2, %v12622_v24 }
 0x962   :  { %17550 = vmatmul.mubr.msk.f32.vlgmr.msra.gmra.mrb[0].mxu1 %vm6788_vm2, %v12623_v25 }
 0x963   :  { %17552 = vmatprep.mubr.msk.f32.mxu1 %vm6788_vm2, %v12624_v26 }
 0x966   :  { %17553 = vmatmul.mubr.msk.f32.gmra.mrb[2].mxu1 %vm6788_vm2, %v12625_v27 }
 0x967   :  { %17555 = vmatprep.mubr.msk.f32.mxu1 %vm6788_vm2, %v12626_v29 }
 0x96a   :  { %17556 = vmatmul.mubr.msk.f32.gmra.mrb[4].mxu1 %vm6788_vm2, %v12627_v30 }
 0x96b   :  { %17558 = vmatprep.mubr.msk.f32.mxu1 %vm6788_vm2, %v23546_v32 }
 0x96e   :  { %17559 = vmatmul.mubr.msk.f32.gmra.mrb[6].mxu1 %vm6788_vm2, %v12629_v35 }
 0x96f   :  { %17561 = vmatprep.mubr.msk.f32.mxu1 %vm6788_vm2, %v12630_v36 }
 0x972   :  { %17562 = vmatmul.mubr.msk.f32.gmra.mrb[8].mxu1 %vm6788_vm2, %v12631_v38 }
 0x973   :  { %17564 = vmatprep.mubr.msk.f32.mxu1 %vm6788_vm2, %v12632_v40 }
 0x976   :  { %17565 = vmatmul.mubr.msk.f32.gmra.mrb[10].mxu1 %vm6788_vm2, %v12633_v41 }
 0x977   :  { %17567 = vmatprep.mubr.msk.f32.mxu1 %vm6788_vm2, %v12634_v42 }
 0x97a   :  { %17568 = vmatmul.mubr.msk.f32.gmra.mrb[12].mxu1 %vm6788_vm2, %v12635_v45 }
 0x97b   :  { %17570 = vmatprep.mubr.msk.f32.mxu1 %vm6788_vm2, %v23547_v49 }
 0x97e   :  { %17571 = vmatmul.mubr.msk.f32.gmra.mrb[14].mxu1 %vm6788_vm2, %v12637_v50 }
 0x97f   :  { %17573 = vmatprep.mubr.msk.f32.mxu1 %vm6788_vm2, %v12638_v51 }
 0x982   :  { %17574 = vmatmul.mubr.msk.f32.gmra.mrb[16].mxu1 %vm6788_vm2, %v12639_v44 }
 0x983   :  { %17576 = vmatprep.mubr.msk.f32.mxu1 %vm6788_vm2, %v12640_v52 }
 0x986   :  { %17577 = vmatmul.mubr.msk.f32.gmra.mrb[18].mxu1 %vm6788_vm2, %v12641_v7 }
 0x987   :  { %17579 = vmatprep.mubr.msk.f32.mxu1 %vm6788_vm2, %v12642_v62 }
 0x98a   :  { %17580 = vmatmul.mubr.msk.f32.gmra.mrb[20].mxu1 %vm6788_vm2, %v12643_v4 }
 0x98b   :  { %17582 = vmatprep.mubr.msk.f32.mxu1 %vm6788_vm2, %v23548_v54 }
 0x98e   :  { %17583 = vmatmul.mubr.msk.f32.gmra.mrb[22].mxu1 %vm6788_vm2, %v12645_v57 }
 0x98f   :  { %17585 = vmatprep.mubr.msk.f32.mxu1 %vm6788_vm2, %v12646_v61 }
 0x992   :  { %17586 = vmatmul.mubr.msk.f32.gmra.mrb[24].mxu1 %vm6788_vm2, %v12647_v59 }
 0x993   :  { %17588 = vmatprep.mubr.msk.f32.mxu1 %vm6788_vm2, %v12648_v33 }
 0x996   :  { %17589 = vmatmul.mubr.msk.f32.gmra.mrb[26].mxu1 %vm6788_vm2, %v12649_v15 }
 0x997   :  { %17591 = vmatprep.mubr.msk.f32.mxu1 %vm6788_vm2, %v12650_v63 }
 0x99a   :  { %17592 = vmatmul.mubr.msk.f32.gmra.mrb[28].mxu1 %vm6788_vm2, %v12651_v48 }
 0x99b   :  { %17594 = vmatprep.mubr.msk.f32.mxu1 %vm6788_vm2, %v23549_v8 }
 0x99e   :  { %17595 = vmatmul.mubr.msk.f32.gmra.mrb[30].mxu1 %vm6788_vm2, %v12653_v19 }
 0x99f   :  { %17597 = vmatprep.mubr.msk.f32.mxu1 %vm6788_vm2, %v12654_v58 }
 0x9a2   :  { %17598 = vmatmul.mubr.msk.f32.gmra.mrb[32].mxu1 %vm6788_vm2, %v12655_v60 }
 0x9a3   :  { %17600 = vmatprep.mubr.msk.f32.mxu1 %vm6788_vm2, %v12656_v9 }
 0x9a6   :  { %17601 = vmatmul.mubr.msk.f32.gmra.mrb[34].mxu1 %vm6788_vm2, %v12657_v21 }
 0x9a7   :  { %17603 = vmatprep.mubr.msk.f32.mxu1 %vm6788_vm2, %v12658_v53 }
 0x9aa   :  { %17604 = vmatmul.mubr.msk.f32.gmra.mrb[36].mxu1 %vm6788_vm2, %v12659_v43 }
 0x9ab   :  { %17606 = vmatprep.mubr.msk.f32.mxu1 %vm6788_vm2, %v23550_v31 }
 0x9ae   :  { %17607 = vmatmul.mubr.msk.f32.gmra.mrb[38].mxu1 %vm6788_vm2, %v12661_v0 }
 0x9af   :  { %17609 = vmatprep.mubr.msk.f32.mxu1 %vm6788_vm2, %v12662_v55 }
 0x9b2   :  { %17610 = vmatmul.mubr.msk.f32.gmra.mrb[40].mxu1 %vm6788_vm2, %v12663_v23 }
 0x9b3   :  { %17612 = vmatprep.mubr.msk.f32.mxu1 %vm6788_vm2, %v12664_v28 }
 0x9b6   :  { %17613 = vmatmul.mubr.msk.f32.gmra.mrb[42].mxu1 %vm6788_vm2, %v12665_v56 }
 0x9b7   :  { %17615 = vmatprep.mubr.msk.f32.mxu1 %vm6788_vm2, %v12666_v39 }
 0x9ba   :  { %17616 = vmatmul.mubr.msk.f32.gmra.mrb[44].mxu1 %vm6788_vm2, %v12667_v46 }
 0x9bb   :  { %17618 = vmatprep.mubr.msk.f32.mxu1 %vm6788_vm2, %v22488_v34  ;;  %v12677_v34 = vld [vmem:[#allocation3 + $0x681] sm:$0xff] }
 0x9be   :  { %17619 = vmatmul.mubr.msk.f32.gmra.mrb[46].mxu1 %vm6788_vm2, %v12669_v2 }
 0x9bf   :  { %17621 = vmatprep.mubr.msk.f32.mxu1 %vm6788_vm2, %v12670_v5 }
 0x9c2   :  { %17622 = vmatmul.mubr.msk.f32.gmra.mrb[48].mxu1 %vm6788_vm2, %v12671_v12 }
 0x9c3   :  { %17624 = vmatprep.mubr.msk.f32.mxu1 %vm6788_vm2, %v12672_v47 }
 0x9c6   :  { %17625 = vmatmul.mubr.msk.f32.gmra.mrb[50].mxu1 %vm6788_vm2, %v12673_v1 }
 0x9c7   :  { %17627 = vmatprep.mubr.msk.f32.mxu1 %vm6788_vm2, %v12674_v37 }
 0x9ca   :  { %17628 = vmatmul.mubr.msk.f32.gmra.mrb[52].mxu1 %vm6788_vm2, %v12675_v3 }
 0x9cb   :  { %17630 = vmatprep.mubr.msk.f32.mxu1 %vm6788_vm2, %v22506_v22  ;;  %v12685_v22 = vld [vmem:[#allocation3 + $0x771] sm:$0xff] }
 0x9ce   :  { %17631 = vmatmul.mubr.msk.f32.gmra.mrb[54].mxu1 %vm6788_vm2, %v12677_v34 }
 0x9cf   :  { %17633 = vmatprep.mubr.msk.f32.mxu1 %vm6788_vm2, %v12678_v6 }
 0x9d2   :  { %17634 = vmatmul.mubr.msk.f32.gmra.mrb[56].mxu1 %vm6788_vm2, %v12679_v10 }
 0x9d3   :  { %17636 = vmatprep.mubr.msk.f32.mxu1 %vm6788_vm2, %v12680_v13 }
 0x9d6   :  { %17637 = vmatmul.mubr.msk.f32.gmra.mrb[58].mxu1 %vm6788_vm2, %v12681_v14 }
 0x9d7   :  { %17639 = vmatprep.mubr.msk.f32.mxu1 %vm6788_vm2, %v12682_v16 }
 0x9da   :  { %17640 = vmatmul.mubr.msk.f32.gmra.mrb[60].mxu1 %vm6788_vm2, %v12683_v17 }
 0x9db   :  { %17642 = vmatprep.mubr.msk.f32.mxu1 %vm6788_vm2, %v22524_v11 }
 0x9de   :  { %17643 = vmatmul.mubr.msk.f32.gmra.mrb[62].mxu1 %vm6788_vm2, %v12685_v22 }
 0xa35   :  { %v17551_v20 = vpop.f32.mrb[0].mxu1 }
 0xa36   :  { %v13337_v24 = vadd.f32 %v17551_v20, %v22803_v18  ;;  %v12946_v25 = vpop.f32.mrb[1].mxu1 }
 0xa37   :  { %v13336_v26 = vadd.f32 %v22803_v18, %v12946_v25 }
 0xa38   :  { %v13401_v27 = vmax.f32 %v13337_v24, 0.0 }
 0xa39   :  { %v13400_v29 = vmax.f32 %v13336_v26, 0.0  ;;  %v17554_v30 = vpop.f32.mrb[2].mxu1 }
 0xa3a   :  { %13465 = vst.msk [vmem:[%s23130_s5 + $0x8] sm:$0xff] %vm6788_vm2, %v13401_v27  ;;  %v13339_v11 = vadd.f32 %v17554_v30, %v22803_v18  ;;  %v12956_v32 = vpop.f32.mrb[3].mxu1 }
 0xa3b   :  { %13464 = vst.msk [vmem:[%s23130_s5] sm:$0xff] %vm6788_vm2, %v13400_v29  ;;  %v13338_v35 = vadd.f32 %v22803_v18, %v12956_v32 }
 0xa3c   :  { %v13403_v36 = vmax.f32 %v13339_v11, 0.0 }
 0xa3d   :  { %v13402_v38 = vmax.f32 %v13338_v35, 0.0  ;;  %v17557_v40 = vpop.f32.mrb[4].mxu1 }
 0xa3e   :  { %13467 = vst.msk [vmem:[%s23130_s5 + $0x18] sm:$0xff] %vm6788_vm2, %v13403_v36  ;;  %v13341_v41 = vadd.f32 %v17557_v40, %v22803_v18  ;;  %v12966_v42 = vpop.f32.mrb[5].mxu1 }
 0xa3f   :  { %13466 = vst.msk [vmem:[%s23130_s5 + $0x10] sm:$0xff] %vm6788_vm2, %v13402_v38  ;;  %v13340_v45 = vadd.f32 %v22803_v18, %v12966_v42 }
 0xa40   :  { %v13405_v49 = vmax.f32 %v13341_v41, 0.0 }
 0xa41   :  { %v13404_v50 = vmax.f32 %v13340_v45, 0.0  ;;  %v17560_v51 = vpop.f32.mrb[6].mxu1 }
 0xa42   :  { %13469 = vst.msk [vmem:[%s23130_s5 + $0x28] sm:$0xff] %vm6788_vm2, %v13405_v49  ;;  %v13343_v44 = vadd.f32 %v17560_v51, %v22803_v18  ;;  %v12976_v52 = vpop.f32.mrb[7].mxu1 }
 0xa43   :  { %13468 = vst.msk [vmem:[%s23130_s5 + $0x20] sm:$0xff] %vm6788_vm2, %v13404_v50  ;;  %v13342_v7 = vadd.f32 %v22803_v18, %v12976_v52 }
 0xa44   :  { %v13407_v62 = vmax.f32 %v13343_v44, 0.0 }
 0xa45   :  { %v13406_v4 = vmax.f32 %v13342_v7, 0.0  ;;  %v17563_v54 = vpop.f32.mrb[8].mxu1 }
 0xa46   :  { %13471 = vst.msk [vmem:[%s23130_s5 + $0x38] sm:$0xff] %vm6788_vm2, %v13407_v62  ;;  %v13345_v57 = vadd.f32 %v17563_v54, %v22803_v18  ;;  %v12986_v61 = vpop.f32.mrb[9].mxu1 }
 0xa47   :  { %13470 = vst.msk [vmem:[%s23130_s5 + $0x30] sm:$0xff] %vm6788_vm2, %v13406_v4  ;;  %v13344_v59 = vadd.f32 %v22803_v18, %v12986_v61 }
 0xa48   :  { %v13409_v33 = vmax.f32 %v13345_v57, 0.0 }
 0xa49   :  { %v13408_v15 = vmax.f32 %v13344_v59, 0.0  ;;  %v17566_v63 = vpop.f32.mrb[10].mxu1 }
 0xa4a   :  { %13473 = vst.msk [vmem:[%s23130_s5 + $0x48] sm:$0xff] %vm6788_vm2, %v13409_v33  ;;  %v13347_v48 = vadd.f32 %v17566_v63, %v22803_v18  ;;  %v12996_v8 = vpop.f32.mrb[11].mxu1 }
 0xa4b   :  { %13472 = vst.msk [vmem:[%s23130_s5 + $0x40] sm:$0xff] %vm6788_vm2, %v13408_v15  ;;  %v13346_v19 = vadd.f32 %v22803_v18, %v12996_v8 }
 0xa4c   :  { %v13411_v58 = vmax.f32 %v13347_v48, 0.0 }
 0xa4d   :  { %v13410_v60 = vmax.f32 %v13346_v19, 0.0  ;;  %v17569_v9 = vpop.f32.mrb[12].mxu1 }
 0xa4e   :  { %13475 = vst.msk [vmem:[%s23130_s5 + $0x58] sm:$0xff] %vm6788_vm2, %v13411_v58  ;;  %v13349_v21 = vadd.f32 %v17569_v9, %v22803_v18  ;;  %v13006_v53 = vpop.f32.mrb[13].mxu1 }
 0xa4f   :  { %13474 = vst.msk [vmem:[%s23130_s5 + $0x50] sm:$0xff] %vm6788_vm2, %v13410_v60  ;;  %v13348_v43 = vadd.f32 %v22803_v18, %v13006_v53 }
 0xa50   :  { %v13413_v31 = vmax.f32 %v13349_v21, 0.0 }
 0xa51   :  { %v13412_v0 = vmax.f32 %v13348_v43, 0.0  ;;  %v17572_v55 = vpop.f32.mrb[14].mxu1 }
 0xa52   :  { %13477 = vst.msk [vmem:[%s23130_s5 + $0x68] sm:$0xff] %vm6788_vm2, %v13413_v31  ;;  %v13351_v23 = vadd.f32 %v17572_v55, %v22803_v18  ;;  %v13016_v28 = vpop.f32.mrb[15].mxu1 }
 0xa53   :  { %13476 = vst.msk [vmem:[%s23130_s5 + $0x60] sm:$0xff] %vm6788_vm2, %v13412_v0  ;;  %v13350_v56 = vadd.f32 %v22803_v18, %v13016_v28 }
 0xa54   :  { %v13415_v39 = vmax.f32 %v13351_v23, 0.0 }
 0xa55   :  { %v13414_v46 = vmax.f32 %v13350_v56, 0.0  ;;  %v17575_v2 = vpop.f32.mrb[16].mxu1 }
 0xa56   :  { %13479 = vst.msk [vmem:[%s23130_s5 + $0x78] sm:$0xff] %vm6788_vm2, %v13415_v39  ;;  %v13353_v5 = vadd.f32 %v17575_v2, %v22803_v18  ;;  %v13026_v12 = vpop.f32.mrb[17].mxu1 }
 0xa57   :  { %13478 = vst.msk [vmem:[%s23130_s5 + $0x70] sm:$0xff] %vm6788_vm2, %v13414_v46  ;;  %v13352_v47 = vadd.f32 %v22803_v18, %v13026_v12 }
 0xa58   :  { %v13417_v1 = vmax.f32 %v13353_v5, 0.0 }
 0xa59   :  { %v13416_v37 = vmax.f32 %v13352_v47, 0.0  ;;  %v17578_v3 = vpop.f32.mrb[18].mxu1 }
 0xa5a   :  { %13481 = vst.msk [vmem:[%s23130_s5 + $0x88] sm:$0xff] %vm6788_vm2, %v13417_v1  ;;  %v13355_v34 = vadd.f32 %v17578_v3, %v22803_v18  ;;  %v13036_v6 = vpop.f32.mrb[19].mxu1 }
 0xa5b   :  { %13480 = vst.msk [vmem:[%s23130_s5 + $0x80] sm:$0xff] %vm6788_vm2, %v13416_v37  ;;  %v13354_v10 = vadd.f32 %v22803_v18, %v13036_v6 }
 0xa5c   :  { %v13419_v13 = vmax.f32 %v13355_v34, 0.0 }
 0xa5d   :  { %v13418_v14 = vmax.f32 %v13354_v10, 0.0  ;;  %v17581_v16 = vpop.f32.mrb[20].mxu1 }
 0xa5e   :  { %13483 = vst.msk [vmem:[%s23130_s5 + $0x98] sm:$0xff] %vm6788_vm2, %v13419_v13  ;;  %v13357_v17 = vadd.f32 %v17581_v16, %v22803_v18  ;;  %v13046_v22 = vpop.f32.mrb[21].mxu1 }
 0xa5f   :  { %13482 = vst.msk [vmem:[%s23130_s5 + $0x90] sm:$0xff] %vm6788_vm2, %v13418_v14  ;;  %v13356_v20 = vadd.f32 %v22803_v18, %v13046_v22 }
 0xa60   :  { %v13421_v24 = vmax.f32 %v13357_v17, 0.0 }
 0xa61   :  { %v13420_v25 = vmax.f32 %v13356_v20, 0.0  ;;  %v17584_v26 = vpop.f32.mrb[22].mxu1 }
 0xa62   :  { %13485 = vst.msk [vmem:[%s23130_s5 + $0xa8] sm:$0xff] %vm6788_vm2, %v13421_v24  ;;  %v13359_v27 = vadd.f32 %v17584_v26, %v22803_v18  ;;  %v13056_v29 = vpop.f32.mrb[23].mxu1 }
 0xa63   :  { %13484 = vst.msk [vmem:[%s23130_s5 + $0xa0] sm:$0xff] %vm6788_vm2, %v13420_v25  ;;  %v13358_v30 = vadd.f32 %v22803_v18, %v13056_v29 }
 0xa64   :  { %v13423_v11 = vmax.f32 %v13359_v27, 0.0 }
 0xa65   :  { %v13422_v32 = vmax.f32 %v13358_v30, 0.0  ;;  %v17587_v35 = vpop.f32.mrb[24].mxu1 }
 0xa66   :  { %13487 = vst.msk [vmem:[%s23130_s5 + $0xb8] sm:$0xff] %vm6788_vm2, %v13423_v11  ;;  %v13361_v36 = vadd.f32 %v17587_v35, %v22803_v18  ;;  %v13066_v38 = vpop.f32.mrb[25].mxu1 }
 0xa67   :  { %13486 = vst.msk [vmem:[%s23130_s5 + $0xb0] sm:$0xff] %vm6788_vm2, %v13422_v32  ;;  %v13360_v40 = vadd.f32 %v22803_v18, %v13066_v38 }
 0xa68   :  { %v13425_v41 = vmax.f32 %v13361_v36, 0.0 }
 0xa69   :  { %v13424_v42 = vmax.f32 %v13360_v40, 0.0  ;;  %v17590_v45 = vpop.f32.mrb[26].mxu1 }
 0xa6a   :  { %13489 = vst.msk [vmem:[%s23130_s5 + $0xc8] sm:$0xff] %vm6788_vm2, %v13425_v41  ;;  %v13363_v49 = vadd.f32 %v17590_v45, %v22803_v18  ;;  %v13076_v50 = vpop.f32.mrb[27].mxu1 }
 0xa6b   :  { %13488 = vst.msk [vmem:[%s23130_s5 + $0xc0] sm:$0xff] %vm6788_vm2, %v13424_v42  ;;  %v13362_v51 = vadd.f32 %v22803_v18, %v13076_v50 }
 0xa6c   :  { %v13427_v44 = vmax.f32 %v13363_v49, 0.0 }
 0xa6d   :  { %v13426_v52 = vmax.f32 %v13362_v51, 0.0  ;;  %v17593_v7 = vpop.f32.mrb[28].mxu1 }
 0xa6e   :  { %13491 = vst.msk [vmem:[%s23130_s5 + $0xd8] sm:$0xff] %vm6788_vm2, %v13427_v44  ;;  %v13365_v62 = vadd.f32 %v17593_v7, %v22803_v18  ;;  %v13086_v4 = vpop.f32.mrb[29].mxu1 }
 0xa6f   :  { %13490 = vst.msk [vmem:[%s23130_s5 + $0xd0] sm:$0xff] %vm6788_vm2, %v13426_v52  ;;  %v13364_v54 = vadd.f32 %v22803_v18, %v13086_v4 }
 0xa70   :  { %v13429_v57 = vmax.f32 %v13365_v62, 0.0 }
 0xa71   :  { %v13428_v61 = vmax.f32 %v13364_v54, 0.0  ;;  %v17596_v59 = vpop.f32.mrb[30].mxu1 }
 0xa72   :  { %13493 = vst.msk [vmem:[%s23130_s5 + $0xe8] sm:$0xff] %vm6788_vm2, %v13429_v57  ;;  %v13367_v33 = vadd.f32 %v17596_v59, %v22803_v18  ;;  %v13096_v15 = vpop.f32.mrb[31].mxu1 }
 0xa73   :  { %13492 = vst.msk [vmem:[%s23130_s5 + $0xe0] sm:$0xff] %vm6788_vm2, %v13428_v61  ;;  %v13366_v63 = vadd.f32 %v22803_v18, %v13096_v15 }
 0xa74   :  { %v13431_v48 = vmax.f32 %v13367_v33, 0.0 }
 0xa75   :  { %v13430_v8 = vmax.f32 %v13366_v63, 0.0  ;;  %v17599_v19 = vpop.f32.mrb[32].mxu1 }
 0xa76   :  { %13495 = vst.msk [vmem:[%s23130_s5 + $0xf8] sm:$0xff] %vm6788_vm2, %v13431_v48  ;;  %v13369_v58 = vadd.f32 %v17599_v19, %v22803_v18  ;;  %v13106_v60 = vpop.f32.mrb[33].mxu1 }
 0xa77   :  { %13494 = vst.msk [vmem:[%s23130_s5 + $0xf0] sm:$0xff] %vm6788_vm2, %v13430_v8  ;;  %v13368_v9 = vadd.f32 %v22803_v18, %v13106_v60 }
 0xa78   :  { %v13433_v21 = vmax.f32 %v13369_v58, 0.0 }
 0xa79   :  { %v13432_v53 = vmax.f32 %v13368_v9, 0.0  ;;  %v17602_v43 = vpop.f32.mrb[34].mxu1 }
 0xa7a   :  { %13497 = vst.msk [vmem:[%s23130_s5 + $0x108] sm:$0xff] %vm6788_vm2, %v13433_v21  ;;  %v13371_v31 = vadd.f32 %v17602_v43, %v22803_v18  ;;  %v13116_v0 = vpop.f32.mrb[35].mxu1 }
 0xa7b   :  { %13496 = vst.msk [vmem:[%s23130_s5 + $0x100] sm:$0xff] %vm6788_vm2, %v13432_v53  ;;  %v13370_v55 = vadd.f32 %v22803_v18, %v13116_v0 }
 0xa7c   :  { %v13435_v23 = vmax.f32 %v13371_v31, 0.0 }
 0xa7d   :  { %v13434_v28 = vmax.f32 %v13370_v55, 0.0  ;;  %v17605_v56 = vpop.f32.mrb[36].mxu1 }
 0xa7e   :  { %13499 = vst.msk [vmem:[%s23130_s5 + $0x118] sm:$0xff] %vm6788_vm2, %v13435_v23  ;;  %v13373_v39 = vadd.f32 %v17605_v56, %v22803_v18  ;;  %v13126_v46 = vpop.f32.mrb[37].mxu1 }
 0xa7f   :  { %13498 = vst.msk [vmem:[%s23130_s5 + $0x110] sm:$0xff] %vm6788_vm2, %v13434_v28  ;;  %v13372_v2 = vadd.f32 %v22803_v18, %v13126_v46 }
 0xa80   :  { %v13437_v5 = vmax.f32 %v13373_v39, 0.0 }
 0xa81   :  { %v13436_v12 = vmax.f32 %v13372_v2, 0.0  ;;  %v17608_v47 = vpop.f32.mrb[38].mxu1 }
 0xa82   :  { %13501 = vst.msk [vmem:[%s23130_s5 + $0x128] sm:$0xff] %vm6788_vm2, %v13437_v5  ;;  %v13375_v1 = vadd.f32 %v17608_v47, %v22803_v18  ;;  %v13136_v37 = vpop.f32.mrb[39].mxu1 }
 0xa83   :  { %13500 = vst.msk [vmem:[%s23130_s5 + $0x120] sm:$0xff] %vm6788_vm2, %v13436_v12  ;;  %v13374_v3 = vadd.f32 %v22803_v18, %v13136_v37 }
 0xa84   :  { %v13439_v34 = vmax.f32 %v13375_v1, 0.0 }
 0xa85   :  { %v13438_v6 = vmax.f32 %v13374_v3, 0.0  ;;  %v17611_v10 = vpop.f32.mrb[40].mxu1 }
 0xa86   :  { %13503 = vst.msk [vmem:[%s23130_s5 + $0x138] sm:$0xff] %vm6788_vm2, %v13439_v34  ;;  %v13377_v13 = vadd.f32 %v17611_v10, %v22803_v18  ;;  %v13146_v14 = vpop.f32.mrb[41].mxu1 }
 0xa87   :  { %13502 = vst.msk [vmem:[%s23130_s5 + $0x130] sm:$0xff] %vm6788_vm2, %v13438_v6  ;;  %v13376_v16 = vadd.f32 %v22803_v18, %v13146_v14 }
 0xa88   :  { %v13441_v17 = vmax.f32 %v13377_v13, 0.0 }
 0xa89   :  { %v13440_v22 = vmax.f32 %v13376_v16, 0.0  ;;  %v17614_v20 = vpop.f32.mrb[42].mxu1 }
 0xa8a   :  { %13505 = vst.msk [vmem:[%s23130_s5 + $0x148] sm:$0xff] %vm6788_vm2, %v13441_v17  ;;  %v13379_v24 = vadd.f32 %v17614_v20, %v22803_v18  ;;  %v13156_v25 = vpop.f32.mrb[43].mxu1 }
 0xa8b   :  { %13504 = vst.msk [vmem:[%s23130_s5 + $0x140] sm:$0xff] %vm6788_vm2, %v13440_v22  ;;  %v13378_v26 = vadd.f32 %v22803_v18, %v13156_v25 }
 0xa8c   :  { %v13443_v27 = vmax.f32 %v13379_v24, 0.0 }
 0xa8d   :  { %v13442_v29 = vmax.f32 %v13378_v26, 0.0  ;;  %v17617_v30 = vpop.f32.mrb[44].mxu1 }
 0xa8e   :  { %13507 = vst.msk [vmem:[%s23130_s5 + $0x158] sm:$0xff] %vm6788_vm2, %v13443_v27  ;;  %v13381_v11 = vadd.f32 %v17617_v30, %v22803_v18  ;;  %v13166_v32 = vpop.f32.mrb[45].mxu1 }
 0xa8f   :  { %13506 = vst.msk [vmem:[%s23130_s5 + $0x150] sm:$0xff] %vm6788_vm2, %v13442_v29  ;;  %v13380_v35 = vadd.f32 %v22803_v18, %v13166_v32 }
 0xa90   :  { %v13445_v36 = vmax.f32 %v13381_v11, 0.0 }
 0xa91   :  { %v13444_v38 = vmax.f32 %v13380_v35, 0.0  ;;  %v17620_v40 = vpop.f32.mrb[46].mxu1 }
 0xa92   :  { %13509 = vst.msk [vmem:[%s23130_s5 + $0x168] sm:$0xff] %vm6788_vm2, %v13445_v36  ;;  %v13383_v41 = vadd.f32 %v17620_v40, %v22803_v18  ;;  %v13176_v42 = vpop.f32.mrb[47].mxu1 }
 0xa93   :  { %13508 = vst.msk [vmem:[%s23130_s5 + $0x160] sm:$0xff] %vm6788_vm2, %v13444_v38  ;;  %v13382_v45 = vadd.f32 %v22803_v18, %v13176_v42 }
 0xa94   :  { %v13447_v49 = vmax.f32 %v13383_v41, 0.0 }
 0xa95   :  { %v13446_v50 = vmax.f32 %v13382_v45, 0.0  ;;  %v17623_v51 = vpop.f32.mrb[48].mxu1 }
 0xa96   :  { %13511 = vst.msk [vmem:[%s23130_s5 + $0x178] sm:$0xff] %vm6788_vm2, %v13447_v49  ;;  %v13385_v44 = vadd.f32 %v17623_v51, %v22803_v18  ;;  %v13186_v52 = vpop.f32.mrb[49].mxu1 }
 0xa97   :  { %13510 = vst.msk [vmem:[%s23130_s5 + $0x170] sm:$0xff] %vm6788_vm2, %v13446_v50  ;;  %v13384_v7 = vadd.f32 %v22803_v18, %v13186_v52 }
 0xa98   :  { %v13449_v62 = vmax.f32 %v13385_v44, 0.0 }
 0xa99   :  { %v13448_v4 = vmax.f32 %v13384_v7, 0.0  ;;  %v17626_v54 = vpop.f32.mrb[50].mxu1 }
 0xa9a   :  { %13513 = vst.msk [vmem:[%s23130_s5 + $0x188] sm:$0xff] %vm6788_vm2, %v13449_v62  ;;  %v13387_v57 = vadd.f32 %v17626_v54, %v22803_v18  ;;  %v13196_v61 = vpop.f32.mrb[51].mxu1 }
 0xa9b   :  { %13512 = vst.msk [vmem:[%s23130_s5 + $0x180] sm:$0xff] %vm6788_vm2, %v13448_v4  ;;  %v13386_v59 = vadd.f32 %v22803_v18, %v13196_v61 }
 0xa9c   :  { %v13451_v33 = vmax.f32 %v13387_v57, 0.0 }
 0xa9d   :  { %v13450_v15 = vmax.f32 %v13386_v59, 0.0  ;;  %v17629_v63 = vpop.f32.mrb[52].mxu1 }
 0xa9e   :  { %13515 = vst.msk [vmem:[%s23130_s5 + $0x198] sm:$0xff] %vm6788_vm2, %v13451_v33  ;;  %v13389_v48 = vadd.f32 %v17629_v63, %v22803_v18  ;;  %v13206_v8 = vpop.f32.mrb[53].mxu1 }
 0xa9f   :  { %13514 = vst.msk [vmem:[%s23130_s5 + $0x190] sm:$0xff] %vm6788_vm2, %v13450_v15  ;;  %v13388_v19 = vadd.f32 %v22803_v18, %v13206_v8 }
 0xaa0   :  { %v13453_v58 = vmax.f32 %v13389_v48, 0.0 }
 0xaa1   :  { %v13452_v60 = vmax.f32 %v13388_v19, 0.0  ;;  %v17632_v9 = vpop.f32.mrb[54].mxu1 }
 0xaa2   :  { %13517 = vst.msk [vmem:[%s23130_s5 + $0x1a8] sm:$0xff] %vm6788_vm2, %v13453_v58  ;;  %v13391_v21 = vadd.f32 %v17632_v9, %v22803_v18  ;;  %v13216_v53 = vpop.f32.mrb[55].mxu1 }
 0xaa3   :  { %13516 = vst.msk [vmem:[%s23130_s5 + $0x1a0] sm:$0xff] %vm6788_vm2, %v13452_v60  ;;  %v13390_v43 = vadd.f32 %v22803_v18, %v13216_v53 }
 0xaa4   :  { %v13455_v31 = vmax.f32 %v13391_v21, 0.0 }
 0xaa5   :  { %v13454_v0 = vmax.f32 %v13390_v43, 0.0  ;;  %v17635_v55 = vpop.f32.mrb[56].mxu1 }
 0xaa6   :  { %13519 = vst.msk [vmem:[%s23130_s5 + $0x1b8] sm:$0xff] %vm6788_vm2, %v13455_v31  ;;  %v13393_v23 = vadd.f32 %v17635_v55, %v22803_v18  ;;  %v13226_v28 = vpop.f32.mrb[57].mxu1 }
 0xaa7   :  { %13518 = vst.msk [vmem:[%s23130_s5 + $0x1b0] sm:$0xff] %vm6788_vm2, %v13454_v0  ;;  %v13392_v56 = vadd.f32 %v22803_v18, %v13226_v28 }
 0xaa8   :  { %v13457_v39 = vmax.f32 %v13393_v23, 0.0 }
 0xaa9   :  { %v13456_v46 = vmax.f32 %v13392_v56, 0.0  ;;  %v17638_v2 = vpop.f32.mrb[58].mxu1 }
 0xaaa   :  { %13521 = vst.msk [vmem:[%s23130_s5 + $0x1c8] sm:$0xff] %vm6788_vm2, %v13457_v39  ;;  %v13395_v5 = vadd.f32 %v17638_v2, %v22803_v18  ;;  %v13236_v12 = vpop.f32.mrb[59].mxu1 }
 0xaab   :  { %13520 = vst.msk [vmem:[%s23130_s5 + $0x1c0] sm:$0xff] %vm6788_vm2, %v13456_v46  ;;  %v13394_v47 = vadd.f32 %v22803_v18, %v13236_v12 }
 0xaac   :  { %v13459_v1 = vmax.f32 %v13395_v5, 0.0 }
 0xaad   :  { %v13458_v37 = vmax.f32 %v13394_v47, 0.0  ;;  %v17641_v3 = vpop.f32.mrb[60].mxu1 }
 0xaae   :  { %13523 = vst.msk [vmem:[%s23130_s5 + $0x1d8] sm:$0xff] %vm6788_vm2, %v13459_v1  ;;  %v13397_v34 = vadd.f32 %v17641_v3, %v22803_v18  ;;  %v13246_v6 = vpop.f32.mrb[61].mxu1 }
 0xaaf   :  { %13522 = vst.msk [vmem:[%s23130_s5 + $0x1d0] sm:$0xff] %vm6788_vm2, %v13458_v37  ;;  %v13396_v10 = vadd.f32 %v22803_v18, %v13246_v6 }
 0xab0   :  { %v13461_v13 = vmax.f32 %v13397_v34, 0.0 }
 0xab1   :  { %v13460_v14 = vmax.f32 %v13396_v10, 0.0  ;;  %v17644_v16 = vpop.f32.mrb[62].mxu1 }
 0xab2   :  { %13525 = vst.msk [vmem:[%s23130_s5 + $0x1e8] sm:$0xff] %vm6788_vm2, %v13461_v13  ;;  %v13399_v17 = vadd.f32 %v17644_v16, %v22803_v18  ;;  %v13256_v22 = vpop.f32.mrb[63].mxu1 }
 0xab3   :  { %13524 = vst.msk [vmem:[%s23130_s5 + $0x1e0] sm:$0xff] %vm6788_vm2, %v13460_v14  ;;  %v13398_v20 = vadd.f32 %v22803_v18, %v13256_v22 }
 0xab4   :  { %v13463_v24 = vmax.f32 %v13399_v17, 0.0 }
 0xab5   :  { %v13462_v25 = vmax.f32 %v13398_v20, 0.0 }
 0xab6   :  { %13527 = vst.msk [vmem:[%s23130_s5 + $0x1f8] sm:$0xff] %vm6788_vm2, %v13463_v24 }
 0xab7   :  { %13526 = vst.msk [vmem:[%s23130_s5 + $0x1f0] sm:$0xff] %vm6788_vm2, %v13462_v25 }

</bundles_post_ra>
